<compile_context>
chip_gen: v5e
topology: v5e:2x2
jax: 0.10.0
libtpu: 0.0.40
codegen_flags: <defaults>
</compile_context>

<pallas_src>
import functools

import jax
import jax.numpy as jnp
from jax import lax
from jax.experimental import pallas as pl
from jax.experimental.pallas import tpu as pltpu

FILTERS = 5
K = 5
FC1 = 50
IN = 28
OUT = IN - K + 1          # 24
P = OUT * OUT             # 576
FLAT = P * FILTERS        # 2880
NCLASS = 10
PIX = IN * IN             # 784

BATCH_TILE = 256          # per-step batch tile (sublanes); fills the 256-wide MXU on v6e/v7x
MXU_DTYPE = jnp.bfloat16  # MXU operand dtype; accumulation is always f32.  Set jnp.float32
                          # for bit-closer parity with the PyTorch reference (slower on MXU).


def cff_kernel(x_ref, wc_ref, w1_ref, w2_ref, out_ref):
    """x_ref: (bt, 784) f32 input tile (batch in sublanes);
    wc_ref: (784, 2880) structured conv matrix; w1_ref: (2880, 50); w2_ref: (50, 10);
    out_ref: (bt, 10) f32 log-probabilities.  All three layers are MXU matmuls."""
    x = x_ref[...].astype(wc_ref.dtype)

    # conv (as structured matmul) + ReLU  -> (bt, 2880), rows already in
    # PyTorch's .view(-1, 2880) order (f*576 + oh*24 + ow).
    h1 = jnp.maximum(
        jnp.dot(x, wc_ref[...], preferred_element_type=jnp.float32), 0.0)

    # fc1 + ReLU  -> (bt, 50)
    h2 = jnp.maximum(
        jnp.dot(h1.astype(w1_ref.dtype), w1_ref[...],
                preferred_element_type=jnp.float32), 0.0)

    # fc2  -> (bt, 10)
    y = jnp.dot(h2.astype(w2_ref.dtype), w2_ref[...],
                preferred_element_type=jnp.float32)

    # log_softmax over classes (lane axis; 10 valid lanes), in f32.
    m = jnp.max(y, axis=1, keepdims=True)
    s = y - m
    lse = jnp.log(jnp.sum(jnp.exp(s), axis=1, keepdims=True))
    out_ref[...] = s - lse


def prepare_params(conv_w, fc1_w, fc2_w, dtype=MXU_DTYPE):
    """One-time (parameter-load-time) preprocessing; keep out of the forward path.

    Builds the structured (784, 2880) conv matrix so the conv runs on the MXU,
    pre-transposes fc weights to (in, out) for the batch-in-sublanes layout, and
    stores everything in the MXU dtype (bf16 by default)."""
    cw = conv_w.reshape(FILTERS, K, K).astype(jnp.float32)
    f, oh, ow, kh, kw = jnp.meshgrid(
        jnp.arange(FILTERS), jnp.arange(OUT), jnp.arange(OUT),
        jnp.arange(K), jnp.arange(K), indexing="ij")
    out_idx = f * P + oh * OUT + ow                 # matches PyTorch's .view(-1, 2880)
    in_idx = (oh + kh) * IN + (ow + kw)             # cross-correlation (PyTorch conv2d)
    vals = cw[f, kh, kw]
    wc_mat = jnp.zeros((PIX, FLAT), jnp.float32).at[
        in_idx.ravel(), out_idx.ravel()].set(vals.ravel())
    return (wc_mat.astype(dtype),
            fc1_w.astype(jnp.float32).T.astype(dtype),   # (2880, 50)
            fc2_w.astype(jnp.float32).T.astype(dtype))   # (50, 10)


def _round_up(n, m):
    return ((n + m - 1) // m) * m


def _batch_tile(B):
    if B > BATCH_TILE:
        return BATCH_TILE
    if B > 16:
        # >=2 grid steps so dimension_semantics=("parallel",) can feed both
        # TensorCores on v7x for mid-size batches.
        return _round_up((B + 1) // 2, 8)
    return _round_up(B, 8)


@jax.jit
def cff_forward(x, wc_mat, w1_t, w2_t):
    """x: (B, 1, 28, 28); wc_mat: (784, 2880); w1_t: (2880, 50); w2_t: (50, 10)."""
    B = x.shape[0]
    x_flat = x.reshape(B, PIX).astype(jnp.float32)   # free reshape, no relayout pass
    bt = _batch_tile(B)
    b_pad = _round_up(B, bt)
    if b_pad != B:
        x_flat = jnp.pad(x_flat, ((0, b_pad - B), (0, 0)))

    out = pl.pallas_call(
        cff_kernel,
        out_shape=jax.ShapeDtypeStruct((b_pad, NCLASS), jnp.float32),
        grid=(b_pad // bt,),
        in_specs=[
            pl.BlockSpec((bt, PIX), lambda i: (i, 0)),      # input batch tile
            pl.BlockSpec((PIX, FLAT), lambda i: (0, 0)),    # conv-as-matrix, VMEM resident
            pl.BlockSpec((FLAT, FC1), lambda i: (0, 0)),    # fc1 (in, out), VMEM resident
            pl.BlockSpec((FC1, NCLASS), lambda i: (0, 0)),  # fc2 (in, out), VMEM resident
        ],
        out_specs=pl.BlockSpec((bt, NCLASS), lambda i: (i, 0)),
        compiler_params=pltpu.CompilerParams(
            dimension_semantics=("parallel",),              # batch tiles shard across TCs (v7x)
            vmem_limit_bytes=32 * 1024 * 1024,              # working set ~17-20 MiB at bt=256
        ),
    )(x_flat, wc_mat, w1_t, w2_t)

    return out[:B]                                          # (B, NCLASS)


def cff_reference(x, conv_w, fc1_w, fc2_w):
    # Independent pure-JAX reference (mirrors the PyTorch forward exactly; all layers bias=False).
    h1m = lax.conv_general_dilated(
        x.astype(jnp.float32), conv_w, window_strides=(1, 1), padding="VALID",
        dimension_numbers=("NCHW", "OIHW", "NCHW"))
    h1m = jnp.maximum(h1m, 0.0)
    h1 = h1m.reshape(x.shape[0], FLAT)
    h2 = jnp.maximum(h1 @ fc1_w.T, 0.0)
    y = h2 @ fc2_w.T
    return jax.nn.log_softmax(y, axis=1)


# TODO(synk): hiddens=True auxiliary outputs and the dionysus/networkx filtration
# methods are analysis-only code paths and are not part of this forward kernel.


if __name__ == "__main__":
    key = jax.random.PRNGKey(0)
    k1, k2, k3, kx = jax.random.split(key, 4)
    # Deterministic PyTorch-style uniform init: U(-1/sqrt(fan_in), 1/sqrt(fan_in))
    b1 = 1.0 / (K * K) ** 0.5
    b2 = 1.0 / FLAT ** 0.5
    b3 = 1.0 / FC1 ** 0.5
    conv_w = jax.random.uniform(k1, (FILTERS, 1, K, K), jnp.float32, -b1, b1)
    fc1_w = jax.random.uniform(k2, (FC1, FLAT), jnp.float32, -b2, b2)
    fc2_w = jax.random.uniform(k3, (NCLASS, FC1), jnp.float32, -b3, b3)

    B = 2
    x = jax.random.normal(kx, (B, 1, IN, IN), jnp.float32)

    params = prepare_params(conv_w, fc1_w, fc2_w)   # one-time weight prep (hoisted)
    out = jax.block_until_ready(cff_forward(x, *params))
    ref = jax.block_until_ready(cff_reference(x, conv_w, fc1_w, fc2_w))

    assert out.shape == (B, NCLASS)
    max_err = float(jnp.max(jnp.abs(out - ref)))
    assert jnp.allclose(out, ref, atol=1e-2, rtol=1e-2), max_err
    print("KERNEL_OK")
</pallas_src>

<mosaic_0001>
module attributes {stable_mosaic.version = 11 : i64} {
  func.func @cff_kernel(%arg0: i32, %arg1: memref<8x784xf32, #tpu.memory_space<vmem>>, %arg2: memref<784x2880xbf16, #tpu.memory_space<vmem>>, %arg3: memref<2880x50xbf16, #tpu.memory_space<vmem>>, %arg4: memref<50x10xbf16, #tpu.memory_space<vmem>>, %arg5: memref<8x10xf32, #tpu.memory_space<vmem>>) attributes {dimension_semantics = [#tpu.dimension_semantics<parallel>], iteration_bounds = array<i64: 1>, scalar_prefetch = 0 : i64, scratch_operands = 0 : i64, tpu.core_type = #tpu.core_type<tc>, window_params = [{transform_indices = @transform_0, window_bounds = array<i64: 8, 784>}, {pipeline_mode = #tpu.pipeline_mode<synchronous>, transform_indices = @transform_1, window_bounds = array<i64: 784, 2880>}, {pipeline_mode = #tpu.pipeline_mode<synchronous>, transform_indices = @transform_2, window_bounds = array<i64: 2880, 50>}, {pipeline_mode = #tpu.pipeline_mode<synchronous>, transform_indices = @transform_3, window_bounds = array<i64: 50, 10>}, {transform_indices = @transform_4, window_bounds = array<i64: 8, 10>}]} {
    %c0 = arith.constant 0 : index
    %c0_0 = arith.constant 0 : index
    %0 = vector.load %arg1[%c0, %c0_0] : memref<8x784xf32, #tpu.memory_space<vmem>>, vector<8x784xf32>
    %1 = arith.truncf %0 : vector<8x784xf32> to vector<8x784xbf16>
    %c0_1 = arith.constant 0 : index
    %c0_2 = arith.constant 0 : index
    %2 = vector.load %arg2[%c0_1, %c0_2] : memref<784x2880xbf16, #tpu.memory_space<vmem>>, vector<784x2880xbf16>
    %cst = arith.constant dense<0.000000e+00> : vector<8x2880xf32>
    %3 = tpu.matmul %1, %2, %cst {dimension_numbers = #tpu.dot_dimension_numbers<[1], [0], [0], [1], [0, 0, 1, 1], [], []>} : vector<8x784xbf16>, vector<784x2880xbf16>, vector<8x2880xf32> -> vector<8x2880xf32>
    %cst_3 = arith.constant 0.000000e+00 : f32
    %4 = vector.broadcast %cst_3 : f32 to vector<8x2880xf32>
    %5 = arith.maximumf %3, %4 : vector<8x2880xf32>
    %6 = arith.truncf %5 : vector<8x2880xf32> to vector<8x2880xbf16>
    %c0_4 = arith.constant 0 : index
    %c0_5 = arith.constant 0 : index
    %7 = vector.load %arg3[%c0_4, %c0_5] : memref<2880x50xbf16, #tpu.memory_space<vmem>>, vector<2880x50xbf16>
    %cst_6 = arith.constant dense<0.000000e+00> : vector<8x50xf32>
    %8 = tpu.matmul %6, %7, %cst_6 {dimension_numbers = #tpu.dot_dimension_numbers<[1], [0], [0], [1], [0, 0, 1, 1], [], []>} : vector<8x2880xbf16>, vector<2880x50xbf16>, vector<8x50xf32> -> vector<8x50xf32>
    %cst_7 = arith.constant 0.000000e+00 : f32
    %9 = vector.broadcast %cst_7 : f32 to vector<8x50xf32>
    %10 = arith.maximumf %8, %9 : vector<8x50xf32>
    %11 = arith.truncf %10 : vector<8x50xf32> to vector<8x50xbf16>
    %c0_8 = arith.constant 0 : index
    %c0_9 = arith.constant 0 : index
    %12 = vector.load %arg4[%c0_8, %c0_9] : memref<50x10xbf16, #tpu.memory_space<vmem>>, vector<50x10xbf16>
    %cst_10 = arith.constant dense<0.000000e+00> : vector<8x10xf32>
    %13 = tpu.matmul %11, %12, %cst_10 {dimension_numbers = #tpu.dot_dimension_numbers<[1], [0], [0], [1], [0, 0, 1, 1], [], []>} : vector<8x50xbf16>, vector<50x10xbf16>, vector<8x10xf32> -> vector<8x10xf32>
    %cst_11 = arith.constant dense<0xFF800000> : vector<8xf32>
    %14 = vector.multi_reduction <maximumf>, %13, %cst_11 [1] : vector<8x10xf32> to vector<8xf32>
    %15 = vector.shape_cast %14 : vector<8xf32> to vector<8x1xf32>
    %16 = vector.broadcast %15 : vector<8x1xf32> to vector<8x10xf32>
    %17 = arith.subf %13, %16 : vector<8x10xf32>
    %18 = math.exp %17 : vector<8x10xf32>
    %cst_12 = arith.constant dense<0.000000e+00> : vector<8xf32>
    %19 = vector.multi_reduction <add>, %18, %cst_12 [1] : vector<8x10xf32> to vector<8xf32>
    %20 = vector.shape_cast %19 : vector<8xf32> to vector<8x1xf32>
    %21 = math.log %20 : vector<8x1xf32>
    %22 = vector.broadcast %21 : vector<8x1xf32> to vector<8x10xf32>
    %23 = arith.subf %17, %22 : vector<8x10xf32>
    %c0_13 = arith.constant 0 : index
    %c0_14 = arith.constant 0 : index
    %24 = vector.load %arg5[%c0_13, %c0_14] : memref<8x10xf32, #tpu.memory_space<vmem>>, vector<8x10xf32>
    tpu.vector_store %arg5[%c0_13, %c0_14], %23 {strides = array<i32>} : memref<8x10xf32, #tpu.memory_space<vmem>>, vector<8x10xf32>,
    return
  }
  func.func @transform_0(%arg0: i32) -> (i32, i32) {
    %c0_i32 = arith.constant 0 : i32
    %c0_i32_0 = arith.constant 0 : i32
    return %arg0, %c0_i32 : i32, i32
  }
  func.func @transform_1(%arg0: i32) -> (i32, i32) {
    %c0_i32 = arith.constant 0 : i32
    %c0_i32_0 = arith.constant 0 : i32
    %c0_i32_1 = arith.constant 0 : i32
    return %c0_i32, %c0_i32_0 : i32, i32
  }
  func.func @transform_2(%arg0: i32) -> (i32, i32) {
    %c0_i32 = arith.constant 0 : i32
    %c0_i32_0 = arith.constant 0 : i32
    %c0_i32_1 = arith.constant 0 : i32
    return %c0_i32, %c0_i32_0 : i32, i32
  }
  func.func @transform_3(%arg0: i32) -> (i32, i32) {
    %c0_i32 = arith.constant 0 : i32
    %c0_i32_0 = arith.constant 0 : i32
    %c0_i32_1 = arith.constant 0 : i32
    return %c0_i32, %c0_i32_0 : i32, i32
  }
  func.func @transform_4(%arg0: i32) -> (i32, i32) {
    %c0_i32 = arith.constant 0 : i32
    %c0_i32_0 = arith.constant 0 : i32
    return %arg0, %c0_i32 : i32, i32
  }
}

</mosaic_0001>

<bundles_post_ra>
// kernel: cff_forward.1
= control target key start
LH: loop header
LB: loop body
LE: loop exit
PB: predicated region body
PF: predicated region fallthrough
CT: control target
= control target key end

     0   :  { %9 = vsyncpa [#allocation3], 0  ;;  %s17472_s18 = smov [#allocation2]   ;;  %s17473_s20 = smov 1472   ;;  %s18460_s0 = inlined_call_operand.vmem [shape: f32[8,784], index: 0, kind: input, shape index: {}]   ;;  %s18461_s1 = inlined_call_operand.hbm [shape: bf16[784,2880], index: 1, kind: input, shape index: {}]   ;;  %s18462_s2 = inlined_call_operand.vmem [shape: bf16[2880,50], index: 2, kind: input, shape index: {}]   ;;  %s18463_s3 = inlined_call_operand.vmem [shape: bf16[50,10], index: 3, kind: input, shape index: {}]   ;;  %s18464_s4 = inlined_call_operand.vmem [shape: f32[8,10], index: 4, kind: output, shape index: {}]  }
   0x1   :  { %s16_s17 = sshll.u32 %s18461_s1, 4  ;;  %s18_s19 = sshll.u32 %s17472_s18, 4  ;;  %s17_s17 = int_to_ptr.hbm [resolvable:$true] %s16_s17  ;;  %s19_s19 = int_to_ptr.vmem [resolvable:$true] %s18_s19 }
   0x2   :  { %s17474_s21 = smov 92  }
   0x3   :  { %24 = dma.hbm_to_vmem [thread:$0]  %s17_s17, 144256, %s19_s19, [#allocation3], %s17473_s20, %s17473_s20, %s17474_s21  }
   0x4   :  { %17470 = dma.done.wait [#allocation3], 144256  }
   0x5   :  { %17471 = vsyncadd [#allocation3], 4294823040  ;;  %v11510_v0 = vld [vmem:[#allocation2 + $0x508] sm:$0xf]  ;;  %v16301_v1 = vld [vmem:[#allocation2 + $0x560] sm:$0xf0] }
   0x6   :  { %v12246_v2 = vld [vmem:[#allocation2 + $0xac8] sm:$0xf]  ;;  %v11511_v3 = vor.u32 %v16301_v1, %v11510_v0  ;;  %v16485_v4 = vld [vmem:[#allocation2 + $0xb20] sm:$0xf0]  ;;  %v11418_v11 = vld [vmem:[#allocation2 + $0x450] sm:$0xf] }
   0x7   :  { %v12982_v5 = vld [vmem:[#allocation2 + $0x1088] sm:$0xf]  ;;  %v16669_v6 = vld [vmem:[#allocation2 + $0x10e0] sm:$0xf0]  ;;  %v12247_v7 = vor.u32 %v16485_v4, %v12246_v2  ;;  %v16278_v13 = vld [vmem:[#allocation2 + $0x4a8] sm:$0xf0] }
   0x8   :  { %v12983_v8 = vor.u32 %v16669_v6, %v12982_v5  ;;  %v13718_v9 = vld [vmem:[#allocation2 + $0x1648] sm:$0xf]  ;;  %v16853_v10 = vld [vmem:[#allocation2 + $0x16a0] sm:$0xf0]  ;;  %6912 = vmatpush.bf16.msra.mxu0 %v11511_v3  ;;  %v12154_v14 = vld [vmem:[#allocation2 + $0xa10] sm:$0xf]  ;;  %v11419_v16 = vor.u32 %v16278_v13, %v11418_v11 }
   0x9   :  { %v13719_v12 = vor.u32 %v16853_v10, %v13718_v9  ;;  %v16462_v15 = vld [vmem:[#allocation2 + $0xa68] sm:$0xf0]  ;;  %6925 = vmatpush.bf16.msra.mxu1 %v12247_v7  ;;  %v12890_v18 = vld [vmem:[#allocation2 + $0xfd0] sm:$0xf]  ;;  %v11326_v23 = vld [vmem:[#allocation2 + $0x398] sm:$0xf] }
   0xa   :  { %6938 = vmatpush.bf16.msra.mxu2 %v12983_v8  ;;  %v12155_v17 = vor.u32 %v16462_v15, %v12154_v14  ;;  %v16646_v19 = vld [vmem:[#allocation2 + $0x1028] sm:$0xf0]  ;;  %v13626_v20 = vld [vmem:[#allocation2 + $0x1590] sm:$0xf]  ;;  %v16255_v24 = vld [vmem:[#allocation2 + $0x3f0] sm:$0xf0] }
   0xb   :  { %6951 = vmatpush.bf16.msra.mxu3 %v13719_v12  ;;  %v12891_v21 = vor.u32 %v16646_v19, %v12890_v18  ;;  %v16830_v22 = vld [vmem:[#allocation2 + $0x15e8] sm:$0xf0]  ;;  %v12062_v26 = vld [vmem:[#allocation2 + $0x958] sm:$0xf]  ;;  %v16439_v27 = vld [vmem:[#allocation2 + $0x9b0] sm:$0xf0]  ;;  %v11327_v29 = vor.u32 %v16255_v24, %v11326_v23 }
   0xc   :  { %v13627_v25 = vor.u32 %v16830_v22, %v13626_v20  ;;  %v12798_v28 = vld [vmem:[#allocation2 + $0xf18] sm:$0xf]  ;;  %6913 = vmatpush.bf16.msra.mxu0 %v11419_v16  ;;  %v16623_v30 = vld [vmem:[#allocation2 + $0xf70] sm:$0xf0]  ;;  %v12063_v33 = vor.u32 %v16439_v27, %v12062_v26  ;;  %v11234_v35 = vld [vmem:[#allocation2 + $0x2e0] sm:$0xf] }
   0xd   :  { %v13534_v31 = vld [vmem:[#allocation2 + $0x14d8] sm:$0xf]  ;;  %v16807_v32 = vld [vmem:[#allocation2 + $0x1530] sm:$0xf0]  ;;  %6926 = vmatpush.bf16.msra.mxu1 %v12155_v17  ;;  %v12799_v34 = vor.u32 %v16623_v30, %v12798_v28  ;;  %v16232_v36 = vld [vmem:[#allocation2 + $0x338] sm:$0xf0] }
   0xe   :  { %6939 = vmatpush.bf16.msra.mxu2 %v12891_v21  ;;  %v11970_v37 = vld [vmem:[#allocation2 + $0x8a0] sm:$0xf]  ;;  %v13535_v38 = vor.u32 %v16807_v32, %v13534_v31  ;;  %v16416_v39 = vld [vmem:[#allocation2 + $0x8f8] sm:$0xf0]  ;;  %v11235_v44 = vor.u32 %v16232_v36, %v11234_v35  ;;  %v11142_v47 = vld [vmem:[#allocation2 + $0x228] sm:$0xf] }
   0xf   :  { %6952 = vmatpush.bf16.msra.mxu3 %v13627_v25  ;;  %v12706_v40 = vld [vmem:[#allocation2 + $0xe60] sm:$0xf]  ;;  %v16600_v41 = vld [vmem:[#allocation2 + $0xeb8] sm:$0xf0]  ;;  %v11971_v45 = vor.u32 %v16416_v39, %v11970_v37  ;;  %v16209_v48 = vld [vmem:[#allocation2 + $0x280] sm:$0xf0] }
  0x10   :  { %v13442_v42 = vld [vmem:[#allocation2 + $0x1420] sm:$0xf]  ;;  %v16784_v43 = vld [vmem:[#allocation2 + $0x1478] sm:$0xf0]  ;;  %6914 = vmatpush.bf16.msra.mxu0 %v11327_v29  ;;  %v12707_v46 = vor.u32 %v16600_v41, %v12706_v40  ;;  %v11878_v49 = vld [vmem:[#allocation2 + $0x7e8] sm:$0xf]  ;;  %v11143_v56 = vor.u32 %v16209_v48, %v11142_v47 }
  0x11   :  { %6927 = vmatpush.bf16.msra.mxu1 %v12063_v33  ;;  %v13443_v50 = vor.u32 %v16784_v43, %v13442_v42  ;;  %v16393_v51 = vld [vmem:[#allocation2 + $0x840] sm:$0xf0]  ;;  %v12614_v52 = vld [vmem:[#allocation2 + $0xda8] sm:$0xf]  ;;  %v11050_v59 = vld [vmem:[#allocation2 + $0x170] sm:$0xf] }
  0x12   :  { %6940 = vmatpush.bf16.msra.mxu2 %v12799_v34  ;;  %v16577_v53 = vld [vmem:[#allocation2 + $0xe00] sm:$0xf0]  ;;  %v13350_v54 = vld [vmem:[#allocation2 + $0x1368] sm:$0xf]  ;;  %v11879_v57 = vor.u32 %v16393_v51, %v11878_v49  ;;  %v16186_v60 = vld [vmem:[#allocation2 + $0x1c8] sm:$0xf0] }
  0x13   :  { %6953 = vmatpush.bf16.msra.mxu3 %v13535_v38  ;;  %v16761_v55 = vld [vmem:[#allocation2 + $0x13c0] sm:$0xf0]  ;;  %v12615_v58 = vor.u32 %v16577_v53, %v12614_v52  ;;  %v11786_v61 = vld [vmem:[#allocation2 + $0x730] sm:$0xf]  ;;  %v16370_v63 = vld [vmem:[#allocation2 + $0x788] sm:$0xf0]  ;;  %v11051_v4 = vor.u32 %v16186_v60, %v11050_v59 }
  0x14   :  { %6915 = vmatpush.bf16.msra.mxu0 %v11235_v44  ;;  %v13351_v62 = vor.u32 %v16761_v55, %v13350_v54  ;;  %v12522_v0 = vld [vmem:[#allocation2 + $0xcf0] sm:$0xf]  ;;  %v16554_v1 = vld [vmem:[#allocation2 + $0xd48] sm:$0xf0]  ;;  %v11787_v5 = vor.u32 %v16370_v63, %v11786_v61  ;;  %v10958_v7 = vld [vmem:[#allocation2 + $0xb8] sm:$0xf] }
  0x15   :  { %6928 = vmatpush.bf16.msra.mxu1 %v11971_v45  ;;  %v13258_v2 = vld [vmem:[#allocation2 + $0x12b0] sm:$0xf]  ;;  %v16738_v3 = vld [vmem:[#allocation2 + $0x1308] sm:$0xf0]  ;;  %v12523_v6 = vor.u32 %v16554_v1, %v12522_v0  ;;  %v16163_v8 = vld [vmem:[#allocation2 + $0x110] sm:$0xf0] }
  0x16   :  { %6941 = vmatpush.bf16.msra.mxu2 %v12707_v46  ;;  %v11694_v9 = vld [vmem:[#allocation2 + $0x678] sm:$0xf]  ;;  %v13259_v10 = vor.u32 %v16738_v3, %v13258_v2  ;;  %v16347_v11 = vld [vmem:[#allocation2 + $0x6d0] sm:$0xf0]  ;;  %v10959_v16 = vor.u32 %v16163_v8, %v10958_v7  ;;  %v10866_v17 = vld [vmem:[#allocation2] sm:$0xf] }
  0x17   :  { %6954 = vmatpush.bf16.msra.mxu3 %v13443_v50  ;;  %v12430_v12 = vld [vmem:[#allocation2 + $0xc38] sm:$0xf]  ;;  %v16531_v13 = vld [vmem:[#allocation2 + $0xc90] sm:$0xf0]  ;;  %v16140_v18 = vld [vmem:[#allocation2 + $0x58] sm:$0xf0]  ;;  %v11695_v20 = vor.u32 %v16347_v11, %v11694_v9 }
  0x18   :  { %6916 = vmatpush.bf16.msra.mxu0 %v11143_v56  ;;  %v13166_v14 = vld [vmem:[#allocation2 + $0x11f8] sm:$0xf]  ;;  %v16715_v15 = vld [vmem:[#allocation2 + $0x1250] sm:$0xf0]  ;;  %v11602_v19 = vld [vmem:[#allocation2 + $0x5c0] sm:$0xf]  ;;  %v12431_v21 = vor.u32 %v16531_v13, %v12430_v12  ;;  %v10867_v32 = vor.u32 %v16140_v18, %v10866_v17 }
  0x19   :  { %6929 = vmatpush.bf16.msra.mxu1 %v11879_v57  ;;  %v16324_v22 = vld [vmem:[#allocation2 + $0x618] sm:$0xf0]  ;;  %v12338_v23 = vld [vmem:[#allocation2 + $0xb80] sm:$0xf]  ;;  %v13167_v25 = vor.u32 %v16715_v15, %v13166_v14  ;;  %v14454_v28 = vld [vmem:[#allocation2 + $0x1c08] sm:$0xf] }
  0x1a   :  { %6942 = vmatpush.bf16.msra.mxu2 %v12615_v58  ;;  %v16508_v24 = vld [vmem:[#allocation2 + $0xbd8] sm:$0xf0]  ;;  %v13074_v26 = vld [vmem:[#allocation2 + $0x1140] sm:$0xf]  ;;  %v17037_v29 = vld [vmem:[#allocation2 + $0x1c60] sm:$0xf0]  ;;  %v11603_v36 = vor.u32 %v16324_v22, %v11602_v19 }
  0x1b   :  { %6955 = vmatpush.bf16.msra.mxu3 %v13351_v62  ;;  %v16692_v27 = vld [vmem:[#allocation2 + $0x1198] sm:$0xf0]  ;;  %v15190_v30 = vld [vmem:[#allocation2 + $0x21c8] sm:$0xf]  ;;  %v17221_v31 = vld [vmem:[#allocation2 + $0x2220] sm:$0xf0]  ;;  %v12339_v37 = vor.u32 %v16508_v24, %v12338_v23  ;;  %v14455_v42 = vor.u32 %v17037_v29, %v14454_v28 }
  0x1c   :  { %6917 = vmatpush.bf16.msra.mxu0 %v11051_v4  ;;  %v16290_v33 = vld [vmem:[#allocation2 + $0x50c] sm:$0xf]  ;;  %v11512_v34 = vld [vmem:[#allocation2 + $0x564] sm:$0xf0]  ;;  %v36_v35 = vld [vmem:[%s18460_s0 + $0x10] sm:$0xff]  ;;  %v13075_v41 = vor.u32 %v16692_v27, %v13074_v26  ;;  %v15191_v46 = vor.u32 %v17221_v31, %v15190_v30  ;;  %vm6908_vm0 = vcmask 130048  }
  0x1d   :  { %6930 = vmatpush.bf16.msra.mxu1 %v11787_v5  ;;  %v15282_v38 = vld [vmem:[#allocation2 + $0x2280] sm:$0xf]  ;;  %v17244_v39 = vld [vmem:[#allocation2 + $0x22d8] sm:$0xf0]  ;;  %v16474_v40 = vld [vmem:[#allocation2 + $0xacc] sm:$0xf]  ;;  %v11515_v47 = vor.u32 %v16290_v33, %v11512_v34  ;;  %v17512_v51 = vpack.c.bf16 %v36_v35, %v36_v35 }
  0x1e   :  { %6943 = vmatpush.bf16.msra.mxu2 %v12523_v6  ;;  %v12248_v43 = vld [vmem:[#allocation2 + $0xb24] sm:$0xf0]  ;;  %v14362_v44 = vld [vmem:[#allocation2 + $0x1b50] sm:$0xf]  ;;  %v37_v45 = vld [vmem:[%s18460_s0 + $0x18] sm:$0xff]  ;;  %v15283_v56 = vor.u32 %v17244_v39, %v15282_v38  ;;  %vm10491_vm1 = vcmask 523264  }
  0x1f   :  { %6956 = vmatpush.bf16.msra.mxu3 %v13259_v10  ;;  %v17014_v48 = vld [vmem:[#allocation2 + $0x1ba8] sm:$0xf0]  ;;  %v15098_v49 = vld [vmem:[#allocation2 + $0x2110] sm:$0xf]  ;;  %v34_v50 = vld [vmem:[%s18460_s0] sm:$0xff]  ;;  %v17516_v57 = vpack.c.bf16 %v37_v45, %v37_v45  ;;  %v12251_v59 = vor.u32 %v16474_v40, %v12248_v43  ;;  %vm10828_vm2 = vcmask 1040384  }
  0x20   :  { %6918 = vmatpush.bf16.msra.mxu0 %v10959_v16  ;;  %v17198_v52 = vld [vmem:[#allocation2 + $0x2168] sm:$0xf0]  ;;  %v16267_v53 = vld [vmem:[#allocation2 + $0x454] sm:$0xf]  ;;  %v11420_v54 = vld [vmem:[#allocation2 + $0x4ac] sm:$0xf0]  ;;  %v17514_v55 = vpack.c.bf16 %v34_v50, %v34_v50  ;;  %v14363_v60 = vor.u32 %v17014_v48, %v14362_v44 }
  0x21   :  { %6931 = vmatpush.bf16.msra.mxu1 %v11695_v20  ;;  %v35_v58 = vld [vmem:[%s18460_s0 + $0x8] sm:$0xff]  ;;  %v16451_v61 = vld [vmem:[#allocation2 + $0xa14] sm:$0xf]  ;;  %v12156_v62 = vld [vmem:[#allocation2 + $0xa6c] sm:$0xf0]  ;;  %v15099_v63 = vor.u32 %v17198_v52, %v15098_v49  ;;  %v11423_v0 = vor.u32 %v16267_v53, %v11420_v54  ;;  %vm10824_vm3 = vcmask 408576  }
  0x22   :  { %6944 = vmatpush.bf16.msra.mxu2 %v12431_v21  ;;  %v14270_v1 = vld [vmem:[#allocation2 + $0x1a98] sm:$0xf]  ;;  %v16991_v2 = vld [vmem:[#allocation2 + $0x1af0] sm:$0xf0]  ;;  %v16244_v5 = vld [vmem:[#allocation2 + $0x39c] sm:$0xf]  ;;  %v17523_v7 = vpack.c.bf16 %v35_v58, %v35_v58  ;;  %v12159_v8 = vor.u32 %v16451_v61, %v12156_v62 }
  0x23   :  { %6957 = vmatpush.bf16.msra.mxu3 %v13167_v25  ;;  %v15006_v3 = vld [vmem:[#allocation2 + $0x2058] sm:$0xf]  ;;  %v17175_v4 = vld [vmem:[#allocation2 + $0x20b0] sm:$0xf0]  ;;  %v14271_v9 = vor.u32 %v16991_v2, %v14270_v1  ;;  %v16428_v10 = vld [vmem:[#allocation2 + $0x95c] sm:$0xf] }
  0x24   :  { %6919 = vmatpush.bf16.msra.mxu0 %v10867_v32  ;;  %v11328_v6 = vld [vmem:[#allocation2 + $0x3f4] sm:$0xf0]  ;;  %v15007_v12 = vor.u32 %v17175_v4, %v15006_v3  ;;  %v14178_v14 = vld [vmem:[#allocation2 + $0x19e0] sm:$0xf]  ;;  %v16968_v15 = vld [vmem:[#allocation2 + $0x1a38] sm:$0xf0] }
  0x25   :  { %6932 = vmatpush.bf16.msra.mxu1 %v11603_v36  ;;  %v12064_v11 = vld [vmem:[#allocation2 + $0x9b4] sm:$0xf0]  ;;  %v11331_v13 = vor.u32 %v16244_v5, %v11328_v6  ;;  %v14914_v16 = vld [vmem:[#allocation2 + $0x1fa0] sm:$0xf]  ;;  %v17152_v17 = vld [vmem:[#allocation2 + $0x1ff8] sm:$0xf0]  ;;  %v14179_v21 = vor.u32 %v16968_v15, %v14178_v14 }
  0x26   :  { %6945 = vmatpush.bf16.msra.mxu2 %v12339_v37  ;;  %v16221_v18 = vld [vmem:[#allocation2 + $0x2e4] sm:$0xf]  ;;  %v11236_v19 = vld [vmem:[#allocation2 + $0x33c] sm:$0xf0]  ;;  %v12067_v20 = vor.u32 %v16428_v10, %v12064_v11  ;;  %v14915_v24 = vor.u32 %v17152_v17, %v14914_v16  ;;  %v14086_v26 = vld [vmem:[#allocation2 + $0x1928] sm:$0xf] }
  0x27   :  { %6958 = vmatpush.bf16.msra.mxu3 %v13075_v41  ;;  %6920 = vmatmul.bf16.vlgmr.msra.gmra.mxu0 %v17514_v55  ;;  %v16405_v22 = vld [vmem:[#allocation2 + $0x8a4] sm:$0xf]  ;;  %v11972_v23 = vld [vmem:[#allocation2 + $0x8fc] sm:$0xf0]  ;;  %v11239_v25 = vor.u32 %v16221_v18, %v11236_v19  ;;  %v14822_v28 = vld [vmem:[#allocation2 + $0x1ee8] sm:$0xf] }
  0x28   :  { %6964 = vmatpush.bf16.msrb.mxu0 %v14455_v42  ;;  %6933 = vmatmul.bf16.vlgmr.msra.gmra.mxu1 %v17523_v7  ;;  %v16945_v27 = vld [vmem:[#allocation2 + $0x1980] sm:$0xf0]  ;;  %v16198_v30 = vld [vmem:[#allocation2 + $0x22c] sm:$0xf]  ;;  %v11144_v31 = vld [vmem:[#allocation2 + $0x284] sm:$0xf0]  ;;  %v11975_v33 = vor.u32 %v16405_v22, %v11972_v23 }
  0x29   :  { %6977 = vmatpush.bf16.msrb.mxu1 %v15191_v46  ;;  %6946 = vmatmul.bf16.vlgmr.msra.gmra.mxu2 %v17512_v51  ;;  %v17129_v29 = vld [vmem:[#allocation2 + $0x1f40] sm:$0xf0]  ;;  %v40_v32 = vld [vmem:[%s18460_s0 + $0x30] sm:$0xff]  ;;  %v14087_v34 = vor.u32 %v16945_v27, %v14086_v26  ;;  %v16382_v35 = vld [vmem:[#allocation2 + $0x7ec] sm:$0xf]  ;;  %v11147_v38 = vor.u32 %v16198_v30, %v11144_v31  ;;  %vm10845_vm4 = vcmask 80896  }
  0x2a   :  { %6997 = vmatpush.bf16.msrb.mxu2 %v15283_v56  ;;  %6959 = vmatmul.bf16.vlgmr.msra.gmra.mxu3 %v17516_v57  ;;  %v11880_v36 = vld [vmem:[#allocation2 + $0x844] sm:$0xf0]  ;;  %v14823_v37 = vor.u32 %v17129_v29, %v14822_v28  ;;  %v13994_v39 = vld [vmem:[#allocation2 + $0x1870] sm:$0xf]  ;;  %v16922_v40 = vld [vmem:[#allocation2 + $0x18c8] sm:$0xf0]  ;;  %v17530_v45 = vpack.c.bf16 %v40_v32, %v40_v32 }
  0x2b   :  { %7003 = vmatpush.bf16.msrb.mxu3 %v11515_v47  ;;  %v14730_v41 = vld [vmem:[#allocation2 + $0x1e30] sm:$0xf]  ;;  %v17106_v42 = vld [vmem:[#allocation2 + $0x1e88] sm:$0xf0]  ;;  %v16175_v43 = vld [vmem:[#allocation2 + $0x174] sm:$0xf]  ;;  %v11883_v46 = vor.u32 %v16382_v35, %v11880_v36  ;;  %v13995_v47 = vor.u32 %v16922_v40, %v13994_v39 }
  0x2c   :  { %6965 = vmatpush.bf16.msrb.mxu0 %v14363_v60  ;;  %v11052_v44 = vld [vmem:[#allocation2 + $0x1cc] sm:$0xf0]  ;;  %v16359_v48 = vld [vmem:[#allocation2 + $0x734] sm:$0xf]  ;;  %v14731_v50 = vor.u32 %v17106_v42, %v14730_v41  ;;  %v13902_v53 = vld [vmem:[#allocation2 + $0x17b8] sm:$0xf] }
  0x2d   :  { %6978 = vmatpush.bf16.msrb.mxu1 %v15099_v63  ;;  %v11788_v49 = vld [vmem:[#allocation2 + $0x78c] sm:$0xf0]  ;;  %v11055_v52 = vor.u32 %v16175_v43, %v11052_v44  ;;  %v16899_v54 = vld [vmem:[#allocation2 + $0x1810] sm:$0xf0]  ;;  %v14638_v56 = vld [vmem:[#allocation2 + $0x1d78] sm:$0xf] }
  0x2e   :  { %7016 = vmatpush.bf16.msra.mxu2 %v12251_v59  ;;  %v17083_v58 = vld [vmem:[#allocation2 + $0x1dd0] sm:$0xf0]  ;;  %v16152_v59 = vld [vmem:[#allocation2 + $0xbc] sm:$0xf]  ;;  %v10960_v60 = vld [vmem:[#allocation2 + $0x114] sm:$0xf0]  ;;  %v11791_v61 = vor.u32 %v16359_v48, %v11788_v49  ;;  %v13903_v62 = vor.u32 %v16899_v54, %v13902_v53 }
  0x2f   :  { %7004 = vmatpush.bf16.msrb.mxu3 %v11423_v0  ;;  %v16336_v63 = vld [vmem:[#allocation2 + $0x67c] sm:$0xf]  ;;  %v11696_v0 = vld [vmem:[#allocation2 + $0x6d4] sm:$0xf0]  ;;  %v13810_v1 = vld [vmem:[#allocation2 + $0x1700] sm:$0xf]  ;;  %v14639_v2 = vor.u32 %v17083_v58, %v14638_v56  ;;  %v10963_v3 = vor.u32 %v16152_v59, %v10960_v60 }
  0x30   :  { %6966 = vmatpush.bf16.msrb.mxu0 %v14271_v9  ;;  %v16876_v4 = vld [vmem:[#allocation2 + $0x1758] sm:$0xf0]  ;;  %v14546_v5 = vld [vmem:[#allocation2 + $0x1cc0] sm:$0xf]  ;;  %v16658_v10 = vld [vmem:[#allocation2 + $0x108c] sm:$0xf]  ;;  %v11699_v14 = vor.u32 %v16336_v63, %v11696_v0 }
  0x31   :  { %6979 = vmatpush.bf16.msrb.mxu1 %v15007_v12  ;;  %v17060_v6 = vld [vmem:[#allocation2 + $0x1d18] sm:$0xf0]  ;;  %v10868_v9 = vld [vmem:[#allocation2 + $0x5c] sm:$0xf0]  ;;  %v12984_v11 = vld [vmem:[#allocation2 + $0x10e4] sm:$0xf0]  ;;  %v13811_v15 = vor.u32 %v16876_v4, %v13810_v1 }
  0x32   :  { %7017 = vmatpush.bf16.msra.mxu2 %v12159_v8  ;;  %v16129_v8 = vld [vmem:[#allocation2 + $0x4] sm:$0xf]  ;;  %v16842_v12 = vld [vmem:[#allocation2 + $0x164c] sm:$0xf]  ;;  %v14456_v17 = vld [vmem:[#allocation2 + $0x1c64] sm:$0xf0]  ;;  %v14547_v19 = vor.u32 %v17060_v6, %v14546_v5 }
  0x33   :  { %7005 = vmatpush.bf16.msrb.mxu3 %v11331_v13  ;;  %v13720_v13 = vld [vmem:[#allocation2 + $0x16a4] sm:$0xf0]  ;;  %v17026_v16 = vld [vmem:[#allocation2 + $0x1c0c] sm:$0xf]  ;;  %v38_v18 = vld [vmem:[%s18460_s0 + $0x20] sm:$0xff] }
  0x34   :  { %6967 = vmatpush.bf16.msrb.mxu0 %v14179_v21  ;;  %v16313_v21 = vld [vmem:[#allocation2 + $0x5c4] sm:$0xf]  ;;  %v11604_v22 = vld [vmem:[#allocation2 + $0x61c] sm:$0xf0]  ;;  %v39_v23 = vld [vmem:[%s18460_s0 + $0x28] sm:$0xff]  ;;  %v14459_v29 = vor.u32 %v17026_v16, %v14456_v17  ;;  %v17540_v30 = vpack.c.bf16 %v38_v18, %v38_v18 }
  0x35   :  { %6980 = vmatpush.bf16.msrb.mxu1 %v14915_v24  ;;  %v12987_v24 = vor.u32 %v16658_v10, %v12984_v11  ;;  %v17210_v26 = vld [vmem:[#allocation2 + $0x21cc] sm:$0xf]  ;;  %v15192_v27 = vld [vmem:[#allocation2 + $0x2224] sm:$0xf0]  ;;  %v16635_v28 = vld [vmem:[#allocation2 + $0xfd4] sm:$0xf]  ;;  %v17542_v35 = vpack.c.bf16 %v39_v23, %v39_v23 }
  0x36   :  { %7018 = vmatpush.bf16.msra.mxu2 %v12067_v20  ;;  %v10871_v20 = vor.u32 %v16129_v8, %v10868_v9  ;;  %v12892_v31 = vld [vmem:[#allocation2 + $0x102c] sm:$0xf0]  ;;  %v16819_v32 = vld [vmem:[#allocation2 + $0x1594] sm:$0xf]  ;;  %v16612_v43 = vld [vmem:[#allocation2 + $0xf1c] sm:$0xf] }
  0x37   :  { %7006 = vmatpush.bf16.msrb.mxu3 %v11239_v25  ;;  %v13723_v25 = vor.u32 %v16842_v12, %v13720_v13  ;;  %v17003_v36 = vld [vmem:[#allocation2 + $0x1b54] sm:$0xf]  ;;  %v12895_v39 = vor.u32 %v16635_v28, %v12892_v31  ;;  %v15100_v42 = vld [vmem:[#allocation2 + $0x216c] sm:$0xf0]  ;;  %v13536_v48 = vld [vmem:[#allocation2 + $0x1534] sm:$0xf0] }
  0x38   :  { %6968 = vmatpush.bf16.msrb.mxu0 %v14087_v34  ;;  %v11607_v34 = vor.u32 %v16313_v21, %v11604_v22  ;;  %v17187_v41 = vld [vmem:[#allocation2 + $0x2114] sm:$0xf]  ;;  %v16980_v49 = vld [vmem:[#allocation2 + $0x1a9c] sm:$0xf]  ;;  %v15008_v58 = vld [vmem:[#allocation2 + $0x20b4] sm:$0xf0] }
  0x39   :  { %6981 = vmatpush.bf16.msrb.mxu1 %v14823_v37  ;;  %15372 = vmatmul.msk.bf16.vlgmr.msrb.gmra.mxu2 %vm6908_vm0, %v17530_v45  ;;  %v14364_v37 = vld [vmem:[#allocation2 + $0x1bac] sm:$0xf0]  ;;  %v17164_v56 = vld [vmem:[#allocation2 + $0x205c] sm:$0xf]  ;;  %v16589_v59 = vld [vmem:[#allocation2 + $0xe64] sm:$0xf] }
  0x3a   :  { %7019 = vmatpush.bf16.msra.mxu2 %v11975_v33  ;;  %v13628_v33 = vld [vmem:[#allocation2 + $0x15ec] sm:$0xf0]  ;;  %v14367_v44 = vor.u32 %v17003_v36, %v14364_v37  ;;  %v13444_v63 = vld [vmem:[#allocation2 + $0x147c] sm:$0xf0]  ;;  %v16957_v0 = vld [vmem:[#allocation2 + $0x19e4] sm:$0xf] }
  0x3b   :  { %7007 = vmatpush.bf16.msrb.mxu3 %v11147_v38  ;;  %v15195_v38 = vor.u32 %v17210_v26, %v15192_v27  ;;  %v13631_v40 = vor.u32 %v16819_v32, %v13628_v33  ;;  %v14180_v1 = vld [vmem:[#allocation2 + $0x1a3c] sm:$0xf0]  ;;  %v17141_v5 = vld [vmem:[#allocation2 + $0x1fa4] sm:$0xf]  ;;  %v16566_v8 = vld [vmem:[#allocation2 + $0xdac] sm:$0xf] }
  0x3c   :  { %6969 = vmatpush.bf16.msrb.mxu0 %v13995_v47  ;;  %v16796_v47 = vld [vmem:[#allocation2 + $0x14dc] sm:$0xf]  ;;  %v14916_v6 = vld [vmem:[#allocation2 + $0x1ffc] sm:$0xf0]  ;;  %v14183_v9 = vor.u32 %v16957_v0, %v14180_v1  ;;  %v12616_v10 = vld [vmem:[#allocation2 + $0xe04] sm:$0xf0] }
  0x3d   :  { %6982 = vmatpush.bf16.msrb.mxu1 %v14731_v50  ;;  %v14272_v50 = vld [vmem:[#allocation2 + $0x1af4] sm:$0xf0]  ;;  %v13539_v54 = vor.u32 %v16796_v47, %v13536_v48  ;;  %v16750_v11 = vld [vmem:[#allocation2 + $0x136c] sm:$0xf]  ;;  %v13352_v12 = vld [vmem:[#allocation2 + $0x13c4] sm:$0xf0]  ;;  %v12619_v16 = vor.u32 %v16566_v8, %v12616_v10 }
  0x3e   :  { %7020 = vmatpush.bf16.msra.mxu2 %v11883_v46  ;;  %v12800_v46 = vld [vmem:[#allocation2 + $0xf74] sm:$0xf0]  ;;  %v14275_v60 = vor.u32 %v16980_v49, %v14272_v50  ;;  %v16934_v13 = vld [vmem:[#allocation2 + $0x192c] sm:$0xf]  ;;  %v13355_v17 = vor.u32 %v16750_v11, %v13352_v12  ;;  %v12524_v22 = vld [vmem:[#allocation2 + $0xd4c] sm:$0xf0] }
  0x3f   :  { %7008 = vmatpush.bf16.msrb.mxu3 %v11055_v52  ;;  %v15103_v52 = vor.u32 %v17187_v41, %v15100_v42  ;;  %v12803_v53 = vor.u32 %v16612_v43, %v12800_v46  ;;  %v17118_v18 = vld [vmem:[#allocation2 + $0x1eec] sm:$0xf]  ;;  %v16727_v23 = vld [vmem:[#allocation2 + $0x12b4] sm:$0xf]  ;;  %v13996_v26 = vld [vmem:[#allocation2 + $0x18cc] sm:$0xf0] }
  0x40   :  { %6970 = vmatpush.bf16.msrb.mxu0 %v13903_v62  ;;  %v16773_v62 = vld [vmem:[#allocation2 + $0x1424] sm:$0xf]  ;;  %v17095_v31 = vld [vmem:[#allocation2 + $0x1e34] sm:$0xf]  ;;  %v14732_v32 = vld [vmem:[#allocation2 + $0x1e8c] sm:$0xf0] }
  0x41   :  { %6983 = vmatpush.bf16.msrb.mxu1 %v14639_v2  ;;  %v15011_v2 = vor.u32 %v17164_v56, %v15008_v58  ;;  %v13447_v4 = vor.u32 %v16773_v62, %v13444_v63  ;;  %v16520_v33 = vld [vmem:[#allocation2 + $0xc3c] sm:$0xf]  ;;  %v12432_v36 = vld [vmem:[#allocation2 + $0xc94] sm:$0xf0]  ;;  %v14735_v41 = vor.u32 %v17095_v31, %v14732_v32  ;;  %v16497_v47 = vld [vmem:[#allocation2 + $0xb84] sm:$0xf] }
  0x42   :  { %7021 = vmatpush.bf16.msra.mxu2 %v11791_v61  ;;  %v12708_v61 = vld [vmem:[#allocation2 + $0xebc] sm:$0xf0]  ;;  %v16704_v37 = vld [vmem:[#allocation2 + $0x11fc] sm:$0xf]  ;;  %v14640_v43 = vld [vmem:[#allocation2 + $0x1dd4] sm:$0xf0] }
  0x43   :  { %7009 = vmatpush.bf16.msrb.mxu3 %v10963_v3  ;;  %v12711_v3 = vor.u32 %v16589_v59, %v12708_v61  ;;  %v17072_v42 = vld [vmem:[#allocation2 + $0x1d7c] sm:$0xf]  ;;  %v12340_v48 = vld [vmem:[#allocation2 + $0xbdc] sm:$0xf0]  ;;  %v16681_v49 = vld [vmem:[#allocation2 + $0x1144] sm:$0xf] }
  0x44   :  { %6971 = vmatpush.bf16.msrb.mxu0 %v13811_v15  ;;  %v14919_v15 = vor.u32 %v17141_v5, %v14916_v6  ;;  %v11518_v56 = vld [vmem:[#allocation2 + $0x510] sm:$0xf]  ;;  %v16302_v58 = vld [vmem:[#allocation2 + $0x568] sm:$0xf0]  ;;  %v17233_v62 = vld [vmem:[#allocation2 + $0x2284] sm:$0xf]  ;;  %v12343_v0 = vor.u32 %v16497_v47, %v12340_v48 }
  0x45   :  { %6984 = vmatpush.bf16.msrb.mxu1 %v14547_v19  ;;  %v14824_v19 = vld [vmem:[#allocation2 + $0x1f44] sm:$0xf0]  ;;  %v12254_v59 = vld [vmem:[#allocation2 + $0xad0] sm:$0xf]  ;;  %v16486_v61 = vld [vmem:[#allocation2 + $0xb28] sm:$0xf0]  ;;  %v11519_v6 = vor.u32 %v16302_v58, %v11518_v56 }
  0x46   :  { %7022 = vmatpush.bf16.msra.mxu2 %v11699_v14  ;;  %v14088_v14 = vld [vmem:[#allocation2 + $0x1984] sm:$0xf0]  ;;  %v14827_v27 = vor.u32 %v17118_v18, %v14824_v19  ;;  %v15284_v63 = vld [vmem:[#allocation2 + $0x22dc] sm:$0xf0]  ;;  %v16670_v8 = vld [vmem:[#allocation2 + $0x10e8] sm:$0xf0]  ;;  %v12255_v11 = vor.u32 %v16486_v61, %v12254_v59 }
  0x47   :  { %7010 = vmatpush.bf16.msrb.mxu3 %v10871_v20  ;;  %6972 = vmatmul.bf16.vlgmr.msrb.gmra.mxu0 %v17540_v30  ;;  %v16543_v20 = vld [vmem:[#allocation2 + $0xcf4] sm:$0xf]  ;;  %v14091_v21 = vor.u32 %v16934_v13, %v14088_v14  ;;  %v16854_v10 = vld [vmem:[#allocation2 + $0x16a8] sm:$0xf0]  ;;  %v15287_v12 = vor.u32 %v17233_v62, %v15284_v63  ;;  %v11426_v13 = vld [vmem:[#allocation2 + $0x458] sm:$0xf] }
  0x48   :  { %7029 = vmatpush.bf16.msra.mxu0 %v12987_v24  ;;  %6985 = vmatmul.bf16.vlgmr.msrb.gmra.mxu1 %v17542_v35  ;;  %v13260_v24 = vld [vmem:[#allocation2 + $0x130c] sm:$0xf0]  ;;  %v12527_v28 = vor.u32 %v16543_v20, %v12524_v22  ;;  %v16279_v14 = vld [vmem:[#allocation2 + $0x4b0] sm:$0xf0]  ;;  %v12898_v20 = vld [vmem:[#allocation2 + $0xfd8] sm:$0xf] }
  0x49   :  { %7042 = vmatpush.bf16.msra.mxu1 %v13723_v25  ;;  %v16911_v25 = vld [vmem:[#allocation2 + $0x1874] sm:$0xf]  ;;  %v12714_v47 = vld [vmem:[#allocation2 + $0xe68] sm:$0xf]  ;;  %v16210_v56 = vld [vmem:[#allocation2 + $0x288] sm:$0xf0] }
  0x4a   :  { %7023 = vmatpush.bf16.msra.mxu2 %v11607_v34  ;;  %7011 = vmatmul.bf16.vlgmr.msrb.gmra.mxu3 %v17514_v55  ;;  %v13999_v34 = vor.u32 %v16911_v25, %v13996_v26  ;;  %v16647_v22 = vld [vmem:[#allocation2 + $0x1030] sm:$0xf0]  ;;  %v11334_v26 = vld [vmem:[#allocation2 + $0x3a0] sm:$0xf]  ;;  %v11886_v58 = vld [vmem:[#allocation2 + $0x7f0] sm:$0xf] }
  0x4b   :  { %7055 = vmatpush.bf16.msra.mxu3 %v14459_v29  ;;  %v13263_v29 = vor.u32 %v16727_v23, %v13260_v24  ;;  %v13634_v23 = vld [vmem:[#allocation2 + $0x1598] sm:$0xf]  ;;  %v16831_v24 = vld [vmem:[#allocation2 + $0x15f0] sm:$0xf0]  ;;  %v12899_v31 = vor.u32 %v16647_v22, %v12898_v20  ;;  %v16394_v59 = vld [vmem:[#allocation2 + $0x848] sm:$0xf0] }
  0x4c   :  { %7030 = vmatpush.bf16.msra.mxu0 %v12895_v39  ;;  %v16888_v39 = vld [vmem:[#allocation2 + $0x17bc] sm:$0xf]  ;;  %v13635_v32 = vor.u32 %v16831_v24, %v13634_v23  ;;  %v12622_v62 = vld [vmem:[#allocation2 + $0xdb0] sm:$0xf]  ;;  %v12438_v23 = vld [vmem:[#allocation2 + $0xc40] sm:$0xf] }
  0x4d   :  { %7043 = vmatpush.bf16.msra.mxu1 %v13631_v40  ;;  %7024 = vmatmul.bf16.vlgmr.msra.gmra.mxu2 %v17523_v7  ;;  %v13904_v40 = vld [vmem:[#allocation2 + $0x1814] sm:$0xf0]  ;;  %v16348_v20 = vld [vmem:[#allocation2 + $0x6d8] sm:$0xf0] }
  0x4e   :  { %7068 = vmatpush.bf16.msrb.mxu2 %v15195_v38  ;;  %v13168_v38 = vld [vmem:[#allocation2 + $0x1254] sm:$0xf0]  ;;  %v13907_v50 = vor.u32 %v16888_v39, %v13904_v40  ;;  %v11242_v40 = vld [vmem:[#allocation2 + $0x2e8] sm:$0xf]  ;;  %v16532_v24 = vld [vmem:[#allocation2 + $0xc98] sm:$0xf0] }
  0x4f   :  { %7056 = vmatpush.bf16.msra.mxu3 %v14367_v44  ;;  %v12435_v44 = vor.u32 %v16520_v33, %v12432_v36  ;;  %v13171_v46 = vor.u32 %v16704_v37, %v13168_v38  ;;  %v12806_v33 = vld [vmem:[#allocation2 + $0xf20] sm:$0xf]  ;;  %v16624_v36 = vld [vmem:[#allocation2 + $0xf78] sm:$0xf0] }
  0x50   :  { %7031 = vmatpush.bf16.msra.mxu0 %v12803_v53  ;;  %v16865_v53 = vld [vmem:[#allocation2 + $0x1704] sm:$0xf]  ;;  %v13542_v37 = vld [vmem:[#allocation2 + $0x14e0] sm:$0xf]  ;;  %v16808_v38 = vld [vmem:[#allocation2 + $0x1538] sm:$0xf0] }
  0x51   :  { %7044 = vmatpush.bf16.msra.mxu1 %v13539_v54  ;;  %v13812_v54 = vld [vmem:[#allocation2 + $0x175c] sm:$0xf0] }
  0x52   :  { %7069 = vmatpush.bf16.msrb.mxu2 %v15103_v52  ;;  %v13076_v52 = vld [vmem:[#allocation2 + $0x119c] sm:$0xf0]  ;;  %v13815_v5 = vor.u32 %v16865_v53, %v13812_v54  ;;  %v11150_v54 = vld [vmem:[#allocation2 + $0x230] sm:$0xf] }
  0x53   :  { %7057 = vmatpush.bf16.msra.mxu3 %v14275_v60  ;;  %v14643_v60 = vor.u32 %v17072_v42, %v14640_v43  ;;  %v13079_v1 = vor.u32 %v16681_v49, %v13076_v52  ;;  %v11978_v42 = vld [vmem:[#allocation2 + $0x8a8] sm:$0xf]  ;;  %v16417_v43 = vld [vmem:[#allocation2 + $0x900] sm:$0xf0]  ;;  %v11151_v63 = vor.u32 %v16210_v56, %v11150_v54  ;;  %v14370_v56 = vld [vmem:[#allocation2 + $0x1b58] sm:$0xf] }
  0x54   :  { %7032 = vmatpush.bf16.msra.mxu0 %v12711_v3  ;;  %v14548_v3 = vld [vmem:[#allocation2 + $0x1d1c] sm:$0xf0]  ;;  %v16601_v49 = vld [vmem:[#allocation2 + $0xec0] sm:$0xf0]  ;;  %v11979_v53 = vor.u32 %v16417_v43, %v11978_v42 }
  0x55   :  { %7045 = vmatpush.bf16.msra.mxu1 %v13447_v4  ;;  %v12990_v4 = vld [vmem:[#allocation2 + $0x1090] sm:$0xf]  ;;  %v16785_v52 = vld [vmem:[#allocation2 + $0x1480] sm:$0xf0] }
  0x56   :  { %7070 = vmatpush.bf16.msrb.mxu2 %v15011_v2  ;;  %v17049_v2 = vld [vmem:[#allocation2 + $0x1cc4] sm:$0xf]  ;;  %v12991_v18 = vor.u32 %v16670_v8, %v12990_v4  ;;  %v11058_v4 = vld [vmem:[#allocation2 + $0x178] sm:$0xf]  ;;  %v16371_v8 = vld [vmem:[#allocation2 + $0x790] sm:$0xf0] }
  0x57   :  { %7058 = vmatpush.bf16.msra.mxu3 %v14183_v9  ;;  %v13726_v9 = vld [vmem:[#allocation2 + $0x1650] sm:$0xf]  ;;  %v16509_v42 = vld [vmem:[#allocation2 + $0xbe0] sm:$0xf0] }
  0x58   :  { %7033 = vmatpush.bf16.msra.mxu0 %v12619_v16  ;;  %v12162_v16 = vld [vmem:[#allocation2 + $0xa18] sm:$0xf]  ;;  %v13727_v19 = vor.u32 %v16854_v10, %v13726_v9 }
  0x59   :  { %7046 = vmatpush.bf16.msra.mxu1 %v13355_v17  ;;  %v16463_v17 = vld [vmem:[#allocation2 + $0xa70] sm:$0xf0] }
  0x5a   :  { %7071 = vmatpush.bf16.msrb.mxu2 %v14919_v15  ;;  %v14551_v15 = vor.u32 %v17049_v2, %v14548_v3  ;;  %v12163_v25 = vor.u32 %v16463_v17, %v12162_v16  ;;  %v16762_v2 = vld [vmem:[#allocation2 + $0x13c8] sm:$0xf0]  ;;  %v11887_v3 = vor.u32 %v16394_v59, %v11886_v58  ;;  %v10966_v17 = vld [vmem:[#allocation2 + $0xc0] sm:$0xf]  ;;  %v17015_v58 = vld [vmem:[#allocation2 + $0x1bb0] sm:$0xf0] }
  0x5b   :  { %7059 = vmatpush.bf16.msra.mxu3 %v14091_v21  ;;  %v11427_v21 = vor.u32 %v16279_v14, %v11426_v13  ;;  %v16555_v13 = vld [vmem:[#allocation2 + $0xd50] sm:$0xf0]  ;;  %v13266_v14 = vld [vmem:[#allocation2 + $0x12b8] sm:$0xf] }
  0x5c   :  { %7034 = vmatpush.bf16.msra.mxu0 %v12527_v28  ;;  %v12070_v28 = vld [vmem:[#allocation2 + $0x960] sm:$0xf] }
  0x5d   :  { %7047 = vmatpush.bf16.msra.mxu1 %v13263_v29  ;;  %v16440_v29 = vld [vmem:[#allocation2 + $0x9b8] sm:$0xf0] }
  0x5e   :  { %7072 = vmatpush.bf16.msrb.mxu2 %v14827_v27  ;;  %v16256_v27 = vld [vmem:[#allocation2 + $0x3f8] sm:$0xf0]  ;;  %v12071_v39 = vor.u32 %v16440_v29, %v12070_v28  ;;  %v10874_v28 = vld [vmem:[#allocation2 + $0x8] sm:$0xf] }
  0x5f   :  { %7060 = vmatpush.bf16.msra.mxu3 %v13999_v34  ;;  %v11335_v34 = vor.u32 %v16256_v27, %v11334_v26  ;;  %v13174_v26 = vld [vmem:[#allocation2 + $0x1200] sm:$0xf]  ;;  %v16716_v27 = vld [vmem:[#allocation2 + $0x1258] sm:$0xf0] }
  0x60   :  { %7035 = vmatpush.bf16.msra.mxu0 %v12435_v44  ;;  %v12807_v44 = vor.u32 %v16624_v36, %v12806_v33  ;;  %v16325_v33 = vld [vmem:[#allocation2 + $0x620] sm:$0xf0]  ;;  %v17038_v36 = vld [vmem:[#allocation2 + $0x1c68] sm:$0xf0] }
  0x61   :  { %7048 = vmatpush.bf16.msra.mxu1 %v13171_v46  ;;  %v13543_v46 = vor.u32 %v16808_v38, %v13542_v37  ;;  %v15198_v37 = vld [vmem:[#allocation2 + $0x21d0] sm:$0xf]  ;;  %v12439_v38 = vor.u32 %v16532_v24, %v12438_v23  ;;  %v14922_v23 = vld [vmem:[#allocation2 + $0x1fa8] sm:$0xf]  ;;  %v17153_v24 = vld [vmem:[#allocation2 + $0x2000] sm:$0xf0] }
  0x62   :  { %7073 = vmatpush.bf16.msrb.mxu2 %v14735_v41  ;;  %v16233_v41 = vld [vmem:[#allocation2 + $0x340] sm:$0xf0] }
  0x63   :  { %7061 = vmatpush.bf16.msra.mxu3 %v13907_v50  ;;  %v11243_v48 = vor.u32 %v16233_v41, %v11242_v40  ;;  %v13450_v50 = vld [vmem:[#allocation2 + $0x1428] sm:$0xf]  ;;  %v17222_v40 = vld [vmem:[#allocation2 + $0x2228] sm:$0xf0] }
  0x64   :  { %7036 = vmatpush.bf16.msra.mxu0 %v12343_v0  ;;  %v13451_v61 = vor.u32 %v16785_v52, %v13450_v50  ;;  %v16578_v0 = vld [vmem:[#allocation2 + $0xe08] sm:$0xf0]  ;;  %v12346_v41 = vld [vmem:[#allocation2 + $0xb88] sm:$0xf]  ;;  %v11520_v50 = vld [vmem:[#allocation2 + $0x56c] sm:$0xf0]  ;;  %v15199_v54 = vor.u32 %v17222_v40, %v15198_v37 }
  0x65   :  { %7049 = vmatpush.bf16.msra.mxu1 %v13079_v1  ;;  %v13358_v1 = vld [vmem:[#allocation2 + $0x1370] sm:$0xf]  ;;  %v12623_v9 = vor.u32 %v16578_v0, %v12622_v62  ;;  %v15290_v52 = vld [vmem:[#allocation2 + $0x2288] sm:$0xf]  ;;  %v12347_v59 = vor.u32 %v16509_v42, %v12346_v41  ;;  %v17199_v62 = vld [vmem:[#allocation2 + $0x2170] sm:$0xf0] }
  0x66   :  { %7074 = vmatpush.bf16.msrb.mxu2 %v14643_v60  ;;  %v12715_v60 = vor.u32 %v16601_v49, %v12714_v47  ;;  %v13359_v10 = vor.u32 %v16762_v2, %v13358_v1  ;;  %v16291_v47 = vld [vmem:[#allocation2 + $0x514] sm:$0xf]  ;;  %v12256_v2 = vld [vmem:[#allocation2 + $0xb2c] sm:$0xf0]  ;;  %v16406_v40 = vld [vmem:[#allocation2 + $0x8ac] sm:$0xf] }
  0x67   :  { %7062 = vmatpush.bf16.msra.mxu3 %v13815_v5  ;;  %7037 = vmatmul.bf16.vlgmr.msra.gmra.mxu0 %v17512_v51  ;;  %v16187_v5 = vld [vmem:[#allocation2 + $0x1d0] sm:$0xf0]  ;;  %v14830_v37 = vld [vmem:[#allocation2 + $0x1ef0] sm:$0xf]  ;;  %v11980_v41 = vld [vmem:[#allocation2 + $0x904] sm:$0xf0] }
  0x68   :  { %7088 = vmatpush.bf16.msrb.mxu0 %v15287_v12  ;;  %7050 = vmatmul.bf16.vlgmr.msra.gmra.mxu1 %v17516_v57  ;;  %v11059_v12 = vor.u32 %v16187_v5, %v11058_v4  ;;  %v16475_v1 = vld [vmem:[#allocation2 + $0xad4] sm:$0xf]  ;;  %v16268_v4 = vld [vmem:[#allocation2 + $0x45c] sm:$0xf]  ;;  %v11428_v5 = vld [vmem:[#allocation2 + $0x4b4] sm:$0xf0] }
  0x69   :  { %7094 = vmatpush.bf16.msrb.mxu1 %v11519_v6  ;;  %v11794_v6 = vld [vmem:[#allocation2 + $0x738] sm:$0xf] }
  0x6a   :  { %7075 = vmatpush.bf16.msrb.mxu2 %v14551_v15  ;;  %7063 = vmatmul.bf16.vlgmr.msra.gmra.mxu3 %v17540_v30  ;;  %v16739_v15 = vld [vmem:[#allocation2 + $0x1310] sm:$0xf0]  ;;  %v11795_v16 = vor.u32 %v16371_v8, %v11794_v6  ;;  %v14278_v8 = vld [vmem:[#allocation2 + $0x1aa0] sm:$0xf] }
  0x6b   :  { %7107 = vmatpush.bf16.msrb.mxu3 %v12255_v11  ;;  %v12530_v11 = vld [vmem:[#allocation2 + $0xcf8] sm:$0xf]  ;;  %v13267_v22 = vor.u32 %v16739_v15, %v13266_v14  ;;  %v16452_v14 = vld [vmem:[#allocation2 + $0xa1c] sm:$0xf] }
  0x6c   :  { %7120 = vmatpush.bf16.msra.mxu0 %v12991_v18  ;;  %v16164_v18 = vld [vmem:[#allocation2 + $0x118] sm:$0xf0]  ;;  %v12164_v15 = vld [vmem:[#allocation2 + $0xa74] sm:$0xf0] }
  0x6d   :  { %7095 = vmatpush.bf16.msrb.mxu1 %v11427_v21  ;;  %7076 = vmatmul.bf16.vlgmr.msrb.gmra.mxu2 %v17542_v35  ;;  %v12531_v21 = vor.u32 %v16555_v13, %v12530_v11  ;;  %v15014_v11 = vld [vmem:[#allocation2 + $0x2060] sm:$0xf]  ;;  %v11431_v13 = vor.u32 %v16268_v4, %v11428_v5  ;;  %v16360_v4 = vld [vmem:[#allocation2 + $0x73c] sm:$0xf]  ;;  %v11796_v5 = vld [vmem:[#allocation2 + $0x794] sm:$0xf0] }
  0x6e   :  { %7133 = vmatpush.bf16.msra.mxu2 %v13727_v19  ;;  %v11702_v19 = vld [vmem:[#allocation2 + $0x680] sm:$0xf] }
  0x6f   :  { %7108 = vmatpush.bf16.msrb.mxu3 %v12163_v25  ;;  %v10967_v25 = vor.u32 %v16164_v18, %v10966_v17  ;;  %v11703_v29 = vor.u32 %v16348_v20, %v11702_v19  ;;  %v16245_v17 = vld [vmem:[#allocation2 + $0x3a4] sm:$0xf]  ;;  %v11336_v18 = vld [vmem:[#allocation2 + $0x3fc] sm:$0xf0]  ;;  %v14186_v20 = vld [vmem:[#allocation2 + $0x19e8] sm:$0xf] }
  0x70   :  { %7121 = vmatpush.bf16.msra.mxu0 %v12899_v31  ;;  %v16141_v31 = vld [vmem:[#allocation2 + $0x60] sm:$0xf0] }
  0x71   :  { %7096 = vmatpush.bf16.msrb.mxu1 %v11335_v34  ;;  %v14462_v34 = vld [vmem:[#allocation2 + $0x1c10] sm:$0xf]  ;;  %v10875_v43 = vor.u32 %v16141_v31, %v10874_v28  ;;  %v11244_v31 = vld [vmem:[#allocation2 + $0x344] sm:$0xf0] }
  0x72   :  { %7134 = vmatpush.bf16.msra.mxu2 %v13635_v32  ;;  %v11610_v32 = vld [vmem:[#allocation2 + $0x5c8] sm:$0xf]  ;;  %v14463_v49 = vor.u32 %v17038_v36, %v14462_v34  ;;  %v16946_v34 = vld [vmem:[#allocation2 + $0x1988] sm:$0xf0] }
  0x73   :  { %7109 = vmatpush.bf16.msrb.mxu3 %v12071_v39  ;;  %v13175_v39 = vor.u32 %v16716_v27, %v13174_v26  ;;  %v16429_v26 = vld [vmem:[#allocation2 + $0x964] sm:$0xf]  ;;  %v12072_v27 = vld [vmem:[#allocation2 + $0x9bc] sm:$0xf0] }
  0x74   :  { %7122 = vmatpush.bf16.msra.mxu0 %v12807_v44  ;;  %v13082_v44 = vld [vmem:[#allocation2 + $0x1148] sm:$0xf]  ;;  %v12075_v36 = vor.u32 %v16429_v26, %v12072_v27 }
  0x75   :  { %7097 = vmatpush.bf16.msrb.mxu1 %v11243_v48  ;;  %v11611_v48 = vor.u32 %v16325_v33, %v11610_v32  ;;  %v14923_v32 = vor.u32 %v17153_v24, %v14922_v23  ;;  %v14094_v33 = vld [vmem:[#allocation2 + $0x1930] sm:$0xf]  ;;  %v16130_v24 = vld [vmem:[#allocation2 + $0xc] sm:$0xf] }
  0x76   :  { %7135 = vmatpush.bf16.msra.mxu2 %v13543_v46  ;;  %v16693_v46 = vld [vmem:[#allocation2 + $0x11a0] sm:$0xf0]  ;;  %v14095_v42 = vor.u32 %v16946_v34, %v14094_v33  ;;  %v16636_v33 = vld [vmem:[#allocation2 + $0xfdc] sm:$0xf]  ;;  %v12900_v34 = vld [vmem:[#allocation2 + $0x1034] sm:$0xf0] }
  0x77   :  { %7110 = vmatpush.bf16.msrb.mxu3 %v11979_v53  ;;  %15373 = vmatmul.msk.bf16.vlgmr.msrb.gmra.mxu0 %vm6908_vm0, %v17530_v45  ;;  %v17245_v53 = vld [vmem:[#allocation2 + $0x22e0] sm:$0xf0] }
  0x78   :  { %7123 = vmatpush.bf16.msra.mxu0 %v12715_v60  ;;  %v13083_v60 = vor.u32 %v16693_v46, %v13082_v44  ;;  %v15291_v0 = vor.u32 %v17245_v53, %v15290_v52  ;;  %v11152_v44 = vld [vmem:[#allocation2 + $0x28c] sm:$0xf0]  ;;  %v17107_v52 = vld [vmem:[#allocation2 + $0x1e90] sm:$0xf0] }
  0x79   :  { %7098 = vmatpush.bf16.msrb.mxu1 %v11151_v63  ;;  %v11523_v63 = vor.u32 %v16291_v47, %v11520_v50  ;;  %v14002_v47 = vld [vmem:[#allocation2 + $0x1878] sm:$0xf] }
  0x7a   :  { %7136 = vmatpush.bf16.msra.mxu2 %v13451_v61  ;;  %v15106_v61 = vld [vmem:[#allocation2 + $0x2118] sm:$0xf] }
  0x7b   :  { %7111 = vmatpush.bf16.msrb.mxu3 %v11887_v3  ;;  %v14371_v3 = vor.u32 %v17015_v58, %v14370_v56  ;;  %v15107_v6 = vor.u32 %v17199_v62, %v15106_v61  ;;  %v14738_v50 = vld [vmem:[#allocation2 + $0x1e38] sm:$0xf]  ;;  %v11888_v56 = vld [vmem:[#allocation2 + $0x84c] sm:$0xf0]  ;;  %v13910_v62 = vld [vmem:[#allocation2 + $0x17c0] sm:$0xf] }
  0x7c   :  { %7124 = vmatpush.bf16.msra.mxu0 %v12623_v9  ;;  %v16992_v9 = vld [vmem:[#allocation2 + $0x1af8] sm:$0xf0]  ;;  %v14739_v61 = vor.u32 %v17107_v52, %v14738_v50  ;;  %v16613_v50 = vld [vmem:[#allocation2 + $0xf24] sm:$0xf]  ;;  %v12808_v52 = vld [vmem:[#allocation2 + $0xf7c] sm:$0xf0] }
  0x7d   :  { %7099 = vmatpush.bf16.msrb.mxu1 %v11059_v12  ;;  %v17176_v12 = vld [vmem:[#allocation2 + $0x20b8] sm:$0xf0] }
  0x7e   :  { %7137 = vmatpush.bf16.msra.mxu2 %v13359_v10  ;;  %v12259_v10 = vor.u32 %v16475_v1, %v12256_v2  ;;  %v15015_v19 = vor.u32 %v17176_v12, %v15014_v11  ;;  %v14646_v1 = vld [vmem:[#allocation2 + $0x1d80] sm:$0xf]  ;;  %v17084_v2 = vld [vmem:[#allocation2 + $0x1dd8] sm:$0xf0]  ;;  %v16877_v12 = vld [vmem:[#allocation2 + $0x1760] sm:$0xf0] }
  0x7f   :  { %7112 = vmatpush.bf16.msrb.mxu3 %v11795_v16  ;;  %v14279_v16 = vor.u32 %v16992_v9, %v14278_v8  ;;  %v16153_v8 = vld [vmem:[#allocation2 + $0xc4] sm:$0xf]  ;;  %v10968_v9 = vld [vmem:[#allocation2 + $0x11c] sm:$0xf0]  ;;  %v14647_v11 = vor.u32 %v17084_v2, %v14646_v1  ;;  %v16590_v1 = vld [vmem:[#allocation2 + $0xe6c] sm:$0xf] }
  0x80   :  { %7125 = vmatpush.bf16.msra.mxu0 %v12531_v21  ;;  %v16969_v21 = vld [vmem:[#allocation2 + $0x1a40] sm:$0xf0]  ;;  %v12716_v2 = vld [vmem:[#allocation2 + $0xec4] sm:$0xf0] }
  0x81   :  { %7100 = vmatpush.bf16.msrb.mxu1 %v10967_v25  ;;  %v11339_v25 = vor.u32 %v16245_v17, %v11336_v18  ;;  %v14187_v28 = vor.u32 %v16969_v21, %v14186_v20  ;;  %v12992_v17 = vld [vmem:[#allocation2 + $0x10ec] sm:$0xf0]  ;;  %v16843_v18 = vld [vmem:[#allocation2 + $0x1654] sm:$0xf]  ;;  %v16337_v21 = vld [vmem:[#allocation2 + $0x684] sm:$0xf] }
  0x82   :  { %7138 = vmatpush.bf16.msra.mxu2 %v13267_v22  ;;  %v12167_v22 = vor.u32 %v16452_v14, %v12164_v15  ;;  %v17061_v14 = vld [vmem:[#allocation2 + $0x1d20] sm:$0xf0]  ;;  %v11799_v15 = vor.u32 %v16360_v4, %v11796_v5  ;;  %v13728_v20 = vld [vmem:[#allocation2 + $0x16ac] sm:$0xf0]  ;;  %v16774_v4 = vld [vmem:[#allocation2 + $0x142c] sm:$0xf] }
  0x83   :  { %7113 = vmatpush.bf16.msrb.mxu3 %v11703_v29  ;;  %v16222_v29 = vld [vmem:[#allocation2 + $0x2ec] sm:$0xf]  ;;  %v13452_v5 = vld [vmem:[#allocation2 + $0x1484] sm:$0xf0] }
  0x84   :  { %7126 = vmatpush.bf16.msra.mxu0 %v12439_v38  ;;  %v17130_v38 = vld [vmem:[#allocation2 + $0x1f48] sm:$0xf0] }
  0x85   :  { %7101 = vmatpush.bf16.msrb.mxu1 %v10875_v43  ;;  %v16199_v43 = vld [vmem:[#allocation2 + $0x234] sm:$0xf]  ;;  %v14831_v46 = vor.u32 %v17130_v38, %v14830_v37  ;;  %v13636_v38 = vld [vmem:[#allocation2 + $0x15f4] sm:$0xf0] }
  0x86   :  { %7139 = vmatpush.bf16.msra.mxu2 %v13175_v39  ;;  %v11247_v39 = vor.u32 %v16222_v29, %v11244_v31  ;;  %v11155_v53 = vor.u32 %v16199_v43, %v11152_v44  ;;  %v14464_v29 = vld [vmem:[#allocation2 + $0x1c6c] sm:$0xf0]  ;;  %v13731_v31 = vor.u32 %v16843_v18, %v13728_v20  ;;  %v12903_v44 = vor.u32 %v16636_v33, %v12900_v34  ;;  %v13268_v33 = vld [vmem:[#allocation2 + $0x1314] sm:$0xf0] }
  0x87   :  { %7114 = vmatpush.bf16.msrb.mxu3 %v11611_v48  ;;  %v16923_v48 = vld [vmem:[#allocation2 + $0x18d0] sm:$0xf0]  ;;  %v15200_v43 = vld [vmem:[#allocation2 + $0x222c] sm:$0xf0] }
  0x88   :  { %7127 = vmatpush.bf16.msra.mxu0 %v12347_v59  ;;  %7102 = vmatmul.bf16.vlgmr.msrb.gmra.mxu1 %v17514_v55  ;;  %v14003_v58 = vor.u32 %v16923_v48, %v14002_v47  ;;  %v16176_v59 = vld [vmem:[#allocation2 + $0x17c] sm:$0xf]  ;;  %v14372_v47 = vld [vmem:[#allocation2 + $0x1bb4] sm:$0xf0]  ;;  %v13360_v18 = vld [vmem:[#allocation2 + $0x13cc] sm:$0xf0] }
  0x89   :  { %7146 = vmatpush.bf16.msra.mxu1 %v14463_v49  ;;  %v11983_v49 = vor.u32 %v16406_v40, %v11980_v41  ;;  %v11612_v40 = vld [vmem:[#allocation2 + $0x624] sm:$0xf0] }
  0x8a   :  { %7140 = vmatpush.bf16.msra.mxu2 %v13083_v60  ;;  %7115 = vmatmul.bf16.vlgmr.msrb.gmra.mxu3 %v17523_v7  ;;  %v11060_v60 = vld [vmem:[#allocation2 + $0x1d4] sm:$0xf0] }
  0x8b   :  { %7159 = vmatpush.bf16.msra.mxu3 %v15199_v54  ;;  %7128 = vmatmul.bf16.vlgmr.msra.gmra.mxu0 %v17512_v51  ;;  %v16383_v54 = vld [vmem:[#allocation2 + $0x7f4] sm:$0xf] }
  0x8c   :  { %7179 = vmatpush.bf16.msrb.mxu0 %v15291_v0  ;;  %v11891_v0 = vor.u32 %v16383_v54, %v11888_v56  ;;  %v16797_v54 = vld [vmem:[#allocation2 + $0x14e4] sm:$0xf]  ;;  %v13544_v56 = vld [vmem:[#allocation2 + $0x153c] sm:$0xf0] }
  0x8d   :  { %7147 = vmatpush.bf16.msra.mxu1 %v14371_v3  ;;  %7141 = vmatmul.bf16.vlgmr.msra.gmra.mxu2 %v17516_v57  ;;  %v11063_v3 = vor.u32 %v16176_v59, %v11060_v60  ;;  %v17188_v59 = vld [vmem:[#allocation2 + $0x211c] sm:$0xf]  ;;  %v15108_v60 = vld [vmem:[#allocation2 + $0x2174] sm:$0xf0] }
  0x8e   :  { %7185 = vmatpush.bf16.msrb.mxu2 %v11523_v63  ;;  %v16900_v63 = vld [vmem:[#allocation2 + $0x1818] sm:$0xf0] }
  0x8f   :  { %7160 = vmatpush.bf16.msra.mxu3 %v15107_v6  ;;  %v13911_v6 = vor.u32 %v16900_v63, %v13910_v62  ;;  %v16981_v62 = vld [vmem:[#allocation2 + $0x1aa4] sm:$0xf]  ;;  %v14280_v63 = vld [vmem:[#allocation2 + $0x1afc] sm:$0xf0] }
  0x90   :  { %7198 = vmatpush.bf16.msra.mxu0 %v12259_v10  ;;  %v13818_v10 = vld [vmem:[#allocation2 + $0x1708] sm:$0xf] }
  0x91   :  { %7148 = vmatpush.bf16.msra.mxu1 %v14279_v16  ;;  %v16659_v16 = vld [vmem:[#allocation2 + $0x1094] sm:$0xf]  ;;  %v13819_v23 = vor.u32 %v16877_v12, %v13818_v10  ;;  %v12719_v10 = vor.u32 %v16590_v1, %v12716_v2  ;;  %v14188_v12 = vld [vmem:[#allocation2 + $0x1a44] sm:$0xf0]  ;;  %v16682_v2 = vld [vmem:[#allocation2 + $0x114c] sm:$0xf] }
  0x92   :  { %7186 = vmatpush.bf16.msrb.mxu2 %v11431_v13  ;;  %v14554_v13 = vld [vmem:[#allocation2 + $0x1cc8] sm:$0xf]  ;;  %v12995_v27 = vor.u32 %v16659_v16, %v12992_v17  ;;  %v16751_v17 = vld [vmem:[#allocation2 + $0x1374] sm:$0xf] }
  0x93   :  { %7161 = vmatpush.bf16.msra.mxu3 %v15015_v19  ;;  %v10971_v19 = vor.u32 %v16153_v8, %v10968_v9  ;;  %v14555_v26 = vor.u32 %v17061_v14, %v14554_v13  ;;  %v17165_v8 = vld [vmem:[#allocation2 + $0x2064] sm:$0xf]  ;;  %v15016_v9 = vld [vmem:[#allocation2 + $0x20bc] sm:$0xf0]  ;;  %v13455_v13 = vor.u32 %v16774_v4, %v13452_v5  ;;  %v16567_v14 = vld [vmem:[#allocation2 + $0xdb4] sm:$0xf] }
  0x94   :  { %7199 = vmatpush.bf16.msra.mxu0 %v12167_v22  ;;  %v11704_v22 = vld [vmem:[#allocation2 + $0x6dc] sm:$0xf0]  ;;  %v15019_v16 = vor.u32 %v17165_v8, %v15016_v9  ;;  %v12348_v1 = vld [vmem:[#allocation2 + $0xbe4] sm:$0xf0]  ;;  %v11526_v5 = vld [vmem:[#allocation2 + $0x518] sm:$0xf] }
  0x95   :  { %7149 = vmatpush.bf16.msra.mxu1 %v14187_v28  ;;  %v17027_v28 = vld [vmem:[#allocation2 + $0x1c14] sm:$0xf]  ;;  %v15292_v8 = vld [vmem:[#allocation2 + $0x22e4] sm:$0xf0] }
  0x96   :  { %7187 = vmatpush.bf16.msrb.mxu2 %v11339_v25  ;;  %v10876_v25 = vld [vmem:[#allocation2 + $0x64] sm:$0xf0]  ;;  %v14467_v41 = vor.u32 %v17027_v28, %v14464_v29  ;;  %v12532_v28 = vld [vmem:[#allocation2 + $0xd54] sm:$0xf0] }
  0x97   :  { %7162 = vmatpush.bf16.msra.mxu3 %v14923_v32  ;;  %v11707_v32 = vor.u32 %v16337_v21, %v11704_v22  ;;  %v10879_v37 = vor.u32 %v16130_v24, %v10876_v25  ;;  %v17142_v21 = vld [vmem:[#allocation2 + $0x1fac] sm:$0xf]  ;;  %v14924_v22 = vld [vmem:[#allocation2 + $0x2004] sm:$0xf0]  ;;  %v16935_v24 = vld [vmem:[#allocation2 + $0x1934] sm:$0xf] }
  0x98   :  { %7200 = vmatpush.bf16.msra.mxu0 %v12075_v36  ;;  %v16820_v36 = vld [vmem:[#allocation2 + $0x159c] sm:$0xf]  ;;  %v14096_v25 = vld [vmem:[#allocation2 + $0x198c] sm:$0xf0]  ;;  %v14927_v29 = vor.u32 %v17142_v21, %v14924_v22  ;;  %v16487_v21 = vld [vmem:[#allocation2 + $0xb30] sm:$0xf0] }
  0x99   :  { %7150 = vmatpush.bf16.msra.mxu1 %v14095_v42  ;;  %v17211_v42 = vld [vmem:[#allocation2 + $0x21d4] sm:$0xf]  ;;  %v13639_v48 = vor.u32 %v16820_v36, %v13636_v38  ;;  %v14099_v36 = vor.u32 %v16935_v24, %v14096_v25  ;;  %v14832_v38 = vld [vmem:[#allocation2 + $0x1f4c] sm:$0xf0]  ;;  %v12998_v25 = vld [vmem:[#allocation2 + $0x1098] sm:$0xf] }
  0x9a   :  { %7188 = vmatpush.bf16.msrb.mxu2 %v11247_v39  ;;  %v16314_v39 = vld [vmem:[#allocation2 + $0x5cc] sm:$0xf] }
  0x9b   :  { %7163 = vmatpush.bf16.msra.mxu3 %v14831_v46  ;;  %15374 = vmatmul.msk.bf16.vlgmr.msrb.gmra.mxu0 %vm6908_vm0, %v17530_v45  ;;  %v17004_v46 = vld [vmem:[#allocation2 + $0x1b5c] sm:$0xf] }
  0x9c   :  { %7201 = vmatpush.bf16.msra.mxu0 %v11983_v49  ;;  %v11615_v49 = vor.u32 %v16314_v39, %v11612_v40 }
  0x9d   :  { %7151 = vmatpush.bf16.msra.mxu1 %v14003_v58  ;;  %v14375_v58 = vor.u32 %v17004_v46, %v14372_v47  ;;  %v16521_v47 = vld [vmem:[#allocation2 + $0xc44] sm:$0xf] }
  0x9e   :  { %7189 = vmatpush.bf16.msrb.mxu2 %v11155_v53  ;;  %v15203_v53 = vor.u32 %v17211_v42, %v15200_v43  ;;  %v14004_v42 = vld [vmem:[#allocation2 + $0x18d4] sm:$0xf0] }
  0x9f   :  { %7164 = vmatpush.bf16.msra.mxu3 %v14739_v61  ;;  %v12811_v61 = vor.u32 %v16613_v50, %v12808_v52  ;;  %v16705_v50 = vld [vmem:[#allocation2 + $0x1204] sm:$0xf]  ;;  %v13176_v52 = vld [vmem:[#allocation2 + $0x125c] sm:$0xf0] }
  0xa0   :  { %7202 = vmatpush.bf16.msra.mxu0 %v11891_v0  ;;  %v13547_v0 = vor.u32 %v16797_v54, %v13544_v56 }
  0xa1   :  { %7152 = vmatpush.bf16.msra.mxu1 %v13911_v6  ;;  %v14283_v6 = vor.u32 %v16981_v62, %v14280_v63  ;;  %v13912_v62 = vld [vmem:[#allocation2 + $0x181c] sm:$0xf0]  ;;  %v16498_v63 = vld [vmem:[#allocation2 + $0xb8c] sm:$0xf] }
  0xa2   :  { %7190 = vmatpush.bf16.msrb.mxu2 %v11063_v3  ;;  %v15111_v3 = vor.u32 %v17188_v59, %v15108_v60  ;;  %v14740_v59 = vld [vmem:[#allocation2 + $0x1e94] sm:$0xf0] }
  0xa3   :  { %7165 = vmatpush.bf16.msra.mxu3 %v14647_v11  ;;  %v16958_v11 = vld [vmem:[#allocation2 + $0x19ec] sm:$0xf] }
  0xa4   :  { %7203 = vmatpush.bf16.msra.mxu0 %v11799_v15  ;;  %v12624_v15 = vld [vmem:[#allocation2 + $0xe0c] sm:$0xf0]  ;;  %v14191_v20 = vor.u32 %v16958_v11, %v14188_v12  ;;  %v16303_v11 = vld [vmem:[#allocation2 + $0x570] sm:$0xf0]  ;;  %v17073_v12 = vld [vmem:[#allocation2 + $0x1d84] sm:$0xf] }
  0xa5   :  { %7153 = vmatpush.bf16.msra.mxu1 %v13819_v23  ;;  %v12627_v23 = vor.u32 %v16567_v14, %v12624_v15  ;;  %v12351_v15 = vor.u32 %v16498_v63, %v12348_v1  ;;  %v16234_v63 = vld [vmem:[#allocation2 + $0x348] sm:$0xf0] }
  0xa6   :  { %7191 = vmatpush.bf16.msrb.mxu2 %v10971_v19  ;;  %v6921_v19 = vpop.f32.mrf.mxu0 }
  0xa7   :  { %7166 = vmatpush.bf16.msra.mxu3 %v14555_v26  ;;  %v13363_v26 = vor.u32 %v16751_v17, %v13360_v18  ;;  %v13820_v17 = vld [vmem:[#allocation2 + $0x1764] sm:$0xf0] }
  0xa8   :  { %7204 = vmatpush.bf16.msra.mxu0 %v11707_v32  ;;  %7154 = vmatmul.bf16.vlgmr.msra.gmra.mxu1 %v17540_v30  ;;  %v16728_v32 = vld [vmem:[#allocation2 + $0x12bc] sm:$0xf] }
  0xa9   :  { %7211 = vmatpush.bf16.msrb.mxu1 %v12995_v27  ;;  %v16544_v27 = vld [vmem:[#allocation2 + $0xcfc] sm:$0xf]  ;;  %v13271_v43 = vor.u32 %v16728_v32, %v13268_v33  ;;  %v17050_v32 = vld [vmem:[#allocation2 + $0x1ccc] sm:$0xf]  ;;  %v14556_v33 = vld [vmem:[#allocation2 + $0x1d24] sm:$0xf0] }
  0xaa   :  { %7192 = vmatpush.bf16.msrb.mxu2 %v10879_v37  ;;  %7167 = vmatmul.bf16.vlgmr.msra.gmra.mxu3 %v17542_v35  ;;  %v17119_v37 = vld [vmem:[#allocation2 + $0x1ef4] sm:$0xf]  ;;  %v12535_v40 = vor.u32 %v16544_v27, %v12532_v28  ;;  %v11434_v28 = vld [vmem:[#allocation2 + $0x460] sm:$0xf] }
  0xab   :  { %7224 = vmatpush.bf16.msrb.mxu3 %v13731_v31  ;;  %v6934_v31 = vpop.f32.mrf.mxu1 }
  0xac   :  { %7205 = vmatpush.bf16.msra.mxu0 %v11615_v49  ;;  %v6935_v34 = vadd.f32 %v6934_v31, %v6921_v19  ;;  %v6947_v39 = vpop.f32.mrf.mxu2  ;;  %v14835_v49 = vor.u32 %v17119_v37, %v14832_v38  ;;  %v16855_v37 = vld [vmem:[#allocation2 + $0x16b0] sm:$0xf0]  ;;  %v12170_v38 = vld [vmem:[#allocation2 + $0xa20] sm:$0xf] }
  0xad   :  { %7212 = vmatpush.bf16.msrb.mxu1 %v12903_v44  ;;  %7193 = vmatmul.bf16.vlgmr.msrb.gmra.mxu2 %v17514_v55  ;;  %v6960_v46 = vpop.f32.mrf.mxu3 }
  0xae   :  { %7237 = vmatpush.bf16.msra.mxu2 %v14467_v41  ;;  %v16912_v41 = vld [vmem:[#allocation2 + $0x187c] sm:$0xf]  ;;  %v6948_v44 = vadd.f32 %v6947_v39, %v6935_v34  ;;  %v13734_v34 = vld [vmem:[#allocation2 + $0x1658] sm:$0xf] }
  0xaf   :  { %7225 = vmatpush.bf16.msrb.mxu3 %v13639_v48  ;;  %7206 = vmatmul.bf16.vlgmr.msra.gmra.mxu0 %v17523_v7  ;;  %v12440_v48 = vld [vmem:[#allocation2 + $0xc9c] sm:$0xf0]  ;;  %v14007_v56 = vor.u32 %v16912_v41, %v14004_v42  ;;  %v16464_v39 = vld [vmem:[#allocation2 + $0xa78] sm:$0xf0] }
  0xb0   :  { %7250 = vmatpush.bf16.msrb.mxu0 %v15203_v53  ;;  %v6923_v53 = vpop.f32.mrf.mxu0  ;;  %v17564_v54 = vadd.f32 %v6960_v46, %v6948_v44  ;;  %v12443_v60 = vor.u32 %v16521_v47, %v12440_v48  ;;  %v12906_v41 = vld [vmem:[#allocation2 + $0xfe0] sm:$0xf]  ;;  %v16648_v42 = vld [vmem:[#allocation2 + $0x1038] sm:$0xf0]  ;;  %v11342_v44 = vld [vmem:[#allocation2 + $0x3a8] sm:$0xf]  ;;  %v13735_v47 = vor.u32 %v16855_v37, %v13734_v34  ;;  %v12171_v48 = vor.u32 %v16464_v39, %v12170_v38 }
  0xb1   :  { %7213 = vmatpush.bf16.msrb.mxu1 %v12811_v61  ;;  %v16889_v61 = vld [vmem:[#allocation2 + $0x17c4] sm:$0xf]  ;;  %v16832_v53 = vld [vmem:[#allocation2 + $0x15f8] sm:$0xf0]  ;;  %v11802_v37 = vld [vmem:[#allocation2 + $0x740] sm:$0xf] }
  0xb2   :  { %7238 = vmatpush.bf16.msra.mxu2 %v14375_v58  ;;  %v17096_v58 = vld [vmem:[#allocation2 + $0x1e3c] sm:$0xf]  ;;  %v16257_v46 = vld [vmem:[#allocation2 + $0x400] sm:$0xf0] }
  0xb3   :  { %7226 = vmatpush.bf16.msrb.mxu3 %v13547_v0  ;;  %v13179_v0 = vor.u32 %v16705_v50, %v13176_v52  ;;  %v14743_v4 = vor.u32 %v17096_v58, %v14740_v59  ;;  %v6936_v9 = vpop.f32.mrf.mxu1  ;;  %v12907_v52 = vor.u32 %v16648_v42, %v12906_v41  ;;  %v16441_v58 = vld [vmem:[#allocation2 + $0x9c0] sm:$0xf0]  ;;  %v11343_v59 = vor.u32 %v16257_v46, %v11342_v44  ;;  %v16372_v38 = vld [vmem:[#allocation2 + $0x798] sm:$0xf0]  ;;  %v10974_v42 = vld [vmem:[#allocation2 + $0xc8] sm:$0xf] }
  0xb4   :  { %7251 = vmatpush.bf16.msrb.mxu0 %v15111_v3  ;;  %v13084_v3 = vld [vmem:[#allocation2 + $0x11a4] sm:$0xf0]  ;;  %v6949_v14 = vpop.f32.mrf.mxu2  ;;  %v12722_v9 = vld [vmem:[#allocation2 + $0xe70] sm:$0xf]  ;;  %v16556_v41 = vld [vmem:[#allocation2 + $0xd58] sm:$0xf0] }
  0xb5   :  { %7214 = vmatpush.bf16.msrb.mxu1 %v12719_v10  ;;  %v13915_v10 = vor.u32 %v16889_v61, %v13912_v62  ;;  %v13087_v18 = vor.u32 %v16682_v2, %v13084_v3  ;;  %v6962_v22 = vpop.f32.mrf.mxu3  ;;  %v16625_v61 = vld [vmem:[#allocation2 + $0xf80] sm:$0xf0]  ;;  %v11250_v62 = vld [vmem:[#allocation2 + $0x2f0] sm:$0xf]  ;;  %v13550_v2 = vld [vmem:[#allocation2 + $0x14e8] sm:$0xf] }
  0xb6   :  { %7239 = vmatpush.bf16.msra.mxu2 %v14283_v6  ;;  %v17234_v6 = vld [vmem:[#allocation2 + $0x228c] sm:$0xf]  ;;  %v11894_v22 = vld [vmem:[#allocation2 + $0x7f8] sm:$0xf] }
  0xb7   :  { %7227 = vmatpush.bf16.msrb.mxu3 %v13455_v13  ;;  %v14648_v13 = vld [vmem:[#allocation2 + $0x1ddc] sm:$0xf0]  ;;  %v15295_v19 = vor.u32 %v17234_v6, %v15292_v8  ;;  %v16418_v6 = vld [vmem:[#allocation2 + $0x908] sm:$0xf0]  ;;  %v11251_v8 = vor.u32 %v16234_v63, %v11250_v62  ;;  %v16533_v62 = vld [vmem:[#allocation2 + $0xca0] sm:$0xf0] }
  0xb8   :  { %7252 = vmatpush.bf16.msrb.mxu0 %v15019_v16  ;;  %v16866_v16 = vld [vmem:[#allocation2 + $0x170c] sm:$0xf]  ;;  %v14651_v24 = vor.u32 %v17073_v12, %v14648_v13  ;;  %v11158_v12 = vld [vmem:[#allocation2 + $0x238] sm:$0xf]  ;;  %v16211_v13 = vld [vmem:[#allocation2 + $0x290] sm:$0xf0] }
  0xb9   :  { %7215 = vmatpush.bf16.msrb.mxu1 %v12627_v23  ;;  %v11527_v23 = vor.u32 %v16303_v11, %v11526_v5  ;;  %v13823_v27 = vor.u32 %v16866_v16, %v13820_v17  ;;  %v11986_v5 = vld [vmem:[#allocation2 + $0x8b0] sm:$0xf] }
  0xba   :  { %7240 = vmatpush.bf16.msra.mxu2 %v14191_v20  ;;  %v12262_v20 = vld [vmem:[#allocation2 + $0xad8] sm:$0xf]  ;;  %v11987_v17 = vor.u32 %v16418_v6, %v11986_v5  ;;  %v17039_v5 = vld [vmem:[#allocation2 + $0x1c70] sm:$0xf0]  ;;  %v13182_v6 = vld [vmem:[#allocation2 + $0x1208] sm:$0xf] }
  0xbb   :  { %7228 = vmatpush.bf16.msrb.mxu3 %v13363_v26  ;;  %v16671_v26 = vld [vmem:[#allocation2 + $0x10f0] sm:$0xf0]  ;;  %v12263_v31 = vor.u32 %v16487_v21, %v12262_v20  ;;  %v16786_v21 = vld [vmem:[#allocation2 + $0x1488] sm:$0xf0] }
  0xbc   :  { %7253 = vmatpush.bf16.msrb.mxu0 %v14927_v29  ;;  %v16280_v29 = vld [vmem:[#allocation2 + $0x4b8] sm:$0xf0]  ;;  %v6999_v50 = vpop.f32.mrf.mxu2 }
  0xbd   :  { %7216 = vmatpush.bf16.msrb.mxu1 %v12535_v40  ;;  %v11435_v40 = vor.u32 %v16280_v29, %v11434_v28  ;;  %v11066_v28 = vld [vmem:[#allocation2 + $0x180] sm:$0xf]  ;;  %v16188_v29 = vld [vmem:[#allocation2 + $0x1d8] sm:$0xf0] }
  0xbe   :  { %7241 = vmatpush.bf16.msra.mxu2 %v14099_v36  ;;  %v12999_v36 = vor.u32 %v16671_v26, %v12998_v25  ;;  %v11159_v25 = vor.u32 %v16211_v13, %v11158_v12  ;;  %v12630_v26 = vld [vmem:[#allocation2 + $0xdb8] sm:$0xf]  ;;  %v11067_v39 = vor.u32 %v16188_v29, %v11066_v28  ;;  %v12354_v12 = vld [vmem:[#allocation2 + $0xb90] sm:$0xf]  ;;  %v16694_v28 = vld [vmem:[#allocation2 + $0x11a8] sm:$0xf0] }
  0xbf   :  { %7229 = vmatpush.bf16.msrb.mxu3 %v13271_v43  ;;  %v14559_v43 = vor.u32 %v17050_v32, %v14556_v33  ;;  %v13366_v33 = vld [vmem:[#allocation2 + $0x1378] sm:$0xf]  ;;  %v16292_v29 = vld [vmem:[#allocation2 + $0x51c] sm:$0xf] }
  0xc0   :  { %7254 = vmatpush.bf16.msrb.mxu0 %v14835_v49  ;;  %v13642_v49 = vld [vmem:[#allocation2 + $0x15a0] sm:$0xf] }
  0xc1   :  { %7217 = vmatpush.bf16.msrb.mxu1 %v12443_v60  ;;  %v12814_v60 = vld [vmem:[#allocation2 + $0xf28] sm:$0xf] }
  0xc2   :  { %7242 = vmatpush.bf16.msra.mxu2 %v14007_v56  ;;  %v12078_v56 = vld [vmem:[#allocation2 + $0x968] sm:$0xf]  ;;  %v12815_v3 = vor.u32 %v16625_v61, %v12814_v60 }
  0xc3   :  { %7230 = vmatpush.bf16.msrb.mxu3 %v13179_v0  ;;  %v13643_v0 = vor.u32 %v16832_v53, %v13642_v49  ;;  %v12079_v1 = vor.u32 %v16441_v58, %v12078_v56  ;;  %v13274_v49 = vld [vmem:[#allocation2 + $0x12c0] sm:$0xf]  ;;  %v16740_v53 = vld [vmem:[#allocation2 + $0x1318] sm:$0xf0]  ;;  %v11710_v56 = vld [vmem:[#allocation2 + $0x688] sm:$0xf] }
  0xc4   :  { %7255 = vmatpush.bf16.msrb.mxu0 %v14743_v4  ;;  %v16809_v4 = vld [vmem:[#allocation2 + $0x1540] sm:$0xf0]  ;;  %v6973_v11 = vpop.f32.mrf.mxu0  ;;  %v12446_v61 = vld [vmem:[#allocation2 + $0xc48] sm:$0xf] }
  0xc5   :  { %7218 = vmatpush.bf16.msrb.mxu1 %v12351_v15  ;;  %v6974_v14 = vadd.f32 %v6973_v11, %v17564_v54  ;;  %v6986_v15 = vpop.f32.mrf.mxu1  ;;  %v13551_v16 = vor.u32 %v16809_v4, %v13550_v2  ;;  %v16349_v58 = vld [vmem:[#allocation2 + $0x6e0] sm:$0xf0]  ;;  %v14470_v2 = vld [vmem:[#allocation2 + $0x1c18] sm:$0xf]  ;;  %v16326_v11 = vld [vmem:[#allocation2 + $0x628] sm:$0xf0] }
  0xc6   :  { %7243 = vmatpush.bf16.msra.mxu2 %v13915_v10  ;;  %v16602_v10 = vld [vmem:[#allocation2 + $0xec8] sm:$0xf0]  ;;  %v11711_v4 = vor.u32 %v16349_v58, %v11710_v56  ;;  %v17177_v56 = vld [vmem:[#allocation2 + $0x20c0] sm:$0xf0]  ;;  %v14194_v58 = vld [vmem:[#allocation2 + $0x19f0] sm:$0xf] }
  0xc7   :  { %7231 = vmatpush.bf16.msrb.mxu3 %v13087_v18  ;;  %v13458_v18 = vld [vmem:[#allocation2 + $0x1430] sm:$0xf]  ;;  %v12723_v20 = vor.u32 %v16602_v10, %v12722_v9  ;;  %v12447_v9 = vor.u32 %v16533_v62, %v12446_v61  ;;  %v16246_v62 = vld [vmem:[#allocation2 + $0x3ac] sm:$0xf] }
  0xc8   :  { %7256 = vmatpush.bf16.msrb.mxu0 %v14651_v24  ;;  %7219 = vmatmul.bf16.vlgmr.msrb.gmra.mxu1 %v17512_v51  ;;  %v6987_v24 = vadd.f32 %v6986_v15, %v6974_v14  ;;  %v13459_v54 = vor.u32 %v16786_v21, %v13458_v18  ;;  %v11618_v10 = vld [vmem:[#allocation2 + $0x5d0] sm:$0xf]  ;;  %v16510_v14 = vld [vmem:[#allocation2 + $0xbe8] sm:$0xf0]  ;;  %v15206_v15 = vld [vmem:[#allocation2 + $0x21d8] sm:$0xf] }
  0xc9   :  { %7270 = vmatpush.bf16.msra.mxu1 %v15295_v19  ;;  %v7001_v19 = vpop.f32.mrf.mxu2  ;;  %v15298_v18 = vld [vmem:[#allocation2 + $0x2290] sm:$0xf] }
  0xca   :  { %7244 = vmatpush.bf16.msra.mxu2 %v13823_v27  ;;  %7232 = vmatmul.bf16.vlgmr.msrb.gmra.mxu3 %v17516_v57  ;;  %v16579_v27 = vld [vmem:[#allocation2 + $0xe10] sm:$0xf0]  ;;  %v17246_v19 = vld [vmem:[#allocation2 + $0x22e8] sm:$0xf0] }
  0xcb   :  { %7276 = vmatpush.bf16.msra.mxu3 %v11527_v23  ;;  %v16395_v23 = vld [vmem:[#allocation2 + $0x850] sm:$0xf0]  ;;  %v12631_v34 = vor.u32 %v16579_v27, %v12630_v26  ;;  %v13090_v27 = vld [vmem:[#allocation2 + $0x1150] sm:$0xf] }
  0xcc   :  { %7257 = vmatpush.bf16.msrb.mxu0 %v14559_v43  ;;  %v11895_v32 = vor.u32 %v16395_v23, %v11894_v22  ;;  %v16165_v43 = vld [vmem:[#allocation2 + $0x120] sm:$0xf0]  ;;  %v6975_v44 = vpop.f32.mrf.mxu0  ;;  %v11619_v22 = vor.u32 %v16326_v11, %v11618_v10  ;;  %v14378_v23 = vld [vmem:[#allocation2 + $0x1b60] sm:$0xf] }
  0xcd   :  { %7289 = vmatpush.bf16.msrb.mxu1 %v12263_v31  ;;  %7245 = vmatmul.bf16.vlgmr.msra.gmra.mxu2 %v17540_v30  ;;  %v17571_v31 = vadd.f32 %v6999_v50, %v6987_v24  ;;  %v7012_v46 = vpop.f32.mrf.mxu3  ;;  %v6988_v50 = vpop.f32.mrf.mxu1  ;;  %v10975_v60 = vor.u32 %v16165_v43, %v10974_v42  ;;  %v17016_v24 = vld [vmem:[#allocation2 + $0x1bb8] sm:$0xf0]  ;;  %v16993_v42 = vld [vmem:[#allocation2 + $0x1b00] sm:$0xf0] }
  0xce   :  { %7302 = vmatpush.bf16.msrb.mxu2 %v12999_v36  ;;  %v16763_v36 = vld [vmem:[#allocation2 + $0x13d0] sm:$0xf0]  ;;  %v12172_v50 = vld [vmem:[#allocation2 + $0xa7c] sm:$0xf0] }
  0xcf   :  { %7277 = vmatpush.bf16.msra.mxu3 %v11435_v40  ;;  %7258 = vmatmul.bf16.vlgmr.msrb.gmra.mxu0 %v17542_v35  ;;  %v12538_v40 = vld [vmem:[#allocation2 + $0xd00] sm:$0xf] }
  0xd0   :  { %7315 = vmatpush.bf16.msra.mxu0 %v13735_v47  ;;  %v13367_v47 = vor.u32 %v16763_v36, %v13366_v33  ;;  %v11528_v33 = vld [vmem:[#allocation2 + $0x574] sm:$0xf0] }
  0xd1   :  { %7290 = vmatpush.bf16.msrb.mxu1 %v12171_v48  ;;  %v11803_v48 = vor.u32 %v16372_v38, %v11802_v37  ;;  %v12264_v36 = vld [vmem:[#allocation2 + $0xb34] sm:$0xf0]  ;;  %v14379_v37 = vor.u32 %v17016_v24, %v14378_v23  ;;  %v15114_v38 = vld [vmem:[#allocation2 + $0x2120] sm:$0xf]  ;;  %v11531_v43 = vor.u32 %v16292_v29, %v11528_v33  ;;  %v16924_v23 = vld [vmem:[#allocation2 + $0x18d8] sm:$0xf0] }
  0xd2   :  { %7303 = vmatpush.bf16.msrb.mxu2 %v12907_v52  ;;  %v12539_v52 = vor.u32 %v16556_v41, %v12538_v40  ;;  %v13091_v40 = vor.u32 %v16694_v28, %v13090_v27  ;;  %v14286_v41 = vld [vmem:[#allocation2 + $0x1aa8] sm:$0xf]  ;;  %v16200_v27 = vld [vmem:[#allocation2 + $0x23c] sm:$0xf] }
  0xd3   :  { %7278 = vmatpush.bf16.msra.mxu3 %v11343_v59  ;;  %v7025_v59 = vpop.f32.mrf.mxu2 }
  0xd4   :  { %7316 = vmatpush.bf16.msra.mxu0 %v13643_v0  ;;  %v17575_v63 = vadd.f32 %v7025_v59, %v7012_v46  ;;  %v10882_v0 = vld [vmem:[#allocation2 + $0x10] sm:$0xf]  ;;  %v16269_v46 = vld [vmem:[#allocation2 + $0x464] sm:$0xf]  ;;  %v16970_v59 = vld [vmem:[#allocation2 + $0x1a48] sm:$0xf0] }
  0xd5   :  { %7291 = vmatpush.bf16.msrb.mxu1 %v12079_v1  ;;  %v16142_v1 = vld [vmem:[#allocation2 + $0x68] sm:$0xf0] }
  0xd6   :  { %7304 = vmatpush.bf16.msrb.mxu2 %v12815_v3  ;;  %v13275_v3 = vor.u32 %v16740_v53, %v13274_v49  ;;  %v10883_v13 = vor.u32 %v16142_v1, %v10882_v0  ;;  %v16453_v49 = vld [vmem:[#allocation2 + $0xa24] sm:$0xf]  ;;  %v15022_v53 = vld [vmem:[#allocation2 + $0x2068] sm:$0xf] }
  0xd7   :  { %7279 = vmatpush.bf16.msra.mxu3 %v11251_v8  ;;  %v16717_v8 = vld [vmem:[#allocation2 + $0x1260] sm:$0xf0]  ;;  %v12175_v61 = vor.u32 %v16453_v49, %v12172_v50  ;;  %v15023_v0 = vor.u32 %v17177_v56, %v15022_v53  ;;  %v11344_v1 = vld [vmem:[#allocation2 + $0x404] sm:$0xf0]  ;;  %v11804_v50 = vld [vmem:[#allocation2 + $0x79c] sm:$0xf0] }
  0xd8   :  { %7317 = vmatpush.bf16.msra.mxu0 %v13551_v16  ;;  %15375 = vmatmul.msk.bf16.vlgmr.msra.gmra.mxu1 %vm6908_vm0, %v17530_v45  ;;  %v17223_v16 = vld [vmem:[#allocation2 + $0x2230] sm:$0xf0]  ;;  %v13183_v21 = vor.u32 %v16717_v8, %v13182_v6  ;;  %v17154_v6 = vld [vmem:[#allocation2 + $0x2008] sm:$0xf0]  ;;  %v14102_v8 = vld [vmem:[#allocation2 + $0x1938] sm:$0xf]  ;;  %v11347_v11 = vor.u32 %v16246_v62, %v11344_v1 }
  0xd9   :  { %7292 = vmatpush.bf16.msrb.mxu1 %v11987_v17  ;;  %v14471_v17 = vor.u32 %v17039_v5, %v14470_v2  ;;  %v15207_v26 = vor.u32 %v17223_v16, %v15206_v15  ;;  %v16430_v2 = vld [vmem:[#allocation2 + $0x96c] sm:$0xf]  ;;  %v14930_v5 = vld [vmem:[#allocation2 + $0x1fb0] sm:$0xf]  ;;  %v16361_v49 = vld [vmem:[#allocation2 + $0x744] sm:$0xf] }
  0xda   :  { %7305 = vmatpush.bf16.msrb.mxu2 %v12723_v20  ;;  %v7014_v20 = vpop.f32.mrf.mxu3  ;;  %v14931_v15 = vor.u32 %v17154_v6, %v14930_v5  ;;  %v11252_v16 = vld [vmem:[#allocation2 + $0x34c] sm:$0xf0]  ;;  %v14654_v53 = vld [vmem:[#allocation2 + $0x1d88] sm:$0xf]  ;;  %v17085_v56 = vld [vmem:[#allocation2 + $0x1de0] sm:$0xf0]  ;;  %v11807_v62 = vor.u32 %v16361_v49, %v11804_v50 }
  0xdb   :  { %7280 = vmatpush.bf16.msra.mxu3 %v11159_v25  ;;  %v12355_v25 = vor.u32 %v16510_v14, %v12354_v12  ;;  %v14838_v20 = vld [vmem:[#allocation2 + $0x1ef8] sm:$0xf]  ;;  %v10976_v5 = vld [vmem:[#allocation2 + $0x124] sm:$0xf0]  ;;  %v16338_v6 = vld [vmem:[#allocation2 + $0x68c] sm:$0xf] }
  0xdc   :  { %7318 = vmatpush.bf16.msra.mxu0 %v13459_v54  ;;  %v7027_v54 = vpop.f32.mrf.mxu2  ;;  %v13000_v1 = vld [vmem:[#allocation2 + $0x10f4] sm:$0xf0]  ;;  %v16798_v50 = vld [vmem:[#allocation2 + $0x14ec] sm:$0xf] }
  0xdd   :  { %7293 = vmatpush.bf16.msrb.mxu1 %v11895_v32  ;;  %v15299_v32 = vor.u32 %v17246_v19, %v15298_v18  ;;  %v11988_v18 = vld [vmem:[#allocation2 + $0x90c] sm:$0xf0]  ;;  %v16384_v54 = vld [vmem:[#allocation2 + $0x7fc] sm:$0xf] }
  0xde   :  { %7306 = vmatpush.bf16.msrb.mxu2 %v12631_v34  ;;  %v16476_v34 = vld [vmem:[#allocation2 + $0xadc] sm:$0xf] }
  0xdf   :  { %7281 = vmatpush.bf16.msra.mxu3 %v11067_v39  ;;  %v17200_v39 = vld [vmem:[#allocation2 + $0x2178] sm:$0xf0]  ;;  %v12267_v44 = vor.u32 %v16476_v34, %v12264_v36  ;;  %v14746_v34 = vld [vmem:[#allocation2 + $0x1e40] sm:$0xf] }
  0xe0   :  { %7319 = vmatpush.bf16.msra.mxu0 %v13367_v47  ;;  %v15115_v47 = vor.u32 %v17200_v39, %v15114_v38  ;;  %v17108_v36 = vld [vmem:[#allocation2 + $0x1e98] sm:$0xf0]  ;;  %v16901_v38 = vld [vmem:[#allocation2 + $0x1820] sm:$0xf0] }
  0xe1   :  { %7294 = vmatpush.bf16.msrb.mxu1 %v11803_v48  ;;  %v11436_v48 = vld [vmem:[#allocation2 + $0x4bc] sm:$0xf0] }
  0xe2   :  { %7307 = vmatpush.bf16.msrb.mxu2 %v12539_v52  ;;  %v14287_v52 = vor.u32 %v16993_v42, %v14286_v41 }
  0xe3   :  { %7282 = vmatpush.bf16.msra.mxu3 %v10975_v60  ;;  %v11439_v60 = vor.u32 %v16269_v46, %v11436_v48  ;;  %v11068_v48 = vld [vmem:[#allocation2 + $0x1dc] sm:$0xf0] }
  0xe4   :  { %7320 = vmatpush.bf16.msra.mxu0 %v13275_v3  ;;  %v12080_v3 = vld [vmem:[#allocation2 + $0x9c4] sm:$0xf0]  ;;  %v7038_v10 = vpop.f32.mrf.mxu0 }
  0xe5   :  { %7295 = vmatpush.bf16.msrb.mxu1 %v11711_v4  ;;  %v14195_v4 = vor.u32 %v16970_v59, %v14194_v58  ;;  %v12083_v12 = vor.u32 %v16430_v2, %v12080_v3  ;;  %v7039_v14 = vadd.f32 %v7038_v10, %v17575_v63  ;;  %v11160_v63 = vld [vmem:[#allocation2 + $0x294] sm:$0xf0]  ;;  %v13826_v59 = vld [vmem:[#allocation2 + $0x1710] sm:$0xf]  ;;  %v16154_v2 = vld [vmem:[#allocation2 + $0xcc] sm:$0xf] }
  0xe6   :  { %7308 = vmatpush.bf16.msrb.mxu2 %v12447_v9  ;;  %v16947_v9 = vld [vmem:[#allocation2 + $0x1990] sm:$0xf0]  ;;  %v14562_v10 = vld [vmem:[#allocation2 + $0x1cd0] sm:$0xf] }
  0xe7   :  { %7283 = vmatpush.bf16.msra.mxu3 %v10883_v13  ;;  %v16223_v13 = vld [vmem:[#allocation2 + $0x2f4] sm:$0xf]  ;;  %v14103_v19 = vor.u32 %v16947_v9, %v14102_v8  ;;  %v11712_v8 = vld [vmem:[#allocation2 + $0x6e4] sm:$0xf0] }
  0xe8   :  { %7321 = vmatpush.bf16.msra.mxu0 %v13183_v21  ;;  %v17131_v21 = vld [vmem:[#allocation2 + $0x1f50] sm:$0xf0]  ;;  %v11255_v24 = vor.u32 %v16223_v13, %v11252_v16  ;;  %v16844_v13 = vld [vmem:[#allocation2 + $0x165c] sm:$0xf] }
  0xe9   :  { %7296 = vmatpush.bf16.msrb.mxu1 %v11619_v22  ;;  %v14010_v22 = vld [vmem:[#allocation2 + $0x1880] sm:$0xf]  ;;  %v14839_v28 = vor.u32 %v17131_v21, %v14838_v20  ;;  %v16131_v20 = vld [vmem:[#allocation2 + $0x14] sm:$0xf]  ;;  %v10884_v21 = vld [vmem:[#allocation2 + $0x6c] sm:$0xf0] }
  0xea   :  { %7309 = vmatpush.bf16.msrb.mxu2 %v12355_v25  ;;  %7284 = vmatmul.bf16.vlgmr.msra.gmra.mxu3 %v17514_v55  ;;  %v14011_v33 = vor.u32 %v16924_v23, %v14010_v22 }
  0xeb   :  { %7328 = vmatpush.bf16.msrb.mxu3 %v14471_v17  ;;  %v16407_v17 = vld [vmem:[#allocation2 + $0x8b4] sm:$0xf] }
  0xec   :  { %7297 = vmatmul.bf16.vlgmr.msrb.gmra.mxu1 %v17523_v7  ;;  %7322 = vmatpush.bf16.msra.mxu0 %v13091_v40  ;;  %v11991_v25 = vor.u32 %v16407_v17, %v11988_v18  ;;  %v7040_v39 = vpop.f32.mrf.mxu0  ;;  %v11163_v40 = vor.u32 %v16200_v27, %v11160_v63  ;;  %v10979_v17 = vor.u32 %v16154_v2, %v10976_v5  ;;  %v17028_v27 = vld [vmem:[#allocation2 + $0x1c1c] sm:$0xf]  ;;  %v14472_v63 = vld [vmem:[#allocation2 + $0x1c74] sm:$0xf0]  ;;  %v15024_v2 = vld [vmem:[#allocation2 + $0x20c4] sm:$0xf0] }
  0xed   :  { %7341 = vmatpush.bf16.msra.mxu1 %v15207_v26  ;;  %7310 = vmatmul.bf16.vlgmr.msrb.gmra.mxu2 %v17512_v51  ;;  %v7051_v26 = vpop.f32.mrf.mxu1  ;;  %v7064_v42 = vpop.f32.mrf.mxu3  ;;  %v11715_v18 = vor.u32 %v16338_v6, %v11712_v8  ;;  %v16614_v39 = vld [vmem:[#allocation2 + $0xf2c] sm:$0xf]  ;;  %v13460_v5 = vld [vmem:[#allocation2 + $0x148c] sm:$0xf0]  ;;  %v16568_v6 = vld [vmem:[#allocation2 + $0xdbc] sm:$0xf] }
  0xee   :  { %7361 = vmatpush.bf16.msra.mxu2 %v15299_v32  ;;  %v7052_v29 = vadd.f32 %v7051_v26, %v7039_v14  ;;  %v11896_v32 = vld [vmem:[#allocation2 + $0x854] sm:$0xf0]  ;;  %v11620_v26 = vld [vmem:[#allocation2 + $0x62c] sm:$0xf0] }
  0xef   :  { %7329 = vmatpush.bf16.msrb.mxu3 %v14379_v37  ;;  %7323 = vmatmul.bf16.vlgmr.msra.gmra.mxu0 %v17516_v57  ;;  %v13918_v37 = vld [vmem:[#allocation2 + $0x17c8] sm:$0xf]  ;;  %v11899_v41 = vor.u32 %v16384_v54, %v11896_v32  ;;  %v13736_v14 = vld [vmem:[#allocation2 + $0x16b4] sm:$0xf0]  ;;  %v17212_v54 = vld [vmem:[#allocation2 + $0x21dc] sm:$0xf] }
  0xf0   :  { %7367 = vmatpush.bf16.msrb.mxu0 %v11531_v43  ;;  %v16177_v43 = vld [vmem:[#allocation2 + $0x184] sm:$0xf]  ;;  %v7065_v46 = vadd.f32 %v7064_v42, %v7052_v29  ;;  %v13739_v29 = vor.u32 %v16844_v13, %v13736_v14  ;;  %v15208_v32 = vld [vmem:[#allocation2 + $0x2234] sm:$0xf0]  ;;  %v14196_v13 = vld [vmem:[#allocation2 + $0x1a4c] sm:$0xf0] }
  0xf1   :  { %7342 = vmatpush.bf16.msra.mxu1 %v15115_v47  ;;  %v7077_v47 = vpop.f32.mrf.mxu2  ;;  %v15211_v42 = vor.u32 %v17212_v54, %v15208_v32  ;;  %v12632_v8 = vld [vmem:[#allocation2 + $0xe14] sm:$0xf0]  ;;  %v17143_v14 = vld [vmem:[#allocation2 + $0x1fb4] sm:$0xf]  ;;  %v16729_v32 = vld [vmem:[#allocation2 + $0x12c4] sm:$0xf] }
  0xf2   :  { %7380 = vmatpush.bf16.msrb.mxu2 %v12267_v44  ;;  %v14747_v44 = vor.u32 %v17108_v36, %v14746_v34  ;;  %v7078_v58 = vadd.f32 %v7077_v47, %v7065_v46  ;;  %v16821_v34 = vld [vmem:[#allocation2 + $0x15a4] sm:$0xf]  ;;  %v13644_v36 = vld [vmem:[#allocation2 + $0x15fc] sm:$0xf0] }
  0xf3   :  { %7330 = vmatpush.bf16.msrb.mxu3 %v14287_v52  ;;  %v13919_v52 = vor.u32 %v16901_v38, %v13918_v37  ;;  %v10887_v37 = vor.u32 %v16131_v20, %v10884_v21  ;;  %v14380_v46 = vld [vmem:[#allocation2 + $0x1bbc] sm:$0xf0]  ;;  %v17189_v47 = vld [vmem:[#allocation2 + $0x2124] sm:$0xf] }
  0xf4   :  { %7368 = vmatpush.bf16.msrb.mxu0 %v11439_v60  ;;  %v16878_v60 = vld [vmem:[#allocation2 + $0x1768] sm:$0xf0]  ;;  %v7090_v16 = vpop.f32.mrf.mxu0  ;;  %v16545_v20 = vld [vmem:[#allocation2 + $0xd04] sm:$0xf]  ;;  %v12540_v21 = vld [vmem:[#allocation2 + $0xd5c] sm:$0xf0] }
  0xf5   :  { %7343 = vmatpush.bf16.msra.mxu1 %v15023_v0  ;;  %v16660_v0 = vld [vmem:[#allocation2 + $0x109c] sm:$0xf]  ;;  %v7053_v3 = vpop.f32.mrf.mxu1  ;;  %v13827_v9 = vor.u32 %v16878_v60, %v13826_v59  ;;  %v7066_v22 = vpop.f32.mrf.mxu3  ;;  %v17584_v23 = vadd.f32 %v7090_v16, %v7078_v58  ;;  %v12724_v58 = vld [vmem:[#allocation2 + $0xecc] sm:$0xf0]  ;;  %v12635_v16 = vor.u32 %v16568_v6, %v12632_v8  ;;  %v12543_v54 = vor.u32 %v16545_v20, %v12540_v21  ;;  %v17051_v20 = vld [vmem:[#allocation2 + $0x1cd4] sm:$0xf] }
  0xf6   :  { %7381 = vmatpush.bf16.msrb.mxu2 %v12175_v61  ;;  %v11071_v61 = vor.u32 %v16177_v43, %v11068_v48  ;;  %v17005_v43 = vld [vmem:[#allocation2 + $0x1b64] sm:$0xf]  ;;  %v15116_v48 = vld [vmem:[#allocation2 + $0x217c] sm:$0xf0] }
  0xf7   :  { %7331 = vmatpush.bf16.msrb.mxu3 %v14195_v4  ;;  %v14655_v4 = vor.u32 %v17085_v56, %v14654_v53  ;;  %v16591_v56 = vld [vmem:[#allocation2 + $0xe74] sm:$0xf]  ;;  %v14383_v59 = vor.u32 %v17005_v43, %v14380_v46  ;;  %v15119_v60 = vor.u32 %v17189_v47, %v15116_v48  ;;  %v14012_v43 = vld [vmem:[#allocation2 + $0x18dc] sm:$0xf0] }
  0xf8   :  { %7369 = vmatpush.bf16.msrb.mxu0 %v11347_v11  ;;  %v17062_v11 = vld [vmem:[#allocation2 + $0x1d28] sm:$0xf0]  ;;  %v12727_v3 = vor.u32 %v16591_v56, %v12724_v58  ;;  %v14748_v46 = vld [vmem:[#allocation2 + $0x1e9c] sm:$0xf0]  ;;  %v16499_v56 = vld [vmem:[#allocation2 + $0xb94] sm:$0xf] }
  0xf9   :  { %7344 = vmatpush.bf16.msra.mxu1 %v14931_v15  ;;  %v16637_v15 = vld [vmem:[#allocation2 + $0xfe4] sm:$0xf]  ;;  %v12356_v58 = vld [vmem:[#allocation2 + $0xbec] sm:$0xf0] }
  0xfa   :  { %7382 = vmatpush.bf16.msrb.mxu2 %v12083_v12  ;;  %v13003_v12 = vor.u32 %v16660_v0, %v13000_v1  ;;  %v14288_v0 = vld [vmem:[#allocation2 + $0x1b04] sm:$0xf0]  ;;  %v17166_v1 = vld [vmem:[#allocation2 + $0x206c] sm:$0xf]  ;;  %v12359_v8 = vor.u32 %v16499_v56, %v12356_v58 }
  0xfb   :  { %7332 = vmatpush.bf16.msrb.mxu3 %v14103_v19  ;;  %v12908_v19 = vld [vmem:[#allocation2 + $0x103c] sm:$0xf0] }
  0xfc   :  { %7370 = vmatpush.bf16.msrb.mxu0 %v11255_v24  ;;  %v14563_v24 = vor.u32 %v17062_v11, %v14562_v10  ;;  %v7092_v53 = vpop.f32.mrf.mxu0  ;;  %v15027_v10 = vor.u32 %v17166_v1, %v15024_v2  ;;  %v16959_v11 = vld [vmem:[#allocation2 + $0x19f4] sm:$0xf] }
  0xfd   :  { %7345 = vmatpush.bf16.msra.mxu1 %v14839_v28  ;;  %15376 = vmatmul.msk.bf16.vlgmr.msra.gmra.mxu2 %vm6908_vm0, %v17530_v45  ;;  %v7079_v28 = vpop.f32.mrf.mxu2  ;;  %v14199_v22 = vor.u32 %v16959_v11, %v14196_v13  ;;  %v11534_v11 = vld [vmem:[#allocation2 + $0x520] sm:$0xf]  ;;  %v16304_v13 = vld [vmem:[#allocation2 + $0x578] sm:$0xf0] }
  0xfe   :  { %7383 = vmatpush.bf16.msrb.mxu2 %v11991_v25  ;;  %v16315_v25 = vld [vmem:[#allocation2 + $0x5d4] sm:$0xf]  ;;  %v14104_v28 = vld [vmem:[#allocation2 + $0x1994] sm:$0xf0] }
  0xff   :  { %7333 = vmatpush.bf16.msrb.mxu3 %v14011_v33  ;;  %v12911_v33 = vor.u32 %v16637_v15, %v12908_v19  ;;  %v11623_v38 = vor.u32 %v16315_v25, %v11620_v26  ;;  %v14932_v15 = vld [vmem:[#allocation2 + $0x200c] sm:$0xf0]  ;;  %v16936_v25 = vld [vmem:[#allocation2 + $0x193c] sm:$0xf] }
 0x100   :  { %7371 = vmatpush.bf16.msrb.mxu0 %v11163_v40  ;;  %v12816_v40 = vld [vmem:[#allocation2 + $0xf84] sm:$0xf0] }
 0x101   :  { %7346 = vmatpush.bf16.msra.mxu1 %v14747_v44  ;;  %v13647_v44 = vor.u32 %v16821_v34, %v13644_v36  ;;  %v12819_v49 = vor.u32 %v16614_v39, %v12816_v40  ;;  %v16522_v34 = vld [vmem:[#allocation2 + $0xc4c] sm:$0xf]  ;;  %v12448_v36 = vld [vmem:[#allocation2 + $0xca4] sm:$0xf0]  ;;  %v16913_v40 = vld [vmem:[#allocation2 + $0x1884] sm:$0xf] }
 0x102   :  { %7384 = vmatpush.bf16.msrb.mxu2 %v11899_v41  ;;  %v14475_v41 = vor.u32 %v17028_v27, %v14472_v63  ;;  %v14840_v63 = vld [vmem:[#allocation2 + $0x1f54] sm:$0xf0]  ;;  %v12451_v47 = vor.u32 %v16522_v34, %v12448_v36  ;;  %v12178_v34 = vld [vmem:[#allocation2 + $0xa28] sm:$0xf]  ;;  %v16465_v36 = vld [vmem:[#allocation2 + $0xa80] sm:$0xf0] }
 0x103   :  { %7334 = vmatpush.bf16.msrb.mxu3 %v13919_v52  ;;  %v13552_v52 = vld [vmem:[#allocation2 + $0x1544] sm:$0xf0] }
 0x104   :  { %7372 = vmatpush.bf16.msrb.mxu0 %v11071_v61  ;;  %v16982_v61 = vld [vmem:[#allocation2 + $0x1aac] sm:$0xf] }
 0x105   :  { %7347 = vmatpush.bf16.msra.mxu1 %v14655_v4  ;;  %v16775_v4 = vld [vmem:[#allocation2 + $0x1434] sm:$0xf]  ;;  %v7103_v27 = vpop.f32.mrf.mxu1 }
 0x106   :  { %7385 = vmatpush.bf16.msrb.mxu2 %v11807_v62  ;;  %v13555_v62 = vor.u32 %v16798_v50, %v13552_v52  ;;  %v13184_v50 = vld [vmem:[#allocation2 + $0x1264] sm:$0xf0] }
 0x107   :  { %7335 = vmatpush.bf16.msrb.mxu3 %v13827_v9  ;;  %v14291_v9 = vor.u32 %v16982_v61, %v14288_v0  ;;  %v16890_v61 = vld [vmem:[#allocation2 + $0x17cc] sm:$0xf]  ;;  %v15300_v0 = vld [vmem:[#allocation2 + $0x22ec] sm:$0xf0] }
 0x108   :  { %7373 = vmatpush.bf16.msrb.mxu0 %v10979_v17  ;;  %v16752_v17 = vld [vmem:[#allocation2 + $0x137c] sm:$0xf]  ;;  %v7129_v19 = vpop.f32.mrf.mxu0 }
 0x109   :  { %7348 = vmatpush.bf16.msra.mxu1 %v14563_v24  ;;  %v14935_v24 = vor.u32 %v17143_v14, %v14932_v15  ;;  %v12270_v14 = vld [vmem:[#allocation2 + $0xae0] sm:$0xf]  ;;  %v16488_v15 = vld [vmem:[#allocation2 + $0xb38] sm:$0xf0] }
 0x10a   :  { %7386 = vmatpush.bf16.msrb.mxu2 %v11715_v18  ;;  %7336 = vmatmul.bf16.vlgmr.msrb.gmra.mxu3 %v17540_v30  ;;  %v13368_v18 = vld [vmem:[#allocation2 + $0x13d4] sm:$0xf0] }
 0x10b   :  { %7393 = vmatpush.bf16.msra.mxu3 %v13003_v12  ;;  %v13463_v12 = vor.u32 %v16775_v4, %v13460_v5  ;;  %v13371_v26 = vor.u32 %v16752_v17, %v13368_v18  ;;  %v17074_v4 = vld [vmem:[#allocation2 + $0x1d8c] sm:$0xf]  ;;  %v14656_v5 = vld [vmem:[#allocation2 + $0x1de4] sm:$0xf0]  ;;  %v16867_v18 = vld [vmem:[#allocation2 + $0x1714] sm:$0xf] }
 0x10c   :  { %7374 = vmatpush.bf16.msrb.mxu0 %v10887_v37  ;;  %7349 = vmatmul.bf16.vlgmr.msra.gmra.mxu1 %v17542_v35  ;;  %v14659_v17 = vor.u32 %v17074_v4, %v14656_v5  ;;  %v16235_v4 = vld [vmem:[#allocation2 + $0x350] sm:$0xf0]  ;;  %v11994_v5 = vld [vmem:[#allocation2 + $0x8b8] sm:$0xf] }
 0x10d   :  { %7406 = vmatpush.bf16.msrb.mxu1 %v13739_v29  ;;  %v17120_v29 = vld [vmem:[#allocation2 + $0x1efc] sm:$0xf]  ;;  %v7116_v37 = vpop.f32.mrf.mxu3  ;;  %v7105_v6 = vpop.f32.mrf.mxu1 }
 0x10e   :  { %7387 = vmatpush.bf16.msrb.mxu2 %v11623_v38  ;;  %v14107_v38 = vor.u32 %v16936_v25, %v14104_v28  ;;  %v14843_v39 = vor.u32 %v17120_v29, %v14840_v63  ;;  %v13006_v25 = vld [vmem:[#allocation2 + $0x10a0] sm:$0xf]  ;;  %v12271_v28 = vor.u32 %v16488_v15, %v12270_v14  ;;  %v16856_v63 = vld [vmem:[#allocation2 + $0x16b8] sm:$0xf0]  ;;  %v16419_v6 = vld [vmem:[#allocation2 + $0x910] sm:$0xf0] }
 0x10f   :  { %7394 = vmatpush.bf16.msra.mxu3 %v12911_v33  ;;  %7375 = vmatmul.bf16.vlgmr.msrb.gmra.mxu0 %v17514_v55  ;;  %v13276_v33 = vld [vmem:[#allocation2 + $0x131c] sm:$0xf0]  ;;  %v11995_v14 = vor.u32 %v16419_v6, %v11994_v5  ;;  %v12730_v15 = vld [vmem:[#allocation2 + $0xe78] sm:$0xf] }
 0x110   :  { %7419 = vmatpush.bf16.msra.mxu0 %v14475_v41  ;;  %v7117_v41 = vadd.f32 %v7116_v37, %v7103_v27  ;;  %v7142_v48 = vpop.f32.mrf.mxu2  ;;  %v7131_v52 = vpop.f32.mrf.mxu0  ;;  %v11535_v27 = vor.u32 %v16304_v13, %v11534_v11  ;;  %v13742_v29 = vld [vmem:[#allocation2 + $0x1660] sm:$0xf]  ;;  %v10890_v6 = vld [vmem:[#allocation2 + $0x18] sm:$0xf] }
 0x111   :  { %7407 = vmatpush.bf16.msrb.mxu1 %v13647_v44  ;;  %7388 = vmatmul.bf16.vlgmr.msrb.gmra.mxu2 %v17523_v7  ;;  %v17097_v44 = vld [vmem:[#allocation2 + $0x1e44] sm:$0xf]  ;;  %v12086_v52 = vld [vmem:[#allocation2 + $0x970] sm:$0xf] }
 0x112   :  { %7432 = vmatpush.bf16.msra.mxu2 %v15211_v42  ;;  %v13279_v42 = vor.u32 %v16729_v32, %v13276_v33  ;;  %v7130_v53 = vadd.f32 %v7129_v19, %v7117_v41  ;;  %v13828_v19 = vld [vmem:[#allocation2 + $0x176c] sm:$0xf0]  ;;  %v16281_v33 = vld [vmem:[#allocation2 + $0x4c0] sm:$0xf0]  ;;  %v13743_v41 = vor.u32 %v16856_v63, %v13742_v29  ;;  %v16764_v63 = vld [vmem:[#allocation2 + $0x13d8] sm:$0xf0] }
 0x113   :  { %7395 = vmatpush.bf16.msra.mxu3 %v12819_v49  ;;  %v16706_v49 = vld [vmem:[#allocation2 + $0x120c] sm:$0xf] }
 0x114   :  { %7420 = vmatpush.bf16.msra.mxu0 %v14383_v59  ;;  %v14015_v59 = vor.u32 %v16913_v40, %v14012_v43  ;;  %v17590_v1 = vadd.f32 %v7142_v48, %v7130_v53  ;;  %v13187_v2 = vor.u32 %v16706_v49, %v13184_v50  ;;  %v16649_v43 = vld [vmem:[#allocation2 + $0x1040] sm:$0xf0]  ;;  %v11350_v49 = vld [vmem:[#allocation2 + $0x3b0] sm:$0xf]  ;;  %v16258_v50 = vld [vmem:[#allocation2 + $0x408] sm:$0xf0] }
 0x115   :  { %7408 = vmatpush.bf16.msrb.mxu1 %v13555_v62  ;;  %v17235_v62 = vld [vmem:[#allocation2 + $0x2294] sm:$0xf]  ;;  %v7118_v21 = vpop.f32.mrf.mxu3  ;;  %v16833_v48 = vld [vmem:[#allocation2 + $0x1600] sm:$0xf0]  ;;  %v16442_v53 = vld [vmem:[#allocation2 + $0x9c8] sm:$0xf0] }
 0x116   :  { %7433 = vmatpush.bf16.msra.mxu2 %v15119_v60  ;;  %v14751_v60 = vor.u32 %v17097_v44, %v14748_v46  ;;  %v12179_v46 = vor.u32 %v16465_v36, %v12178_v34  ;;  %v11902_v21 = vld [vmem:[#allocation2 + $0x800] sm:$0xf]  ;;  %v11810_v36 = vld [vmem:[#allocation2 + $0x748] sm:$0xf] }
 0x117   :  { %7396 = vmatpush.bf16.msra.mxu3 %v12727_v3  ;;  %v13920_v3 = vld [vmem:[#allocation2 + $0x1824] sm:$0xf0] }
 0x118   :  { %7421 = vmatpush.bf16.msra.mxu0 %v14291_v9  ;;  %v16683_v9 = vld [vmem:[#allocation2 + $0x1154] sm:$0xf]  ;;  %v7144_v32 = vpop.f32.mrf.mxu2  ;;  %v17592_v37 = vpop.f32.mrf.mxu0 }
 0x119   :  { %7409 = vmatpush.bf16.msrb.mxu1 %v13463_v12  ;;  %v15303_v12 = vor.u32 %v17235_v62, %v15300_v0  ;;  %v12087_v62 = vor.u32 %v16442_v53, %v12086_v52  ;;  %v13558_v0 = vld [vmem:[#allocation2 + $0x14f0] sm:$0xf]  ;;  %v16189_v32 = vld [vmem:[#allocation2 + $0x1e0] sm:$0xf0]  ;;  %v16166_v53 = vld [vmem:[#allocation2 + $0x128] sm:$0xf0] }
 0x11a   :  { %7434 = vmatpush.bf16.msra.mxu2 %v15027_v10  ;;  %v13092_v10 = vld [vmem:[#allocation2 + $0x11ac] sm:$0xf0] }
 0x11b   :  { %7397 = vmatpush.bf16.msra.mxu3 %v12635_v16  ;;  %v13923_v16 = vor.u32 %v16890_v61, %v13920_v3  ;;  %v11351_v61 = vor.u32 %v16258_v50, %v11350_v49  ;;  %v11258_v3 = vld [vmem:[#allocation2 + $0x2f8] sm:$0xf]  ;;  %v16741_v50 = vld [vmem:[#allocation2 + $0x1320] sm:$0xf0]  ;;  %v10982_v52 = vld [vmem:[#allocation2 + $0xd0] sm:$0xf] }
 0x11c   :  { %7422 = vmatpush.bf16.msra.mxu0 %v14199_v22  ;;  %v13095_v22 = vor.u32 %v16683_v9, %v13092_v10  ;;  %v11259_v13 = vor.u32 %v16235_v4, %v11258_v3  ;;  %v16534_v3 = vld [vmem:[#allocation2 + $0xca8] sm:$0xf0] }
 0x11d   :  { %7410 = vmatpush.bf16.msrb.mxu1 %v13371_v26  ;;  %v16672_v26 = vld [vmem:[#allocation2 + $0x10f8] sm:$0xf0]  ;;  %v16718_v4 = vld [vmem:[#allocation2 + $0x1268] sm:$0xf0] }
 0x11e   :  { %7435 = vmatpush.bf16.msra.mxu2 %v14935_v24  ;;  %v14564_v24 = vld [vmem:[#allocation2 + $0x1d2c] sm:$0xf0]  ;;  %v13007_v40 = vor.u32 %v16672_v26, %v13006_v25 }
 0x11f   :  { %7398 = vmatpush.bf16.msra.mxu3 %v12543_v54  ;;  %v11442_v54 = vld [vmem:[#allocation2 + $0x468] sm:$0xf] }
 0x120   :  { %7423 = vmatpush.bf16.msra.mxu0 %v14107_v38  ;;  %v13831_v38 = vor.u32 %v16867_v18, %v13828_v19  ;;  %v11443_v44 = vor.u32 %v16281_v33, %v11442_v54  ;;  %v16787_v18 = vld [vmem:[#allocation2 + $0x1490] sm:$0xf0]  ;;  %v11166_v19 = vld [vmem:[#allocation2 + $0x240] sm:$0xf]  ;;  %v11074_v54 = vld [vmem:[#allocation2 + $0x188] sm:$0xf] }
 0x121   :  { %7411 = vmatpush.bf16.msrb.mxu1 %v13279_v42  ;;  %v12914_v42 = vld [vmem:[#allocation2 + $0xfe8] sm:$0xf] }
 0x122   :  { %7436 = vmatpush.bf16.msra.mxu2 %v14843_v39  ;;  %v14567_v39 = vor.u32 %v17051_v20, %v14564_v24  ;;  %v12915_v56 = vor.u32 %v16649_v43, %v12914_v42  ;;  %v16212_v20 = vld [vmem:[#allocation2 + $0x298] sm:$0xf0]  ;;  %v11075_v43 = vor.u32 %v16189_v32, %v11074_v54  ;;  %v11536_v54 = vld [vmem:[#allocation2 + $0x57c] sm:$0xf0]  ;;  %v14386_v32 = vld [vmem:[#allocation2 + $0x1b68] sm:$0xf] }
 0x123   :  { %7399 = vmatpush.bf16.msra.mxu3 %v12451_v47  ;;  %v13650_v47 = vld [vmem:[#allocation2 + $0x15a8] sm:$0xf]  ;;  %v11167_v26 = vor.u32 %v16212_v20, %v11166_v19 }
 0x124   :  { %7424 = vmatpush.bf16.msra.mxu0 %v14015_v59  ;;  %v13651_v58 = vor.u32 %v16833_v48, %v13650_v47  ;;  %v12822_v59 = vld [vmem:[#allocation2 + $0xf30] sm:$0xf]  ;;  %v13282_v47 = vld [vmem:[#allocation2 + $0x12c8] sm:$0xf] }
 0x125   :  { %7412 = vmatpush.bf16.msrb.mxu1 %v13187_v2  ;;  %v16810_v2 = vld [vmem:[#allocation2 + $0x1548] sm:$0xf0]  ;;  %v7155_v9 = vpop.f32.mrf.mxu1 }
 0x126   :  { %7437 = vmatpush.bf16.msra.mxu2 %v14751_v60  ;;  %v16626_v60 = vld [vmem:[#allocation2 + $0xf88] sm:$0xf0]  ;;  %v13559_v11 = vor.u32 %v16810_v2, %v13558_v0  ;;  %v13283_v0 = vor.u32 %v16741_v50, %v13282_v47  ;;  %v10983_v2 = vor.u32 %v16166_v53, %v10982_v52  ;;  %v14294_v50 = vld [vmem:[#allocation2 + $0x1ab0] sm:$0xf] }
 0x127   :  { %7400 = vmatpush.bf16.msra.mxu3 %v12359_v8  ;;  %v7183_v8 = vpop.f32.mrf.mxu0  ;;  %v12823_v10 = vor.u32 %v16626_v60, %v12822_v59  ;;  %v16350_v59 = vld [vmem:[#allocation2 + $0x6e8] sm:$0xf0] }
 0x128   :  { %7425 = vmatpush.bf16.msra.mxu0 %v13923_v16  ;;  %v16603_v16 = vld [vmem:[#allocation2 + $0xed0] sm:$0xf0]  ;;  %v16994_v52 = vld [vmem:[#allocation2 + $0x1b08] sm:$0xf0] }
 0x129   :  { %7413 = vmatpush.bf16.msrb.mxu1 %v13095_v22  ;;  %v16396_v22 = vld [vmem:[#allocation2 + $0x858] sm:$0xf0]  ;;  %v12731_v24 = vor.u32 %v16603_v16, %v12730_v15  ;;  %v16143_v8 = vld [vmem:[#allocation2 + $0x70] sm:$0xf0]  ;;  %v15214_v16 = vld [vmem:[#allocation2 + $0x21e0] sm:$0xf] }
 0x12a   :  { %7438 = vmatpush.bf16.msra.mxu2 %v14659_v17  ;;  %7401 = vmatmul.bf16.vlgmr.msra.gmra.mxu3 %v17512_v51  ;;  %v13466_v17 = vld [vmem:[#allocation2 + $0x1438] sm:$0xf]  ;;  %v11903_v29 = vor.u32 %v16396_v22, %v11902_v21  ;;  %v10891_v20 = vor.u32 %v16143_v8, %v10890_v6  ;;  %v16511_v21 = vld [vmem:[#allocation2 + $0xbf0] sm:$0xf0] }
 0x12b   :  { %7452 = vmatpush.bf16.msrb.mxu3 %v15303_v12  ;;  %v7156_v12 = vadd.f32 %v7155_v9, %v17590_v1  ;;  %v13467_v25 = vor.u32 %v16787_v18, %v13466_v17  ;;  %v12638_v1 = vld [vmem:[#allocation2 + $0xdc0] sm:$0xf]  ;;  %v11626_v9 = vld [vmem:[#allocation2 + $0x5d8] sm:$0xf]  ;;  %v17224_v17 = vld [vmem:[#allocation2 + $0x2238] sm:$0xf0] }
 0x12c   :  { %7426 = vmatpush.bf16.msra.mxu0 %v13831_v38  ;;  %7414 = vmatmul.bf16.vlgmr.msrb.gmra.mxu1 %v17516_v57  ;;  %v16373_v38 = vld [vmem:[#allocation2 + $0x7a0] sm:$0xf0]  ;;  %v12362_v18 = vld [vmem:[#allocation2 + $0xb98] sm:$0xf] }
 0x12d   :  { %7458 = vmatpush.bf16.msra.mxu1 %v11535_v27  ;;  %v16580_v27 = vld [vmem:[#allocation2 + $0xe18] sm:$0xf0]  ;;  %v7168_v34 = vpop.f32.mrf.mxu3  ;;  %v11811_v49 = vor.u32 %v16373_v38, %v11810_v36  ;;  %v13098_v22 = vld [vmem:[#allocation2 + $0x1158] sm:$0xf]  ;;  %v15122_v36 = vld [vmem:[#allocation2 + $0x2128] sm:$0xf] }
 0x12e   :  { %7439 = vmatpush.bf16.msra.mxu2 %v14567_v39  ;;  %v7169_v39 = vadd.f32 %v7168_v34, %v7156_v12  ;;  %v14478_v12 = vld [vmem:[#allocation2 + $0x1c20] sm:$0xf]  ;;  %v12363_v34 = vor.u32 %v16511_v21, %v12362_v18  ;;  %v17201_v38 = vld [vmem:[#allocation2 + $0x2180] sm:$0xf0]  ;;  %v14938_v8 = vld [vmem:[#allocation2 + $0x1fb8] sm:$0xf] }
 0x12f   :  { %7471 = vmatpush.bf16.msra.mxu3 %v12271_v28  ;;  %7427 = vmatmul.bf16.vlgmr.msra.gmra.mxu0 %v17540_v30  ;;  %v13374_v28 = vld [vmem:[#allocation2 + $0x1380] sm:$0xf]  ;;  %v7207_v33 = vpop.f32.mrf.mxu0  ;;  %v15123_v47 = vor.u32 %v17201_v38, %v15122_v36  ;;  %v11260_v18 = vld [vmem:[#allocation2 + $0x354] sm:$0xf0]  ;;  %v14754_v36 = vld [vmem:[#allocation2 + $0x1e48] sm:$0xf] }
 0x130   :  { %7484 = vmatpush.bf16.msrb.mxu0 %v13007_v40  ;;  %v12639_v40 = vor.u32 %v16580_v27, %v12638_v1  ;;  %v13375_v42 = vor.u32 %v16764_v63, %v13374_v28  ;;  %v17602_v48 = vadd.f32 %v17592_v37, %v7169_v39  ;;  %v13190_v37 = vld [vmem:[#allocation2 + $0x1210] sm:$0xf]  ;;  %v16293_v1 = vld [vmem:[#allocation2 + $0x524] sm:$0xf]  ;;  %v15306_v27 = vld [vmem:[#allocation2 + $0x2298] sm:$0xf]  ;;  %v15215_v63 = vor.u32 %v17224_v17, %v15214_v16 }
 0x131   :  { %7459 = vmatpush.bf16.msra.mxu1 %v11443_v44  ;;  %7440 = vmatmul.bf16.vlgmr.msra.gmra.mxu2 %v17542_v35  ;;  %v12546_v44 = vld [vmem:[#allocation2 + $0xd08] sm:$0xf]  ;;  %v13191_v19 = vor.u32 %v16718_v4, %v13190_v37  ;;  %v17247_v28 = vld [vmem:[#allocation2 + $0x22f0] sm:$0xf0]  ;;  %v11352_v37 = vld [vmem:[#allocation2 + $0x40c] sm:$0xf0] }
 0x132   :  { %7497 = vmatpush.bf16.msrb.mxu2 %v13743_v41  ;;  %v7157_v41 = vpop.f32.mrf.mxu1  ;;  %v14202_v4 = vld [vmem:[#allocation2 + $0x19f8] sm:$0xf]  ;;  %v16224_v16 = vld [vmem:[#allocation2 + $0x2fc] sm:$0xf]  ;;  %v17109_v38 = vld [vmem:[#allocation2 + $0x1ea0] sm:$0xf0] }
 0x133   :  { %7472 = vmatpush.bf16.msra.mxu3 %v12179_v46  ;;  %v16557_v46 = vld [vmem:[#allocation2 + $0xd60] sm:$0xf0] }
 0x134   :  { %7485 = vmatpush.bf16.msrb.mxu0 %v12915_v56  ;;  %v7194_v56 = vpop.f32.mrf.mxu2  ;;  %v16477_v41 = vld [vmem:[#allocation2 + $0xae4] sm:$0xf] }
 0x135   :  { %7460 = vmatpush.bf16.msra.mxu1 %v11351_v61  ;;  %v17604_v60 = vadd.f32 %v7207_v33, %v7194_v56  ;;  %v12547_v61 = vor.u32 %v16557_v46, %v12546_v44  ;;  %v17017_v33 = vld [vmem:[#allocation2 + $0x1bc0] sm:$0xf0]  ;;  %v16270_v46 = vld [vmem:[#allocation2 + $0x46c] sm:$0xf]  ;;  %v15030_v56 = vld [vmem:[#allocation2 + $0x2070] sm:$0xf] }
 0x136   :  { %7498 = vmatpush.bf16.msrb.mxu2 %v13651_v58  ;;  %v11718_v58 = vld [vmem:[#allocation2 + $0x690] sm:$0xf]  ;;  %v14387_v44 = vor.u32 %v17017_v33, %v14386_v32 }
 0x137   :  { %7473 = vmatpush.bf16.msra.mxu3 %v12087_v62  ;;  %v12454_v62 = vld [vmem:[#allocation2 + $0xc50] sm:$0xf]  ;;  %v11719_v5 = vor.u32 %v16350_v59, %v11718_v58  ;;  %v17178_v58 = vld [vmem:[#allocation2 + $0x20c8] sm:$0xf0] }
 0x138   :  { %7486 = vmatpush.bf16.msrb.mxu0 %v12823_v10  ;;  %v7209_v10 = vpop.f32.mrf.mxu0  ;;  %v12455_v15 = vor.u32 %v16534_v3, %v12454_v62  ;;  %v16454_v59 = vld [vmem:[#allocation2 + $0xa2c] sm:$0xf]  ;;  %v15031_v3 = vor.u32 %v17178_v58, %v15030_v56 }
 0x139   :  { %7461 = vmatpush.bf16.msra.mxu1 %v11259_v13  ;;  %v17040_v13 = vld [vmem:[#allocation2 + $0x1c78] sm:$0xf0]  ;;  %v16902_v56 = vld [vmem:[#allocation2 + $0x1828] sm:$0xf0] }
 0x13a   :  { %7499 = vmatpush.bf16.msrb.mxu2 %v13559_v11  ;;  %15377 = vmatmul.msk.bf16.vlgmr.msrb.gmra.mxu3 %vm6908_vm0, %v17530_v45  ;;  %v16327_v11 = vld [vmem:[#allocation2 + $0x630] sm:$0xf0] }
 0x13b   :  { %7474 = vmatpush.bf16.msra.mxu3 %v11995_v14  ;;  %v7170_v14 = vpop.f32.mrf.mxu3 }
 0x13c   :  { %7487 = vmatpush.bf16.msrb.mxu0 %v12731_v24  ;;  %v16695_v24 = vld [vmem:[#allocation2 + $0x11b0] sm:$0xf0] }
 0x13d   :  { %7462 = vmatpush.bf16.msra.mxu1 %v11167_v26  ;;  %v14479_v26 = vor.u32 %v17040_v13, %v14478_v12  ;;  %v13099_v39 = vor.u32 %v16695_v24, %v13098_v22  ;;  %v12088_v12 = vld [vmem:[#allocation2 + $0x9cc] sm:$0xf0]  ;;  %v14846_v22 = vld [vmem:[#allocation2 + $0x1f00] sm:$0xf]  ;;  %v17132_v24 = vld [vmem:[#allocation2 + $0x1f58] sm:$0xf0] }
 0x13e   :  { %7500 = vmatpush.bf16.msrb.mxu2 %v13467_v25  ;;  %v11627_v25 = vor.u32 %v16327_v11, %v11626_v9  ;;  %v17155_v9 = vld [vmem:[#allocation2 + $0x2010] sm:$0xf0] }
 0x13f   :  { %7475 = vmatpush.bf16.msra.mxu3 %v11903_v29  ;;  %v7196_v29 = vpop.f32.mrf.mxu2  ;;  %v16431_v11 = vld [vmem:[#allocation2 + $0x974] sm:$0xf]  ;;  %v14939_v17 = vor.u32 %v17155_v9, %v14938_v8 }
 0x140   :  { %7488 = vmatpush.bf16.msrb.mxu0 %v12639_v40  ;;  %v15307_v40 = vor.u32 %v17247_v28, %v15306_v27  ;;  %v12091_v21 = vor.u32 %v16431_v11, %v12088_v12  ;;  %v14847_v28 = vor.u32 %v17132_v24, %v14846_v22  ;;  %v11168_v29 = vld [vmem:[#allocation2 + $0x29c] sm:$0xf0]  ;;  %v16879_v9 = vld [vmem:[#allocation2 + $0x1770] sm:$0xf0] }
 0x141   :  { %7463 = vmatpush.bf16.msra.mxu1 %v11075_v43  ;;  %v11539_v43 = vor.u32 %v16293_v1, %v11536_v54  ;;  %v11263_v1 = vor.u32 %v16224_v16, %v11260_v18  ;;  %v16925_v54 = vld [vmem:[#allocation2 + $0x18e0] sm:$0xf0]  ;;  %v17063_v11 = vld [vmem:[#allocation2 + $0x1d30] sm:$0xf0] }
 0x142   :  { %7501 = vmatpush.bf16.msrb.mxu2 %v13375_v42  ;;  %v12272_v42 = vld [vmem:[#allocation2 + $0xb3c] sm:$0xf0] }
 0x143   :  { %7476 = vmatpush.bf16.msra.mxu3 %v11811_v49  ;;  %v11444_v49 = vld [vmem:[#allocation2 + $0x4c4] sm:$0xf0]  ;;  %v12275_v53 = vor.u32 %v16477_v41, %v12272_v42  ;;  %v16385_v41 = vld [vmem:[#allocation2 + $0x804] sm:$0xf]  ;;  %v11904_v42 = vld [vmem:[#allocation2 + $0x85c] sm:$0xf0] }
 0x144   :  { %7489 = vmatpush.bf16.msrb.mxu0 %v12547_v61  ;;  %v12180_v61 = vld [vmem:[#allocation2 + $0xa84] sm:$0xf0]  ;;  %v11447_v62 = vor.u32 %v16270_v46, %v11444_v49  ;;  %v11907_v58 = vor.u32 %v16385_v41, %v11904_v42  ;;  %v17213_v42 = vld [vmem:[#allocation2 + $0x21e4] sm:$0xf] }
 0x145   :  { %7464 = vmatpush.bf16.msra.mxu1 %v10983_v2  ;;  %v16247_v2 = vld [vmem:[#allocation2 + $0x3b4] sm:$0xf]  ;;  %v12183_v6 = vor.u32 %v16454_v59, %v12180_v61  ;;  %v7220_v10 = vpop.f32.mrf.mxu1  ;;  %v14662_v59 = vld [vmem:[#allocation2 + $0x1d90] sm:$0xf]  ;;  %v17086_v61 = vld [vmem:[#allocation2 + $0x1de8] sm:$0xf0] }
 0x146   :  { %7502 = vmatpush.bf16.msrb.mxu2 %v13283_v0  ;;  %v14295_v0 = vor.u32 %v16994_v52, %v14294_v50  ;;  %v7221_v13 = vadd.f32 %v7220_v10, %v17604_v60  ;;  %v11355_v14 = vor.u32 %v16247_v2, %v11352_v37  ;;  %v16201_v60 = vld [vmem:[#allocation2 + $0x244] sm:$0xf]  ;;  %v14755_v50 = vor.u32 %v17109_v38, %v14754_v36  ;;  %v11076_v52 = vld [vmem:[#allocation2 + $0x1e4] sm:$0xf0]  ;;  %v14570_v10 = vld [vmem:[#allocation2 + $0x1cd8] sm:$0xf] }
 0x147   :  { %7477 = vmatpush.bf16.msra.mxu3 %v11719_v5  ;;  %v16971_v5 = vld [vmem:[#allocation2 + $0x1a50] sm:$0xf0]  ;;  %v11812_v2 = vld [vmem:[#allocation2 + $0x7a4] sm:$0xf0]  ;;  %v14663_v8 = vor.u32 %v17086_v61, %v14662_v59  ;;  %v16822_v36 = vld [vmem:[#allocation2 + $0x15ac] sm:$0xf] }
 0x148   :  { %7490 = vmatpush.bf16.msrb.mxu0 %v12455_v15  ;;  %v14203_v15 = vor.u32 %v16971_v5, %v14202_v4  ;;  %v16155_v4 = vld [vmem:[#allocation2 + $0xd4] sm:$0xf]  ;;  %v10984_v5 = vld [vmem:[#allocation2 + $0x12c] sm:$0xf0]  ;;  %v13652_v38 = vld [vmem:[#allocation2 + $0x1604] sm:$0xf0] }
 0x149   :  { %7465 = vmatpush.bf16.msra.mxu1 %v10891_v20  ;;  %v16948_v20 = vld [vmem:[#allocation2 + $0x1998] sm:$0xf0]  ;;  %v10987_v24 = vor.u32 %v16155_v4, %v10984_v5  ;;  %v16799_v59 = vld [vmem:[#allocation2 + $0x14f4] sm:$0xf]  ;;  %v13560_v61 = vld [vmem:[#allocation2 + $0x154c] sm:$0xf0] }
 0x14a   :  { %7503 = vmatpush.bf16.msrb.mxu2 %v13191_v19  ;;  %v14110_v19 = vld [vmem:[#allocation2 + $0x1940] sm:$0xf]  ;;  %v16983_v4 = vld [vmem:[#allocation2 + $0x1ab4] sm:$0xf]  ;;  %v13563_v5 = vor.u32 %v16799_v59, %v13560_v61 }
 0x14b   :  { %7478 = vmatpush.bf16.msra.mxu3 %v11627_v25  ;;  %v16408_v25 = vld [vmem:[#allocation2 + $0x8bc] sm:$0xf]  ;;  %v14111_v27 = vor.u32 %v16948_v20, %v14110_v19  ;;  %v13744_v19 = vld [vmem:[#allocation2 + $0x16bc] sm:$0xf0]  ;;  %v16339_v20 = vld [vmem:[#allocation2 + $0x694] sm:$0xf] }
 0x14c   :  { %7491 = vmatpush.bf16.msrb.mxu0 %v12363_v34  ;;  %7466 = vmatmul.bf16.vlgmr.msra.gmra.mxu1 %v17514_v55  ;;  %v7259_v34 = vpop.f32.mrf.mxu0 }
 0x14d   :  { %7510 = vmatpush.bf16.msrb.mxu1 %v14479_v26  ;;  %v11996_v26 = vld [vmem:[#allocation2 + $0x914] sm:$0xf0]  ;;  %v7233_v32 = vpop.f32.mrf.mxu3 }
 0x14e   :  { %7504 = vmatpush.bf16.msrb.mxu2 %v13099_v39  ;;  %7479 = vmatmul.bf16.vlgmr.msra.gmra.mxu3 %v17523_v7  ;;  %v11999_v33 = vor.u32 %v16408_v25, %v11996_v26  ;;  %v7234_v39 = vadd.f32 %v7233_v32, %v7221_v13  ;;  %v16661_v13 = vld [vmem:[#allocation2 + $0x10a4] sm:$0xf]  ;;  %v16132_v26 = vld [vmem:[#allocation2 + $0x1c] sm:$0xf] }
 0x14f   :  { %7523 = vmatpush.bf16.msrb.mxu3 %v15215_v63  ;;  %7492 = vmatmul.bf16.vlgmr.msrb.gmra.mxu0 %v17512_v51  ;;  %v14018_v63 = vld [vmem:[#allocation2 + $0x1888] sm:$0xf] }
 0x150   :  { %7543 = vmatpush.bf16.msra.mxu0 %v15307_v40  ;;  %v7222_v40 = vpop.f32.mrf.mxu1  ;;  %v14019_v46 = vor.u32 %v16925_v54, %v14018_v63  ;;  %v14480_v63 = vld [vmem:[#allocation2 + $0x1c7c] sm:$0xf0] }
 0x151   :  { %7511 = vmatpush.bf16.msrb.mxu1 %v14387_v44  ;;  %7505 = vmatmul.bf16.vlgmr.msrb.gmra.mxu2 %v17516_v57  ;;  %v11171_v44 = vor.u32 %v16201_v60, %v11168_v29  ;;  %v17029_v29 = vld [vmem:[#allocation2 + $0x1c24] sm:$0xf]  ;;  %v11628_v40 = vld [vmem:[#allocation2 + $0x634] sm:$0xf0] }
 0x152   :  { %7549 = vmatpush.bf16.msra.mxu2 %v11539_v43  ;;  %v7246_v43 = vpop.f32.mrf.mxu2 }
 0x153   :  { %7524 = vmatpush.bf16.msrb.mxu3 %v15123_v47  ;;  %v16178_v47 = vld [vmem:[#allocation2 + $0x18c] sm:$0xf]  ;;  %v7247_v49 = vadd.f32 %v7246_v43, %v7234_v39  ;;  %v16316_v39 = vld [vmem:[#allocation2 + $0x5dc] sm:$0xf]  ;;  %v15216_v43 = vld [vmem:[#allocation2 + $0x223c] sm:$0xf0] }
 0x154   :  { %7562 = vmatpush.bf16.msrb.mxu0 %v12275_v53  ;;  %v13926_v53 = vld [vmem:[#allocation2 + $0x17d0] sm:$0xf] }
 0x155   :  { %7512 = vmatpush.bf16.msrb.mxu1 %v14295_v0  ;;  %v16362_v0 = vld [vmem:[#allocation2 + $0x74c] sm:$0xf]  ;;  %v13927_v37 = vor.u32 %v16902_v56, %v13926_v53  ;;  %v7235_v16 = vpop.f32.mrf.mxu3  ;;  %v16615_v53 = vld [vmem:[#allocation2 + $0xf34] sm:$0xf]  ;;  %v12824_v56 = vld [vmem:[#allocation2 + $0xf8c] sm:$0xf0] }
 0x156   :  { %7550 = vmatpush.bf16.msra.mxu2 %v11447_v62  ;;  %v7260_v62 = vadd.f32 %v7259_v34, %v7247_v49  ;;  %v11815_v12 = vor.u32 %v16362_v0, %v11812_v2  ;;  %v12916_v34 = vld [vmem:[#allocation2 + $0x1044] sm:$0xf0]  ;;  %v13655_v49 = vor.u32 %v16822_v36, %v13652_v38  ;;  %v17190_v0 = vld [vmem:[#allocation2 + $0x212c] sm:$0xf] }
 0x157   :  { %7525 = vmatpush.bf16.msrb.mxu3 %v15031_v3  ;;  %v11079_v3 = vor.u32 %v16178_v47, %v11076_v52  ;;  %v17006_v47 = vld [vmem:[#allocation2 + $0x1b6c] sm:$0xf]  ;;  %v14388_v52 = vld [vmem:[#allocation2 + $0x1bc4] sm:$0xf0] }
 0x158   :  { %7563 = vmatpush.bf16.msrb.mxu0 %v12183_v6  ;;  %v13834_v6 = vld [vmem:[#allocation2 + $0x1718] sm:$0xf]  ;;  %v7272_v18 = vpop.f32.mrf.mxu1  ;;  %v15124_v2 = vld [vmem:[#allocation2 + $0x2184] sm:$0xf0]  ;;  %v16730_v38 = vld [vmem:[#allocation2 + $0x12cc] sm:$0xf] }
 0x159   :  { %7513 = vmatpush.bf16.msrb.mxu1 %v14203_v15  ;;  %v16845_v15 = vld [vmem:[#allocation2 + $0x1664] sm:$0xf]  ;;  %v17613_v22 = vadd.f32 %v7272_v18, %v7260_v62  ;;  %v13835_v25 = vor.u32 %v16879_v9, %v13834_v6  ;;  %v14296_v6 = vld [vmem:[#allocation2 + $0x1b0c] sm:$0xf0]  ;;  %v12732_v9 = vld [vmem:[#allocation2 + $0xed4] sm:$0xf0] }
 0x15a   :  { %7551 = vmatpush.bf16.msra.mxu2 %v11355_v14  ;;  %v13008_v14 = vld [vmem:[#allocation2 + $0x10fc] sm:$0xf0]  ;;  %v13747_v54 = vor.u32 %v16845_v15, %v13744_v19  ;;  %v14299_v15 = vor.u32 %v16983_v4, %v14296_v6  ;;  %v14204_v19 = vld [vmem:[#allocation2 + $0x1a54] sm:$0xf0] }
 0x15b   :  { %7526 = vmatpush.bf16.msrb.mxu3 %v14939_v17  ;;  %v7261_v17 = vpop.f32.mrf.mxu0  ;;  %v13011_v60 = vor.u32 %v16661_v13, %v13008_v14  ;;  %v17167_v13 = vld [vmem:[#allocation2 + $0x2074] sm:$0xf]  ;;  %v15032_v14 = vld [vmem:[#allocation2 + $0x20cc] sm:$0xf0] }
 0x15c   :  { %7564 = vmatpush.bf16.msrb.mxu0 %v12091_v21  ;;  %v11720_v21 = vld [vmem:[#allocation2 + $0x6ec] sm:$0xf0]  ;;  %v16960_v17 = vld [vmem:[#allocation2 + $0x19fc] sm:$0xf] }
 0x15d   :  { %7514 = vmatpush.bf16.msrb.mxu1 %v14111_v27  ;;  %v14571_v27 = vor.u32 %v17063_v11, %v14570_v10  ;;  %v11723_v32 = vor.u32 %v16339_v20, %v11720_v21  ;;  %v15127_v10 = vor.u32 %v17190_v0, %v15124_v2  ;;  %v16776_v11 = vld [vmem:[#allocation2 + $0x143c] sm:$0xf]  ;;  %v16569_v20 = vld [vmem:[#allocation2 + $0xdc4] sm:$0xf]  ;;  %v12640_v21 = vld [vmem:[#allocation2 + $0xe1c] sm:$0xf0] }
 0x15e   :  { %7552 = vmatpush.bf16.msra.mxu2 %v11263_v1  ;;  %v7248_v1 = vpop.f32.mrf.mxu2  ;;  %v13192_v0 = vld [vmem:[#allocation2 + $0x126c] sm:$0xf0] }
 0x15f   :  { %7527 = vmatpush.bf16.msrb.mxu3 %v14847_v28  ;;  %15378 = vmatmul.msk.bf16.vlgmr.msra.gmra.mxu0 %vm6908_vm0, %v17530_v45  ;;  %v10892_v28 = vld [vmem:[#allocation2 + $0x74] sm:$0xf0] }
 0x160   :  { %7565 = vmatpush.bf16.msrb.mxu0 %v11999_v33  ;;  %v16638_v33 = vld [vmem:[#allocation2 + $0xfec] sm:$0xf]  ;;  %v10895_v41 = vor.u32 %v16132_v26, %v10892_v28  ;;  %v7274_v62 = vpop.f32.mrf.mxu1  ;;  %v13376_v26 = vld [vmem:[#allocation2 + $0x13dc] sm:$0xf0]  ;;  %v14207_v28 = vor.u32 %v16960_v17, %v14204_v19  ;;  %v17236_v17 = vld [vmem:[#allocation2 + $0x229c] sm:$0xf] }
 0x161   :  { %7515 = vmatpush.bf16.msrb.mxu1 %v14019_v46  ;;  %v12919_v46 = vor.u32 %v16638_v33, %v12916_v34  ;;  %v16546_v33 = vld [vmem:[#allocation2 + $0xd0c] sm:$0xf]  ;;  %v12548_v34 = vld [vmem:[#allocation2 + $0xd64] sm:$0xf0]  ;;  %v16707_v62 = vld [vmem:[#allocation2 + $0x1214] sm:$0xf] }
 0x162   :  { %7553 = vmatpush.bf16.msra.mxu2 %v11171_v44  ;;  %v14483_v44 = vor.u32 %v17029_v29, %v14480_v63  ;;  %v12643_v29 = vor.u32 %v16569_v20, %v12640_v21  ;;  %v16937_v63 = vld [vmem:[#allocation2 + $0x1944] sm:$0xf]  ;;  %v17075_v21 = vld [vmem:[#allocation2 + $0x1d94] sm:$0xf] }
 0x163   :  { %7528 = vmatpush.bf16.msrb.mxu3 %v14755_v50  ;;  %v11631_v50 = vor.u32 %v16316_v39, %v11628_v40  ;;  %v13284_v39 = vld [vmem:[#allocation2 + $0x1324] sm:$0xf0]  ;;  %v16305_v20 = vld [vmem:[#allocation2 + $0x580] sm:$0xf0] }
 0x164   :  { %7566 = vmatpush.bf16.msrb.mxu0 %v11907_v58  ;;  %v15219_v58 = vor.u32 %v17213_v42, %v15216_v43  ;;  %v17121_v42 = vld [vmem:[#allocation2 + $0x1f04] sm:$0xf]  ;;  %v14848_v43 = vld [vmem:[#allocation2 + $0x1f5c] sm:$0xf0] }
 0x165   :  { %7516 = vmatpush.bf16.msrb.mxu1 %v13927_v37  ;;  %v12827_v37 = vor.u32 %v16615_v53, %v12824_v56  ;;  %v14020_v53 = vld [vmem:[#allocation2 + $0x18e4] sm:$0xf0]  ;;  %v16523_v56 = vld [vmem:[#allocation2 + $0xc54] sm:$0xf]  ;;  %v14851_v59 = vor.u32 %v17121_v42, %v14848_v43  ;;  %v14572_v42 = vld [vmem:[#allocation2 + $0x1d34] sm:$0xf0] }
 0x166   :  { %7554 = vmatpush.bf16.msra.mxu2 %v11079_v3  ;;  %v14391_v3 = vor.u32 %v17006_v47, %v14388_v52  ;;  %v12551_v47 = vor.u32 %v16546_v33, %v12548_v34  ;;  %v13287_v52 = vor.u32 %v16730_v38, %v13284_v39  ;;  %v16673_v38 = vld [vmem:[#allocation2 + $0x1100] sm:$0xf0]  ;;  %v11450_v39 = vld [vmem:[#allocation2 + $0x470] sm:$0xf] }
 0x167   :  { %7529 = vmatpush.bf16.msrb.mxu3 %v14663_v8  ;;  %v16592_v8 = vld [vmem:[#allocation2 + $0xe7c] sm:$0xf] }
 0x168   :  { %7567 = vmatpush.bf16.msrb.mxu0 %v11815_v12  ;;  %v13468_v12 = vld [vmem:[#allocation2 + $0x1494] sm:$0xf0]  ;;  %v12735_v16 = vor.u32 %v16592_v8, %v12732_v9  ;;  %v16891_v8 = vld [vmem:[#allocation2 + $0x17d4] sm:$0xf]  ;;  %v13928_v9 = vld [vmem:[#allocation2 + $0x182c] sm:$0xf0] }
 0x169   :  { %7517 = vmatpush.bf16.msrb.mxu1 %v13835_v25  ;;  %v13471_v18 = vor.u32 %v16776_v11, %v13468_v12  ;;  %v16753_v25 = vld [vmem:[#allocation2 + $0x1384] sm:$0xf]  ;;  %v7298_v1 = vpop.f32.mrf.mxu1  ;;  %v13195_v11 = vor.u32 %v16707_v62, %v13192_v0  ;;  %v12364_v12 = vld [vmem:[#allocation2 + $0xbf4] sm:$0xf0]  ;;  %v16259_v0 = vld [vmem:[#allocation2 + $0x410] sm:$0xf0] }
 0x16a   :  { %7555 = vmatpush.bf16.msra.mxu2 %v10987_v24  ;;  %v15035_v24 = vor.u32 %v17167_v13, %v15032_v14  ;;  %v16684_v13 = vld [vmem:[#allocation2 + $0x115c] sm:$0xf]  ;;  %v13100_v14 = vld [vmem:[#allocation2 + $0x11b4] sm:$0xf0] }
 0x16b   :  { %7530 = vmatpush.bf16.msrb.mxu3 %v14571_v27  ;;  %v17144_v27 = vld [vmem:[#allocation2 + $0x1fbc] sm:$0xf]  ;;  %v11358_v62 = vld [vmem:[#allocation2 + $0x3b8] sm:$0xf] }
 0x16c   :  { %7568 = vmatpush.bf16.msrb.mxu0 %v11723_v32  ;;  %7518 = vmatmul.bf16.vlgmr.msrb.gmra.mxu1 %v17540_v30  ;;  %v14112_v32 = vld [vmem:[#allocation2 + $0x199c] sm:$0xf0]  ;;  %v7324_v40 = vpop.f32.mrf.mxu0 }
 0x16d   :  { %7575 = vmatpush.bf16.msra.mxu1 %v13011_v60  ;;  %v14940_v60 = vld [vmem:[#allocation2 + $0x2014] sm:$0xf0] }
 0x16e   :  { %7531 = vmatmul.bf16.vlgmr.msrb.gmra.mxu3 %v17542_v35  ;;  %7556 = vmatpush.bf16.msra.mxu2 %v10895_v41  ;;  %v14943_v36 = vor.u32 %v17144_v27, %v14940_v60  ;;  %v7285_v41 = vpop.f32.mrf.mxu3  ;;  %v16868_v27 = vld [vmem:[#allocation2 + $0x171c] sm:$0xf] }
 0x16f   :  { %7588 = vmatpush.bf16.msra.mxu3 %v13747_v54  ;;  %v13379_v54 = vor.u32 %v16753_v25, %v13376_v26  ;;  %v13931_v26 = vor.u32 %v16891_v8, %v13928_v9  ;;  %v11359_v9 = vor.u32 %v16259_v0, %v11358_v62  ;;  %v12554_v62 = vld [vmem:[#allocation2 + $0xd10] sm:$0xf]  ;;  %v16558_v0 = vld [vmem:[#allocation2 + $0xd68] sm:$0xf0] }
 0x170   :  { %7569 = vmatpush.bf16.msrb.mxu0 %v11631_v50  ;;  %v7311_v50 = vpop.f32.mrf.mxu2 }
 0x171   :  { %7576 = vmatpush.bf16.msra.mxu1 %v12919_v46  ;;  %7557 = vmatmul.bf16.vlgmr.msra.gmra.mxu2 %v17514_v55  ;;  %v14115_v46 = vor.u32 %v16937_v63, %v14112_v32  ;;  %v7300_v2 = vpop.f32.mrf.mxu1  ;;  %v16489_v32 = vld [vmem:[#allocation2 + $0xb40] sm:$0xf0] }
 0x172   :  { %7601 = vmatpush.bf16.msrb.mxu2 %v14483_v44  ;;  %v7299_v44 = vadd.f32 %v7298_v1, %v7285_v41  ;;  %v17052_v41 = vld [vmem:[#allocation2 + $0x1cdc] sm:$0xf]  ;;  %v13658_v2 = vld [vmem:[#allocation2 + $0x15b0] sm:$0xf] }
 0x173   :  { %7589 = vmatpush.bf16.msra.mxu3 %v13655_v49  ;;  %7570 = vmatmul.bf16.vlgmr.msrb.gmra.mxu0 %v17523_v7  ;;  %v16914_v49 = vld [vmem:[#allocation2 + $0x188c] sm:$0xf] }
 0x174   :  { %7614 = vmatpush.bf16.msra.mxu0 %v15219_v58  ;;  %v12456_v58 = vld [vmem:[#allocation2 + $0xcac] sm:$0xf0]  ;;  %v7312_v61 = vadd.f32 %v7311_v50, %v7299_v44  ;;  %v7326_v19 = vpop.f32.mrf.mxu0  ;;  %v13750_v44 = vld [vmem:[#allocation2 + $0x1668] sm:$0xf] }
 0x175   :  { %7577 = vmatpush.bf16.msra.mxu1 %v12827_v37  ;;  %v14756_v37 = vld [vmem:[#allocation2 + $0x1ea4] sm:$0xf0]  ;;  %v12459_v6 = vor.u32 %v16523_v56, %v12456_v58  ;;  %v12186_v50 = vld [vmem:[#allocation2 + $0xa30] sm:$0xf]  ;;  %v16466_v56 = vld [vmem:[#allocation2 + $0xa88] sm:$0xf0] }
 0x176   :  { %7602 = vmatpush.bf16.msrb.mxu2 %v14391_v3  ;;  %v17098_v3 = vld [vmem:[#allocation2 + $0x1e4c] sm:$0xf]  ;;  %v17619_v4 = vadd.f32 %v7324_v40, %v7312_v61  ;;  %v7287_v25 = vpop.f32.mrf.mxu3  ;;  %v12922_v58 = vld [vmem:[#allocation2 + $0xff0] sm:$0xf] }
 0x177   :  { %7590 = vmatpush.bf16.msra.mxu3 %v13563_v5  ;;  %v14023_v5 = vor.u32 %v16914_v49, %v14020_v53  ;;  %v16282_v40 = vld [vmem:[#allocation2 + $0x4c8] sm:$0xf0]  ;;  %v14575_v53 = vor.u32 %v17052_v41, %v14572_v42  ;;  %v12738_v25 = vld [vmem:[#allocation2 + $0xe80] sm:$0xf] }
 0x178   :  { %7615 = vmatpush.bf16.msra.mxu0 %v15127_v10  ;;  %v16500_v10 = vld [vmem:[#allocation2 + $0xb9c] sm:$0xf]  ;;  %v7313_v60 = vpop.f32.mrf.mxu2 }
 0x179   :  { %7578 = vmatpush.bf16.msra.mxu1 %v12735_v16  ;;  %v11542_v16 = vld [vmem:[#allocation2 + $0x528] sm:$0xf]  ;;  %v12367_v1 = vor.u32 %v16500_v10, %v12364_v12  ;;  %v16443_v10 = vld [vmem:[#allocation2 + $0x9d0] sm:$0xf0]  ;;  %v16213_v60 = vld [vmem:[#allocation2 + $0x2a0] sm:$0xf0] }
 0x17a   :  { %7603 = vmatpush.bf16.msrb.mxu2 %v14299_v15  ;;  %v14759_v15 = vor.u32 %v17098_v3, %v14756_v37  ;;  %v11543_v33 = vor.u32 %v16305_v20, %v11542_v16  ;;  %v16834_v3 = vld [vmem:[#allocation2 + $0x1608] sm:$0xf0]  ;;  %v12187_v37 = vor.u32 %v16466_v56, %v12186_v50  ;;  %v16627_v12 = vld [vmem:[#allocation2 + $0xf90] sm:$0xf0]  ;;  %v13566_v16 = vld [vmem:[#allocation2 + $0x14f8] sm:$0xf] }
 0x17b   :  { %7591 = vmatpush.bf16.msra.mxu3 %v13471_v18  ;;  %v15308_v18 = vld [vmem:[#allocation2 + $0x22f4] sm:$0xf0]  ;;  %v12002_v20 = vld [vmem:[#allocation2 + $0x8c0] sm:$0xf]  ;;  %v11818_v56 = vld [vmem:[#allocation2 + $0x750] sm:$0xf] }
 0x17c   :  { %7616 = vmatpush.bf16.msra.mxu0 %v15035_v24  ;;  %v14664_v24 = vld [vmem:[#allocation2 + $0x1dec] sm:$0xf0]  ;;  %v15311_v63 = vor.u32 %v17236_v17, %v15308_v18  ;;  %v16811_v17 = vld [vmem:[#allocation2 + $0x1550] sm:$0xf0] }
 0x17d   :  { %7579 = vmatpush.bf16.msra.mxu1 %v12643_v29  ;;  %v13836_v29 = vld [vmem:[#allocation2 + $0x1774] sm:$0xf0]  ;;  %v14667_v34 = vor.u32 %v17075_v21, %v14664_v24  ;;  %v16420_v24 = vld [vmem:[#allocation2 + $0x918] sm:$0xf0] }
 0x17e   :  { %7604 = vmatpush.bf16.msrb.mxu2 %v14207_v28  ;;  %v13103_v28 = vor.u32 %v16684_v13, %v13100_v14  ;;  %v13839_v43 = vor.u32 %v16868_v27, %v13836_v29  ;;  %v13659_v13 = vor.u32 %v16834_v3, %v13658_v2  ;;  %v11266_v14 = vld [vmem:[#allocation2 + $0x300] sm:$0xf]  ;;  %v11174_v27 = vld [vmem:[#allocation2 + $0x248] sm:$0xf]  ;;  %v16788_v29 = vld [vmem:[#allocation2 + $0x1498] sm:$0xf0] }
 0x17f   :  { %7592 = vmatpush.bf16.msra.mxu3 %v13379_v54  ;;  %v12278_v54 = vld [vmem:[#allocation2 + $0xae8] sm:$0xf]  ;;  %v16167_v3 = vld [vmem:[#allocation2 + $0x130] sm:$0xf0] }
 0x180   :  { %7617 = vmatpush.bf16.msra.mxu0 %v14943_v36  ;;  %v13014_v36 = vld [vmem:[#allocation2 + $0x10a8] sm:$0xf]  ;;  %v17623_v8 = vpop.f32.mrf.mxu2 }
 0x181   :  { %7580 = vmatpush.bf16.msra.mxu1 %v12551_v47  ;;  %v12279_v47 = vor.u32 %v16489_v32, %v12278_v54  ;;  %v13015_v49 = vor.u32 %v16673_v38, %v13014_v36  ;;  %v11910_v32 = vld [vmem:[#allocation2 + $0x808] sm:$0xf]  ;;  %v16397_v36 = vld [vmem:[#allocation2 + $0x860] sm:$0xf0] }
 0x182   :  { %7605 = vmatpush.bf16.msrb.mxu2 %v14115_v46  ;;  %v16857_v46 = vld [vmem:[#allocation2 + $0x16c0] sm:$0xf0]  ;;  %v12646_v38 = vld [vmem:[#allocation2 + $0xdc8] sm:$0xf] }
 0x183   :  { %7593 = vmatpush.bf16.msra.mxu3 %v13287_v52  ;;  %v11451_v52 = vor.u32 %v16282_v40, %v11450_v39  ;;  %v13751_v61 = vor.u32 %v16857_v46, %v13750_v44  ;;  %v16581_v39 = vld [vmem:[#allocation2 + $0xe20] sm:$0xf0]  ;;  %v16190_v44 = vld [vmem:[#allocation2 + $0x1e8] sm:$0xf0] }
 0x184   :  { %7618 = vmatpush.bf16.msra.mxu0 %v14851_v59  ;;  %v16650_v59 = vld [vmem:[#allocation2 + $0x1048] sm:$0xf0] }
 0x185   :  { %7581 = vmatpush.bf16.msra.mxu1 %v12459_v6  ;;  %v12094_v6 = vld [vmem:[#allocation2 + $0x978] sm:$0xf] }
 0x186   :  { %7606 = vmatpush.bf16.msrb.mxu2 %v14023_v5  ;;  %v12923_v5 = vor.u32 %v16650_v59, %v12922_v58  ;;  %v12095_v18 = vor.u32 %v16443_v10, %v12094_v6  ;;  %v16742_v6 = vld [vmem:[#allocation2 + $0x1328] sm:$0xf0]  ;;  %v12555_v10 = vor.u32 %v16558_v0, %v12554_v62 }
 0x187   :  { %7594 = vmatpush.bf16.msra.mxu3 %v13195_v11  ;;  %v12830_v11 = vld [vmem:[#allocation2 + $0xf38] sm:$0xf] }
 0x188   :  { %7619 = vmatpush.bf16.msra.mxu0 %v14759_v15  ;;  %v16236_v15 = vld [vmem:[#allocation2 + $0x358] sm:$0xf0]  ;;  %v12831_v19 = vor.u32 %v16627_v12, %v12830_v11  ;;  %v11726_v11 = vld [vmem:[#allocation2 + $0x698] sm:$0xf] }
 0x189   :  { %7582 = vmatpush.bf16.msra.mxu1 %v12367_v1  ;;  %v11267_v21 = vor.u32 %v16236_v15, %v11266_v14  ;;  %v13567_v1 = vor.u32 %v16811_v17, %v13566_v16  ;;  %v7350_v41 = vpop.f32.mrf.mxu1  ;;  %v12462_v14 = vld [vmem:[#allocation2 + $0xc58] sm:$0xf]  ;;  %v16535_v15 = vld [vmem:[#allocation2 + $0xcb0] sm:$0xf0] }
 0x18a   :  { %7607 = vmatpush.bf16.msrb.mxu2 %v13931_v26  ;;  %v16604_v26 = vld [vmem:[#allocation2 + $0xed8] sm:$0xf0] }
 0x18b   :  { %7595 = vmatpush.bf16.msra.mxu3 %v13103_v28  ;;  %v13474_v28 = vld [vmem:[#allocation2 + $0x1440] sm:$0xf]  ;;  %v12739_v54 = vor.u32 %v16604_v26, %v12738_v25  ;;  %v17041_v25 = vld [vmem:[#allocation2 + $0x1c80] sm:$0xf0]  ;;  %v13198_v26 = vld [vmem:[#allocation2 + $0x1218] sm:$0xf] }
 0x18c   :  { %7620 = vmatpush.bf16.msra.mxu0 %v14667_v34  ;;  %7583 = vmatmul.bf16.vlgmr.msra.gmra.mxu1 %v17512_v51  ;;  %v11175_v34 = vor.u32 %v16213_v60, %v11174_v27  ;;  %v13475_v42 = vor.u32 %v16788_v29, %v13474_v28  ;;  %v7376_v50 = vpop.f32.mrf.mxu0  ;;  %v12463_v28 = vor.u32 %v16535_v15, %v12462_v14  ;;  %v11634_v29 = vld [vmem:[#allocation2 + $0x5e0] sm:$0xf]  ;;  %v12188_v14 = vld [vmem:[#allocation2 + $0xa8c] sm:$0xf0] }
 0x18d   :  { %7634 = vmatpush.bf16.msrb.mxu1 %v15311_v63  ;;  %v12003_v63 = vor.u32 %v16420_v24, %v12002_v20  ;;  %v7337_v40 = vpop.f32.mrf.mxu3  ;;  %v14486_v20 = vld [vmem:[#allocation2 + $0x1c28] sm:$0xf] }
 0x18e   :  { %7596 = vmatmul.bf16.vlgmr.msra.gmra.mxu3 %v17516_v57  ;;  %7608 = vmatpush.bf16.msrb.mxu2 %v13839_v43  ;;  %v11082_v43 = vld [vmem:[#allocation2 + $0x190] sm:$0xf]  ;;  %v7338_v46 = vadd.f32 %v7337_v40, %v17619_v4  ;;  %v10990_v4 = vld [vmem:[#allocation2 + $0xd8] sm:$0xf] }
 0x18f   :  { %7640 = vmatpush.bf16.msrb.mxu3 %v11543_v33  ;;  %v7365_v33 = vpop.f32.mrf.mxu2  ;;  %v11083_v59 = vor.u32 %v16190_v44, %v11082_v43  ;;  %v10991_v12 = vor.u32 %v16167_v3, %v10990_v4  ;;  %v14394_v40 = vld [vmem:[#allocation2 + $0x1b70] sm:$0xf]  ;;  %v17018_v43 = vld [vmem:[#allocation2 + $0x1bc8] sm:$0xf0]  ;;  %v13106_v44 = vld [vmem:[#allocation2 + $0x1160] sm:$0xf] }
 0x190   :  { %7621 = vmatpush.bf16.msra.mxu0 %v14575_v53  ;;  %v12647_v53 = vor.u32 %v16581_v39, %v12646_v38  ;;  %v7351_v58 = vadd.f32 %v7350_v41, %v7338_v46  ;;  %v16512_v33 = vld [vmem:[#allocation2 + $0xbf8] sm:$0xf0]  ;;  %v14487_v38 = vor.u32 %v17041_v25, %v14486_v20  ;;  %v15314_v41 = vld [vmem:[#allocation2 + $0x22a0] sm:$0xf]  ;;  %v14395_v62 = vor.u32 %v17018_v43, %v14394_v40  ;;  %v17202_v4 = vld [vmem:[#allocation2 + $0x2188] sm:$0xf0] }
 0x191   :  { %7653 = vmatpush.bf16.msra.mxu1 %v12279_v47  ;;  %7609 = vmatmul.bf16.vlgmr.msrb.gmra.mxu2 %v17540_v30  ;;  %v13382_v47 = vld [vmem:[#allocation2 + $0x1388] sm:$0xf]  ;;  %v16696_v46 = vld [vmem:[#allocation2 + $0x11b8] sm:$0xf0]  ;;  %v11360_v25 = vld [vmem:[#allocation2 + $0x414] sm:$0xf0] }
 0x192   :  { %7666 = vmatpush.bf16.msra.mxu2 %v13015_v49  ;;  %v16765_v49 = vld [vmem:[#allocation2 + $0x13e0] sm:$0xf0]  ;;  %v13107_v0 = vor.u32 %v16696_v46, %v13106_v44  ;;  %v16972_v20 = vld [vmem:[#allocation2 + $0x1a58] sm:$0xf0]  ;;  %v12004_v40 = vld [vmem:[#allocation2 + $0x91c] sm:$0xf0] }
 0x193   :  { %7641 = vmatpush.bf16.msrb.mxu3 %v11451_v52  ;;  %7622 = vmatmul.bf16.vlgmr.msra.gmra.mxu0 %v17542_v35  ;;  %v11911_v52 = vor.u32 %v16397_v36, %v11910_v32  ;;  %v13383_v2 = vor.u32 %v16765_v49, %v13382_v47  ;;  %v17225_v36 = vld [vmem:[#allocation2 + $0x2240] sm:$0xf0] }
 0x194   :  { %7679 = vmatpush.bf16.msrb.mxu0 %v13751_v61  ;;  %v16374_v61 = vld [vmem:[#allocation2 + $0x7a8] sm:$0xf0]  ;;  %v7378_v27 = vpop.f32.mrf.mxu0  ;;  %v17133_v43 = vld [vmem:[#allocation2 + $0x1f60] sm:$0xf0] }
 0x195   :  { %7654 = vmatpush.bf16.msra.mxu1 %v12187_v37  ;;  %v17631_v37 = vadd.f32 %v17623_v8, %v7351_v58  ;;  %v7339_v8 = vpop.f32.mrf.mxu3  ;;  %v16478_v58 = vld [vmem:[#allocation2 + $0xaec] sm:$0xf]  ;;  %v12096_v27 = vld [vmem:[#allocation2 + $0x9d4] sm:$0xf0] }
 0x196   :  { %7667 = vmatpush.bf16.msra.mxu2 %v12923_v5  ;;  %v13290_v5 = vld [vmem:[#allocation2 + $0x12d0] sm:$0xf] }
 0x197   :  { %7642 = vmatpush.bf16.msrb.mxu3 %v11359_v9  ;;  %v11819_v9 = vor.u32 %v16374_v61, %v11818_v56  ;;  %v7389_v16 = vpop.f32.mrf.mxu2  ;;  %v13291_v17 = vor.u32 %v16742_v6, %v13290_v5  ;;  %v14302_v5 = vld [vmem:[#allocation2 + $0x1ab8] sm:$0xf]  ;;  %v16995_v6 = vld [vmem:[#allocation2 + $0x1b10] sm:$0xf0] }
 0x198   :  { %7680 = vmatpush.bf16.msrb.mxu0 %v13659_v13  ;;  %v16351_v13 = vld [vmem:[#allocation2 + $0x6f0] sm:$0xf0]  ;;  %v17633_v24 = vadd.f32 %v7389_v16, %v7376_v50  ;;  %v16294_v50 = vld [vmem:[#allocation2 + $0x52c] sm:$0xf]  ;;  %v14303_v15 = vor.u32 %v16995_v6, %v14302_v5  ;;  %v15038_v16 = vld [vmem:[#allocation2 + $0x2078] sm:$0xf] }
 0x199   :  { %7655 = vmatpush.bf16.msra.mxu1 %v12095_v18  ;;  %v10898_v18 = vld [vmem:[#allocation2 + $0x20] sm:$0xf]  ;;  %v11727_v60 = vor.u32 %v16351_v13, %v11726_v11  ;;  %v11452_v11 = vld [vmem:[#allocation2 + $0x4cc] sm:$0xf0]  ;;  %v16455_v13 = vld [vmem:[#allocation2 + $0xa34] sm:$0xf] }
 0x19a   :  { %7668 = vmatpush.bf16.msra.mxu2 %v12831_v19  ;;  %v16144_v19 = vld [vmem:[#allocation2 + $0x78] sm:$0xf0]  ;;  %v12191_v8 = vor.u32 %v16455_v13, %v12188_v14  ;;  %v17110_v5 = vld [vmem:[#allocation2 + $0x1ea8] sm:$0xf0]  ;;  %v11084_v13 = vld [vmem:[#allocation2 + $0x1ec] sm:$0xf0] }
 0x19b   :  { %7643 = vmatpush.bf16.msrb.mxu3 %v11267_v21  ;;  %v7352_v21 = vpop.f32.mrf.mxu1  ;;  %v10899_v32 = vor.u32 %v16144_v19, %v10898_v18  ;;  %v14210_v19 = vld [vmem:[#allocation2 + $0x1a00] sm:$0xf] }
 0x19c   :  { %7681 = vmatpush.bf16.msrb.mxu0 %v13567_v1  ;;  %15379 = vmatmul.msk.bf16.vlgmr.msrb.gmra.mxu1 %vm6908_vm0, %v17530_v45  ;;  %v16719_v1 = vld [vmem:[#allocation2 + $0x1270] sm:$0xf0]  ;;  %v16248_v21 = vld [vmem:[#allocation2 + $0x3bc] sm:$0xf] }
 0x19d   :  { %7656 = vmatpush.bf16.msra.mxu1 %v12003_v63  ;;  %v16328_v63 = vld [vmem:[#allocation2 + $0x638] sm:$0xf0]  ;;  %v13199_v39 = vor.u32 %v16719_v1, %v13198_v26 }
 0x19e   :  { %7669 = vmatpush.bf16.msra.mxu2 %v12739_v54  ;;  %v12370_v54 = vld [vmem:[#allocation2 + $0xba0] sm:$0xf]  ;;  %v11635_v47 = vor.u32 %v16328_v63, %v11634_v29  ;;  %v16432_v1 = vld [vmem:[#allocation2 + $0x97c] sm:$0xf]  ;;  %v11363_v63 = vor.u32 %v16248_v21, %v11360_v25 }
 0x19f   :  { %7644 = vmatpush.bf16.msrb.mxu3 %v11175_v34  ;;  %v15222_v34 = vld [vmem:[#allocation2 + $0x21e8] sm:$0xf]  ;;  %v12371_v49 = vor.u32 %v16512_v33, %v12370_v54  ;;  %v7391_v61 = vpop.f32.mrf.mxu2  ;;  %v17156_v29 = vld [vmem:[#allocation2 + $0x2018] sm:$0xf0]  ;;  %v12099_v33 = vor.u32 %v16432_v1, %v12096_v27  ;;  %v16662_v27 = vld [vmem:[#allocation2 + $0x10ac] sm:$0xf] }
 0x1a0   :  { %7682 = vmatpush.bf16.msrb.mxu0 %v13475_v42  ;;  %v17248_v42 = vld [vmem:[#allocation2 + $0x22f8] sm:$0xf0]  ;;  %v14118_v54 = vld [vmem:[#allocation2 + $0x1948] sm:$0xf] }
 0x1a1   :  { %7657 = vmatpush.bf16.msra.mxu1 %v11911_v52  ;;  %v11544_v52 = vld [vmem:[#allocation2 + $0x584] sm:$0xf0]  ;;  %v15315_v56 = vor.u32 %v17248_v42, %v15314_v41  ;;  %v16880_v1 = vld [vmem:[#allocation2 + $0x1778] sm:$0xf0] }
 0x1a2   :  { %7670 = vmatpush.bf16.msra.mxu2 %v12647_v53  ;;  %v15223_v53 = vor.u32 %v17225_v36, %v15222_v34  ;;  %v11547_v3 = vor.u32 %v16294_v50, %v11544_v52  ;;  %v16225_v34 = vld [vmem:[#allocation2 + $0x304] sm:$0xf]  ;;  %v11268_v36 = vld [vmem:[#allocation2 + $0x35c] sm:$0xf0]  ;;  %v14854_v42 = vld [vmem:[#allocation2 + $0x1f08] sm:$0xf] }
 0x1a3   :  { %7645 = vmatpush.bf16.msrb.mxu3 %v11083_v59  ;;  %v12280_v59 = vld [vmem:[#allocation2 + $0xb44] sm:$0xf0]  ;;  %v11271_v46 = vor.u32 %v16225_v34, %v11268_v36  ;;  %v14855_v61 = vor.u32 %v17133_v43, %v14854_v42  ;;  %v16340_v34 = vld [vmem:[#allocation2 + $0x69c] sm:$0xf]  ;;  %v11728_v36 = vld [vmem:[#allocation2 + $0x6f4] sm:$0xf0] }
 0x1a4   :  { %7683 = vmatpush.bf16.msrb.mxu0 %v13383_v2  ;;  %v15130_v2 = vld [vmem:[#allocation2 + $0x2130] sm:$0xf] }
 0x1a5   :  { %7658 = vmatpush.bf16.msra.mxu1 %v11819_v9  ;;  %v12283_v9 = vor.u32 %v16478_v58, %v12280_v59  ;;  %v11176_v58 = vld [vmem:[#allocation2 + $0x2a4] sm:$0xf0] }
 0x1a6   :  { %7671 = vmatpush.bf16.msra.mxu2 %v12555_v10  ;;  %v16271_v10 = vld [vmem:[#allocation2 + $0x474] sm:$0xf] }
 0x1a7   :  { %7646 = vmatpush.bf16.msrb.mxu3 %v10991_v12  ;;  %v15131_v12 = vor.u32 %v17202_v4, %v15130_v2  ;;  %v11455_v18 = vor.u32 %v16271_v10, %v11452_v11  ;;  %v16903_v10 = vld [vmem:[#allocation2 + $0x1830] sm:$0xf0] }
 0x1a8   :  { %7684 = vmatpush.bf16.msrb.mxu0 %v13291_v17  ;;  %v17179_v17 = vld [vmem:[#allocation2 + $0x20d0] sm:$0xf0] }
 0x1a9   :  { %7659 = vmatpush.bf16.msra.mxu1 %v11727_v60  ;;  %v15039_v26 = vor.u32 %v17179_v17, %v15038_v16  ;;  %v14211_v60 = vor.u32 %v16972_v20, %v14210_v19  ;;  %v7415_v50 = vpop.f32.mrf.mxu1  ;;  %v16363_v16 = vld [vmem:[#allocation2 + $0x754] sm:$0xf]  ;;  %v11820_v17 = vld [vmem:[#allocation2 + $0x7ac] sm:$0xf0]  ;;  %v14670_v20 = vld [vmem:[#allocation2 + $0x1d98] sm:$0xf] }
 0x1aa   :  { %7672 = vmatpush.bf16.msra.mxu2 %v12463_v28  ;;  %v14946_v28 = vld [vmem:[#allocation2 + $0x1fc0] sm:$0xf] }
 0x1ab   :  { %7647 = vmatpush.bf16.msrb.mxu3 %v10899_v32  ;;  %v16949_v32 = vld [vmem:[#allocation2 + $0x19a0] sm:$0xf0] }
 0x1ac   :  { %7685 = vmatpush.bf16.msrb.mxu0 %v13199_v39  ;;  %v16409_v39 = vld [vmem:[#allocation2 + $0x8c4] sm:$0xf]  ;;  %v14119_v41 = vor.u32 %v16949_v32, %v14118_v54  ;;  %v7428_v59 = vpop.f32.mrf.mxu0  ;;  %v10992_v54 = vld [vmem:[#allocation2 + $0x134] sm:$0xf0] }
 0x1ad   :  { %7660 = vmatpush.bf16.msra.mxu1 %v11635_v47  ;;  %v7402_v44 = vpop.f32.mrf.mxu3  ;;  %v14026_v47 = vld [vmem:[#allocation2 + $0x1890] sm:$0xf] }
 0x1ae   :  { %7673 = vmatpush.bf16.msra.mxu2 %v12371_v49  ;;  %7648 = vmatmul.bf16.vlgmr.msrb.gmra.mxu3 %v17514_v55  ;;  %v16926_v49 = vld [vmem:[#allocation2 + $0x18e8] sm:$0xf0]  ;;  %v7403_v52 = vadd.f32 %v7402_v44, %v17633_v24  ;;  %v13752_v44 = vld [vmem:[#allocation2 + $0x16c4] sm:$0xf0] }
 0x1af   :  { %7692 = vmatpush.bf16.msra.mxu3 %v14487_v38  ;;  %v14947_v38 = vor.u32 %v17156_v29, %v14946_v28  ;;  %v14027_v2 = vor.u32 %v16926_v49, %v14026_v47  ;;  %v11823_v28 = vor.u32 %v16363_v16, %v11820_v17  ;;  %v13016_v29 = vld [vmem:[#allocation2 + $0x1104] sm:$0xf0]  ;;  %v12924_v47 = vld [vmem:[#allocation2 + $0x104c] sm:$0xf0]  ;;  %v11731_v49 = vor.u32 %v16340_v34, %v11728_v36  ;;  %v17007_v16 = vld [vmem:[#allocation2 + $0x1b74] sm:$0xf] }
 0x1b0   :  { %7686 = vmatpush.bf16.msrb.mxu0 %v13107_v0  ;;  %7661 = vmatmul.bf16.vlgmr.msra.gmra.mxu1 %v17523_v7  ;;  %v11912_v0 = vld [vmem:[#allocation2 + $0x864] sm:$0xf0]  ;;  %v7416_v4 = vadd.f32 %v7415_v50, %v7403_v52  ;;  %v13019_v42 = vor.u32 %v16662_v27, %v13016_v29  ;;  %v16133_v50 = vld [vmem:[#allocation2 + $0x24] sm:$0xf]  ;;  %v10900_v52 = vld [vmem:[#allocation2 + $0x7c] sm:$0xf0] }
 0x1b1   :  { %7705 = vmatpush.bf16.msrb.mxu1 %v15223_v53  ;;  %7674 = vmatmul.bf16.vlgmr.msra.gmra.mxu2 %v17512_v51  ;;  %v12007_v53 = vor.u32 %v16409_v39, %v12004_v40  ;;  %v14578_v39 = vld [vmem:[#allocation2 + $0x1ce0] sm:$0xf]  ;;  %v17064_v40 = vld [vmem:[#allocation2 + $0x1d38] sm:$0xf0]  ;;  %v14396_v17 = vld [vmem:[#allocation2 + $0x1bcc] sm:$0xf0] }
 0x1b2   :  { %7725 = vmatpush.bf16.msrb.mxu2 %v15315_v56  ;;  %v16202_v56 = vld [vmem:[#allocation2 + $0x24c] sm:$0xf]  ;;  %v7429_v11 = vadd.f32 %v7428_v59, %v7416_v4  ;;  %v15224_v4 = vld [vmem:[#allocation2 + $0x2244] sm:$0xf0]  ;;  %v12740_v27 = vld [vmem:[#allocation2 + $0xedc] sm:$0xf0] }
 0x1b3   :  { %7693 = vmatpush.bf16.msra.mxu3 %v14395_v62  ;;  %7687 = vmatmul.bf16.vlgmr.msrb.gmra.mxu0 %v17516_v57  ;;  %v16386_v62 = vld [vmem:[#allocation2 + $0x80c] sm:$0xf]  ;;  %v11179_v6 = vor.u32 %v16202_v56, %v11176_v58  ;;  %v14579_v56 = vor.u32 %v17064_v40, %v14578_v39  ;;  %v11636_v58 = vld [vmem:[#allocation2 + $0x63c] sm:$0xf0]  ;;  %v14304_v29 = vld [vmem:[#allocation2 + $0x1b14] sm:$0xf0] }
 0x1b4   :  { %7731 = vmatpush.bf16.msra.mxu0 %v11547_v3  ;;  %v14762_v3 = vld [vmem:[#allocation2 + $0x1e50] sm:$0xf]  ;;  %v11915_v24 = vor.u32 %v16386_v62, %v11912_v0  ;;  %v7430_v32 = vpop.f32.mrf.mxu0  ;;  %v17030_v59 = vld [vmem:[#allocation2 + $0x1c2c] sm:$0xf]  ;;  %v16777_v36 = vld [vmem:[#allocation2 + $0x1444] sm:$0xf] }
 0x1b5   :  { %7706 = vmatpush.bf16.msrb.mxu1 %v15131_v12  ;;  %v16179_v12 = vld [vmem:[#allocation2 + $0x194] sm:$0xf]  ;;  %v14763_v14 = vor.u32 %v17110_v5, %v14762_v3  ;;  %v7404_v21 = vpop.f32.mrf.mxu3  ;;  %v15040_v32 = vld [vmem:[#allocation2 + $0x20d4] sm:$0xf0]  ;;  %v16570_v40 = vld [vmem:[#allocation2 + $0xdcc] sm:$0xf] }
 0x1b6   :  { %7744 = vmatpush.bf16.msra.mxu2 %v12283_v9  ;;  %v13934_v9 = vld [vmem:[#allocation2 + $0x17d8] sm:$0xf]  ;;  %v11087_v25 = vor.u32 %v16179_v12, %v11084_v13  ;;  %v16616_v13 = vld [vmem:[#allocation2 + $0xf3c] sm:$0xf] }
 0x1b7   :  { %7694 = vmatpush.bf16.msra.mxu3 %v14303_v15  ;;  %v7441_v15 = vpop.f32.mrf.mxu2 }
 0x1b8   :  { %7732 = vmatpush.bf16.msra.mxu0 %v11455_v18  ;;  %v13935_v18 = vor.u32 %v16903_v10, %v13934_v9  ;;  %v7442_v19 = vadd.f32 %v7441_v15, %v7429_v11  ;;  %v16823_v9 = vld [vmem:[#allocation2 + $0x15b4] sm:$0xf]  ;;  %v13660_v10 = vld [vmem:[#allocation2 + $0x160c] sm:$0xf0] }
 0x1b9   :  { %7707 = vmatpush.bf16.msrb.mxu1 %v15039_v26  ;;  %v13842_v26 = vld [vmem:[#allocation2 + $0x1720] sm:$0xf] }
 0x1ba   :  { %7745 = vmatpush.bf16.msra.mxu2 %v12191_v8  ;;  %v17087_v8 = vld [vmem:[#allocation2 + $0x1df0] sm:$0xf0] }
 0x1bb   :  { %7695 = vmatpush.bf16.msra.mxu3 %v14211_v60  ;;  %v7417_v60 = vpop.f32.mrf.mxu1 }
 0x1bc   :  { %7733 = vmatpush.bf16.msra.mxu0 %v11363_v63  ;;  %v16156_v63 = vld [vmem:[#allocation2 + $0xdc] sm:$0xf] }
 0x1bd   :  { %7708 = vmatpush.bf16.msrb.mxu1 %v14947_v38  ;;  %v13843_v38 = vor.u32 %v16880_v1, %v13842_v26  ;;  %v10995_v43 = vor.u32 %v16156_v63, %v10992_v54  ;;  %v7454_v3 = vpop.f32.mrf.mxu3  ;;  %v14399_v26 = vor.u32 %v17007_v16, %v14396_v17  ;;  %v16593_v1 = vld [vmem:[#allocation2 + $0xe84] sm:$0xf]  ;;  %v17168_v54 = vld [vmem:[#allocation2 + $0x207c] sm:$0xf]  ;;  %v16915_v16 = vld [vmem:[#allocation2 + $0x1894] sm:$0xf] }
 0x1be   :  { %7746 = vmatpush.bf16.msra.mxu2 %v12099_v33  ;;  %v14671_v33 = vor.u32 %v17087_v8, %v14670_v20  ;;  %v17191_v20 = vld [vmem:[#allocation2 + $0x2134] sm:$0xf]  ;;  %v15132_v8 = vld [vmem:[#allocation2 + $0x218c] sm:$0xf0] }
 0x1bf   :  { %7696 = vmatpush.bf16.msra.mxu3 %v14119_v41  ;;  %v16846_v41 = vld [vmem:[#allocation2 + $0x166c] sm:$0xf]  ;;  %v7443_v62 = vpop.f32.mrf.mxu2  ;;  %v15135_v60 = vor.u32 %v17191_v20, %v15132_v8  ;;  %v14028_v17 = vld [vmem:[#allocation2 + $0x18ec] sm:$0xf0]  ;;  %v17099_v8 = vld [vmem:[#allocation2 + $0x1e54] sm:$0xf] }
 0x1c0   :  { %7734 = vmatpush.bf16.msra.mxu0 %v11271_v46  ;;  %v16639_v46 = vld [vmem:[#allocation2 + $0xff4] sm:$0xf]  ;;  %v13755_v0 = vor.u32 %v16846_v41, %v13752_v44  ;;  %v12648_v41 = vld [vmem:[#allocation2 + $0xe24] sm:$0xf0]  ;;  %v14212_v44 = vld [vmem:[#allocation2 + $0x1a5c] sm:$0xf0] }
 0x1c1   :  { %7709 = vmatpush.bf16.msrb.mxu1 %v14855_v61  ;;  %15380 = vmatmul.msk.bf16.vlgmr.msrb.gmra.mxu2 %vm6908_vm0, %v17530_v45  ;;  %v14488_v61 = vld [vmem:[#allocation2 + $0x1c84] sm:$0xf0]  ;;  %v12927_v5 = vor.u32 %v16639_v46, %v12924_v47  ;;  %v12556_v62 = vld [vmem:[#allocation2 + $0xd6c] sm:$0xf0] }
 0x1c2   :  { %7747 = vmatpush.bf16.msra.mxu2 %v12007_v53  ;;  %v16317_v53 = vld [vmem:[#allocation2 + $0x5e4] sm:$0xf]  ;;  %v14491_v12 = vor.u32 %v17030_v59, %v14488_v61  ;;  %v16547_v61 = vld [vmem:[#allocation2 + $0xd14] sm:$0xf] }
 0x1c3   :  { %7697 = vmatpush.bf16.msra.mxu3 %v14027_v2  ;;  %v17214_v2 = vld [vmem:[#allocation2 + $0x21ec] sm:$0xf]  ;;  %v11639_v11 = vor.u32 %v16317_v53, %v11636_v58 }
 0x1c4   :  { %7735 = vmatpush.bf16.msra.mxu0 %v11179_v6  ;;  %v10903_v6 = vor.u32 %v16133_v50, %v10900_v52  ;;  %v15227_v15 = vor.u32 %v17214_v2, %v15224_v4  ;;  %v14948_v50 = vld [vmem:[#allocation2 + $0x201c] sm:$0xf0]  ;;  %v12651_v52 = vor.u32 %v16570_v40, %v12648_v41  ;;  %v16754_v53 = vld [vmem:[#allocation2 + $0x138c] sm:$0xf]  ;;  %v14120_v4 = vld [vmem:[#allocation2 + $0x19a4] sm:$0xf0] }
 0x1c5   :  { %7710 = vmatpush.bf16.msrb.mxu1 %v14763_v14  ;;  %v12832_v14 = vld [vmem:[#allocation2 + $0xf94] sm:$0xf0]  ;;  %v7456_v34 = vpop.f32.mrf.mxu3  ;;  %v16938_v2 = vld [vmem:[#allocation2 + $0x194c] sm:$0xf]  ;;  %v17076_v41 = vld [vmem:[#allocation2 + $0x1d9c] sm:$0xf] }
 0x1c6   :  { %7748 = vmatpush.bf16.msra.mxu2 %v11915_v24  ;;  %v17642_v24 = vadd.f32 %v7454_v3, %v7442_v19  ;;  %v12835_v21 = vor.u32 %v16616_v13, %v12832_v14  ;;  %v16800_v19 = vld [vmem:[#allocation2 + $0x14fc] sm:$0xf]  ;;  %v12464_v14 = vld [vmem:[#allocation2 + $0xcb4] sm:$0xf0] }
 0x1c7   :  { %7698 = vmatpush.bf16.msra.mxu3 %v13935_v18  ;;  %v13663_v18 = vor.u32 %v16823_v9, %v13660_v10  ;;  %v12559_v9 = vor.u32 %v16547_v61, %v12556_v62  ;;  %v16731_v10 = vld [vmem:[#allocation2 + $0x12d4] sm:$0xf]  ;;  %v16524_v13 = vld [vmem:[#allocation2 + $0xc5c] sm:$0xf]  ;;  %v13936_v34 = vld [vmem:[#allocation2 + $0x1834] sm:$0xf0] }
 0x1c8   :  { %7736 = vmatpush.bf16.msra.mxu0 %v11087_v25  ;;  %v13568_v25 = vld [vmem:[#allocation2 + $0x1554] sm:$0xf0]  ;;  %v16869_v62 = vld [vmem:[#allocation2 + $0x1724] sm:$0xf] }
 0x1c9   :  { %7711 = vmatpush.bf16.msrb.mxu1 %v14671_v33  ;;  %v13571_v63 = vor.u32 %v16800_v19, %v13568_v25  ;;  %v12743_v33 = vor.u32 %v16593_v1, %v12740_v27  ;;  %v7467_v46 = vpop.f32.mrf.mxu1  ;;  %v12467_v25 = vor.u32 %v16524_v13, %v12464_v14  ;;  %v13200_v1 = vld [vmem:[#allocation2 + $0x1274] sm:$0xf0] }
 0x1ca   :  { %7749 = vmatpush.bf16.msra.mxu2 %v11823_v28  ;;  %v16984_v28 = vld [vmem:[#allocation2 + $0x1abc] sm:$0xf] }
 0x1cb   :  { %7699 = vmatpush.bf16.msra.mxu3 %v13843_v38  ;;  %v13476_v38 = vld [vmem:[#allocation2 + $0x149c] sm:$0xf0]  ;;  %v14307_v39 = vor.u32 %v16984_v28, %v14304_v29  ;;  %v14031_v29 = vor.u32 %v16915_v16, %v14028_v17  ;;  %v12194_v16 = vld [vmem:[#allocation2 + $0xa38] sm:$0xf]  ;;  %v16467_v17 = vld [vmem:[#allocation2 + $0xa90] sm:$0xf0] }
 0x1cc   :  { %7737 = vmatpush.bf16.msra.mxu0 %v10995_v43  ;;  %v16961_v43 = vld [vmem:[#allocation2 + $0x1a04] sm:$0xf]  ;;  %v13479_v47 = vor.u32 %v16777_v36, %v13476_v38  ;;  %v7493_v58 = vpop.f32.mrf.mxu0  ;;  %v15316_v38 = vld [vmem:[#allocation2 + $0x22fc] sm:$0xf0] }
 0x1cd   :  { %7712 = vmatpush.bf16.msrb.mxu1 %v14579_v56  ;;  %v13384_v56 = vld [vmem:[#allocation2 + $0x13e4] sm:$0xf0]  ;;  %v14215_v59 = vor.u32 %v16961_v43, %v14212_v44  ;;  %v17237_v36 = vld [vmem:[#allocation2 + $0x22a4] sm:$0xf] }
 0x1ce   :  { %7750 = vmatpush.bf16.msra.mxu2 %v11731_v49  ;;  %7700 = vmatmul.bf16.vlgmr.msra.gmra.mxu3 %v17540_v30  ;;  %v17145_v49 = vld [vmem:[#allocation2 + $0x1fc4] sm:$0xf]  ;;  %v13387_v3 = vor.u32 %v16754_v53, %v13384_v56  ;;  %v16306_v53 = vld [vmem:[#allocation2 + $0x588] sm:$0xf0]  ;;  %v12286_v56 = vld [vmem:[#allocation2 + $0xaf0] sm:$0xf] }
 0x1cf   :  { %7757 = vmatpush.bf16.msrb.mxu3 %v13019_v42  ;;  %v15043_v42 = vor.u32 %v17168_v54, %v15040_v32  ;;  %v12372_v54 = vld [vmem:[#allocation2 + $0xbfc] sm:$0xf0]  ;;  %v16892_v32 = vld [vmem:[#allocation2 + $0x17dc] sm:$0xf]  ;;  %v16685_v44 = vld [vmem:[#allocation2 + $0x1164] sm:$0xf] }
 0x1d0   :  { %7738 = vmatpush.bf16.msra.mxu0 %v10903_v6  ;;  %7713 = vmatmul.bf16.vlgmr.msrb.gmra.mxu1 %v17542_v35  ;;  %v14856_v6 = vld [vmem:[#allocation2 + $0x1f64] sm:$0xf0] }
 0x1d1   :  { %7770 = vmatpush.bf16.msra.mxu1 %v13755_v0  ;;  %v14951_v0 = vor.u32 %v17145_v49, %v14948_v50  ;;  %v7480_v19 = vpop.f32.mrf.mxu3  ;;  %v13939_v50 = vor.u32 %v16892_v32, %v13936_v34  ;;  %v16444_v32 = vld [vmem:[#allocation2 + $0x9d8] sm:$0xf0] }
 0x1d2   :  { %7751 = vmatpush.bf16.msra.mxu2 %v11639_v11  ;;  %v13292_v11 = vld [vmem:[#allocation2 + $0x132c] sm:$0xf0]  ;;  %v7481_v27 = vadd.f32 %v7480_v19, %v7467_v46  ;;  %v13108_v46 = vld [vmem:[#allocation2 + $0x11bc] sm:$0xf0] }
 0x1d3   :  { %7758 = vmatpush.bf16.msrb.mxu3 %v12927_v5  ;;  %7739 = vmatmul.bf16.vlgmr.msra.gmra.mxu0 %v17514_v55  ;;  %v17122_v5 = vld [vmem:[#allocation2 + $0x1f0c] sm:$0xf]  ;;  %v13295_v20 = vor.u32 %v16731_v10, %v13292_v11  ;;  %v13758_v10 = vld [vmem:[#allocation2 + $0x1670] sm:$0xf] }
 0x1d4   :  { %7783 = vmatpush.bf16.msrb.mxu0 %v14491_v12  ;;  %v14123_v12 = vor.u32 %v16938_v2, %v14120_v4  ;;  %v7506_v28 = vpop.f32.mrf.mxu2  ;;  %v13111_v2 = vor.u32 %v16685_v44, %v13108_v46  ;;  %v14580_v4 = vld [vmem:[#allocation2 + $0x1d3c] sm:$0xf0]  ;;  %v16858_v11 = vld [vmem:[#allocation2 + $0x16c8] sm:$0xf0]  ;;  %v16237_v44 = vld [vmem:[#allocation2 + $0x360] sm:$0xf0] }
 0x1d5   :  { %7771 = vmatpush.bf16.msra.mxu1 %v13663_v18  ;;  %7752 = vmatmul.bf16.vlgmr.msra.gmra.mxu2 %v17523_v7  ;;  %v7469_v18 = vpop.f32.mrf.mxu1  ;;  %v13759_v19 = vor.u32 %v16858_v11, %v13758_v10  ;;  %v12010_v46 = vld [vmem:[#allocation2 + $0x8c8] sm:$0xf] }
 0x1d6   :  { %7796 = vmatpush.bf16.msrb.mxu2 %v15227_v15  ;;  %v14859_v15 = vor.u32 %v17122_v5, %v14856_v6  ;;  %v16674_v5 = vld [vmem:[#allocation2 + $0x1108] sm:$0xf0] }
 0x1d7   :  { %7759 = vmatpush.bf16.msrb.mxu3 %v12835_v21  ;;  %v14764_v21 = vld [vmem:[#allocation2 + $0x1eac] sm:$0xf0] }
 0x1d8   :  { %7784 = vmatpush.bf16.msrb.mxu0 %v14399_v26  ;;  %v16708_v26 = vld [vmem:[#allocation2 + $0x121c] sm:$0xf] }
 0x1d9   :  { %7772 = vmatpush.bf16.msra.mxu1 %v13571_v63  ;;  %v16501_v63 = vld [vmem:[#allocation2 + $0xba4] sm:$0xf]  ;;  %v13203_v40 = vor.u32 %v16708_v26, %v13200_v1  ;;  %v7482_v13 = vpop.f32.mrf.mxu3  ;;  %v16651_v26 = vld [vmem:[#allocation2 + $0x1050] sm:$0xf0] }
 0x1da   :  { %7797 = vmatpush.bf16.msrb.mxu2 %v15135_v60  ;;  %v7495_v60 = vpop.f32.mrf.mxu0  ;;  %v12375_v43 = vor.u32 %v16501_v63, %v12372_v54  ;;  %v16260_v63 = vld [vmem:[#allocation2 + $0x418] sm:$0xf0]  ;;  %v12102_v54 = vld [vmem:[#allocation2 + $0x980] sm:$0xf]  ;;  %v16582_v13 = vld [vmem:[#allocation2 + $0xe28] sm:$0xf0] }
 0x1db   :  { %7760 = vmatpush.bf16.msrb.mxu3 %v12743_v33  ;;  %v14767_v33 = vor.u32 %v17099_v8, %v14764_v21  ;;  %v13666_v60 = vld [vmem:[#allocation2 + $0x15b8] sm:$0xf] }
 0x1dc   :  { %7785 = vmatpush.bf16.msrb.mxu0 %v14307_v39  ;;  %v7494_v39 = vadd.f32 %v7493_v58, %v7481_v27  ;;  %v13844_v58 = vld [vmem:[#allocation2 + $0x177c] sm:$0xf0]  ;;  %v12195_v27 = vor.u32 %v16467_v17, %v12194_v16  ;;  %v16766_v16 = vld [vmem:[#allocation2 + $0x13e8] sm:$0xf0]  ;;  %v11090_v17 = vld [vmem:[#allocation2 + $0x198] sm:$0xf] }
 0x1dd   :  { %7773 = vmatpush.bf16.msra.mxu1 %v13479_v47  ;;  %v11550_v47 = vld [vmem:[#allocation2 + $0x530] sm:$0xf]  ;;  %v13847_v14 = vor.u32 %v16869_v62, %v13844_v58 }
 0x1de   :  { %7798 = vmatpush.bf16.msrb.mxu2 %v15043_v42  ;;  %v14672_v42 = vld [vmem:[#allocation2 + $0x1df4] sm:$0xf0]  ;;  %v17648_v49 = vadd.f32 %v7506_v28, %v7494_v39  ;;  %v11551_v6 = vor.u32 %v16306_v53, %v11550_v47  ;;  %v16835_v28 = vld [vmem:[#allocation2 + $0x1610] sm:$0xf0]  ;;  %v16421_v47 = vld [vmem:[#allocation2 + $0x920] sm:$0xf0] }
 0x1df   :  { %7761 = vmatpush.bf16.msrb.mxu3 %v12651_v52  ;;  %v15319_v52 = vor.u32 %v17237_v36, %v15316_v38  ;;  %v14675_v61 = vor.u32 %v17076_v41, %v14672_v42  ;;  %v13667_v34 = vor.u32 %v16835_v28, %v13666_v60  ;;  %v12838_v36 = vld [vmem:[#allocation2 + $0xf40] sm:$0xf]  ;;  %v16628_v38 = vld [vmem:[#allocation2 + $0xf98] sm:$0xf0]  ;;  %v12562_v28 = vld [vmem:[#allocation2 + $0xd18] sm:$0xf] }
 0x1e0   :  { %7786 = vmatpush.bf16.msrb.mxu0 %v14215_v59  ;;  %v16490_v59 = vld [vmem:[#allocation2 + $0xb48] sm:$0xf0]  ;;  %v13574_v41 = vld [vmem:[#allocation2 + $0x1500] sm:$0xf]  ;;  %v16812_v42 = vld [vmem:[#allocation2 + $0x1558] sm:$0xf0] }
 0x1e1   :  { %7774 = vmatpush.bf16.msra.mxu1 %v13387_v3  ;;  %v13022_v3 = vld [vmem:[#allocation2 + $0x10b0] sm:$0xf] }
 0x1e2   :  { %7799 = vmatpush.bf16.msrb.mxu2 %v14951_v0  ;;  %v17053_v0 = vld [vmem:[#allocation2 + $0x1ce4] sm:$0xf]  ;;  %v17650_v18 = vpop.f32.mrf.mxu0  ;;  %v13023_v21 = vor.u32 %v16674_v5, %v13022_v3  ;;  %v11182_v3 = vld [vmem:[#allocation2 + $0x250] sm:$0xf]  ;;  %v16214_v5 = vld [vmem:[#allocation2 + $0x2a8] sm:$0xf0] }
 0x1e3   :  { %7762 = vmatpush.bf16.msrb.mxu3 %v12559_v9  ;;  %v12287_v9 = vor.u32 %v16490_v59, %v12286_v56  ;;  %v14583_v8 = vor.u32 %v17053_v0, %v14580_v4  ;;  %v13575_v56 = vor.u32 %v16812_v42, %v13574_v41  ;;  %v12746_v59 = vld [vmem:[#allocation2 + $0xe88] sm:$0xf]  ;;  %v12011_v0 = vor.u32 %v16421_v47, %v12010_v46  ;;  %v16789_v4 = vld [vmem:[#allocation2 + $0x14a0] sm:$0xf0]  ;;  %v12470_v46 = vld [vmem:[#allocation2 + $0xc60] sm:$0xf] }
 0x1e4   :  { %7787 = vmatpush.bf16.msrb.mxu0 %v14123_v12  ;;  %v11458_v12 = vld [vmem:[#allocation2 + $0x478] sm:$0xf]  ;;  %v16536_v47 = vld [vmem:[#allocation2 + $0xcb8] sm:$0xf0] }
 0x1e5   :  { %7775 = vmatpush.bf16.msra.mxu1 %v13295_v20  ;;  %v7508_v20 = vpop.f32.mrf.mxu2 }
 0x1e6   :  { %7800 = vmatpush.bf16.msrb.mxu2 %v14859_v15  ;;  %v16283_v15 = vld [vmem:[#allocation2 + $0x4d0] sm:$0xf0] }
 0x1e7   :  { %7763 = vmatpush.bf16.msrb.mxu3 %v12467_v25  ;;  %v12930_v25 = vld [vmem:[#allocation2 + $0xff8] sm:$0xf]  ;;  %v11459_v1 = vor.u32 %v16283_v15, %v11458_v12  ;;  %v12654_v12 = vld [vmem:[#allocation2 + $0xdd0] sm:$0xf]  ;;  %v16191_v20 = vld [vmem:[#allocation2 + $0x1f0] sm:$0xf0] }
 0x1e8   :  { %7788 = vmatpush.bf16.msrb.mxu0 %v14031_v29  ;;  %v11366_v29 = vld [vmem:[#allocation2 + $0x3c0] sm:$0xf]  ;;  %v13390_v15 = vld [vmem:[#allocation2 + $0x1390] sm:$0xf] }
 0x1e9   :  { %7776 = vmatpush.bf16.msra.mxu1 %v13203_v40  ;;  %v11367_v39 = vor.u32 %v16260_v63, %v11366_v29  ;;  %v12103_v40 = vor.u32 %v16444_v32, %v12102_v54  ;;  %v7519_v53 = vpop.f32.mrf.mxu1  ;;  %v16559_v29 = vld [vmem:[#allocation2 + $0xd70] sm:$0xf0]  ;;  %v11091_v63 = vor.u32 %v16191_v20, %v11090_v17  ;;  %v13298_v32 = vld [vmem:[#allocation2 + $0x12d8] sm:$0xf] }
 0x1ea   :  { %7801 = vmatpush.bf16.msrb.mxu2 %v14767_v33  ;;  %v12931_v33 = vor.u32 %v16651_v26, %v12930_v25  ;;  %v7520_v62 = vadd.f32 %v7519_v53, %v17648_v49  ;;  %v12655_v25 = vor.u32 %v16582_v13, %v12654_v12  ;;  %v12563_v42 = vor.u32 %v16559_v29, %v12562_v28  ;;  %v13114_v12 = vld [vmem:[#allocation2 + $0x1168] sm:$0xf] }
 0x1eb   :  { %7764 = vmatpush.bf16.msrb.mxu3 %v12375_v43  ;;  %v11274_v43 = vld [vmem:[#allocation2 + $0x308] sm:$0xf] }
 0x1ec   :  { %7789 = vmatpush.bf16.msrb.mxu0 %v13939_v50  ;;  %v7547_v50 = vpop.f32.mrf.mxu0  ;;  %v11275_v58 = vor.u32 %v16237_v44, %v11274_v43 }
 0x1ed   :  { %7777 = vmatpush.bf16.msra.mxu1 %v13111_v2  ;;  %v13482_v2 = vld [vmem:[#allocation2 + $0x1448] sm:$0xf]  ;;  %v13206_v50 = vld [vmem:[#allocation2 + $0x1220] sm:$0xf] }
 0x1ee   :  { %7802 = vmatpush.bf16.msrb.mxu2 %v14675_v61  ;;  %7765 = vmatmul.bf16.vlgmr.msrb.gmra.mxu3 %v17512_v51  ;;  %v16605_v61 = vld [vmem:[#allocation2 + $0xee0] sm:$0xf0]  ;;  %v13483_v11 = vor.u32 %v16789_v4, %v13482_v2  ;;  %v17042_v2 = vld [vmem:[#allocation2 + $0x1c88] sm:$0xf0]  ;;  %v15230_v4 = vld [vmem:[#allocation2 + $0x21f0] sm:$0xf] }
 0x1ef   :  { %7816 = vmatpush.bf16.msra.mxu3 %v15319_v52  ;;  %v12839_v52 = vor.u32 %v16628_v38, %v12838_v36  ;;  %v12747_v10 = vor.u32 %v16605_v61, %v12746_v59  ;;  %v16168_v38 = vld [vmem:[#allocation2 + $0x138] sm:$0xf0]  ;;  %v16145_v59 = vld [vmem:[#allocation2 + $0x80] sm:$0xf0]  ;;  %v11642_v61 = vld [vmem:[#allocation2 + $0x5e8] sm:$0xf] }
 0x1f0   :  { %7790 = vmatpush.bf16.msrb.mxu0 %v13847_v14  ;;  %7778 = vmatmul.bf16.vlgmr.msra.gmra.mxu1 %v17516_v57  ;;  %v11183_v14 = vor.u32 %v16214_v5, %v11182_v3  ;;  %v17226_v3 = vld [vmem:[#allocation2 + $0x2248] sm:$0xf0] }
 0x1f1   :  { %7822 = vmatpush.bf16.msrb.mxu1 %v11551_v6  ;;  %v11918_v6 = vld [vmem:[#allocation2 + $0x810] sm:$0xf]  ;;  %v7521_v60 = vpop.f32.mrf.mxu1  ;;  %v15231_v20 = vor.u32 %v17226_v3, %v15230_v4 }
 0x1f2   :  { %7803 = vmatpush.bf16.msrb.mxu2 %v14583_v8  ;;  %v11826_v8 = vld [vmem:[#allocation2 + $0x758] sm:$0xf]  ;;  %v17203_v60 = vld [vmem:[#allocation2 + $0x2190] sm:$0xf0] }
 0x1f3   :  { %7835 = vmatpush.bf16.msrb.mxu3 %v12287_v9  ;;  %7791 = vmatmul.bf16.vlgmr.msrb.gmra.mxu0 %v17540_v30  ;;  %v16398_v9 = vld [vmem:[#allocation2 + $0x868] sm:$0xf0] }
 0x1f4   :  { %7848 = vmatpush.bf16.msra.mxu0 %v13023_v21  ;;  %v11919_v49 = vor.u32 %v16398_v9, %v11918_v6  ;;  %v16375_v21 = vld [vmem:[#allocation2 + $0x7b0] sm:$0xf0]  ;;  %v7571_v26 = vpop.f32.mrf.mxu0  ;;  %v7558_v41 = vpop.f32.mrf.mxu2 }
 0x1f5   :  { %7823 = vmatpush.bf16.msrb.mxu1 %v11459_v1  ;;  %7804 = vmatmul.bf16.vlgmr.msrb.gmra.mxu2 %v17542_v35  ;;  %v11827_v54 = vor.u32 %v16375_v21, %v11826_v8  ;;  %v17662_v43 = vadd.f32 %v7571_v26, %v7558_v41  ;;  %v16295_v8 = vld [vmem:[#allocation2 + $0x534] sm:$0xf]  ;;  %v11552_v21 = vld [vmem:[#allocation2 + $0x58c] sm:$0xf0]  ;;  %v16996_v41 = vld [vmem:[#allocation2 + $0x1b18] sm:$0xf0] }
 0x1f6   :  { %7861 = vmatpush.bf16.msra.mxu2 %v13759_v19  ;;  %v7532_v19 = vpop.f32.mrf.mxu3 }
 0x1f7   :  { %7836 = vmatpush.bf16.msrb.mxu3 %v12195_v27  ;;  %v7533_v1 = vadd.f32 %v7532_v19, %v7520_v62  ;;  %v13391_v27 = vor.u32 %v16766_v16, %v13390_v15  ;;  %v16329_v62 = vld [vmem:[#allocation2 + $0x640] sm:$0xf0]  ;;  %v15322_v15 = vld [vmem:[#allocation2 + $0x22a8] sm:$0xf]  ;;  %v14402_v19 = vld [vmem:[#allocation2 + $0x1b78] sm:$0xf] }
 0x1f8   :  { %7849 = vmatpush.bf16.msra.mxu0 %v12931_v33  ;;  %v16743_v33 = vld [vmem:[#allocation2 + $0x1330] sm:$0xf0]  ;;  %v17249_v16 = vld [vmem:[#allocation2 + $0x2300] sm:$0xf0] }
 0x1f9   :  { %7824 = vmatpush.bf16.msrb.mxu1 %v11367_v39  ;;  %v17660_v36 = vadd.f32 %v17650_v18, %v7533_v1  ;;  %v11734_v39 = vld [vmem:[#allocation2 + $0x6a0] sm:$0xf]  ;;  %v13299_v44 = vor.u32 %v16743_v33, %v13298_v32  ;;  %v10906_v18 = vld [vmem:[#allocation2 + $0x28] sm:$0xf]  ;;  %v17019_v1 = vld [vmem:[#allocation2 + $0x1bd0] sm:$0xf0]  ;;  %v15323_v29 = vor.u32 %v17249_v16, %v15322_v15 }
 0x1fa   :  { %7862 = vmatpush.bf16.msra.mxu2 %v13667_v34  ;;  %v10998_v34 = vld [vmem:[#allocation2 + $0xe0] sm:$0xf]  ;;  %v10907_v13 = vor.u32 %v16145_v59, %v10906_v18  ;;  %v12288_v32 = vld [vmem:[#allocation2 + $0xb4c] sm:$0xf0]  ;;  %v14403_v33 = vor.u32 %v17019_v1, %v14402_v19  ;;  %v16249_v18 = vld [vmem:[#allocation2 + $0x3c4] sm:$0xf] }
 0x1fb   :  { %7837 = vmatpush.bf16.msrb.mxu3 %v12103_v40  ;;  %v16352_v40 = vld [vmem:[#allocation2 + $0x6f8] sm:$0xf0]  ;;  %v11368_v59 = vld [vmem:[#allocation2 + $0x41c] sm:$0xf0]  ;;  %v14862_v15 = vld [vmem:[#allocation2 + $0x1f10] sm:$0xf] }
 0x1fc   :  { %7850 = vmatpush.bf16.msra.mxu0 %v12839_v52  ;;  %v10999_v52 = vor.u32 %v16168_v38, %v10998_v34  ;;  %v11735_v53 = vor.u32 %v16352_v40, %v11734_v39  ;;  %v7573_v6 = vpop.f32.mrf.mxu0  ;;  %v16272_v38 = vld [vmem:[#allocation2 + $0x47c] sm:$0xf]  ;;  %v11460_v39 = vld [vmem:[#allocation2 + $0x4d4] sm:$0xf0]  ;;  %v14310_v40 = vld [vmem:[#allocation2 + $0x1ac0] sm:$0xf]  ;;  %v11371_v3 = vor.u32 %v16249_v18, %v11368_v59 }
 0x1fd   :  { %7825 = vmatpush.bf16.msrb.mxu1 %v11275_v58  ;;  %v14494_v58 = vld [vmem:[#allocation2 + $0x1c30] sm:$0xf]  ;;  %v12104_v6 = vld [vmem:[#allocation2 + $0x9dc] sm:$0xf0]  ;;  %v17134_v16 = vld [vmem:[#allocation2 + $0x1f68] sm:$0xf0] }
 0x1fe   :  { %7863 = vmatpush.bf16.msra.mxu2 %v13575_v56  ;;  %15381 = vmatmul.msk.bf16.vlgmr.msra.gmra.mxu3 %vm6908_vm0, %v17530_v45  ;;  %v16720_v56 = vld [vmem:[#allocation2 + $0x1278] sm:$0xf0]  ;;  %v7534_v5 = vpop.f32.mrf.mxu3  ;;  %v14495_v17 = vor.u32 %v17042_v2, %v14494_v58  ;;  %v14954_v58 = vld [vmem:[#allocation2 + $0x1fc8] sm:$0xf]  ;;  %v14034_v1 = vld [vmem:[#allocation2 + $0x1898] sm:$0xf] }
 0x1ff   :  { %7838 = vmatpush.bf16.msrb.mxu3 %v12011_v0  ;;  %v12471_v0 = vor.u32 %v16536_v47, %v12470_v46  ;;  %v13207_v9 = vor.u32 %v16720_v56, %v13206_v50  ;;  %v11463_v47 = vor.u32 %v16272_v38, %v11460_v39  ;;  %v16456_v50 = vld [vmem:[#allocation2 + $0xa3c] sm:$0xf]  ;;  %v16433_v5 = vld [vmem:[#allocation2 + $0x984] sm:$0xf]  ;;  %v16387_v38 = vld [vmem:[#allocation2 + $0x814] sm:$0xf] }
 0x200   :  { %7851 = vmatpush.bf16.msra.mxu0 %v12747_v10  ;;  %v12378_v10 = vld [vmem:[#allocation2 + $0xba8] sm:$0xf]  ;;  %v11920_v39 = vld [vmem:[#allocation2 + $0x86c] sm:$0xf0] }
 0x201   :  { %7826 = vmatpush.bf16.msrb.mxu1 %v11183_v14  ;;  %v11643_v14 = vor.u32 %v16329_v62, %v11642_v61  ;;  %v14218_v61 = vld [vmem:[#allocation2 + $0x1a08] sm:$0xf]  ;;  %v16973_v62 = vld [vmem:[#allocation2 + $0x1a60] sm:$0xf0]  ;;  %v11923_v18 = vor.u32 %v16387_v38, %v11920_v39  ;;  %v13668_v38 = vld [vmem:[#allocation2 + $0x1614] sm:$0xf0] }
 0x202   :  { %7864 = vmatpush.bf16.msra.mxu2 %v13483_v11  ;;  %v16513_v11 = vld [vmem:[#allocation2 + $0xc00] sm:$0xf0]  ;;  %v16318_v39 = vld [vmem:[#allocation2 + $0x5ec] sm:$0xf] }
 0x203   :  { %7839 = vmatpush.bf16.msrb.mxu3 %v11919_v49  ;;  %v16697_v49 = vld [vmem:[#allocation2 + $0x11c0] sm:$0xf0]  ;;  %v12379_v26 = vor.u32 %v16513_v11, %v12378_v10  ;;  %v14219_v10 = vor.u32 %v16973_v62, %v14218_v61  ;;  %v16364_v61 = vld [vmem:[#allocation2 + $0x75c] sm:$0xf]  ;;  %v11828_v62 = vld [vmem:[#allocation2 + $0x7b4] sm:$0xf0] }
 0x204   :  { %7852 = vmatpush.bf16.msra.mxu0 %v12655_v25  ;;  %v7560_v25 = vpop.f32.mrf.mxu2  ;;  %v13115_v28 = vor.u32 %v16697_v49, %v13114_v12  ;;  %v16226_v12 = vld [vmem:[#allocation2 + $0x30c] sm:$0xf] }
 0x205   :  { %7827 = vmatpush.bf16.msrb.mxu1 %v11091_v63  ;;  %v11555_v63 = vor.u32 %v16295_v8, %v11552_v21  ;;  %v16950_v49 = vld [vmem:[#allocation2 + $0x19a8] sm:$0xf0]  ;;  %v12012_v21 = vld [vmem:[#allocation2 + $0x924] sm:$0xf0]  ;;  %v16203_v25 = vld [vmem:[#allocation2 + $0x254] sm:$0xf] }
 0x206   :  { %7865 = vmatpush.bf16.msra.mxu2 %v13391_v27  ;;  %v15138_v27 = vld [vmem:[#allocation2 + $0x2138] sm:$0xf]  ;;  %v16410_v8 = vld [vmem:[#allocation2 + $0x8cc] sm:$0xf] }
 0x207   :  { %7840 = vmatpush.bf16.msrb.mxu3 %v11827_v54  ;;  %v16479_v54 = vld [vmem:[#allocation2 + $0xaf4] sm:$0xf]  ;;  %v15139_v34 = vor.u32 %v17203_v60, %v15138_v27  ;;  %v14770_v60 = vld [vmem:[#allocation2 + $0x1e58] sm:$0xf] }
 0x208   :  { %7853 = vmatpush.bf16.msra.mxu0 %v12563_v42  ;;  %v15046_v42 = vld [vmem:[#allocation2 + $0x2080] sm:$0xf]  ;;  %v12291_v46 = vor.u32 %v16479_v54, %v12288_v32  ;;  %v16927_v27 = vld [vmem:[#allocation2 + $0x18f0] sm:$0xf0] }
 0x209   :  { %7828 = vmatpush.bf16.msrb.mxu1 %v10999_v52  ;;  %v12196_v52 = vld [vmem:[#allocation2 + $0xa94] sm:$0xf0]  ;;  %v7584_v4 = vpop.f32.mrf.mxu1 }
 0x20a   :  { %7866 = vmatpush.bf16.msra.mxu2 %v13299_v44  ;;  %v17180_v44 = vld [vmem:[#allocation2 + $0x20d8] sm:$0xf0]  ;;  %v12199_v2 = vor.u32 %v16456_v50, %v12196_v52  ;;  %v14678_v52 = vld [vmem:[#allocation2 + $0x1da0] sm:$0xf] }
 0x20b   :  { %7841 = vmatpush.bf16.msrb.mxu3 %v11735_v53  ;;  %v14311_v53 = vor.u32 %v16996_v41, %v14310_v40  ;;  %v15047_v56 = vor.u32 %v17180_v44, %v15046_v42  ;;  %v14035_v40 = vor.u32 %v16927_v27, %v14034_v1  ;;  %v16180_v42 = vld [vmem:[#allocation2 + $0x19c] sm:$0xf]  ;;  %v11092_v44 = vld [vmem:[#allocation2 + $0x1f4] sm:$0xf0] }
 0x20c   :  { %7854 = vmatpush.bf16.msra.mxu0 %v12471_v0  ;;  %v17157_v0 = vld [vmem:[#allocation2 + $0x2020] sm:$0xf0]  ;;  %v16904_v50 = vld [vmem:[#allocation2 + $0x1838] sm:$0xf0]  ;;  %v11095_v59 = vor.u32 %v16180_v42, %v11092_v44  ;;  %v17215_v42 = vld [vmem:[#allocation2 + $0x21f4] sm:$0xf] }
 0x20d   :  { %7829 = vmatpush.bf16.msrb.mxu1 %v10907_v13  ;;  %v14955_v11 = vor.u32 %v17157_v0, %v14954_v58  ;;  %v11276_v13 = vld [vmem:[#allocation2 + $0x364] sm:$0xf0]  ;;  %v16157_v58 = vld [vmem:[#allocation2 + $0xe4] sm:$0xf]  ;;  %v15232_v44 = vld [vmem:[#allocation2 + $0x224c] sm:$0xf0] }
 0x20e   :  { %7867 = vmatpush.bf16.msra.mxu2 %v13207_v9  ;;  %v7585_v9 = vadd.f32 %v7584_v4, %v17662_v43  ;;  %v14863_v43 = vor.u32 %v17134_v16, %v14862_v15 }
 0x20f   :  { %7842 = vmatpush.bf16.msrb.mxu3 %v11643_v14  ;;  %v14126_v14 = vld [vmem:[#allocation2 + $0x1950] sm:$0xf] }
 0x210   :  { %7855 = vmatpush.bf16.msra.mxu0 %v12379_v26  ;;  %7830 = vmatmul.bf16.vlgmr.msrb.gmra.mxu1 %v17514_v55  ;;  %v14127_v19 = vor.u32 %v16950_v49, %v14126_v14  ;;  %v11184_v26 = vld [vmem:[#allocation2 + $0x2ac] sm:$0xf0]  ;;  %v7623_v54 = vpop.f32.mrf.mxu0  ;;  %v16847_v14 = vld [vmem:[#allocation2 + $0x1674] sm:$0xf] }
 0x211   :  { %7874 = vmatpush.bf16.msra.mxu1 %v14495_v17  ;;  %v12107_v17 = vor.u32 %v16433_v5, %v12104_v6  ;;  %v13850_v5 = vld [vmem:[#allocation2 + $0x1728] sm:$0xf]  ;;  %v16881_v6 = vld [vmem:[#allocation2 + $0x1780] sm:$0xf0]  ;;  %v13760_v49 = vld [vmem:[#allocation2 + $0x16cc] sm:$0xf0] }
 0x212   :  { %7868 = vmatpush.bf16.msra.mxu2 %v13115_v28  ;;  %7843 = vmatmul.bf16.vlgmr.msrb.gmra.mxu3 %v17523_v7  ;;  %v17111_v28 = vld [vmem:[#allocation2 + $0x1eb0] sm:$0xf0]  ;;  %v13763_v27 = vor.u32 %v16847_v14, %v13760_v49  ;;  %v16778_v14 = vld [vmem:[#allocation2 + $0x144c] sm:$0xf]  ;;  %v13484_v49 = vld [vmem:[#allocation2 + $0x14a4] sm:$0xf0] }
 0x213   :  { %7887 = vmatpush.bf16.msra.mxu3 %v15231_v20  ;;  %7856 = vmatmul.bf16.vlgmr.msra.gmra.mxu0 %v17512_v51  ;;  %v11279_v20 = vor.u32 %v16226_v12, %v11276_v13  ;;  %v14771_v41 = vor.u32 %v17111_v28, %v14770_v60  ;;  %v11831_v12 = vor.u32 %v16364_v61, %v11828_v62  ;;  %v13024_v13 = vld [vmem:[#allocation2 + $0x110c] sm:$0xf0]  ;;  %v10908_v60 = vld [vmem:[#allocation2 + $0x84] sm:$0xf0]  ;;  %v17031_v28 = vld [vmem:[#allocation2 + $0x1c34] sm:$0xf] }
 0x214   :  { %7907 = vmatpush.bf16.msrb.mxu0 %v15323_v29  ;;  %v7597_v29 = vpop.f32.mrf.mxu3  ;;  %v15235_v61 = vor.u32 %v17215_v42, %v15232_v44  ;;  %v16801_v62 = vld [vmem:[#allocation2 + $0x1504] sm:$0xf]  ;;  %v16732_v44 = vld [vmem:[#allocation2 + $0x12dc] sm:$0xf] }
 0x215   :  { %7875 = vmatpush.bf16.msra.mxu1 %v14403_v33  ;;  %7869 = vmatmul.bf16.vlgmr.msra.gmra.mxu2 %v17516_v57  ;;  %v7598_v32 = vadd.f32 %v7597_v29, %v7585_v9  ;;  %v7586_v33 = vpop.f32.mrf.mxu1  ;;  %v14586_v9 = vld [vmem:[#allocation2 + $0x1ce8] sm:$0xf]  ;;  %v14496_v29 = vld [vmem:[#allocation2 + $0x1c8c] sm:$0xf0] }
 0x216   :  { %7913 = vmatpush.bf16.msrb.mxu2 %v11555_v63  ;;  %v12015_v63 = vor.u32 %v16410_v8, %v12012_v21  ;;  %v16341_v8 = vld [vmem:[#allocation2 + $0x6a4] sm:$0xf]  ;;  %v11736_v21 = vld [vmem:[#allocation2 + $0x6fc] sm:$0xf0]  ;;  %v12932_v33 = vld [vmem:[#allocation2 + $0x1054] sm:$0xf0] }
 0x217   :  { %7888 = vmatpush.bf16.msra.mxu3 %v15139_v34  ;;  %v11187_v34 = vor.u32 %v16203_v25, %v11184_v26  ;;  %v16134_v26 = vld [vmem:[#allocation2 + $0x2c] sm:$0xf] }
 0x218   :  { %7926 = vmatpush.bf16.msra.mxu0 %v12291_v46  ;;  %v13942_v46 = vld [vmem:[#allocation2 + $0x17e0] sm:$0xf]  ;;  %v7625_v16 = vpop.f32.mrf.mxu0 }
 0x219   :  { %7876 = vmatpush.bf16.msra.mxu1 %v14311_v53  ;;  %v17088_v53 = vld [vmem:[#allocation2 + $0x1df8] sm:$0xf0]  ;;  %v15048_v16 = vld [vmem:[#allocation2 + $0x20dc] sm:$0xf0] }
 0x21a   :  { %7914 = vmatpush.bf16.msrb.mxu2 %v11463_v47  ;;  %v7610_v47 = vpop.f32.mrf.mxu2  ;;  %v14679_v4 = vor.u32 %v17088_v53, %v14678_v52 }
 0x21b   :  { %7889 = vmatpush.bf16.msra.mxu3 %v15047_v56  ;;  %v7611_v56 = vadd.f32 %v7610_v47, %v7598_v32  ;;  %v16640_v32 = vld [vmem:[#allocation2 + $0xffc] sm:$0xf] }
 0x21c   :  { %7927 = vmatpush.bf16.msra.mxu0 %v12199_v2  ;;  %v13943_v2 = vor.u32 %v16904_v50, %v13942_v46  ;;  %v7599_v15 = vpop.f32.mrf.mxu3  ;;  %v14499_v46 = vor.u32 %v17031_v28, %v14496_v29  ;;  %v12935_v47 = vor.u32 %v16640_v32, %v12932_v33  ;;  %v17008_v50 = vld [vmem:[#allocation2 + $0x1b7c] sm:$0xf]  ;;  %v17146_v28 = vld [vmem:[#allocation2 + $0x1fcc] sm:$0xf]  ;;  %v14956_v29 = vld [vmem:[#allocation2 + $0x2024] sm:$0xf0] }
 0x21d   :  { %7877 = vmatpush.bf16.msra.mxu1 %v14219_v10  ;;  %v7624_v0 = vadd.f32 %v7623_v54, %v7611_v56  ;;  %v17065_v10 = vld [vmem:[#allocation2 + $0x1d40] sm:$0xf0]  ;;  %v11739_v54 = vor.u32 %v16341_v8, %v11736_v21  ;;  %v14404_v56 = vld [vmem:[#allocation2 + $0x1bd4] sm:$0xf0]  ;;  %v16962_v8 = vld [vmem:[#allocation2 + $0x1a0c] sm:$0xf]  ;;  %v13487_v21 = vor.u32 %v16778_v14, %v13484_v49 }
 0x21e   :  { %7915 = vmatpush.bf16.msrb.mxu2 %v11371_v3  ;;  %v11000_v3 = vld [vmem:[#allocation2 + $0x13c] sm:$0xf0]  ;;  %v14587_v25 = vor.u32 %v17065_v10, %v14586_v9  ;;  %v17169_v15 = vld [vmem:[#allocation2 + $0x2084] sm:$0xf]  ;;  %v16939_v32 = vld [vmem:[#allocation2 + $0x1954] sm:$0xf] }
 0x21f   :  { %7890 = vmatpush.bf16.msra.mxu3 %v14955_v11  ;;  %v16663_v11 = vld [vmem:[#allocation2 + $0x10b4] sm:$0xf]  ;;  %v14312_v10 = vld [vmem:[#allocation2 + $0x1b1c] sm:$0xf0]  ;;  %v16502_v14 = vld [vmem:[#allocation2 + $0xbac] sm:$0xf] }
 0x220   :  { %7928 = vmatpush.bf16.msra.mxu0 %v12107_v17  ;;  %v7636_v17 = vpop.f32.mrf.mxu1  ;;  %v13027_v1 = vor.u32 %v16663_v11, %v13024_v13  ;;  %v16594_v11 = vld [vmem:[#allocation2 + $0xe8c] sm:$0xf] }
 0x221   :  { %7878 = vmatpush.bf16.msra.mxu1 %v14127_v19  ;;  %v17671_v19 = vadd.f32 %v7636_v17, %v7624_v0 }
 0x222   :  { %7916 = vmatpush.bf16.msrb.mxu2 %v11279_v20  ;;  %v11003_v20 = vor.u32 %v16157_v58, %v11000_v3  ;;  %v13576_v58 = vld [vmem:[#allocation2 + $0x155c] sm:$0xf0]  ;;  %v14407_v3 = vor.u32 %v17008_v50, %v14404_v56  ;;  %v14864_v50 = vld [vmem:[#allocation2 + $0x1f6c] sm:$0xf0]  ;;  %v16916_v56 = vld [vmem:[#allocation2 + $0x189c] sm:$0xf] }
 0x223   :  { %7891 = vmatpush.bf16.msra.mxu3 %v14863_v43  ;;  %15382 = vmatmul.msk.bf16.vlgmr.msrb.gmra.mxu0 %vm6908_vm0, %v17530_v45  ;;  %v13851_v43 = vor.u32 %v16881_v6, %v13850_v5  ;;  %v16985_v6 = vld [vmem:[#allocation2 + $0x1ac4] sm:$0xf]  ;;  %v13579_v9 = vor.u32 %v16801_v62, %v13576_v58  ;;  %v12472_v58 = vld [vmem:[#allocation2 + $0xcbc] sm:$0xf0] }
 0x224   :  { %7929 = vmatpush.bf16.msra.mxu0 %v12015_v63  ;;  %v7612_v63 = vpop.f32.mrf.mxu2  ;;  %v14315_v17 = vor.u32 %v16985_v6, %v14312_v10  ;;  %v16525_v62 = vld [vmem:[#allocation2 + $0xc64] sm:$0xf]  ;;  %v17100_v6 = vld [vmem:[#allocation2 + $0x1e5c] sm:$0xf] }
 0x225   :  { %7879 = vmatpush.bf16.msra.mxu1 %v14035_v40  ;;  %v11644_v40 = vld [vmem:[#allocation2 + $0x644] sm:$0xf0] }
 0x226   :  { %7917 = vmatpush.bf16.msrb.mxu2 %v11187_v34  ;;  %v16824_v34 = vld [vmem:[#allocation2 + $0x15bc] sm:$0xf]  ;;  %v11647_v53 = vor.u32 %v16318_v39, %v11644_v40  ;;  %v12564_v39 = vld [vmem:[#allocation2 + $0xd74] sm:$0xf0] }
 0x227   :  { %7892 = vmatpush.bf16.msra.mxu3 %v14771_v41  ;;  %v10911_v41 = vor.u32 %v16134_v26, %v10908_v60  ;;  %v13671_v52 = vor.u32 %v16824_v34, %v13668_v38  ;;  %v12656_v26 = vld [vmem:[#allocation2 + $0xe2c] sm:$0xf0]  ;;  %v16548_v38 = vld [vmem:[#allocation2 + $0xd1c] sm:$0xf] }
 0x228   :  { %7930 = vmatpush.bf16.msra.mxu0 %v11923_v18  ;;  %v16617_v18 = vld [vmem:[#allocation2 + $0xf44] sm:$0xf]  ;;  %v7638_v0 = vpop.f32.mrf.mxu1  ;;  %v13392_v60 = vld [vmem:[#allocation2 + $0x13ec] sm:$0xf0] }
 0x229   :  { %7880 = vmatpush.bf16.msra.mxu1 %v13943_v2  ;;  %v17192_v2 = vld [vmem:[#allocation2 + $0x213c] sm:$0xf]  ;;  %v14128_v34 = vld [vmem:[#allocation2 + $0x19ac] sm:$0xf0] }
 0x22a   :  { %7918 = vmatpush.bf16.msrb.mxu2 %v11095_v59  ;;  %v12840_v59 = vld [vmem:[#allocation2 + $0xf9c] sm:$0xf0] }
 0x22b   :  { %7893 = vmatpush.bf16.msra.mxu3 %v14679_v4  ;;  %v15140_v4 = vld [vmem:[#allocation2 + $0x2194] sm:$0xf0]  ;;  %v12843_v5 = vor.u32 %v16617_v18, %v12840_v59 }
 0x22c   :  { %7931 = vmatpush.bf16.msra.mxu0 %v11831_v12  ;;  %v12748_v12 = vld [vmem:[#allocation2 + $0xee4] sm:$0xf0]  ;;  %v15143_v13 = vor.u32 %v17192_v2, %v15140_v4  ;;  %v16709_v4 = vld [vmem:[#allocation2 + $0x1224] sm:$0xf] }
 0x22d   :  { %7881 = vmatpush.bf16.msra.mxu1 %v13851_v43  ;;  %v14220_v43 = vld [vmem:[#allocation2 + $0x1a64] sm:$0xf0] }
 0x22e   :  { %7919 = vmatpush.bf16.msrb.mxu2 %v11003_v20  ;;  %v12751_v20 = vor.u32 %v16594_v11, %v12748_v12  ;;  %v14223_v63 = vor.u32 %v16962_v8, %v14220_v43  ;;  %v12475_v11 = vor.u32 %v16525_v62, %v12472_v58  ;;  %v16893_v12 = vld [vmem:[#allocation2 + $0x17e4] sm:$0xf]  ;;  %v11558_v43 = vld [vmem:[#allocation2 + $0x538] sm:$0xf]  ;;  %v16859_v62 = vld [vmem:[#allocation2 + $0x16d0] sm:$0xf0] }
 0x22f   :  { %7894 = vmatpush.bf16.msra.mxu3 %v14587_v25  ;;  %v16571_v25 = vld [vmem:[#allocation2 + $0xdd4] sm:$0xf] }
 0x230   :  { %7932 = vmatpush.bf16.msra.mxu0 %v11739_v54  ;;  %7882 = vmatmul.bf16.vlgmr.msra.gmra.mxu1 %v17540_v30  ;;  %v12659_v54 = vor.u32 %v16571_v25, %v12656_v26  ;;  %v7688_v40 = vpop.f32.mrf.mxu0  ;;  %v7662_v42 = vpop.f32.mrf.mxu1  ;;  %v17238_v25 = vld [vmem:[#allocation2 + $0x22ac] sm:$0xf]  ;;  %v15324_v26 = vld [vmem:[#allocation2 + $0x2304] sm:$0xf0] }
 0x231   :  { %7939 = vmatpush.bf16.msrb.mxu1 %v13027_v1  ;;  %v15051_v1 = vor.u32 %v17169_v15, %v15048_v16  ;;  %v7649_v0 = vpop.f32.mrf.mxu3  ;;  %v12380_v16 = vld [vmem:[#allocation2 + $0xc04] sm:$0xf0] }
 0x232   :  { %7895 = vmatmul.bf16.vlgmr.msra.gmra.mxu3 %v17542_v35  ;;  %7920 = vmatpush.bf16.msrb.mxu2 %v10911_v41  ;;  %v14959_v41 = vor.u32 %v17146_v28, %v14956_v29  ;;  %v17077_v28 = vld [vmem:[#allocation2 + $0x1da4] sm:$0xf]  ;;  %v14680_v29 = vld [vmem:[#allocation2 + $0x1dfc] sm:$0xf0] }
 0x233   :  { %7952 = vmatpush.bf16.msrb.mxu3 %v13763_v27  ;;  %v16755_v27 = vld [vmem:[#allocation2 + $0x1394] sm:$0xf] }
 0x234   :  { %7933 = vmatpush.bf16.msra.mxu0 %v11647_v53  ;;  %v13395_v33 = vor.u32 %v16755_v27, %v13392_v60  ;;  %v12567_v53 = vor.u32 %v16548_v38, %v12564_v39  ;;  %v7675_v18 = vpop.f32.mrf.mxu2  ;;  %v16307_v60 = vld [vmem:[#allocation2 + $0x590] sm:$0xf0]  ;;  %v13852_v38 = vld [vmem:[#allocation2 + $0x1784] sm:$0xf0]  ;;  %v15327_v39 = vor.u32 %v17238_v25, %v15324_v26  ;;  %v11282_v26 = vld [vmem:[#allocation2 + $0x310] sm:$0xf] }
 0x235   :  { %7940 = vmatpush.bf16.msrb.mxu1 %v12935_v47  ;;  %7921 = vmatmul.bf16.vlgmr.msrb.gmra.mxu2 %v17514_v55  ;;  %v17123_v47 = vld [vmem:[#allocation2 + $0x1f14] sm:$0xf] }
 0x236   :  { %7965 = vmatpush.bf16.msra.mxu2 %v14499_v46  ;;  %v13300_v46 = vld [vmem:[#allocation2 + $0x1334] sm:$0xf0]  ;;  %v14867_v2 = vor.u32 %v17123_v47, %v14864_v50  ;;  %v16675_v47 = vld [vmem:[#allocation2 + $0x1110] sm:$0xf0]  ;;  %v11466_v50 = vld [vmem:[#allocation2 + $0x480] sm:$0xf] }
 0x237   :  { %7953 = vmatpush.bf16.msrb.mxu3 %v13671_v52  ;;  %7934 = vmatmul.bf16.vlgmr.msra.gmra.mxu0 %v17523_v7  ;;  %v14131_v52 = vor.u32 %v16939_v32, %v14128_v34  ;;  %v13303_v59 = vor.u32 %v16732_v44, %v13300_v46  ;;  %v16870_v32 = vld [vmem:[#allocation2 + $0x172c] sm:$0xf]  ;;  %v11559_v44 = vor.u32 %v16307_v60, %v11558_v43  ;;  %v16629_v43 = vld [vmem:[#allocation2 + $0xfa0] sm:$0xf0]  ;;  %v13582_v60 = vld [vmem:[#allocation2 + $0x1508] sm:$0xf] }
 0x238   :  { %7978 = vmatpush.bf16.msrb.mxu0 %v15235_v61  ;;  %v14036_v61 = vld [vmem:[#allocation2 + $0x18f4] sm:$0xf0]  ;;  %v7690_v8 = vpop.f32.mrf.mxu0  ;;  %v14683_v46 = vor.u32 %v17077_v28, %v14680_v29  ;;  %v16813_v28 = vld [vmem:[#allocation2 + $0x1560] sm:$0xf0] }
 0x239   :  { %7941 = vmatpush.bf16.msrb.mxu1 %v12843_v5  ;;  %v7663_v5 = vadd.f32 %v7662_v42, %v7649_v0  ;;  %v14039_v10 = vor.u32 %v16916_v56, %v14036_v61  ;;  %v16491_v42 = vld [vmem:[#allocation2 + $0xb50] sm:$0xf0]  ;;  %v17054_v56 = vld [vmem:[#allocation2 + $0x1cec] sm:$0xf]  ;;  %v13766_v61 = vld [vmem:[#allocation2 + $0x1678] sm:$0xf] }
 0x23a   :  { %7966 = vmatpush.bf16.msra.mxu2 %v14407_v3  ;;  %v13208_v3 = vld [vmem:[#allocation2 + $0x127c] sm:$0xf0]  ;;  %v16445_v8 = vld [vmem:[#allocation2 + $0x9e0] sm:$0xf0] }
 0x23b   :  { %7954 = vmatpush.bf16.msrb.mxu3 %v13579_v9  ;;  %v14772_v9 = vld [vmem:[#allocation2 + $0x1eb4] sm:$0xf0]  ;;  %v7676_v49 = vadd.f32 %v7675_v18, %v7663_v5  ;;  %v13211_v15 = vor.u32 %v16709_v4, %v13208_v3  ;;  %v14588_v18 = vld [vmem:[#allocation2 + $0x1d44] sm:$0xf0]  ;;  %v16468_v5 = vld [vmem:[#allocation2 + $0xa98] sm:$0xf0] }
 0x23c   :  { %7979 = vmatpush.bf16.msrb.mxu0 %v15143_v13  ;;  %v13944_v13 = vld [vmem:[#allocation2 + $0x183c] sm:$0xf0]  ;;  %v14591_v3 = vor.u32 %v17054_v56, %v14588_v18  ;;  %v16399_v18 = vld [vmem:[#allocation2 + $0x870] sm:$0xf0] }
 0x23d   :  { %7942 = vmatpush.bf16.msrb.mxu1 %v12751_v20  ;;  %v13116_v20 = vld [vmem:[#allocation2 + $0x11c4] sm:$0xf0]  ;;  %v17677_v27 = vadd.f32 %v7688_v40, %v7676_v49  ;;  %v13030_v40 = vld [vmem:[#allocation2 + $0x10b8] sm:$0xf] }
 0x23e   :  { %7967 = vmatpush.bf16.msra.mxu2 %v14315_v17  ;;  %v16686_v17 = vld [vmem:[#allocation2 + $0x116c] sm:$0xf]  ;;  %v13031_v0 = vor.u32 %v16675_v47, %v13030_v40 }
 0x23f   :  { %7955 = vmatpush.bf16.msrb.mxu3 %v13487_v21  ;;  %v14775_v21 = vor.u32 %v17100_v6, %v14772_v9  ;;  %v13119_v34 = vor.u32 %v16686_v17, %v13116_v20  ;;  %v12938_v6 = vld [vmem:[#allocation2 + $0x1000] sm:$0xf]  ;;  %v16652_v9 = vld [vmem:[#allocation2 + $0x1058] sm:$0xf0] }
 0x240   :  { %7980 = vmatpush.bf16.msrb.mxu0 %v15051_v1  ;;  %v7664_v1 = vpop.f32.mrf.mxu1 }
 0x241   :  { %7943 = vmatpush.bf16.msrb.mxu1 %v12659_v54  ;;  %v12383_v54 = vor.u32 %v16502_v14, %v12380_v16  ;;  %v16836_v14 = vld [vmem:[#allocation2 + $0x1618] sm:$0xf0]  ;;  %v12110_v16 = vld [vmem:[#allocation2 + $0x988] sm:$0xf]  ;;  %v16238_v1 = vld [vmem:[#allocation2 + $0x368] sm:$0xf0] }
 0x242   :  { %7968 = vmatpush.bf16.msra.mxu2 %v14223_v63  ;;  %v13947_v63 = vor.u32 %v16893_v12, %v13944_v13  ;;  %v16261_v12 = vld [vmem:[#allocation2 + $0x420] sm:$0xf0]  ;;  %v13674_v13 = vld [vmem:[#allocation2 + $0x15c0] sm:$0xf]  ;;  %v12111_v29 = vor.u32 %v16445_v8, %v12110_v16 }
 0x243   :  { %7956 = vmatpush.bf16.msrb.mxu3 %v13395_v33  ;;  %v7677_v33 = vpop.f32.mrf.mxu2  ;;  %v13675_v25 = vor.u32 %v16836_v14, %v13674_v13  ;;  %v16376_v14 = vld [vmem:[#allocation2 + $0x7b8] sm:$0xf0] }
 0x244   :  { %7981 = vmatpush.bf16.msrb.mxu0 %v14959_v41  ;;  %v12294_v41 = vld [vmem:[#allocation2 + $0xaf8] sm:$0xf]  ;;  %v16422_v33 = vld [vmem:[#allocation2 + $0x928] sm:$0xf0] }
 0x245   :  { %7944 = vmatpush.bf16.msrb.mxu1 %v12567_v53  ;;  %v16284_v53 = vld [vmem:[#allocation2 + $0x4d8] sm:$0xf0]  ;;  %v12295_v58 = vor.u32 %v16491_v42, %v12294_v41  ;;  %v11190_v41 = vld [vmem:[#allocation2 + $0x258] sm:$0xf]  ;;  %v16215_v42 = vld [vmem:[#allocation2 + $0x2b0] sm:$0xf0] }
 0x246   :  { %7969 = vmatpush.bf16.msra.mxu2 %v14131_v52  ;;  %v7651_v52 = vpop.f32.mrf.mxu3  ;;  %v11467_v4 = vor.u32 %v16284_v53, %v11466_v50  ;;  %v11191_v56 = vor.u32 %v16215_v42, %v11190_v41  ;;  %v14502_v41 = vld [vmem:[#allocation2 + $0x1c38] sm:$0xf] }
 0x247   :  { %7957 = vmatpush.bf16.msrb.mxu3 %v13303_v59  ;;  %v13855_v59 = vor.u32 %v16870_v32, %v13852_v38  ;;  %v11283_v32 = vor.u32 %v16238_v1, %v11282_v26  ;;  %v16606_v38 = vld [vmem:[#allocation2 + $0xee8] sm:$0xf0]  ;;  %v11926_v52 = vld [vmem:[#allocation2 + $0x818] sm:$0xf]  ;;  %v11742_v1 = vld [vmem:[#allocation2 + $0x6a8] sm:$0xf] }
 0x248   :  { %7982 = vmatpush.bf16.msrb.mxu0 %v14867_v2  ;;  %v12202_v2 = vld [vmem:[#allocation2 + $0xa40] sm:$0xf] }
 0x249   :  { %7945 = vmatpush.bf16.msrb.mxu1 %v12475_v11  ;;  %v11374_v11 = vld [vmem:[#allocation2 + $0x3c8] sm:$0xf]  ;;  %v12203_v49 = vor.u32 %v16468_v5, %v12202_v2  ;;  %v11098_v2 = vld [vmem:[#allocation2 + $0x1a0] sm:$0xf]  ;;  %v13398_v5 = vld [vmem:[#allocation2 + $0x1398] sm:$0xf] }
 0x24a   :  { %7970 = vmatpush.bf16.msra.mxu2 %v14039_v10  ;;  %v13767_v10 = vor.u32 %v16859_v62, %v13766_v61  ;;  %v11375_v20 = vor.u32 %v16261_v12, %v11374_v11  ;;  %v16583_v61 = vld [vmem:[#allocation2 + $0xe30] sm:$0xf0]  ;;  %v11834_v11 = vld [vmem:[#allocation2 + $0x760] sm:$0xf] }
 0x24b   :  { %7958 = vmatpush.bf16.msrb.mxu3 %v13211_v15  ;;  %v12939_v15 = vor.u32 %v16652_v9, %v12938_v6  ;;  %v17681_v17 = vpop.f32.mrf.mxu2  ;;  %v16767_v6 = vld [vmem:[#allocation2 + $0x13f0] sm:$0xf0]  ;;  %v11927_v9 = vor.u32 %v16399_v18, %v11926_v52  ;;  %v11650_v52 = vld [vmem:[#allocation2 + $0x5f0] sm:$0xf] }
 0x24c   :  { %7983 = vmatpush.bf16.msrb.mxu0 %v14775_v21  ;;  %v12846_v21 = vld [vmem:[#allocation2 + $0xf48] sm:$0xf]  ;;  %v13399_v16 = vor.u32 %v16767_v6, %v13398_v5  ;;  %v17020_v5 = vld [vmem:[#allocation2 + $0x1bd8] sm:$0xf0]  ;;  %v13122_v6 = vld [vmem:[#allocation2 + $0x1170] sm:$0xf] }
 0x24d   :  { %7946 = vmatpush.bf16.msrb.mxu1 %v12383_v54  ;;  %v12018_v54 = vld [vmem:[#allocation2 + $0x8d0] sm:$0xf]  ;;  %v7714_v50 = vpop.f32.mrf.mxu1 }
 0x24e   :  { %7971 = vmatpush.bf16.msra.mxu2 %v13947_v63  ;;  %v12847_v63 = vor.u32 %v16629_v43, %v12846_v21  ;;  %v12019_v40 = vor.u32 %v16422_v33, %v12018_v54  ;;  %v13306_v21 = vld [vmem:[#allocation2 + $0x12e0] sm:$0xf]  ;;  %v16744_v43 = vld [vmem:[#allocation2 + $0x1338] sm:$0xf0]  ;;  %v12478_v54 = vld [vmem:[#allocation2 + $0xc68] sm:$0xf] }
 0x24f   :  { %7959 = vmatpush.bf16.msrb.mxu3 %v13119_v34  ;;  %v12754_v34 = vld [vmem:[#allocation2 + $0xe90] sm:$0xf] }
 0x250   :  { %7984 = vmatpush.bf16.msrb.mxu0 %v14683_v46  ;;  %7947 = vmatmul.bf16.vlgmr.msrb.gmra.mxu1 %v17512_v51  ;;  %v16790_v46 = vld [vmem:[#allocation2 + $0x14a8] sm:$0xf0]  ;;  %v12755_v47 = vor.u32 %v16606_v38, %v12754_v34  ;;  %v7740_v62 = vpop.f32.mrf.mxu0  ;;  %v10914_v38 = vld [vmem:[#allocation2 + $0x30] sm:$0xf] }
 0x251   :  { %7998 = vmatpush.bf16.msra.mxu1 %v15327_v39  ;;  %v13583_v39 = vor.u32 %v16813_v28, %v13582_v60 }
 0x252   :  { %7960 = vmatmul.bf16.vlgmr.msrb.gmra.mxu3 %v17516_v57  ;;  %7972 = vmatpush.bf16.msra.mxu2 %v13855_v59  ;;  %v12662_v59 = vld [vmem:[#allocation2 + $0xdd8] sm:$0xf] }
 0x253   :  { %8004 = vmatpush.bf16.msra.mxu3 %v11559_v44  ;;  %v13490_v44 = vld [vmem:[#allocation2 + $0x1450] sm:$0xf]  ;;  %v7729_v53 = vpop.f32.mrf.mxu2 }
 0x254   :  { %7985 = vmatpush.bf16.msrb.mxu0 %v14591_v3  ;;  %v16330_v53 = vld [vmem:[#allocation2 + $0x648] sm:$0xf0] }
 0x255   :  { %8017 = vmatpush.bf16.msrb.mxu1 %v12295_v58  ;;  %7973 = vmatmul.bf16.vlgmr.msra.gmra.mxu2 %v17540_v30  ;;  %v7701_v58 = vpop.f32.mrf.mxu3  ;;  %v7716_v60 = vpop.f32.mrf.mxu1 }
 0x256   :  { %8030 = vmatpush.bf16.msrb.mxu2 %v13031_v0  ;;  %v13491_v0 = vor.u32 %v16790_v46, %v13490_v44  ;;  %v7702_v3 = vadd.f32 %v7701_v58, %v17677_v27  ;;  %v16169_v27 = vld [vmem:[#allocation2 + $0x140] sm:$0xf0]  ;;  %v17043_v44 = vld [vmem:[#allocation2 + $0x1c90] sm:$0xf0]  ;;  %v13214_v46 = vld [vmem:[#allocation2 + $0x1228] sm:$0xf] }
 0x257   :  { %8005 = vmatpush.bf16.msra.mxu3 %v11467_v4  ;;  %7986 = vmatmul.bf16.vlgmr.msrb.gmra.mxu0 %v17542_v35  ;;  %v16192_v4 = vld [vmem:[#allocation2 + $0x1f8] sm:$0xf0]  ;;  %v14503_v58 = vor.u32 %v17043_v44, %v14502_v41  ;;  %v16997_v60 = vld [vmem:[#allocation2 + $0x1b20] sm:$0xf0]  ;;  %v16974_v44 = vld [vmem:[#allocation2 + $0x1a68] sm:$0xf0] }
 0x258   :  { %8043 = vmatpush.bf16.msra.mxu0 %v13767_v10  ;;  %v12663_v10 = vor.u32 %v16583_v61, %v12662_v59  ;;  %v7715_v12 = vadd.f32 %v7714_v50, %v7702_v3  ;;  %v11099_v13 = vor.u32 %v16192_v4, %v11098_v2  ;;  %v7742_v34 = vpop.f32.mrf.mxu0  ;;  %v16514_v59 = vld [vmem:[#allocation2 + $0xc08] sm:$0xf0]  ;;  %v15238_v61 = vld [vmem:[#allocation2 + $0x21f8] sm:$0xf]  ;;  %v14410_v2 = vld [vmem:[#allocation2 + $0x1b80] sm:$0xf] }
 0x259   :  { %8018 = vmatpush.bf16.msrb.mxu1 %v12203_v49  ;;  %v12570_v49 = vld [vmem:[#allocation2 + $0xd20] sm:$0xf]  ;;  %v15330_v4 = vld [vmem:[#allocation2 + $0x22b0] sm:$0xf]  ;;  %v17250_v3 = vld [vmem:[#allocation2 + $0x2308] sm:$0xf0] }
 0x25a   :  { %8031 = vmatpush.bf16.msrb.mxu2 %v12939_v15  ;;  %v16560_v15 = vld [vmem:[#allocation2 + $0xd78] sm:$0xf0]  ;;  %v17689_v8 = vadd.f32 %v17681_v17, %v7715_v12  ;;  %v13307_v17 = vor.u32 %v16744_v43, %v13306_v21  ;;  %v15146_v43 = vld [vmem:[#allocation2 + $0x2140] sm:$0xf] }
 0x25b   :  { %8006 = vmatpush.bf16.msra.mxu3 %v11375_v20  ;;  %v11006_v20 = vld [vmem:[#allocation2 + $0xe8] sm:$0xf]  ;;  %v12571_v26 = vor.u32 %v16560_v15, %v12570_v49  ;;  %v7753_v28 = vpop.f32.mrf.mxu2  ;;  %v16296_v12 = vld [vmem:[#allocation2 + $0x53c] sm:$0xf]  ;;  %v15331_v15 = vor.u32 %v17250_v3, %v15330_v4  ;;  %v12204_v34 = vld [vmem:[#allocation2 + $0xa9c] sm:$0xf0] }
 0x25c   :  { %8044 = vmatpush.bf16.msra.mxu0 %v13675_v25  ;;  %v11835_v25 = vor.u32 %v16376_v14, %v11834_v11  ;;  %v17691_v33 = vadd.f32 %v7753_v28, %v7740_v62  ;;  %v17227_v62 = vld [vmem:[#allocation2 + $0x2250] sm:$0xf0]  ;;  %v11284_v4 = vld [vmem:[#allocation2 + $0x36c] sm:$0xf0] }
 0x25d   :  { %8019 = vmatpush.bf16.msrb.mxu1 %v12111_v29  ;;  %v11007_v29 = vor.u32 %v16169_v27, %v11006_v20  ;;  %v7703_v42 = vpop.f32.mrf.mxu3  ;;  %v15239_v49 = vor.u32 %v17227_v62, %v15238_v61  ;;  %v12296_v20 = vld [vmem:[#allocation2 + $0xb54] sm:$0xf0]  ;;  %v14411_v27 = vor.u32 %v17020_v5, %v14410_v2  ;;  %v16227_v2 = vld [vmem:[#allocation2 + $0x314] sm:$0xf] }
 0x25e   :  { %8032 = vmatpush.bf16.msrb.mxu2 %v12847_v63  ;;  %v16353_v63 = vld [vmem:[#allocation2 + $0x700] sm:$0xf0]  ;;  %v14226_v42 = vld [vmem:[#allocation2 + $0x1a10] sm:$0xf]  ;;  %v14134_v62 = vld [vmem:[#allocation2 + $0x1958] sm:$0xf] }
 0x25f   :  { %8007 = vmatpush.bf16.msra.mxu3 %v11283_v32  ;;  %v16537_v32 = vld [vmem:[#allocation2 + $0xcc0] sm:$0xf0]  ;;  %v16411_v5 = vld [vmem:[#allocation2 + $0x8d4] sm:$0xf] }
 0x260   :  { %8045 = vmatpush.bf16.msra.mxu0 %v13583_v39  ;;  %15383 = vmatmul.msk.bf16.vlgmr.msra.gmra.mxu1 %vm6908_vm0, %v17530_v45  ;;  %v16146_v39 = vld [vmem:[#allocation2 + $0x88] sm:$0xf0]  ;;  %v12479_v50 = vor.u32 %v16537_v32, %v12478_v54  ;;  %v16457_v32 = vld [vmem:[#allocation2 + $0xa44] sm:$0xf] }
 0x261   :  { %8020 = vmatpush.bf16.msrb.mxu1 %v12019_v40  ;;  %v16721_v40 = vld [vmem:[#allocation2 + $0x1280] sm:$0xf0]  ;;  %v10915_v18 = vor.u32 %v16146_v39, %v10914_v38  ;;  %v15054_v38 = vld [vmem:[#allocation2 + $0x2088] sm:$0xf] }
 0x262   :  { %8033 = vmatpush.bf16.msrb.mxu2 %v12755_v47  ;;  %v11743_v47 = vor.u32 %v16353_v63, %v11742_v1  ;;  %v14318_v1 = vld [vmem:[#allocation2 + $0x1ac8] sm:$0xf]  ;;  %v11468_v63 = vld [vmem:[#allocation2 + $0x4dc] sm:$0xf0]  ;;  %v17181_v39 = vld [vmem:[#allocation2 + $0x20e0] sm:$0xf0] }
 0x263   :  { %8008 = vmatpush.bf16.msra.mxu3 %v11191_v56  ;;  %v12386_v56 = vld [vmem:[#allocation2 + $0xbb0] sm:$0xf]  ;;  %v7755_v14 = vpop.f32.mrf.mxu2 }
 0x264   :  { %8046 = vmatpush.bf16.msra.mxu0 %v13491_v0  ;;  %v13215_v0 = vor.u32 %v16721_v40, %v13214_v46  ;;  %v12387_v11 = vor.u32 %v16514_v59, %v12386_v56  ;;  %v12207_v46 = vor.u32 %v16457_v32, %v12204_v34  ;;  %v16250_v40 = vld [vmem:[#allocation2 + $0x3cc] sm:$0xf]  ;;  %v14227_v56 = vor.u32 %v16974_v44, %v14226_v42  ;;  %v13950_v32 = vld [vmem:[#allocation2 + $0x17e8] sm:$0xf]  ;;  %v16905_v34 = vld [vmem:[#allocation2 + $0x1840] sm:$0xf0] }
 0x265   :  { %8021 = vmatpush.bf16.msrb.mxu1 %v11927_v9  ;;  %v16698_v9 = vld [vmem:[#allocation2 + $0x11c8] sm:$0xf0]  ;;  %v11287_v14 = vor.u32 %v16227_v2, %v11284_v4  ;;  %v16365_v44 = vld [vmem:[#allocation2 + $0x764] sm:$0xf]  ;;  %v13032_v2 = vld [vmem:[#allocation2 + $0x1114] sm:$0xf0] }
 0x266   :  { %8034 = vmatpush.bf16.msrb.mxu2 %v12663_v10  ;;  %v11651_v10 = vor.u32 %v16330_v53, %v11650_v52  ;;  %v13123_v21 = vor.u32 %v16698_v9, %v13122_v6  ;;  %v16434_v52 = vld [vmem:[#allocation2 + $0x98c] sm:$0xf]  ;;  %v12112_v53 = vld [vmem:[#allocation2 + $0x9e4] sm:$0xf0]  ;;  %v12020_v6 = vld [vmem:[#allocation2 + $0x92c] sm:$0xf0] }
 0x267   :  { %8009 = vmatpush.bf16.msra.mxu3 %v11099_v13  ;;  %v11560_v13 = vld [vmem:[#allocation2 + $0x594] sm:$0xf0]  ;;  %v17158_v59 = vld [vmem:[#allocation2 + $0x2028] sm:$0xf0] }
 0x268   :  { %8047 = vmatpush.bf16.msra.mxu0 %v13399_v16  ;;  %v16480_v16 = vld [vmem:[#allocation2 + $0xafc] sm:$0xf]  ;;  %v16158_v4 = vld [vmem:[#allocation2 + $0xec] sm:$0xf] }
 0x269   :  { %8022 = vmatpush.bf16.msrb.mxu1 %v11835_v25  ;;  %v17204_v25 = vld [vmem:[#allocation2 + $0x2198] sm:$0xf0]  ;;  %v12299_v28 = vor.u32 %v16480_v16, %v12296_v20 }
 0x26a   :  { %8035 = vmatpush.bf16.msrb.mxu2 %v12571_v26  ;;  %v11563_v26 = vor.u32 %v16296_v12, %v11560_v13  ;;  %v15147_v54 = vor.u32 %v17204_v25, %v15146_v43  ;;  %v17135_v12 = vld [vmem:[#allocation2 + $0x1f70] sm:$0xf0]  ;;  %v11192_v43 = vld [vmem:[#allocation2 + $0x2b4] sm:$0xf0] }
 0x26b   :  { %8010 = vmatpush.bf16.msra.mxu3 %v11007_v29  ;;  %v16273_v29 = vld [vmem:[#allocation2 + $0x484] sm:$0xf] }
 0x26c   :  { %8048 = vmatpush.bf16.msra.mxu0 %v13307_v17  ;;  %v14319_v17 = vor.u32 %v16997_v60, %v14318_v1  ;;  %v11471_v41 = vor.u32 %v16273_v29, %v11468_v63  ;;  %v11928_v1 = vld [vmem:[#allocation2 + $0x874] sm:$0xf0]  ;;  %v14778_v29 = vld [vmem:[#allocation2 + $0x1e60] sm:$0xf]  ;;  %v17112_v63 = vld [vmem:[#allocation2 + $0x1eb8] sm:$0xf0] }
 0x26d   :  { %8023 = vmatpush.bf16.msrb.mxu1 %v11743_v47  ;;  %v11376_v47 = vld [vmem:[#allocation2 + $0x424] sm:$0xf0]  ;;  %v7779_v9 = vpop.f32.mrf.mxu1 }
 0x26e   :  { %8036 = vmatpush.bf16.msrb.mxu2 %v12479_v50  ;;  %v15055_v50 = vor.u32 %v17181_v39, %v15054_v38  ;;  %v11379_v61 = vor.u32 %v16250_v40, %v11376_v47  ;;  %v16181_v38 = vld [vmem:[#allocation2 + $0x1a4] sm:$0xf]  ;;  %v11100_v39 = vld [vmem:[#allocation2 + $0x1fc] sm:$0xf0]  ;;  %v13951_v47 = vor.u32 %v16905_v34, %v13950_v32  ;;  %v15240_v32 = vld [vmem:[#allocation2 + $0x2254] sm:$0xf0] }
 0x26f   :  { %8011 = vmatpush.bf16.msra.mxu3 %v10915_v18  ;;  %v14962_v18 = vld [vmem:[#allocation2 + $0x1fd0] sm:$0xf] }
 0x270   :  { %8049 = vmatpush.bf16.msra.mxu0 %v13215_v0  ;;  %v12115_v0 = vor.u32 %v16434_v52, %v12112_v53  ;;  %v14963_v3 = vor.u32 %v17158_v59, %v14962_v18  ;;  %v7792_v16 = vpop.f32.mrf.mxu0  ;;  %v14686_v52 = vld [vmem:[#allocation2 + $0x1da8] sm:$0xf]  ;;  %v17089_v53 = vld [vmem:[#allocation2 + $0x1e00] sm:$0xf0]  ;;  %v11103_v18 = vor.u32 %v16181_v38, %v11100_v39  ;;  %v13858_v59 = vld [vmem:[#allocation2 + $0x1730] sm:$0xf] }
 0x271   :  { %8024 = vmatpush.bf16.msrb.mxu1 %v11651_v10  ;;  %v7766_v13 = vpop.f32.mrf.mxu3  ;;  %v16825_v38 = vld [vmem:[#allocation2 + $0x15c4] sm:$0xf]  ;;  %v13676_v39 = vld [vmem:[#allocation2 + $0x161c] sm:$0xf0] }
 0x272   :  { %8037 = vmatpush.bf16.msrb.mxu2 %v12387_v11  ;;  %8012 = vmatmul.bf16.vlgmr.msra.gmra.mxu3 %v17514_v55  ;;  %v14870_v11 = vld [vmem:[#allocation2 + $0x1f18] sm:$0xf]  ;;  %v7767_v20 = vadd.f32 %v7766_v13, %v17691_v33  ;;  %v16848_v13 = vld [vmem:[#allocation2 + $0x167c] sm:$0xf] }
 0x273   :  { %8056 = vmatpush.bf16.msrb.mxu3 %v14503_v58  ;;  %v16951_v58 = vld [vmem:[#allocation2 + $0x19b0] sm:$0xf0]  ;;  %v14871_v25 = vor.u32 %v17135_v12, %v14870_v11  ;;  %v14594_v11 = vld [vmem:[#allocation2 + $0x1cf0] sm:$0xf]  ;;  %v17066_v12 = vld [vmem:[#allocation2 + $0x1d48] sm:$0xf0] }
 0x274   :  { %8050 = vmatpush.bf16.msra.mxu0 %v13123_v21  ;;  %8025 = vmatmul.bf16.vlgmr.msrb.gmra.mxu1 %v17523_v7  ;;  %v14135_v10 = vor.u32 %v16951_v58, %v14134_v62  ;;  %v16204_v21 = vld [vmem:[#allocation2 + $0x25c] sm:$0xf] }
 0x275   :  { %8069 = vmatpush.bf16.msra.mxu1 %v15239_v49  ;;  %8038 = vmatmul.bf16.vlgmr.msrb.gmra.mxu2 %v17512_v51  ;;  %v14042_v49 = vld [vmem:[#allocation2 + $0x18a0] sm:$0xf]  ;;  %v7781_v40 = vpop.f32.mrf.mxu1  ;;  %v16664_v62 = vld [vmem:[#allocation2 + $0x10bc] sm:$0xf] }
 0x276   :  { %8089 = vmatpush.bf16.msra.mxu2 %v15331_v15  ;;  %v16928_v15 = vld [vmem:[#allocation2 + $0x18f8] sm:$0xf0]  ;;  %v12848_v40 = vld [vmem:[#allocation2 + $0xfa4] sm:$0xf0] }
 0x277   :  { %8057 = vmatpush.bf16.msrb.mxu3 %v14411_v27  ;;  %8051 = vmatmul.bf16.vlgmr.msra.gmra.mxu0 %v17516_v57  ;;  %v12023_v27 = vor.u32 %v16411_v5, %v12020_v6  ;;  %v14043_v60 = vor.u32 %v16928_v15, %v14042_v49  ;;  %v14687_v5 = vor.u32 %v17089_v53, %v14686_v52  ;;  %v16342_v6 = vld [vmem:[#allocation2 + $0x6ac] sm:$0xf]  ;;  %v13768_v15 = vld [vmem:[#allocation2 + $0x16d4] sm:$0xf0]  ;;  %v17009_v52 = vld [vmem:[#allocation2 + $0x1b84] sm:$0xf] }
 0x278   :  { %8095 = vmatpush.bf16.msrb.mxu0 %v11563_v26  ;;  %v16388_v26 = vld [vmem:[#allocation2 + $0x81c] sm:$0xf]  ;;  %v7805_v42 = vpop.f32.mrf.mxu2  ;;  %v7794_v58 = vpop.f32.mrf.mxu0  ;;  %v14412_v53 = vld [vmem:[#allocation2 + $0x1bdc] sm:$0xf0] }
 0x279   :  { %8070 = vmatpush.bf16.msra.mxu1 %v15147_v54  ;;  %v11195_v54 = vor.u32 %v16204_v21, %v11192_v43  ;;  %v16135_v21 = vld [vmem:[#allocation2 + $0x34] sm:$0xf]  ;;  %v10916_v43 = vld [vmem:[#allocation2 + $0x8c] sm:$0xf0]  ;;  %v14415_v58 = vor.u32 %v17009_v52, %v14412_v53 }
 0x27a   :  { %8108 = vmatpush.bf16.msrb.mxu2 %v12299_v28  ;;  %v7780_v28 = vadd.f32 %v7779_v9, %v7767_v20  ;;  %v11744_v9 = vld [vmem:[#allocation2 + $0x704] sm:$0xf0]  ;;  %v12940_v20 = vld [vmem:[#allocation2 + $0x105c] sm:$0xf0] }
 0x27b   :  { %8058 = vmatpush.bf16.msrb.mxu3 %v14319_v17  ;;  %v11931_v17 = vor.u32 %v16388_v26, %v11928_v1  ;;  %v14595_v26 = vor.u32 %v17066_v12, %v14594_v11  ;;  %v11652_v1 = vld [vmem:[#allocation2 + $0x64c] sm:$0xf0] }
 0x27c   :  { %8096 = vmatpush.bf16.msrb.mxu0 %v11471_v41  ;;  %v7793_v33 = vadd.f32 %v7792_v16, %v7780_v28  ;;  %v14779_v41 = vor.u32 %v17112_v63, %v14778_v29  ;;  %v16641_v16 = vld [vmem:[#allocation2 + $0x1004] sm:$0xf]  ;;  %v14504_v28 = vld [vmem:[#allocation2 + $0x1c94] sm:$0xf0]  ;;  %v13771_v63 = vor.u32 %v16848_v13, %v13768_v15  ;;  %v16779_v13 = vld [vmem:[#allocation2 + $0x1454] sm:$0xf] }
 0x27d   :  { %8071 = vmatpush.bf16.msra.mxu1 %v15055_v50  ;;  %v16572_v15 = vld [vmem:[#allocation2 + $0xddc] sm:$0xf] }
 0x27e   :  { %8109 = vmatpush.bf16.msrb.mxu2 %v12207_v46  ;;  %v11836_v46 = vld [vmem:[#allocation2 + $0x7bc] sm:$0xf0]  ;;  %v7806_v50 = vadd.f32 %v7805_v42, %v7793_v33  ;;  %v10919_v33 = vor.u32 %v16135_v21, %v10916_v43  ;;  %v14228_v21 = vld [vmem:[#allocation2 + $0x1a6c] sm:$0xf0] }
 0x27f   :  { %8059 = vmatpush.bf16.msrb.mxu3 %v14227_v56  ;;  %v7768_v56 = vpop.f32.mrf.mxu3 }
 0x280   :  { %8097 = vmatpush.bf16.msrb.mxu0 %v11379_v61  ;;  %v16882_v61 = vld [vmem:[#allocation2 + $0x1788] sm:$0xf0]  ;;  %v7807_v29 = vpop.f32.mrf.mxu2  ;;  %v13679_v56 = vor.u32 %v16825_v38, %v13676_v39  ;;  %v14136_v38 = vld [vmem:[#allocation2 + $0x19b4] sm:$0xf0] }
 0x281   :  { %8072 = vmatpush.bf16.msra.mxu1 %v14963_v3  ;;  %v11008_v3 = vld [vmem:[#allocation2 + $0x144] sm:$0xf0] }
 0x282   :  { %8110 = vmatpush.bf16.msrb.mxu2 %v12115_v0  ;;  %v11839_v0 = vor.u32 %v16365_v44, %v11836_v46  ;;  %v11011_v49 = vor.u32 %v16158_v4, %v11008_v3  ;;  %v16618_v46 = vld [vmem:[#allocation2 + $0xf4c] sm:$0xf] }
 0x283   :  { %8060 = vmatpush.bf16.msrb.mxu3 %v14135_v10  ;;  %v13859_v10 = vor.u32 %v16882_v61, %v13858_v59  ;;  %v15148_v59 = vld [vmem:[#allocation2 + $0x219c] sm:$0xf0]  ;;  %v12851_v61 = vor.u32 %v16618_v46, %v12848_v40  ;;  %v16986_v3 = vld [vmem:[#allocation2 + $0x1acc] sm:$0xf]  ;;  %v16733_v40 = vld [vmem:[#allocation2 + $0x12e4] sm:$0xf] }
 0x284   :  { %8098 = vmatpush.bf16.msrb.mxu0 %v11287_v14  ;;  %v13035_v14 = vor.u32 %v16664_v62, %v13032_v2  ;;  %v13584_v62 = vld [vmem:[#allocation2 + $0x1564] sm:$0xf0]  ;;  %v12756_v2 = vld [vmem:[#allocation2 + $0xeec] sm:$0xf0] }
 0x285   :  { %8073 = vmatpush.bf16.msra.mxu1 %v14871_v25  ;;  %15384 = vmatmul.msk.bf16.vlgmr.msra.gmra.mxu2 %vm6908_vm0, %v17530_v45  ;;  %v16319_v25 = vld [vmem:[#allocation2 + $0x5f4] sm:$0xf] }
 0x286   :  { %8111 = vmatpush.bf16.msrb.mxu2 %v12023_v27  ;;  %v11747_v27 = vor.u32 %v16342_v6, %v11744_v9  ;;  %v11655_v42 = vor.u32 %v16319_v25, %v11652_v1  ;;  %v17170_v9 = vld [vmem:[#allocation2 + $0x208c] sm:$0xf]  ;;  %v17147_v25 = vld [vmem:[#allocation2 + $0x1fd4] sm:$0xf] }
 0x287   :  { %8061 = vmatpush.bf16.msrb.mxu3 %v14043_v60  ;;  %v17032_v60 = vld [vmem:[#allocation2 + $0x1c3c] sm:$0xf]  ;;  %v7818_v34 = vpop.f32.mrf.mxu3 }
 0x288   :  { %8099 = vmatpush.bf16.msrb.mxu0 %v11195_v54  ;;  %v17216_v54 = vld [vmem:[#allocation2 + $0x21fc] sm:$0xf]  ;;  %v14507_v44 = vor.u32 %v17032_v60, %v14504_v28  ;;  %v13400_v28 = vld [vmem:[#allocation2 + $0x13f4] sm:$0xf0] }
 0x289   :  { %8074 = vmatpush.bf16.msra.mxu1 %v14779_v41  ;;  %v17700_v41 = vadd.f32 %v7818_v34, %v7806_v50  ;;  %v16802_v50 = vld [vmem:[#allocation2 + $0x150c] sm:$0xf]  ;;  %v16756_v60 = vld [vmem:[#allocation2 + $0x139c] sm:$0xf] }
 0x28a   :  { %8112 = vmatpush.bf16.msrb.mxu2 %v11931_v17  ;;  %v12943_v17 = vor.u32 %v16641_v16, %v12940_v20  ;;  %v13587_v6 = vor.u32 %v16802_v50, %v13584_v62  ;;  %v12664_v16 = vld [vmem:[#allocation2 + $0xe34] sm:$0xf0]  ;;  %v13403_v39 = vor.u32 %v16756_v60, %v13400_v28  ;;  %v16917_v50 = vld [vmem:[#allocation2 + $0x18a4] sm:$0xf]  ;;  %v14044_v62 = vld [vmem:[#allocation2 + $0x18fc] sm:$0xf0] }
 0x28b   :  { %8062 = vmatpush.bf16.msrb.mxu3 %v13951_v47  ;;  %v15243_v47 = vor.u32 %v17216_v54, %v15240_v32  ;;  %v12667_v1 = vor.u32 %v16572_v15, %v12664_v16  ;;  %v16549_v54 = vld [vmem:[#allocation2 + $0xd24] sm:$0xf]  ;;  %v12572_v32 = vld [vmem:[#allocation2 + $0xd7c] sm:$0xf0]  ;;  %v13952_v16 = vld [vmem:[#allocation2 + $0x1844] sm:$0xf0] }
 0x28c   :  { %8100 = vmatpush.bf16.msrb.mxu0 %v11103_v18  ;;  %v17193_v18 = vld [vmem:[#allocation2 + $0x2144] sm:$0xf]  ;;  %v12575_v46 = vor.u32 %v16549_v54, %v12572_v32  ;;  %v16687_v60 = vld [vmem:[#allocation2 + $0x1174] sm:$0xf]  ;;  %v13124_v28 = vld [vmem:[#allocation2 + $0x11cc] sm:$0xf0] }
 0x28d   :  { %8075 = vmatpush.bf16.msra.mxu1 %v14687_v5  ;;  %v15151_v4 = vor.u32 %v17193_v18, %v15148_v59  ;;  %v14320_v5 = vld [vmem:[#allocation2 + $0x1b24] sm:$0xf0]  ;;  %v16308_v32 = vld [vmem:[#allocation2 + $0x598] sm:$0xf0] }
 0x28e   :  { %8113 = vmatpush.bf16.msrb.mxu2 %v11839_v0  ;;  %v16595_v0 = vld [vmem:[#allocation2 + $0xe94] sm:$0xf]  ;;  %v12480_v18 = vld [vmem:[#allocation2 + $0xcc4] sm:$0xf0] }
 0x28f   :  { %8063 = vmatpush.bf16.msrb.mxu3 %v13859_v10  ;;  %v15056_v10 = vld [vmem:[#allocation2 + $0x20e4] sm:$0xf0]  ;;  %v12759_v11 = vor.u32 %v16595_v0, %v12756_v2  ;;  %v7820_v12 = vpop.f32.mrf.mxu3  ;;  %v17101_v2 = vld [vmem:[#allocation2 + $0x1e64] sm:$0xf] }
 0x290   :  { %8101 = vmatpush.bf16.msrb.mxu0 %v11011_v49  ;;  %v14323_v49 = vor.u32 %v16986_v3, %v14320_v5  ;;  %v15059_v20 = vor.u32 %v17170_v9, %v15056_v10  ;;  %v7857_v29 = vpop.f32.mrf.mxu0  ;;  %v13216_v9 = vld [vmem:[#allocation2 + $0x1284] sm:$0xf0]  ;;  %v16503_v12 = vld [vmem:[#allocation2 + $0xbb4] sm:$0xf] }
 0x291   :  { %8076 = vmatpush.bf16.msra.mxu1 %v14595_v26  ;;  %v14964_v26 = vld [vmem:[#allocation2 + $0x202c] sm:$0xf0] }
 0x292   :  { %8114 = vmatpush.bf16.msrb.mxu2 %v11747_v27  ;;  %8064 = vmatmul.bf16.vlgmr.msrb.gmra.mxu3 %v17540_v30  ;;  %v16963_v27 = vld [vmem:[#allocation2 + $0x1a14] sm:$0xf]  ;;  %v14967_v34 = vor.u32 %v17147_v25, %v14964_v26  ;;  %v17078_v25 = vld [vmem:[#allocation2 + $0x1dac] sm:$0xf]  ;;  %v14688_v26 = vld [vmem:[#allocation2 + $0x1e04] sm:$0xf0] }
 0x293   :  { %8121 = vmatpush.bf16.msra.mxu3 %v13035_v14  ;;  %v13492_v14 = vld [vmem:[#allocation2 + $0x14ac] sm:$0xf0] }
 0x294   :  { %8102 = vmatpush.bf16.msrb.mxu0 %v10919_v33  ;;  %8077 = vmatmul.bf16.vlgmr.msra.gmra.mxu1 %v17542_v35  ;;  %v13495_v43 = vor.u32 %v16779_v13, %v13492_v14  ;;  %v16940_v33 = vld [vmem:[#allocation2 + $0x195c] sm:$0xf]  ;;  %v12388_v13 = vld [vmem:[#allocation2 + $0xc0c] sm:$0xf0]  ;;  %v16894_v14 = vld [vmem:[#allocation2 + $0x17ec] sm:$0xf] }
 0x295   :  { %8134 = vmatpush.bf16.msrb.mxu1 %v13771_v63  ;;  %v14231_v63 = vor.u32 %v16963_v27, %v14228_v21  ;;  %v14139_v53 = vor.u32 %v16940_v33, %v14136_v38  ;;  %v15332_v27 = vld [vmem:[#allocation2 + $0x230c] sm:$0xf0]  ;;  %v14691_v38 = vor.u32 %v17078_v25, %v14688_v26  ;;  %v16630_v26 = vld [vmem:[#allocation2 + $0xfa8] sm:$0xf0] }
 0x296   :  { %8115 = vmatpush.bf16.msrb.mxu2 %v11655_v42  ;;  %v17124_v42 = vld [vmem:[#allocation2 + $0x1f1c] sm:$0xf]  ;;  %v12854_v25 = vld [vmem:[#allocation2 + $0xf50] sm:$0xf] }
 0x297   :  { %8122 = vmatpush.bf16.msra.mxu3 %v12943_v17  ;;  %8103 = vmatmul.bf16.vlgmr.msrb.gmra.mxu0 %v17514_v55  ;;  %v7831_v17 = vpop.f32.mrf.mxu1  ;;  %v7844_v52 = vpop.f32.mrf.mxu3 }
 0x298   :  { %8147 = vmatpush.bf16.msra.mxu0 %v14507_v44  ;;  %v14872_v44 = vld [vmem:[#allocation2 + $0x1f74] sm:$0xf0]  ;;  %v7845_v59 = vadd.f32 %v7844_v52, %v7831_v17  ;;  %v7870_v0 = vpop.f32.mrf.mxu2  ;;  %v7859_v10 = vpop.f32.mrf.mxu0  ;;  %v16492_v17 = vld [vmem:[#allocation2 + $0xb58] sm:$0xf0] }
 0x299   :  { %8135 = vmatpush.bf16.msrb.mxu1 %v13679_v56  ;;  %8116 = vmatmul.bf16.vlgmr.msrb.gmra.mxu2 %v17523_v7  ;;  %v16526_v56 = vld [vmem:[#allocation2 + $0xc6c] sm:$0xf]  ;;  %v16676_v52 = vld [vmem:[#allocation2 + $0x1118] sm:$0xf0]  ;;  %v16653_v10 = vld [vmem:[#allocation2 + $0x1060] sm:$0xf0] }
 0x29a   :  { %8160 = vmatpush.bf16.msra.mxu2 %v15243_v47  ;;  %v13308_v47 = vld [vmem:[#allocation2 + $0x133c] sm:$0xf0]  ;;  %v12483_v3 = vor.u32 %v16526_v56, %v12480_v18  ;;  %v7858_v5 = vadd.f32 %v7857_v29, %v7845_v59 }
 0x29b   :  { %8123 = vmatpush.bf16.msra.mxu3 %v12851_v61  ;;  %v14875_v61 = vor.u32 %v17124_v42, %v14872_v44  ;;  %v11566_v29 = vld [vmem:[#allocation2 + $0x540] sm:$0xf]  ;;  %v13860_v42 = vld [vmem:[#allocation2 + $0x178c] sm:$0xf0]  ;;  %v17055_v44 = vld [vmem:[#allocation2 + $0x1cf4] sm:$0xf] }
 0x29c   :  { %8148 = vmatpush.bf16.msra.mxu0 %v14415_v58  ;;  %v13311_v58 = vor.u32 %v16733_v40, %v13308_v47  ;;  %v14596_v40 = vld [vmem:[#allocation2 + $0x1d4c] sm:$0xf0]  ;;  %v13038_v47 = vld [vmem:[#allocation2 + $0x10c0] sm:$0xf]  ;;  %v11567_v56 = vor.u32 %v16308_v32, %v11566_v29  ;;  %v16814_v29 = vld [vmem:[#allocation2 + $0x1568] sm:$0xf0] }
 0x29d   :  { %8136 = vmatpush.bf16.msrb.mxu1 %v13587_v6  ;;  %v16710_v6 = vld [vmem:[#allocation2 + $0x122c] sm:$0xf]  ;;  %v13774_v59 = vld [vmem:[#allocation2 + $0x1680] sm:$0xf]  ;;  %v12026_v32 = vld [vmem:[#allocation2 + $0x8d8] sm:$0xf] }
 0x29e   :  { %8161 = vmatpush.bf16.msra.mxu2 %v15151_v4  ;;  %v14780_v4 = vld [vmem:[#allocation2 + $0x1ebc] sm:$0xf0] }
 0x29f   :  { %8124 = vmatpush.bf16.msra.mxu3 %v12759_v11  ;;  %v14047_v11 = vor.u32 %v16917_v50, %v14044_v62  ;;  %v14783_v15 = vor.u32 %v17101_v2, %v14780_v4  ;;  %v7833_v21 = vpop.f32.mrf.mxu1  ;;  %v7846_v33 = vpop.f32.mrf.mxu3  ;;  %v11474_v50 = vld [vmem:[#allocation2 + $0x488] sm:$0xf]  ;;  %v16469_v2 = vld [vmem:[#allocation2 + $0xaa0] sm:$0xf0] }
 0x2a0   :  { %8149 = vmatpush.bf16.msra.mxu0 %v14323_v49  ;;  %v17706_v49 = vadd.f32 %v7870_v0, %v7858_v5  ;;  %v12210_v0 = vld [vmem:[#allocation2 + $0xa48] sm:$0xf]  ;;  %v17708_v4 = vpop.f32.mrf.mxu0  ;;  %v13039_v5 = vor.u32 %v16676_v52, %v13038_v47  ;;  %v12855_v33 = vor.u32 %v16630_v26, %v12854_v25  ;;  %v13498_v52 = vld [vmem:[#allocation2 + $0x1458] sm:$0xf] }
 0x2a1   :  { %8137 = vmatpush.bf16.msrb.mxu1 %v13495_v43  ;;  %v13219_v43 = vor.u32 %v16710_v6, %v13216_v9  ;;  %v12946_v9 = vld [vmem:[#allocation2 + $0x1008] sm:$0xf] }
 0x2a2   :  { %8162 = vmatpush.bf16.msra.mxu2 %v15059_v20  ;;  %v17239_v20 = vld [vmem:[#allocation2 + $0x22b4] sm:$0xf]  ;;  %v12947_v21 = vor.u32 %v16653_v10, %v12946_v9  ;;  %v16193_v10 = vld [vmem:[#allocation2 + $0x200] sm:$0xf0] }
 0x2a3   :  { %8125 = vmatpush.bf16.msra.mxu3 %v12667_v1  ;;  %v12391_v1 = vor.u32 %v16503_v12, %v12388_v13  ;;  %v15335_v54 = vor.u32 %v17239_v20, %v15332_v27  ;;  %v12211_v12 = vor.u32 %v16469_v2, %v12210_v0  ;;  %v13682_v13 = vld [vmem:[#allocation2 + $0x15c8] sm:$0xf]  ;;  %v12118_v20 = vld [vmem:[#allocation2 + $0x990] sm:$0xf]  ;;  %v16446_v27 = vld [vmem:[#allocation2 + $0x9e8] sm:$0xf0] }
 0x2a4   :  { %8150 = vmatpush.bf16.msra.mxu0 %v14231_v63  ;;  %v13955_v63 = vor.u32 %v16894_v14, %v13952_v16  ;;  %v16837_v14 = vld [vmem:[#allocation2 + $0x1620] sm:$0xf0]  ;;  %v16262_v16 = vld [vmem:[#allocation2 + $0x428] sm:$0xf0]  ;;  %v16584_v0 = vld [vmem:[#allocation2 + $0xe38] sm:$0xf0] }
 0x2a5   :  { %8138 = vmatpush.bf16.msrb.mxu1 %v13403_v39  ;;  %v16871_v39 = vld [vmem:[#allocation2 + $0x1734] sm:$0xf] }
 0x2a6   :  { %8163 = vmatpush.bf16.msra.mxu2 %v14967_v34  ;;  %v12302_v34 = vld [vmem:[#allocation2 + $0xb00] sm:$0xf]  ;;  %v13863_v62 = vor.u32 %v16871_v39, %v13860_v42  ;;  %v12762_v42 = vld [vmem:[#allocation2 + $0xe98] sm:$0xf] }
 0x2a7   :  { %8126 = vmatpush.bf16.msra.mxu3 %v12575_v46  ;;  %v13127_v46 = vor.u32 %v16687_v60, %v13124_v28  ;;  %v12303_v18 = vor.u32 %v16492_v17, %v12302_v34  ;;  %v12119_v60 = vor.u32 %v16446_v27, %v12118_v20  ;;  %v13590_v28 = vld [vmem:[#allocation2 + $0x1510] sm:$0xf]  ;;  %v16423_v34 = vld [vmem:[#allocation2 + $0x930] sm:$0xf0]  ;;  %v12578_v27 = vld [vmem:[#allocation2 + $0xd28] sm:$0xf] }
 0x2a8   :  { %8151 = vmatpush.bf16.msra.mxu0 %v14139_v53  ;;  %v7872_v53 = vpop.f32.mrf.mxu2  ;;  %v7911_v17 = vpop.f32.mrf.mxu0  ;;  %v13591_v39 = vor.u32 %v16814_v29, %v13590_v28  ;;  %v12027_v47 = vor.u32 %v16423_v34, %v12026_v32  ;;  %v11014_v28 = vld [vmem:[#allocation2 + $0xf0] sm:$0xf]  ;;  %v16170_v29 = vld [vmem:[#allocation2 + $0x148] sm:$0xf0] }
 0x2a9   :  { %8139 = vmatpush.bf16.msrb.mxu1 %v13311_v58  ;;  %v16285_v58 = vld [vmem:[#allocation2 + $0x4e0] sm:$0xf0]  ;;  %v16791_v53 = vld [vmem:[#allocation2 + $0x14b0] sm:$0xf0] }
 0x2aa   :  { %8164 = vmatpush.bf16.msra.mxu2 %v14875_v61  ;;  %v16860_v61 = vld [vmem:[#allocation2 + $0x16d8] sm:$0xf0] }
 0x2ab   :  { %8127 = vmatpush.bf16.msra.mxu3 %v12483_v3  ;;  %v14599_v3 = vor.u32 %v17055_v44, %v14596_v40  ;;  %v13775_v6 = vor.u32 %v16860_v61, %v13774_v59  ;;  %v16607_v44 = vld [vmem:[#allocation2 + $0xef0] sm:$0xf0]  ;;  %v11934_v59 = vld [vmem:[#allocation2 + $0x820] sm:$0xf]  ;;  %v16400_v61 = vld [vmem:[#allocation2 + $0x878] sm:$0xf0] }
 0x2ac   :  { %8152 = vmatpush.bf16.msra.mxu0 %v14047_v11  ;;  %v11475_v11 = vor.u32 %v16285_v58, %v11474_v50  ;;  %v12763_v50 = vor.u32 %v16607_v44, %v12762_v42  ;;  %v12670_v58 = vld [vmem:[#allocation2 + $0xde0] sm:$0xf]  ;;  %v11015_v42 = vor.u32 %v16170_v29, %v11014_v28  ;;  %v16481_v29 = vld [vmem:[#allocation2 + $0xb04] sm:$0xf] }
 0x2ad   :  { %8140 = vmatpush.bf16.msrb.mxu1 %v13219_v43  ;;  %v13683_v43 = vor.u32 %v16837_v14, %v13682_v13  ;;  %v12671_v14 = vor.u32 %v16584_v0, %v12670_v58 }
 0x2ae   :  { %8165 = vmatpush.bf16.msra.mxu2 %v14783_v15  ;;  %v11382_v15 = vld [vmem:[#allocation2 + $0x3d0] sm:$0xf] }
 0x2af   :  { %8128 = vmatpush.bf16.msra.mxu3 %v12391_v1  ;;  %v11383_v1 = vor.u32 %v16262_v16, %v11382_v15 }
 0x2b0   :  { %8153 = vmatpush.bf16.msra.mxu0 %v13955_v63  ;;  %v11290_v63 = vld [vmem:[#allocation2 + $0x318] sm:$0xf] }
 0x2b1   :  { %8141 = vmatpush.bf16.msrb.mxu1 %v13127_v46 }
 0x2b2   :  { %8166 = vmatpush.bf16.msra.mxu2 %v14691_v38  ;;  %8129 = vmatmul.bf16.vlgmr.msra.gmra.mxu3 %v17512_v51  ;;  %v7883_v38 = vpop.f32.mrf.mxu1 }
 0x2b3   :  { %8180 = vmatpush.bf16.msrb.mxu3 %v15335_v54  ;;  %v16239_v54 = vld [vmem:[#allocation2 + $0x370] sm:$0xf0]  ;;  %v7884_v46 = vadd.f32 %v7883_v38, %v17706_v49  ;;  %v11935_v49 = vor.u32 %v16400_v61, %v11934_v59  ;;  %v12486_v38 = vld [vmem:[#allocation2 + $0xc70] sm:$0xf]  ;;  %v17044_v61 = vld [vmem:[#allocation2 + $0x1c98] sm:$0xf0] }
 0x2b4   :  { %8154 = vmatpush.bf16.msra.mxu0 %v13863_v62  ;;  %8142 = vmatmul.bf16.vlgmr.msrb.gmra.mxu1 %v17516_v57  ;;  %v11291_v40 = vor.u32 %v16239_v54, %v11290_v63  ;;  %v13499_v62 = vor.u32 %v16791_v53, %v13498_v52  ;;  %v7935_v15 = vpop.f32.mrf.mxu0  ;;  %v11750_v63 = vld [vmem:[#allocation2 + $0x6b0] sm:$0xf]  ;;  %v16354_v54 = vld [vmem:[#allocation2 + $0x708] sm:$0xf0]  ;;  %v11658_v52 = vld [vmem:[#allocation2 + $0x5f8] sm:$0xf] }
 0x2b5   :  { %8186 = vmatpush.bf16.msra.mxu1 %v11567_v56  ;;  %v11198_v56 = vld [vmem:[#allocation2 + $0x260] sm:$0xf]  ;;  %v7896_v9 = vpop.f32.mrf.mxu3  ;;  %v11751_v44 = vor.u32 %v16354_v54, %v11750_v63  ;;  %v16331_v53 = vld [vmem:[#allocation2 + $0x650] sm:$0xf0] }
 0x2b6   :  { %8167 = vmatpush.bf16.msra.mxu2 %v14599_v3  ;;  %v13406_v3 = vld [vmem:[#allocation2 + $0x13a0] sm:$0xf]  ;;  %v7897_v13 = vadd.f32 %v7896_v9, %v7884_v46  ;;  %v16722_v46 = vld [vmem:[#allocation2 + $0x1288] sm:$0xf0]  ;;  %v16699_v9 = vld [vmem:[#allocation2 + $0x11d0] sm:$0xf0] }
 0x2b7   :  { %8199 = vmatpush.bf16.msra.mxu3 %v12303_v18  ;;  %8155 = vmatmul.bf16.vlgmr.msra.gmra.mxu0 %v17540_v30  ;;  %v16216_v18 = vld [vmem:[#allocation2 + $0x2b8] sm:$0xf0]  ;;  %v12304_v63 = vld [vmem:[#allocation2 + $0xb5c] sm:$0xf0] }
 0x2b8   :  { %8212 = vmatpush.bf16.msrb.mxu0 %v13039_v5  ;;  %v11199_v2 = vor.u32 %v16216_v18, %v11198_v56  ;;  %v16768_v5 = vld [vmem:[#allocation2 + $0x13f8] sm:$0xf0]  ;;  %v7922_v32 = vpop.f32.mrf.mxu2  ;;  %v14510_v56 = vld [vmem:[#allocation2 + $0x1c40] sm:$0xf] }
 0x2b9   :  { %8187 = vmatpush.bf16.msra.mxu1 %v11475_v11  ;;  %8168 = vmatmul.bf16.vlgmr.msra.gmra.mxu2 %v17542_v35  ;;  %v11842_v11 = vld [vmem:[#allocation2 + $0x768] sm:$0xf]  ;;  %v13407_v16 = vor.u32 %v16768_v5, %v13406_v3  ;;  %v17720_v17 = vadd.f32 %v7935_v15, %v7922_v32  ;;  %v13130_v3 = vld [vmem:[#allocation2 + $0x1178] sm:$0xf]  ;;  %v11568_v15 = vld [vmem:[#allocation2 + $0x59c] sm:$0xf0] }
 0x2ba   :  { %8225 = vmatpush.bf16.msrb.mxu2 %v13775_v6  ;;  %v11106_v6 = vld [vmem:[#allocation2 + $0x1a8] sm:$0xf]  ;;  %v7885_v20 = vpop.f32.mrf.mxu1 }
 0x2bb   :  { %8200 = vmatpush.bf16.msra.mxu3 %v12211_v12  ;;  %v16377_v12 = vld [vmem:[#allocation2 + $0x7c0] sm:$0xf0]  ;;  %v11107_v25 = vor.u32 %v16193_v10, %v11106_v6  ;;  %v11659_v6 = vor.u32 %v16331_v53, %v11658_v52  ;;  %v15338_v10 = vld [vmem:[#allocation2 + $0x22b8] sm:$0xf] }
 0x2bc   :  { %8213 = vmatpush.bf16.msrb.mxu0 %v12947_v21  ;;  %v16561_v21 = vld [vmem:[#allocation2 + $0xd80] sm:$0xf0]  ;;  %v11843_v26 = vor.u32 %v16377_v12, %v11842_v11  ;;  %v7937_v58 = vpop.f32.mrf.mxu0  ;;  %v17251_v11 = vld [vmem:[#allocation2 + $0x2310] sm:$0xf0]  ;;  %v14511_v12 = vor.u32 %v17044_v61, %v14510_v56 }
 0x2bd   :  { %8188 = vmatpush.bf16.msra.mxu1 %v11383_v1  ;;  %v13314_v1 = vld [vmem:[#allocation2 + $0x12e8] sm:$0xf]  ;;  %v12579_v34 = vor.u32 %v16561_v21, %v12578_v27  ;;  %v7898_v18 = vpop.f32.mrf.mxu3  ;;  %v17021_v21 = vld [vmem:[#allocation2 + $0x1be0] sm:$0xf0]  ;;  %v16251_v56 = vld [vmem:[#allocation2 + $0x3d4] sm:$0xf] }
 0x2be   :  { %8226 = vmatpush.bf16.msrb.mxu2 %v13683_v43  ;;  %v17718_v43 = vadd.f32 %v17708_v4, %v7897_v13  ;;  %v16538_v4 = vld [vmem:[#allocation2 + $0xcc8] sm:$0xf0]  ;;  %v11384_v18 = vld [vmem:[#allocation2 + $0x42c] sm:$0xf0]  ;;  %v16975_v61 = vld [vmem:[#allocation2 + $0x1a70] sm:$0xf0] }
 0x2bf   :  { %8201 = vmatpush.bf16.msra.mxu3 %v12119_v60  ;;  %v16745_v60 = vld [vmem:[#allocation2 + $0x1340] sm:$0xf0]  ;;  %v12487_v59 = vor.u32 %v16538_v4, %v12486_v38  ;;  %v14326_v38 = vld [vmem:[#allocation2 + $0x1ad0] sm:$0xf]  ;;  %v16998_v4 = vld [vmem:[#allocation2 + $0x1b28] sm:$0xf0] }
 0x2c0   :  { %8214 = vmatpush.bf16.msrb.mxu0 %v12855_v33  ;;  %v13315_v33 = vor.u32 %v16745_v60, %v13314_v1  ;;  %v7924_v20 = vpop.f32.mrf.mxu2  ;;  %v13131_v1 = vor.u32 %v16699_v9, %v13130_v3  ;;  %v15339_v60 = vor.u32 %v17251_v11, %v15338_v10  ;;  %v14327_v52 = vor.u32 %v16998_v4, %v14326_v38  ;;  %v12120_v3 = vld [vmem:[#allocation2 + $0x9ec] sm:$0xf0]  ;;  %v16228_v10 = vld [vmem:[#allocation2 + $0x31c] sm:$0xf]  ;;  %v11292_v11 = vld [vmem:[#allocation2 + $0x374] sm:$0xf0] }
 0x2c1   :  { %8189 = vmatpush.bf16.msra.mxu1 %v11291_v40  ;;  %v10922_v40 = vld [vmem:[#allocation2 + $0x38] sm:$0xf]  ;;  %v11295_v20 = vor.u32 %v16228_v10, %v11292_v11  ;;  %v16883_v10 = vld [vmem:[#allocation2 + $0x1790] sm:$0xf0] }
 0x2c2   :  { %8227 = vmatpush.bf16.msrb.mxu2 %v13591_v39  ;;  %15385 = vmatmul.msk.bf16.vlgmr.msrb.gmra.mxu3 %vm6908_vm0, %v17530_v45  ;;  %v13222_v39 = vld [vmem:[#allocation2 + $0x1230] sm:$0xf]  ;;  %v14602_v11 = vld [vmem:[#allocation2 + $0x1cf8] sm:$0xf] }
 0x2c3   :  { %8202 = vmatpush.bf16.msra.mxu3 %v12027_v47  ;;  %v16147_v47 = vld [vmem:[#allocation2 + $0x90] sm:$0xf0]  ;;  %v13223_v0 = vor.u32 %v16722_v46, %v13222_v39  ;;  %v15062_v39 = vld [vmem:[#allocation2 + $0x2090] sm:$0xf] }
 0x2c4   :  { %8215 = vmatpush.bf16.msrb.mxu0 %v12763_v50  ;;  %v15246_v50 = vld [vmem:[#allocation2 + $0x2200] sm:$0xf]  ;;  %v10923_v5 = vor.u32 %v16147_v47, %v10922_v40  ;;  %v16458_v40 = vld [vmem:[#allocation2 + $0xa4c] sm:$0xf]  ;;  %v12212_v47 = vld [vmem:[#allocation2 + $0xaa4] sm:$0xf0] }
 0x2c5   :  { %8190 = vmatpush.bf16.msra.mxu1 %v11199_v2  ;;  %v12394_v2 = vld [vmem:[#allocation2 + $0xbb8] sm:$0xf]  ;;  %v12215_v58 = vor.u32 %v16458_v40, %v12212_v47  ;;  %v16182_v40 = vld [vmem:[#allocation2 + $0x1ac] sm:$0xf]  ;;  %v11108_v47 = vld [vmem:[#allocation2 + $0x204] sm:$0xf0] }
 0x2c6   :  { %8228 = vmatpush.bf16.msrb.mxu2 %v13499_v62  ;;  %v17228_v62 = vld [vmem:[#allocation2 + $0x2258] sm:$0xf0] }
 0x2c7   :  { %8203 = vmatpush.bf16.msra.mxu3 %v11935_v49  ;;  %v16515_v49 = vld [vmem:[#allocation2 + $0xc10] sm:$0xf0]  ;;  %v15247_v13 = vor.u32 %v17228_v62, %v15246_v50  ;;  %v14970_v50 = vld [vmem:[#allocation2 + $0x1fd8] sm:$0xf] }
 0x2c8   :  { %8216 = vmatpush.bf16.msrb.mxu0 %v12671_v14  ;;  %v16297_v14 = vld [vmem:[#allocation2 + $0x544] sm:$0xf]  ;;  %v12395_v27 = vor.u32 %v16515_v49, %v12394_v2  ;;  %v17159_v62 = vld [vmem:[#allocation2 + $0x2030] sm:$0xf0]  ;;  %v11387_v2 = vor.u32 %v16251_v56, %v11384_v18  ;;  %v16906_v56 = vld [vmem:[#allocation2 + $0x1848] sm:$0xf0] }
 0x2c9   :  { %8191 = vmatpush.bf16.msra.mxu1 %v11107_v25  ;;  %v15154_v25 = vld [vmem:[#allocation2 + $0x2148] sm:$0xf]  ;;  %v11571_v28 = vor.u32 %v16297_v14, %v11568_v15  ;;  %v16435_v49 = vld [vmem:[#allocation2 + $0x994] sm:$0xf]  ;;  %v14971_v9 = vor.u32 %v17159_v62, %v14970_v50  ;;  %v14878_v14 = vld [vmem:[#allocation2 + $0x1f20] sm:$0xf]  ;;  %v11111_v62 = vor.u32 %v16182_v40, %v11108_v47 }
 0x2ca   :  { %8229 = vmatpush.bf16.msrb.mxu2 %v13407_v16  ;;  %v14418_v16 = vld [vmem:[#allocation2 + $0x1b88] sm:$0xf]  ;;  %v17136_v15 = vld [vmem:[#allocation2 + $0x1f78] sm:$0xf0]  ;;  %v14694_v18 = vld [vmem:[#allocation2 + $0x1db0] sm:$0xf] }
 0x2cb   :  { %8204 = vmatpush.bf16.msra.mxu3 %v11843_v26  ;;  %v17205_v26 = vld [vmem:[#allocation2 + $0x21a0] sm:$0xf0]  ;;  %v14419_v54 = vor.u32 %v17021_v21, %v14418_v16  ;;  %v12123_v16 = vor.u32 %v16435_v49, %v12120_v3  ;;  %v12028_v21 = vld [vmem:[#allocation2 + $0x934] sm:$0xf0]  ;;  %v13684_v40 = vld [vmem:[#allocation2 + $0x1624] sm:$0xf0] }
 0x2cc   :  { %8217 = vmatpush.bf16.msrb.mxu0 %v12579_v34  ;;  %v15155_v32 = vor.u32 %v17205_v26, %v15154_v25  ;;  %v16274_v34 = vld [vmem:[#allocation2 + $0x48c] sm:$0xf]  ;;  %v16205_v26 = vld [vmem:[#allocation2 + $0x264] sm:$0xf]  ;;  %v16320_v47 = vld [vmem:[#allocation2 + $0x5fc] sm:$0xf] }
 0x2cd   :  { %8192 = vmatpush.bf16.msra.mxu1 %v11015_v42  ;;  %v17182_v42 = vld [vmem:[#allocation2 + $0x20e8] sm:$0xf0] }
 0x2ce   :  { %8230 = vmatpush.bf16.msrb.mxu2 %v13315_v33  ;;  %v11476_v33 = vld [vmem:[#allocation2 + $0x4e4] sm:$0xf0]  ;;  %v15063_v53 = vor.u32 %v17182_v42, %v15062_v39  ;;  %v16389_v39 = vld [vmem:[#allocation2 + $0x824] sm:$0xf]  ;;  %v11936_v42 = vld [vmem:[#allocation2 + $0x87c] sm:$0xf0] }
 0x2cf   :  { %8205 = vmatpush.bf16.msra.mxu3 %v11751_v44  ;;  %v12307_v44 = vor.u32 %v16481_v29, %v12304_v63  ;;  %v11479_v46 = vor.u32 %v16274_v34, %v11476_v33  ;;  %v14786_v29 = vld [vmem:[#allocation2 + $0x1e68] sm:$0xf]  ;;  %v17113_v63 = vld [vmem:[#allocation2 + $0x1ec0] sm:$0xf0]  ;;  %v11939_v50 = vor.u32 %v16389_v39, %v11936_v42  ;;  %v16642_v42 = vld [vmem:[#allocation2 + $0x100c] sm:$0xf] }
 0x2d0   :  { %8218 = vmatpush.bf16.msrb.mxu0 %v12487_v59  ;;  %v14234_v59 = vld [vmem:[#allocation2 + $0x1a18] sm:$0xf] }
 0x2d1   :  { %8193 = vmatpush.bf16.msra.mxu1 %v10923_v5 }
 0x2d2   :  { %8231 = vmatpush.bf16.msrb.mxu2 %v13223_v0  ;;  %v7948_v0 = vpop.f32.mrf.mxu1 }
 0x2d3   :  { %8206 = vmatpush.bf16.msra.mxu3 %v11659_v6  ;;  %v7949_v5 = vadd.f32 %v7948_v0, %v17720_v17  ;;  %v14235_v6 = vor.u32 %v16975_v61, %v14234_v59  ;;  %v14879_v17 = vor.u32 %v17136_v15, %v14878_v14  ;;  %v17090_v59 = vld [vmem:[#allocation2 + $0x1e08] sm:$0xf0]  ;;  %v11844_v0 = vld [vmem:[#allocation2 + $0x7c4] sm:$0xf0]  ;;  %v13040_v15 = vld [vmem:[#allocation2 + $0x111c] sm:$0xf0] }
 0x2d4   :  { %8219 = vmatpush.bf16.msrb.mxu0 %v12395_v27  ;;  %8194 = vmatmul.bf16.vlgmr.msra.gmra.mxu1 %v17514_v55  ;;  %v16412_v27 = vld [vmem:[#allocation2 + $0x8dc] sm:$0xf]  ;;  %v7987_v34 = vpop.f32.mrf.mxu0 }
 0x2d5   :  { %8238 = vmatpush.bf16.msrb.mxu1 %v14511_v12  ;;  %v14142_v12 = vld [vmem:[#allocation2 + $0x1960] sm:$0xf] }
 0x2d6   :  { %8232 = vmatpush.bf16.msrb.mxu2 %v13131_v1  ;;  %8207 = vmatmul.bf16.vlgmr.msra.gmra.mxu3 %v17523_v7  ;;  %v11200_v1 = vld [vmem:[#allocation2 + $0x2bc] sm:$0xf0] }
 0x2d7   :  { %8251 = vmatpush.bf16.msrb.mxu3 %v15247_v13  ;;  %8220 = vmatmul.bf16.vlgmr.msrb.gmra.mxu0 %v17512_v51  ;;  %v16952_v13 = vld [vmem:[#allocation2 + $0x19b8] sm:$0xf0]  ;;  %v11203_v4 = vor.u32 %v16205_v26, %v11200_v1  ;;  %v16343_v26 = vld [vmem:[#allocation2 + $0x6b4] sm:$0xf]  ;;  %v11752_v1 = vld [vmem:[#allocation2 + $0x70c] sm:$0xf0] }
 0x2d8   :  { %8271 = vmatpush.bf16.msra.mxu0 %v15339_v60  ;;  %v14143_v25 = vor.u32 %v16952_v13, %v14142_v12  ;;  %v14050_v60 = vld [vmem:[#allocation2 + $0x18a8] sm:$0xf]  ;;  %v17067_v12 = vld [vmem:[#allocation2 + $0x1d50] sm:$0xf0]  ;;  %v16665_v13 = vld [vmem:[#allocation2 + $0x10c4] sm:$0xf]  ;;  %v11755_v39 = vor.u32 %v16343_v26, %v11752_v1 }
 0x2d9   :  { %8239 = vmatpush.bf16.msrb.mxu1 %v14419_v54  ;;  %8233 = vmatmul.bf16.vlgmr.msrb.gmra.mxu2 %v17516_v57  ;;  %v7961_v54 = vpop.f32.mrf.mxu3  ;;  %v17171_v26 = vld [vmem:[#allocation2 + $0x2094] sm:$0xf]  ;;  %v15064_v1 = vld [vmem:[#allocation2 + $0x20ec] sm:$0xf0] }
 0x2da   :  { %8277 = vmatpush.bf16.msra.mxu2 %v11571_v28  ;;  %v16929_v28 = vld [vmem:[#allocation2 + $0x1900] sm:$0xf0]  ;;  %v7962_v33 = vadd.f32 %v7961_v54, %v7949_v5  ;;  %v7950_v38 = vpop.f32.mrf.mxu1  ;;  %v14695_v5 = vor.u32 %v17090_v59, %v14694_v18  ;;  %v13043_v54 = vor.u32 %v16665_v13, %v13040_v15  ;;  %v15248_v18 = vld [vmem:[#allocation2 + $0x225c] sm:$0xf0] }
 0x2db   :  { %8252 = vmatpush.bf16.msrb.mxu3 %v15155_v32  ;;  %v12031_v32 = vor.u32 %v16412_v27, %v12028_v21  ;;  %v14512_v38 = vld [vmem:[#allocation2 + $0x1c9c] sm:$0xf0] }
 0x2dc   :  { %8290 = vmatpush.bf16.msrb.mxu0 %v12307_v44  ;;  %v14051_v44 = vor.u32 %v16929_v28, %v14050_v60  ;;  %v7989_v21 = vpop.f32.mrf.mxu0 }
 0x2dd   :  { %8240 = vmatpush.bf16.msrb.mxu1 %v14327_v52  ;;  %v13958_v52 = vld [vmem:[#allocation2 + $0x17f0] sm:$0xf] }
 0x2de   :  { %8278 = vmatpush.bf16.msra.mxu2 %v11479_v46  ;;  %v14787_v46 = vor.u32 %v17113_v63, %v14786_v29  ;;  %v13959_v3 = vor.u32 %v16906_v56, %v13958_v52  ;;  %v14603_v29 = vor.u32 %v17067_v12, %v14602_v11  ;;  %v16136_v63 = vld [vmem:[#allocation2 + $0x3c] sm:$0xf]  ;;  %v11660_v52 = vld [vmem:[#allocation2 + $0x654] sm:$0xf0]  ;;  %v17217_v56 = vld [vmem:[#allocation2 + $0x2204] sm:$0xf] }
 0x2df   :  { %8253 = vmatpush.bf16.msrb.mxu3 %v15063_v53  ;;  %v7974_v53 = vpop.f32.mrf.mxu2  ;;  %v15156_v11 = vld [vmem:[#allocation2 + $0x21a4] sm:$0xf0] }
 0x2e0   :  { %8291 = vmatpush.bf16.msrb.mxu0 %v12215_v58  ;;  %v7975_v61 = vadd.f32 %v7974_v53, %v7962_v33  ;;  %v16366_v58 = vld [vmem:[#allocation2 + $0x76c] sm:$0xf]  ;;  %v17033_v33 = vld [vmem:[#allocation2 + $0x1c44] sm:$0xf] }
 0x2e1   :  { %8241 = vmatpush.bf16.msrb.mxu1 %v14235_v6  ;;  %v11016_v6 = vld [vmem:[#allocation2 + $0x14c] sm:$0xf0]  ;;  %v11847_v14 = vor.u32 %v16366_v58, %v11844_v0  ;;  %v7963_v27 = vpop.f32.mrf.mxu3  ;;  %v14515_v59 = vor.u32 %v17033_v33, %v14512_v38  ;;  %v11663_v58 = vor.u32 %v16320_v47, %v11660_v52  ;;  %v14420_v0 = vld [vmem:[#allocation2 + $0x1be4] sm:$0xf0]  ;;  %v12672_v33 = vld [vmem:[#allocation2 + $0xe3c] sm:$0xf0]  ;;  %v15067_v38 = vor.u32 %v17171_v26, %v15064_v1 }
 0x2e2   :  { %8279 = vmatpush.bf16.msra.mxu2 %v11387_v2  ;;  %v16159_v2 = vld [vmem:[#allocation2 + $0xf4] sm:$0xf]  ;;  %v7988_v49 = vadd.f32 %v7987_v34, %v7975_v61  ;;  %v10924_v34 = vld [vmem:[#allocation2 + $0x94] sm:$0xf0]  ;;  %v16941_v47 = vld [vmem:[#allocation2 + $0x1964] sm:$0xf] }
 0x2e3   :  { %8254 = vmatpush.bf16.msrb.mxu3 %v14971_v9  ;;  %v13866_v9 = vld [vmem:[#allocation2 + $0x1738] sm:$0xf]  ;;  %v10927_v53 = vor.u32 %v16136_v63, %v10924_v34  ;;  %v16964_v63 = vld [vmem:[#allocation2 + $0x1a1c] sm:$0xf]  ;;  %v16573_v34 = vld [vmem:[#allocation2 + $0xde4] sm:$0xf] }
 0x2e4   :  { %8292 = vmatpush.bf16.msrb.mxu0 %v12123_v16  ;;  %v16849_v16 = vld [vmem:[#allocation2 + $0x1684] sm:$0xf]  ;;  %v13867_v28 = vor.u32 %v16883_v10, %v13866_v9  ;;  %v17194_v10 = vld [vmem:[#allocation2 + $0x214c] sm:$0xf]  ;;  %v12764_v27 = vld [vmem:[#allocation2 + $0xef4] sm:$0xf0] }
 0x2e5   :  { %8242 = vmatpush.bf16.msrb.mxu1 %v14143_v25  ;;  %v8000_v25 = vpop.f32.mrf.mxu1  ;;  %v15159_v21 = vor.u32 %v17194_v10, %v15156_v11  ;;  %v14052_v10 = vld [vmem:[#allocation2 + $0x1904] sm:$0xf0]  ;;  %v16527_v11 = vld [vmem:[#allocation2 + $0xc74] sm:$0xf]  ;;  %v13960_v1 = vld [vmem:[#allocation2 + $0x184c] sm:$0xf0] }
 0x2e6   :  { %8280 = vmatpush.bf16.msra.mxu2 %v11295_v20  ;;  %v13776_v20 = vld [vmem:[#allocation2 + $0x16dc] sm:$0xf0]  ;;  %v17729_v60 = vadd.f32 %v8000_v25, %v7988_v49  ;;  %v12856_v49 = vld [vmem:[#allocation2 + $0xfac] sm:$0xf0]  ;;  %v16780_v25 = vld [vmem:[#allocation2 + $0x145c] sm:$0xf] }
 0x2e7   :  { %8255 = vmatpush.bf16.msrb.mxu3 %v14879_v17  ;;  %15386 = vmatmul.msk.bf16.vlgmr.msra.gmra.mxu0 %vm6908_vm0, %v17530_v45  ;;  %v11019_v17 = vor.u32 %v16159_v2, %v11016_v6  ;;  %v16619_v2 = vld [vmem:[#allocation2 + $0xf54] sm:$0xf]  ;;  %v13592_v6 = vld [vmem:[#allocation2 + $0x156c] sm:$0xf0] }
 0x2e8   :  { %8293 = vmatpush.bf16.msrb.mxu0 %v12031_v32  ;;  %v13779_v32 = vor.u32 %v16849_v16, %v13776_v20  ;;  %v12859_v13 = vor.u32 %v16619_v2, %v12856_v49  ;;  %v14328_v16 = vld [vmem:[#allocation2 + $0x1b2c] sm:$0xf0]  ;;  %v16596_v20 = vld [vmem:[#allocation2 + $0xe9c] sm:$0xf]  ;;  %v14880_v2 = vld [vmem:[#allocation2 + $0x1f7c] sm:$0xf0] }
 0x2e9   :  { %8243 = vmatpush.bf16.msrb.mxu1 %v14051_v44  ;;  %v12948_v44 = vld [vmem:[#allocation2 + $0x1064] sm:$0xf0]  ;;  %v16895_v26 = vld [vmem:[#allocation2 + $0x17f4] sm:$0xf] }
 0x2ea   :  { %8281 = vmatpush.bf16.msra.mxu2 %v11203_v4  ;;  %v7976_v4 = vpop.f32.mrf.mxu2  ;;  %v12951_v61 = vor.u32 %v16642_v42, %v12948_v44  ;;  %v17148_v42 = vld [vmem:[#allocation2 + $0x1fdc] sm:$0xf]  ;;  %v14972_v44 = vld [vmem:[#allocation2 + $0x2034] sm:$0xf0] }
 0x2eb   :  { %8256 = vmatpush.bf16.msrb.mxu3 %v14787_v46  ;;  %v16826_v46 = vld [vmem:[#allocation2 + $0x15cc] sm:$0xf]  ;;  %v16757_v4 = vld [vmem:[#allocation2 + $0x13a4] sm:$0xf] }
 0x2ec   :  { %8294 = vmatpush.bf16.msrb.mxu0 %v11939_v50  ;;  %v17010_v50 = vld [vmem:[#allocation2 + $0x1b8c] sm:$0xf] }
 0x2ed   :  { %8244 = vmatpush.bf16.msrb.mxu1 %v13959_v3  ;;  %v15251_v3 = vor.u32 %v17217_v56, %v15248_v18  ;;  %v8002_v9 = vpop.f32.mrf.mxu1  ;;  %v14423_v12 = vor.u32 %v17010_v50, %v14420_v0  ;;  %v16550_v56 = vld [vmem:[#allocation2 + $0xd2c] sm:$0xf]  ;;  %v12580_v18 = vld [vmem:[#allocation2 + $0xd84] sm:$0xf0]  ;;  %v17125_v0 = vld [vmem:[#allocation2 + $0x1f24] sm:$0xf] }
 0x2ee   :  { %8282 = vmatpush.bf16.msra.mxu2 %v11111_v62  ;;  %v13687_v62 = vor.u32 %v16826_v46, %v13684_v40  ;;  %v12675_v40 = vor.u32 %v16573_v34, %v12672_v33  ;;  %v13132_v34 = vld [vmem:[#allocation2 + $0x11d4] sm:$0xf0] }
 0x2ef   :  { %8257 = vmatpush.bf16.msrb.mxu3 %v14695_v5  ;;  %v16803_v5 = vld [vmem:[#allocation2 + $0x1514] sm:$0xf] }
 0x2f0   :  { %8295 = vmatpush.bf16.msrb.mxu0 %v11847_v14  ;;  %v16987_v14 = vld [vmem:[#allocation2 + $0x1ad4] sm:$0xf]  ;;  %v13595_v15 = vor.u32 %v16803_v5, %v13592_v6  ;;  %v16918_v5 = vld [vmem:[#allocation2 + $0x18ac] sm:$0xf] }
 0x2f1   :  { %8245 = vmatpush.bf16.msrb.mxu1 %v13867_v28  ;;  %v14331_v28 = vor.u32 %v16987_v14, %v14328_v16  ;;  %v14883_v14 = vor.u32 %v17125_v0, %v14880_v2  ;;  %v13224_v16 = vld [vmem:[#allocation2 + $0x128c] sm:$0xf0]  ;;  %v12310_v0 = vld [vmem:[#allocation2 + $0xb08] sm:$0xf]  ;;  %v16493_v2 = vld [vmem:[#allocation2 + $0xb60] sm:$0xf0] }
 0x2f2   :  { %8283 = vmatpush.bf16.msra.mxu2 %v11019_v17  ;;  %v13500_v17 = vld [vmem:[#allocation2 + $0x14b4] sm:$0xf0] }
 0x2f3   :  { %8258 = vmatpush.bf16.msrb.mxu3 %v14603_v29  ;;  %v12767_v29 = vor.u32 %v16596_v20, %v12764_v27  ;;  %v17102_v27 = vld [vmem:[#allocation2 + $0x1e6c] sm:$0xf] }
 0x2f4   :  { %8296 = vmatpush.bf16.msrb.mxu0 %v11755_v39  ;;  %8246 = vmatmul.bf16.vlgmr.msrb.gmra.mxu1 %v17540_v30  ;;  %v13408_v39 = vld [vmem:[#allocation2 + $0x13fc] sm:$0xf0] }
 0x2f5   :  { %8303 = vmatpush.bf16.msra.mxu1 %v13043_v54  ;;  %v13503_v54 = vor.u32 %v16780_v25, %v13500_v17  ;;  %v13411_v52 = vor.u32 %v16757_v4, %v13408_v39  ;;  %v8026_v50 = vpop.f32.mrf.mxu1  ;;  %v14055_v25 = vor.u32 %v16918_v5, %v14052_v10  ;;  %v11574_v4 = vld [vmem:[#allocation2 + $0x548] sm:$0xf]  ;;  %v17240_v39 = vld [vmem:[#allocation2 + $0x22bc] sm:$0xf]  ;;  %v16677_v5 = vld [vmem:[#allocation2 + $0x1120] sm:$0xf0] }
 0x2f6   :  { %8259 = vmatmul.bf16.vlgmr.msrb.gmra.mxu3 %v17542_v35  ;;  %8284 = vmatpush.bf16.msra.mxu2 %v10927_v53  ;;  %v14144_v53 = vld [vmem:[#allocation2 + $0x19bc] sm:$0xf0]  ;;  %v16286_v10 = vld [vmem:[#allocation2 + $0x4e8] sm:$0xf0] }
 0x2f7   :  { %8316 = vmatpush.bf16.msra.mxu3 %v13779_v32  ;;  %v14236_v32 = vld [vmem:[#allocation2 + $0x1a74] sm:$0xf0]  ;;  %v14147_v49 = vor.u32 %v16941_v47, %v14144_v53  ;;  %v17079_v47 = vld [vmem:[#allocation2 + $0x1db4] sm:$0xf]  ;;  %v13963_v53 = vor.u32 %v16895_v26, %v13960_v1  ;;  %v12954_v26 = vld [vmem:[#allocation2 + $0x1010] sm:$0xf] }
 0x2f8   :  { %8297 = vmatpush.bf16.msrb.mxu0 %v11663_v58  ;;  %v14239_v46 = vor.u32 %v16964_v63, %v14236_v32  ;;  %v13316_v58 = vld [vmem:[#allocation2 + $0x1344] sm:$0xf0]  ;;  %v8039_v6 = vpop.f32.mrf.mxu2  ;;  %v16688_v32 = vld [vmem:[#allocation2 + $0x117c] sm:$0xf]  ;;  %v16654_v1 = vld [vmem:[#allocation2 + $0x1068] sm:$0xf0] }
 0x2f9   :  { %8304 = vmatpush.bf16.msra.mxu1 %v12951_v61  ;;  %8285 = vmatmul.bf16.vlgmr.msra.gmra.mxu2 %v17514_v55  ;;  %v14975_v61 = vor.u32 %v17148_v42, %v14972_v44  ;;  %v15340_v42 = vld [vmem:[#allocation2 + $0x2314] sm:$0xf0] }
 0x2fa   :  { %8329 = vmatpush.bf16.msrb.mxu2 %v14515_v59  ;;  %v8052_v59 = vpop.f32.mrf.mxu0 }
 0x2fb   :  { %8317 = vmatpush.bf16.msra.mxu3 %v13687_v62  ;;  %8298 = vmatmul.bf16.vlgmr.msrb.gmra.mxu0 %v17523_v7  ;;  %v16734_v62 = vld [vmem:[#allocation2 + $0x12ec] sm:$0xf] }
 0x2fc   :  { %8342 = vmatpush.bf16.msra.mxu0 %v15251_v3  ;;  %v12583_v3 = vor.u32 %v16550_v56, %v12580_v18  ;;  %v13319_v9 = vor.u32 %v16734_v62, %v13316_v58  ;;  %v16872_v18 = vld [vmem:[#allocation2 + $0x173c] sm:$0xf]  ;;  %v13868_v62 = vld [vmem:[#allocation2 + $0x1794] sm:$0xf0]  ;;  %v15343_v58 = vor.u32 %v17240_v39, %v15340_v42  ;;  %v16447_v42 = vld [vmem:[#allocation2 + $0x9f0] sm:$0xf0] }
 0x2fd   :  { %8305 = vmatpush.bf16.msra.mxu1 %v12859_v13  ;;  %v8013_v13 = vpop.f32.mrf.mxu3  ;;  %v8028_v44 = vpop.f32.mrf.mxu1 }
 0x2fe   :  { %8330 = vmatpush.bf16.msrb.mxu2 %v14423_v12  ;;  %v12488_v12 = vld [vmem:[#allocation2 + $0xccc] sm:$0xf0]  ;;  %v8027_v20 = vadd.f32 %v8026_v50, %v8013_v13  ;;  %v13135_v50 = vor.u32 %v16688_v32, %v13132_v34  ;;  %v13871_v13 = vor.u32 %v16872_v18, %v13868_v62  ;;  %v16838_v32 = vld [vmem:[#allocation2 + $0x1628] sm:$0xf0]  ;;  %v12862_v44 = vld [vmem:[#allocation2 + $0xf58] sm:$0xf] }
 0x2ff   :  { %8318 = vmatpush.bf16.msra.mxu3 %v13595_v15  ;;  %v16711_v15 = vld [vmem:[#allocation2 + $0x1234] sm:$0xf]  ;;  %v12491_v17 = vor.u32 %v16527_v11, %v12488_v12  ;;  %v17056_v11 = vld [vmem:[#allocation2 + $0x1cfc] sm:$0xf]  ;;  %v14604_v12 = vld [vmem:[#allocation2 + $0x1d54] sm:$0xf0] }
 0x300   :  { %8343 = vmatpush.bf16.msra.mxu0 %v15159_v21  ;;  %v14788_v21 = vld [vmem:[#allocation2 + $0x1ec4] sm:$0xf0]  ;;  %v13227_v63 = vor.u32 %v16711_v15, %v13224_v16  ;;  %v16861_v15 = vld [vmem:[#allocation2 + $0x16e0] sm:$0xf0]  ;;  %v12311_v16 = vor.u32 %v16493_v2, %v12310_v0  ;;  %v16815_v18 = vld [vmem:[#allocation2 + $0x1570] sm:$0xf0] }
 0x301   :  { %8306 = vmatpush.bf16.msra.mxu1 %v12767_v29  ;;  %v8040_v29 = vadd.f32 %v8039_v6, %v8027_v20  ;;  %v11482_v6 = vld [vmem:[#allocation2 + $0x490] sm:$0xf]  ;;  %v12034_v62 = vld [vmem:[#allocation2 + $0x8e0] sm:$0xf]  ;;  %v16424_v0 = vld [vmem:[#allocation2 + $0x938] sm:$0xf0] }
 0x302   :  { %8331 = vmatpush.bf16.msrb.mxu2 %v14331_v28  ;;  %v16504_v28 = vld [vmem:[#allocation2 + $0xbbc] sm:$0xf]  ;;  %v8054_v33 = vpop.f32.mrf.mxu0  ;;  %v12770_v2 = vld [vmem:[#allocation2 + $0xea0] sm:$0xf] }
 0x303   :  { %8319 = vmatpush.bf16.msra.mxu3 %v13503_v54  ;;  %v12396_v54 = vld [vmem:[#allocation2 + $0xc14] sm:$0xf0]  ;;  %v12955_v33 = vor.u32 %v16654_v1, %v12954_v26  ;;  %v11114_v26 = vld [vmem:[#allocation2 + $0x1b0] sm:$0xf]  ;;  %v16194_v1 = vld [vmem:[#allocation2 + $0x208] sm:$0xf0] }
 0x304   :  { %8344 = vmatpush.bf16.msra.mxu0 %v15067_v38  ;;  %v14791_v38 = vor.u32 %v17102_v27, %v14788_v21  ;;  %v12399_v56 = vor.u32 %v16504_v28, %v12396_v54  ;;  %v12218_v27 = vld [vmem:[#allocation2 + $0xa50] sm:$0xf]  ;;  %v11483_v21 = vor.u32 %v16286_v10, %v11482_v6  ;;  %v13506_v6 = vld [vmem:[#allocation2 + $0x1460] sm:$0xf]  ;;  %v12035_v10 = vor.u32 %v16424_v0, %v12034_v62 }
 0x305   :  { %8307 = vmatpush.bf16.msra.mxu1 %v12675_v40  ;;  %v16309_v40 = vld [vmem:[#allocation2 + $0x5a0] sm:$0xf0]  ;;  %v13690_v54 = vld [vmem:[#allocation2 + $0x15d0] sm:$0xf] }
 0x306   :  { %8332 = vmatpush.bf16.msrb.mxu2 %v14239_v46  ;;  %v17735_v46 = vadd.f32 %v8052_v59, %v8040_v29  ;;  %v13046_v59 = vld [vmem:[#allocation2 + $0x10c8] sm:$0xf]  ;;  %v11390_v29 = vld [vmem:[#allocation2 + $0x3d8] sm:$0xf] }
 0x307   :  { %8320 = vmatpush.bf16.msra.mxu3 %v13411_v52  ;;  %v14696_v52 = vld [vmem:[#allocation2 + $0x1e0c] sm:$0xf0]  ;;  %v13047_v20 = vor.u32 %v16677_v5, %v13046_v59  ;;  %v11206_v59 = vld [vmem:[#allocation2 + $0x268] sm:$0xf]  ;;  %v16217_v5 = vld [vmem:[#allocation2 + $0x2c0] sm:$0xf0] }
 0x308   :  { %8345 = vmatpush.bf16.msra.mxu0 %v14975_v61  ;;  %v8041_v61 = vpop.f32.mrf.mxu2 }
 0x309   :  { %8308 = vmatpush.bf16.msra.mxu1 %v12583_v3  ;;  %v14699_v3 = vor.u32 %v17079_v47, %v14696_v52  ;;  %v13691_v47 = vor.u32 %v16838_v32, %v13690_v54  ;;  %v11298_v52 = vld [vmem:[#allocation2 + $0x320] sm:$0xf] }
 0x30a   :  { %8333 = vmatpush.bf16.msrb.mxu2 %v14147_v49  ;;  %v11575_v49 = vor.u32 %v16309_v40, %v11574_v4  ;;  %v16631_v40 = vld [vmem:[#allocation2 + $0xfb0] sm:$0xf0] }
 0x30b   :  { %8321 = vmatpush.bf16.msra.mxu3 %v13319_v9  ;;  %v8015_v9 = vpop.f32.mrf.mxu3 }
 0x30c   :  { %8346 = vmatpush.bf16.msra.mxu0 %v14883_v14  ;;  %v13782_v14 = vld [vmem:[#allocation2 + $0x1688] sm:$0xf]  ;;  %v16792_v9 = vld [vmem:[#allocation2 + $0x14b8] sm:$0xf0] }
 0x30d   :  { %8309 = vmatpush.bf16.msra.mxu1 %v12491_v17  ;;  %v16470_v17 = vld [vmem:[#allocation2 + $0xaa8] sm:$0xf0]  ;;  %v13783_v28 = vor.u32 %v16861_v15, %v13782_v14  ;;  %v11207_v15 = vor.u32 %v16217_v5, %v11206_v59 }
 0x30e   :  { %8334 = vmatpush.bf16.msrb.mxu2 %v14055_v25  ;;  %v14607_v25 = vor.u32 %v17056_v11, %v14604_v12  ;;  %v12219_v34 = vor.u32 %v16470_v17, %v12218_v27  ;;  %v16585_v27 = vld [vmem:[#allocation2 + $0xe40] sm:$0xf0]  ;;  %v13507_v17 = vor.u32 %v16792_v9, %v13506_v6  ;;  %v10930_v6 = vld [vmem:[#allocation2 + $0x40] sm:$0xf]  ;;  %v16148_v9 = vld [vmem:[#allocation2 + $0x98] sm:$0xf0] }
 0x30f   :  { %8322 = vmatpush.bf16.msra.mxu3 %v13227_v63  ;;  %v16263_v63 = vld [vmem:[#allocation2 + $0x430] sm:$0xf0] }
 0x310   :  { %8347 = vmatpush.bf16.msra.mxu0 %v14791_v38  ;;  %v12126_v38 = vld [vmem:[#allocation2 + $0x998] sm:$0xf]  ;;  %v17739_v4 = vpop.f32.mrf.mxu2  ;;  %v11391_v39 = vor.u32 %v16263_v63, %v11390_v29  ;;  %v13414_v29 = vld [vmem:[#allocation2 + $0x13a8] sm:$0xf]  ;;  %v16769_v63 = vld [vmem:[#allocation2 + $0x1400] sm:$0xf0] }
 0x311   :  { %8310 = vmatpush.bf16.msra.mxu1 %v12399_v56  ;;  %v13598_v56 = vld [vmem:[#allocation2 + $0x1518] sm:$0xf]  ;;  %v12127_v61 = vor.u32 %v16447_v42, %v12126_v38  ;;  %v8078_v12 = vpop.f32.mrf.mxu1  ;;  %v11115_v38 = vor.u32 %v16194_v1, %v11114_v26  ;;  %v12586_v42 = vld [vmem:[#allocation2 + $0xd30] sm:$0xf]  ;;  %v15254_v26 = vld [vmem:[#allocation2 + $0x2208] sm:$0xf] }
 0x312   :  { %8335 = vmatpush.bf16.msrb.mxu2 %v13963_v53  ;;  %v16240_v53 = vld [vmem:[#allocation2 + $0x378] sm:$0xf0]  ;;  %v17229_v1 = vld [vmem:[#allocation2 + $0x2260] sm:$0xf0] }
 0x313   :  { %8323 = vmatpush.bf16.msra.mxu3 %v13135_v50  ;;  %v12863_v50 = vor.u32 %v16631_v40, %v12862_v44  ;;  %v16562_v44 = vld [vmem:[#allocation2 + $0xd88] sm:$0xf0]  ;;  %v13415_v40 = vor.u32 %v16769_v63, %v13414_v29  ;;  %v14426_v63 = vld [vmem:[#allocation2 + $0x1b90] sm:$0xf] }
 0x314   :  { %8348 = vmatpush.bf16.msra.mxu0 %v14699_v3  ;;  %8311 = vmatmul.bf16.vlgmr.msra.gmra.mxu1 %v17512_v51  ;;  %v13599_v3 = vor.u32 %v16815_v18, %v13598_v56  ;;  %v16746_v56 = vld [vmem:[#allocation2 + $0x1348] sm:$0xf0] }
 0x315   :  { %8362 = vmatpush.bf16.msrb.mxu1 %v15343_v58  ;;  %v11299_v58 = vor.u32 %v16240_v53, %v11298_v52  ;;  %v13322_v53 = vld [vmem:[#allocation2 + $0x12f0] sm:$0xf] }
 0x316   :  { %8324 = vmatmul.bf16.vlgmr.msra.gmra.mxu3 %v17516_v57  ;;  %8336 = vmatpush.bf16.msrb.mxu2 %v13871_v13  ;;  %v11942_v13 = vld [vmem:[#allocation2 + $0x828] sm:$0xf] }
 0x317   :  { %8368 = vmatpush.bf16.msrb.mxu3 %v11575_v49  ;;  %v16608_v49 = vld [vmem:[#allocation2 + $0xef8] sm:$0xf0] }
 0x318   :  { %8349 = vmatpush.bf16.msra.mxu0 %v14607_v25  ;;  %v12771_v11 = vor.u32 %v16608_v49, %v12770_v2  ;;  %v8093_v14 = vpop.f32.mrf.mxu2  ;;  %v8065_v25 = vpop.f32.mrf.mxu3  ;;  %v16355_v2 = vld [vmem:[#allocation2 + $0x710] sm:$0xf0]  ;;  %v12494_v49 = vld [vmem:[#allocation2 + $0xc78] sm:$0xf] }
 0x319   :  { %8381 = vmatpush.bf16.msra.mxu1 %v12311_v16  ;;  %8337 = vmatmul.bf16.vlgmr.msrb.gmra.mxu2 %v17540_v30  ;;  %v16401_v16 = vld [vmem:[#allocation2 + $0x880] sm:$0xf0]  ;;  %v8080_v62 = vpop.f32.mrf.mxu1  ;;  %v16723_v14 = vld [vmem:[#allocation2 + $0x1290] sm:$0xf0] }
 0x31a   :  { %8394 = vmatpush.bf16.msra.mxu2 %v13047_v20  ;;  %v12678_v20 = vld [vmem:[#allocation2 + $0xde8] sm:$0xf]  ;;  %v11943_v54 = vor.u32 %v16401_v16, %v11942_v13  ;;  %v13230_v13 = vld [vmem:[#allocation2 + $0x1238] sm:$0xf]  ;;  %v15162_v62 = vld [vmem:[#allocation2 + $0x2150] sm:$0xf] }
 0x31b   :  { %8369 = vmatpush.bf16.msrb.mxu3 %v11483_v21  ;;  %8350 = vmatmul.bf16.vlgmr.msra.gmra.mxu0 %v17542_v35  ;;  %v8104_v21 = vpop.f32.mrf.mxu0  ;;  %v12679_v32 = vor.u32 %v16585_v27, %v12678_v20  ;;  %v11666_v20 = vld [vmem:[#allocation2 + $0x600] sm:$0xf]  ;;  %v16332_v27 = vld [vmem:[#allocation2 + $0x658] sm:$0xf0]  ;;  %v13231_v29 = vor.u32 %v16723_v14, %v13230_v13  ;;  %v17183_v13 = vld [vmem:[#allocation2 + $0x20f0] sm:$0xf0] }
 0x31c   :  { %8407 = vmatpush.bf16.msrb.mxu0 %v13783_v28  ;;  %v8066_v28 = vadd.f32 %v8065_v25, %v17735_v46  ;;  %v16171_v46 = vld [vmem:[#allocation2 + $0x150] sm:$0xf0]  ;;  %v12402_v25 = vld [vmem:[#allocation2 + $0xbc0] sm:$0xf] }
 0x31d   :  { %8382 = vmatpush.bf16.msra.mxu1 %v12219_v34  ;;  %v11850_v34 = vld [vmem:[#allocation2 + $0x770] sm:$0xf] }
 0x31e   :  { %8395 = vmatpush.bf16.msra.mxu2 %v12955_v33  ;;  %v8079_v33 = vadd.f32 %v8078_v12, %v8066_v28  ;;  %v17045_v12 = vld [vmem:[#allocation2 + $0x1ca0] sm:$0xf0] }
 0x31f   :  { %8370 = vmatpush.bf16.msrb.mxu3 %v11391_v39  ;;  %v16378_v39 = vld [vmem:[#allocation2 + $0x7c8] sm:$0xf0] }
 0x320   :  { %8408 = vmatpush.bf16.msrb.mxu0 %v13691_v47  ;;  %v11022_v47 = vld [vmem:[#allocation2 + $0xf8] sm:$0xf]  ;;  %v17747_v52 = vadd.f32 %v17739_v4, %v8079_v33  ;;  %v11851_v18 = vor.u32 %v16378_v39, %v11850_v34  ;;  %v13323_v4 = vor.u32 %v16746_v56, %v13322_v53  ;;  %v17022_v34 = vld [vmem:[#allocation2 + $0x1be8] sm:$0xf0]  ;;  %v13138_v33 = vld [vmem:[#allocation2 + $0x1180] sm:$0xf]  ;;  %v11667_v39 = vor.u32 %v16332_v27, %v11666_v20 }
 0x321   :  { %8383 = vmatpush.bf16.msra.mxu1 %v12127_v61  ;;  %v12587_v61 = vor.u32 %v16562_v44, %v12586_v42  ;;  %v11023_v0 = vor.u32 %v16171_v46, %v11022_v47  ;;  %v16298_v44 = vld [vmem:[#allocation2 + $0x54c] sm:$0xf]  ;;  %v15255_v46 = vor.u32 %v17229_v1, %v15254_v26  ;;  %v16252_v27 = vld [vmem:[#allocation2 + $0x3dc] sm:$0xf]  ;;  %v12128_v26 = vld [vmem:[#allocation2 + $0x9f4] sm:$0xf0] }
 0x322   :  { %8396 = vmatpush.bf16.msra.mxu2 %v12863_v50  ;;  %v11758_v50 = vld [vmem:[#allocation2 + $0x6b8] sm:$0xf]  ;;  %v16482_v56 = vld [vmem:[#allocation2 + $0xb0c] sm:$0xf] }
 0x323   :  { %8371 = vmatpush.bf16.msrb.mxu3 %v11299_v58  ;;  %v8117_v58 = vpop.f32.mrf.mxu2  ;;  %v8106_v5 = vpop.f32.mrf.mxu0 }
 0x324   :  { %8409 = vmatpush.bf16.msrb.mxu0 %v13599_v3  ;;  %15387 = vmatmul.msk.bf16.vlgmr.msrb.gmra.mxu1 %vm6908_vm0, %v17530_v45  ;;  %v16539_v3 = vld [vmem:[#allocation2 + $0xcd0] sm:$0xf0]  ;;  %v17749_v59 = vadd.f32 %v8117_v58, %v8104_v21  ;;  %v10931_v21 = vor.u32 %v16148_v9, %v10930_v6  ;;  %v17206_v58 = vld [vmem:[#allocation2 + $0x21a8] sm:$0xf0] }
 0x325   :  { %8384 = vmatpush.bf16.msra.mxu1 %v12035_v10  ;;  %v14518_v10 = vld [vmem:[#allocation2 + $0x1c48] sm:$0xf]  ;;  %v12495_v16 = vor.u32 %v16539_v3, %v12494_v49  ;;  %v16999_v49 = vld [vmem:[#allocation2 + $0x1b30] sm:$0xf0]  ;;  %v15163_v6 = vor.u32 %v17206_v58, %v15162_v62 }
 0x326   :  { %8397 = vmatpush.bf16.msra.mxu2 %v12771_v11  ;;  %v8067_v11 = vpop.f32.mrf.mxu3  ;;  %v14519_v28 = vor.u32 %v17045_v12, %v14518_v10  ;;  %v16275_v5 = vld [vmem:[#allocation2 + $0x494] sm:$0xf]  ;;  %v12220_v10 = vld [vmem:[#allocation2 + $0xaac] sm:$0xf0]  ;;  %v15070_v12 = vld [vmem:[#allocation2 + $0x2098] sm:$0xf] }
 0x327   :  { %8372 = vmatpush.bf16.msrb.mxu3 %v11207_v15  ;;  %v11759_v15 = vor.u32 %v16355_v2, %v11758_v50  ;;  %v14334_v2 = vld [vmem:[#allocation2 + $0x1ad8] sm:$0xf]  ;;  %v16459_v9 = vld [vmem:[#allocation2 + $0xa54] sm:$0xf] }
 0x328   :  { %8410 = vmatpush.bf16.msrb.mxu0 %v13507_v17  ;;  %v16516_v17 = vld [vmem:[#allocation2 + $0xc18] sm:$0xf0]  ;;  %v14335_v11 = vor.u32 %v16999_v49, %v14334_v2  ;;  %v12223_v20 = vor.u32 %v16459_v9, %v12220_v10  ;;  %v16206_v2 = vld [vmem:[#allocation2 + $0x26c] sm:$0xf]  ;;  %v11208_v49 = vld [vmem:[#allocation2 + $0x2c4] sm:$0xf0] }
 0x329   :  { %8385 = vmatpush.bf16.msra.mxu1 %v11943_v54  ;;  %v15346_v54 = vld [vmem:[#allocation2 + $0x22c0] sm:$0xf]  ;;  %v12403_v42 = vor.u32 %v16516_v17, %v12402_v25  ;;  %v11392_v25 = vld [vmem:[#allocation2 + $0x434] sm:$0xf0]  ;;  %v16436_v17 = vld [vmem:[#allocation2 + $0x99c] sm:$0xf] }
 0x32a   :  { %8398 = vmatpush.bf16.msra.mxu2 %v12679_v32  ;;  %v17252_v32 = vld [vmem:[#allocation2 + $0x2318] sm:$0xf0]  ;;  %v14794_v10 = vld [vmem:[#allocation2 + $0x1e70] sm:$0xf] }
 0x32b   :  { %8373 = vmatpush.bf16.msrb.mxu3 %v11115_v38  ;;  %v16700_v38 = vld [vmem:[#allocation2 + $0x11d8] sm:$0xf0]  ;;  %v8119_v47 = vpop.f32.mrf.mxu2  ;;  %v15347_v53 = vor.u32 %v17252_v32, %v15346_v54  ;;  %v14150_v54 = vld [vmem:[#allocation2 + $0x1968] sm:$0xf]  ;;  %v16953_v32 = vld [vmem:[#allocation2 + $0x19c0] sm:$0xf0] }
 0x32c   :  { %8411 = vmatpush.bf16.msrb.mxu0 %v13415_v40  ;;  %v11576_v40 = vld [vmem:[#allocation2 + $0x5a4] sm:$0xf0]  ;;  %v13139_v50 = vor.u32 %v16700_v38, %v13138_v33  ;;  %v16229_v33 = vld [vmem:[#allocation2 + $0x324] sm:$0xf]  ;;  %v11300_v38 = vld [vmem:[#allocation2 + $0x37c] sm:$0xf0]  ;;  %v14151_v47 = vor.u32 %v16953_v32, %v14150_v54 }
 0x32d   :  { %8386 = vmatpush.bf16.msra.mxu1 %v11851_v18  ;;  %v12312_v18 = vld [vmem:[#allocation2 + $0xb64] sm:$0xf0] }
 0x32e   :  { %8399 = vmatpush.bf16.msra.mxu2 %v12587_v61  ;;  %v14427_v61 = vor.u32 %v17022_v34, %v14426_v63  ;;  %v12315_v3 = vor.u32 %v16482_v56, %v12312_v18  ;;  %v11395_v63 = vor.u32 %v16252_v27, %v11392_v25  ;;  %v12131_v34 = vor.u32 %v16436_v17, %v12128_v26  ;;  %v11852_v17 = vld [vmem:[#allocation2 + $0x7cc] sm:$0xf0] }
 0x32f   :  { %8374 = vmatpush.bf16.msrb.mxu3 %v11023_v0  ;;  %v11579_v0 = vor.u32 %v16298_v44, %v11576_v40  ;;  %v12036_v44 = vld [vmem:[#allocation2 + $0x93c] sm:$0xf0]  ;;  %v11303_v18 = vor.u32 %v16229_v33, %v11300_v38  ;;  %v16884_v33 = vld [vmem:[#allocation2 + $0x1798] sm:$0xf0]  ;;  %v16666_v38 = vld [vmem:[#allocation2 + $0x10cc] sm:$0xf] }
 0x330   :  { %8412 = vmatpush.bf16.msrb.mxu0 %v13323_v4  ;;  %v11484_v4 = vld [vmem:[#allocation2 + $0x4ec] sm:$0xf0] }
 0x331   :  { %8387 = vmatpush.bf16.msra.mxu1 %v11759_v15  ;;  %v11487_v14 = vor.u32 %v16275_v5, %v11484_v4  ;;  %v14242_v15 = vld [vmem:[#allocation2 + $0x1a20] sm:$0xf]  ;;  %v8143_v40 = vpop.f32.mrf.mxu1  ;;  %v16390_v5 = vld [vmem:[#allocation2 + $0x82c] sm:$0xf]  ;;  %v11944_v4 = vld [vmem:[#allocation2 + $0x884] sm:$0xf0] }
 0x332   :  { %8400 = vmatpush.bf16.msra.mxu2 %v12495_v16  ;;  %v16976_v16 = vld [vmem:[#allocation2 + $0x1a78] sm:$0xf0] }
 0x333   :  { %8375 = vmatpush.bf16.msrb.mxu3 %v10931_v21  ;;  %v15071_v21 = vor.u32 %v17183_v13, %v15070_v12  ;;  %v14243_v1 = vor.u32 %v16976_v16, %v14242_v15  ;;  %v11211_v12 = vor.u32 %v16206_v2, %v11208_v49  ;;  %v13966_v13 = vld [vmem:[#allocation2 + $0x17f8] sm:$0xf]  ;;  %v11947_v15 = vor.u32 %v16390_v5, %v11944_v4  ;;  %v16183_v16 = vld [vmem:[#allocation2 + $0x1b4] sm:$0xf]  ;;  %v13784_v2 = vld [vmem:[#allocation2 + $0x16e4] sm:$0xf0] }
 0x334   :  { %8413 = vmatpush.bf16.msrb.mxu0 %v13231_v29  ;;  %v17160_v29 = vld [vmem:[#allocation2 + $0x2038] sm:$0xf0]  ;;  %v8156_v62 = vpop.f32.mrf.mxu0  ;;  %v16643_v49 = vld [vmem:[#allocation2 + $0x1014] sm:$0xf]  ;;  %v16137_v4 = vld [vmem:[#allocation2 + $0x44] sm:$0xf] }
 0x335   :  { %8388 = vmatpush.bf16.msra.mxu1 %v11667_v39  ;;  %v8130_v56 = vpop.f32.mrf.mxu3 }
 0x336   :  { %8401 = vmatpush.bf16.msra.mxu2 %v12403_v42  ;;  %8376 = vmatmul.bf16.vlgmr.msrb.gmra.mxu3 %v17514_v55  ;;  %v16413_v42 = vld [vmem:[#allocation2 + $0x8e4] sm:$0xf]  ;;  %v8131_v58 = vadd.f32 %v8130_v56, %v17749_v59  ;;  %v11760_v56 = vld [vmem:[#allocation2 + $0x714] sm:$0xf0] }
 0x337   :  { %8420 = vmatpush.bf16.msra.mxu3 %v14519_v28  ;;  %v14978_v28 = vld [vmem:[#allocation2 + $0x1fe0] sm:$0xf] }
 0x338   :  { %8414 = vmatpush.bf16.msrb.mxu0 %v13139_v50  ;;  %8389 = vmatmul.bf16.vlgmr.msra.gmra.mxu1 %v17523_v7  ;;  %v14979_v39 = vor.u32 %v17160_v29, %v14978_v28  ;;  %v16930_v50 = vld [vmem:[#allocation2 + $0x1908] sm:$0xf0]  ;;  %v8144_v9 = vadd.f32 %v8143_v40, %v8131_v58  ;;  %v14702_v29 = vld [vmem:[#allocation2 + $0x1db8] sm:$0xf]  ;;  %v16160_v40 = vld [vmem:[#allocation2 + $0xfc] sm:$0xf] }
 0x339   :  { %8433 = vmatpush.bf16.msrb.mxu1 %v15255_v46  ;;  %8402 = vmatmul.bf16.vlgmr.msra.gmra.mxu2 %v17512_v51  ;;  %v14886_v46 = vld [vmem:[#allocation2 + $0x1f28] sm:$0xf]  ;;  %v8145_v26 = vpop.f32.mrf.mxu1 }
 0x33a   :  { %8453 = vmatpush.bf16.msrb.mxu2 %v15347_v53  ;;  %v17137_v53 = vld [vmem:[#allocation2 + $0x1f80] sm:$0xf0]  ;;  %v8157_v59 = vadd.f32 %v8156_v62, %v8144_v9  ;;  %v16850_v62 = vld [vmem:[#allocation2 + $0x168c] sm:$0xf] }
 0x33b   :  { %8421 = vmatpush.bf16.msra.mxu3 %v14427_v61  ;;  %8415 = vmatmul.bf16.vlgmr.msrb.gmra.mxu0 %v17516_v57  ;;  %v14058_v61 = vld [vmem:[#allocation2 + $0x18b0] sm:$0xf]  ;;  %v16321_v9 = vld [vmem:[#allocation2 + $0x604] sm:$0xf] }
 0x33c   :  { %8459 = vmatpush.bf16.msra.mxu0 %v11579_v0  ;;  %v12039_v0 = vor.u32 %v16413_v42, %v12036_v44  ;;  %v8169_v25 = vpop.f32.mrf.mxu2  ;;  %v13048_v44 = vld [vmem:[#allocation2 + $0x1124] sm:$0xf0] }
 0x33d   :  { %8434 = vmatpush.bf16.msrb.mxu1 %v15163_v6  ;;  %v14059_v6 = vor.u32 %v16930_v50, %v14058_v61  ;;  %v8170_v28 = vadd.f32 %v8169_v25, %v8157_v59  ;;  %v8132_v54 = vpop.f32.mrf.mxu3  ;;  %v14610_v61 = vld [vmem:[#allocation2 + $0x1d00] sm:$0xf]  ;;  %v17068_v50 = vld [vmem:[#allocation2 + $0x1d58] sm:$0xf0]  ;;  %v13051_v58 = vor.u32 %v16666_v38, %v13048_v44  ;;  %v17218_v59 = vld [vmem:[#allocation2 + $0x220c] sm:$0xf] }
 0x33e   :  { %8472 = vmatpush.bf16.msra.mxu2 %v12315_v3  ;;  %v14887_v3 = vor.u32 %v17137_v53, %v14886_v46  ;;  %v16344_v53 = vld [vmem:[#allocation2 + $0x6bc] sm:$0xf]  ;;  %v12864_v54 = vld [vmem:[#allocation2 + $0xfb4] sm:$0xf0] }
 0x33f   :  { %8422 = vmatpush.bf16.msra.mxu3 %v14335_v11  ;;  %v17114_v11 = vld [vmem:[#allocation2 + $0x1ec8] sm:$0xf0]  ;;  %v11763_v5 = vor.u32 %v16344_v53, %v11760_v56  ;;  %v12772_v53 = vld [vmem:[#allocation2 + $0xefc] sm:$0xf0] }
 0x340   :  { %8460 = vmatpush.bf16.msra.mxu0 %v11487_v14  ;;  %v16907_v14 = vld [vmem:[#allocation2 + $0x1850] sm:$0xf0]  ;;  %v14795_v27 = vor.u32 %v17114_v11, %v14794_v10  ;;  %v14611_v10 = vor.u32 %v17068_v50, %v14610_v61  ;;  %v11668_v11 = vld [vmem:[#allocation2 + $0x65c] sm:$0xf0]  ;;  %v14336_v61 = vld [vmem:[#allocation2 + $0x1b34] sm:$0xf0] }
 0x341   :  { %8435 = vmatpush.bf16.msrb.mxu1 %v15071_v21  ;;  %v16367_v21 = vld [vmem:[#allocation2 + $0x774] sm:$0xf] }
 0x342   :  { %8473 = vmatpush.bf16.msra.mxu2 %v12223_v20  ;;  %v11116_v20 = vld [vmem:[#allocation2 + $0x20c] sm:$0xf0]  ;;  %v11855_v42 = vor.u32 %v16367_v21, %v11852_v17  ;;  %v16827_v21 = vld [vmem:[#allocation2 + $0x15d4] sm:$0xf] }
 0x343   :  { %8423 = vmatpush.bf16.msra.mxu3 %v14243_v1  ;;  %v13967_v1 = vor.u32 %v16907_v14, %v13966_v13  ;;  %v11119_v32 = vor.u32 %v16183_v16, %v11116_v20  ;;  %v14520_v13 = vld [vmem:[#allocation2 + $0x1ca4] sm:$0xf0]  ;;  %v13692_v17 = vld [vmem:[#allocation2 + $0x162c] sm:$0xf0] }
 0x344   :  { %8461 = vmatpush.bf16.msra.mxu0 %v11395_v63  ;;  %v17091_v63 = vld [vmem:[#allocation2 + $0x1e10] sm:$0xf0]  ;;  %v8171_v14 = vpop.f32.mrf.mxu2  ;;  %v15256_v16 = vld [vmem:[#allocation2 + $0x2264] sm:$0xf0]  ;;  %v13695_v38 = vor.u32 %v16827_v21, %v13692_v17  ;;  %v12588_v21 = vld [vmem:[#allocation2 + $0xd8c] sm:$0xf0] }
 0x345   :  { %8436 = vmatpush.bf16.msrb.mxu1 %v14979_v39  ;;  %v8158_v39 = vpop.f32.mrf.mxu0  ;;  %v14703_v46 = vor.u32 %v17091_v63, %v14702_v29  ;;  %v8182_v20 = vpop.f32.mrf.mxu3  ;;  %v16620_v63 = vld [vmem:[#allocation2 + $0xf5c] sm:$0xf]  ;;  %v14980_v14 = vld [vmem:[#allocation2 + $0x203c] sm:$0xf0] }
 0x346   :  { %8474 = vmatpush.bf16.msra.mxu2 %v12131_v34  ;;  %v13874_v34 = vld [vmem:[#allocation2 + $0x1740] sm:$0xf]  ;;  %v17758_v26 = vadd.f32 %v8182_v20, %v8170_v28  ;;  %v17195_v39 = vld [vmem:[#allocation2 + $0x2154] sm:$0xf]  ;;  %v12867_v44 = vor.u32 %v16620_v63, %v12864_v54  ;;  %v16804_v28 = vld [vmem:[#allocation2 + $0x151c] sm:$0xf] }
 0x347   :  { %8424 = vmatpush.bf16.msra.mxu3 %v14151_v47  ;;  %v11024_v47 = vld [vmem:[#allocation2 + $0x154] sm:$0xf0]  ;;  %v14152_v63 = vld [vmem:[#allocation2 + $0x19c4] sm:$0xf0] }
 0x348   :  { %8462 = vmatpush.bf16.msra.mxu0 %v11303_v18  ;;  %v13875_v18 = vor.u32 %v16884_v33, %v13874_v34  ;;  %v17011_v34 = vld [vmem:[#allocation2 + $0x1b94] sm:$0xf]  ;;  %v14428_v33 = vld [vmem:[#allocation2 + $0x1bec] sm:$0xf0] }
 0x349   :  { %8437 = vmatpush.bf16.msrb.mxu1 %v14887_v3  ;;  %15388 = vmatmul.msk.bf16.vlgmr.msrb.gmra.mxu2 %vm6908_vm0, %v17530_v45  ;;  %v12956_v3 = vld [vmem:[#allocation2 + $0x106c] sm:$0xf0] }
 0x34a   :  { %8475 = vmatpush.bf16.msra.mxu2 %v12039_v0  ;;  %v11027_v0 = vor.u32 %v16160_v40, %v11024_v47  ;;  %v13600_v40 = vld [vmem:[#allocation2 + $0x1574] sm:$0xf0]  ;;  %v14431_v47 = vor.u32 %v17011_v34, %v14428_v33  ;;  %v14888_v34 = vld [vmem:[#allocation2 + $0x1f84] sm:$0xf0] }
 0x34b   :  { %8425 = vmatpush.bf16.msra.mxu3 %v14059_v6  ;;  %v10932_v6 = vld [vmem:[#allocation2 + $0x9c] sm:$0xf0]  ;;  %v13603_v50 = vor.u32 %v16804_v28, %v13600_v40  ;;  %v16528_v28 = vld [vmem:[#allocation2 + $0xc7c] sm:$0xf]  ;;  %v12496_v40 = vld [vmem:[#allocation2 + $0xcd4] sm:$0xf0] }
 0x34c   :  { %8463 = vmatpush.bf16.msra.mxu0 %v11211_v12  ;;  %v17034_v12 = vld [vmem:[#allocation2 + $0x1c4c] sm:$0xf]  ;;  %v10935_v25 = vor.u32 %v16137_v4, %v10932_v6  ;;  %v12680_v6 = vld [vmem:[#allocation2 + $0xe44] sm:$0xf0] }
 0x34d   :  { %8438 = vmatpush.bf16.msrb.mxu1 %v14795_v27  ;;  %v12959_v27 = vor.u32 %v16643_v49, %v12956_v3  ;;  %v14523_v29 = vor.u32 %v17034_v12, %v14520_v13  ;;  %v16781_v49 = vld [vmem:[#allocation2 + $0x1464] sm:$0xf]  ;;  %v13508_v3 = vld [vmem:[#allocation2 + $0x14bc] sm:$0xf0]  ;;  %v16574_v4 = vld [vmem:[#allocation2 + $0xdec] sm:$0xf] }
 0x34e   :  { %8476 = vmatpush.bf16.msra.mxu2 %v11947_v15  ;;  %v13787_v15 = vor.u32 %v16850_v62, %v13784_v2  ;;  %v17172_v62 = vld [vmem:[#allocation2 + $0x209c] sm:$0xf]  ;;  %v8184_v2 = vpop.f32.mrf.mxu3  ;;  %v13511_v12 = vor.u32 %v16781_v49, %v13508_v3  ;;  %v17149_v13 = vld [vmem:[#allocation2 + $0x1fe4] sm:$0xf]  ;;  %v13232_v49 = vld [vmem:[#allocation2 + $0x1294] sm:$0xf0] }
 0x34f   :  { %8426 = vmatpush.bf16.msra.mxu3 %v13967_v1  ;;  %v11671_v1 = vor.u32 %v16321_v9, %v11668_v11  ;;  %v14244_v11 = vld [vmem:[#allocation2 + $0x1a7c] sm:$0xf0]  ;;  %v14983_v17 = vor.u32 %v17149_v13, %v14980_v14  ;;  %v16712_v2 = vld [vmem:[#allocation2 + $0x123c] sm:$0xf]  ;;  %v17241_v13 = vld [vmem:[#allocation2 + $0x22c4] sm:$0xf] }
 0x350   :  { %8464 = vmatpush.bf16.msra.mxu0 %v11119_v32  ;;  %v15259_v32 = vor.u32 %v17218_v59, %v15256_v16  ;;  %v16758_v59 = vld [vmem:[#allocation2 + $0x13ac] sm:$0xf]  ;;  %v13416_v16 = vld [vmem:[#allocation2 + $0x1404] sm:$0xf0]  ;;  %v15348_v14 = vld [vmem:[#allocation2 + $0x231c] sm:$0xf0] }
 0x351   :  { %8439 = vmatpush.bf16.msrb.mxu1 %v14703_v46  ;;  %v16597_v46 = vld [vmem:[#allocation2 + $0xea4] sm:$0xf]  ;;  %v13419_v54 = vor.u32 %v16758_v59, %v13416_v16  ;;  %v13235_v59 = vor.u32 %v16712_v2, %v13232_v49  ;;  %v17080_v16 = vld [vmem:[#allocation2 + $0x1dbc] sm:$0xf]  ;;  %v16471_v2 = vld [vmem:[#allocation2 + $0xab0] sm:$0xf0] }
 0x352   :  { %8477 = vmatpush.bf16.msra.mxu2 %v11855_v42  ;;  %v15164_v42 = vld [vmem:[#allocation2 + $0x21ac] sm:$0xf0] }
 0x353   :  { %8427 = vmatpush.bf16.msra.mxu3 %v13875_v18  ;;  %v15167_v56 = vor.u32 %v17195_v39, %v15164_v42  ;;  %v16988_v18 = vld [vmem:[#allocation2 + $0x1adc] sm:$0xf]  ;;  %v13324_v39 = vld [vmem:[#allocation2 + $0x134c] sm:$0xf0] }
 0x354   :  { %8465 = vmatpush.bf16.msra.mxu0 %v11027_v0  ;;  %v12775_v0 = vor.u32 %v16597_v46, %v12772_v53  ;;  %v8221_v20 = vpop.f32.mrf.mxu0  ;;  %v16919_v53 = vld [vmem:[#allocation2 + $0x18b4] sm:$0xf] }
 0x355   :  { %8440 = vmatpush.bf16.msrb.mxu1 %v14611_v10  ;;  %v16965_v10 = vld [vmem:[#allocation2 + $0x1a24] sm:$0xf] }
 0x356   :  { %8478 = vmatpush.bf16.msra.mxu2 %v11763_v5  ;;  %8428 = vmatmul.bf16.vlgmr.msra.gmra.mxu3 %v17540_v30  ;;  %v14339_v5 = vor.u32 %v16988_v18, %v14336_v61 }
 0x357   :  { %8485 = vmatpush.bf16.msrb.mxu3 %v13051_v58  ;;  %v15072_v58 = vld [vmem:[#allocation2 + $0x20f4] sm:$0xf0] }
 0x358   :  { %8466 = vmatpush.bf16.msra.mxu0 %v10935_v25  ;;  %8441 = vmatmul.bf16.vlgmr.msrb.gmra.mxu1 %v17542_v35  ;;  %v15075_v9 = vor.u32 %v17172_v62, %v15072_v58  ;;  %v16551_v25 = vld [vmem:[#allocation2 + $0xd34] sm:$0xf]  ;;  %v14796_v62 = vld [vmem:[#allocation2 + $0x1ecc] sm:$0xf0]  ;;  %v12499_v58 = vor.u32 %v16528_v28, %v12496_v40  ;;  %v14612_v28 = vld [vmem:[#allocation2 + $0x1d5c] sm:$0xf0] }
 0x359   :  { %8498 = vmatpush.bf16.msra.mxu1 %v13787_v15  ;;  %v12683_v15 = vor.u32 %v16574_v4, %v12680_v6  ;;  %v12591_v33 = vor.u32 %v16551_v25, %v12588_v21  ;;  %v8208_v42 = vpop.f32.mrf.mxu3  ;;  %v16505_v4 = vld [vmem:[#allocation2 + $0xbc4] sm:$0xf]  ;;  %v12404_v6 = vld [vmem:[#allocation2 + $0xc1c] sm:$0xf0]  ;;  %v13054_v40 = vld [vmem:[#allocation2 + $0x10d0] sm:$0xf] }
 0x35a   :  { %8479 = vmatpush.bf16.msra.mxu2 %v11671_v1  ;;  %v8195_v1 = vpop.f32.mrf.mxu1  ;;  %v16689_v25 = vld [vmem:[#allocation2 + $0x1184] sm:$0xf]  ;;  %v13140_v21 = vld [vmem:[#allocation2 + $0x11dc] sm:$0xf0] }
 0x35b   :  { %8486 = vmatpush.bf16.msrb.mxu3 %v12959_v27  ;;  %8467 = vmatmul.bf16.vlgmr.msra.gmra.mxu0 %v17514_v55  ;;  %v14247_v27 = vor.u32 %v16965_v10, %v14244_v11 }
 0x35c   :  { %8511 = vmatpush.bf16.msrb.mxu0 %v14523_v29  ;;  %v16942_v29 = vld [vmem:[#allocation2 + $0x196c] sm:$0xf]  ;;  %v8234_v61 = vpop.f32.mrf.mxu2  ;;  %v8223_v3 = vpop.f32.mrf.mxu0 }
 0x35d   :  { %8499 = vmatpush.bf16.msra.mxu1 %v13695_v38  ;;  %8480 = vmatmul.bf16.vlgmr.msra.gmra.mxu2 %v17523_v7  ;;  %v16735_v38 = vld [vmem:[#allocation2 + $0x12f4] sm:$0xf] }
 0x35e   :  { %8524 = vmatpush.bf16.msrb.mxu2 %v15259_v32  ;;  %v17126_v32 = vld [vmem:[#allocation2 + $0x1f2c] sm:$0xf]  ;;  %v13327_v18 = vor.u32 %v16735_v38, %v13324_v39  ;;  %v16873_v38 = vld [vmem:[#allocation2 + $0x1744] sm:$0xf]  ;;  %v13876_v39 = vld [vmem:[#allocation2 + $0x179c] sm:$0xf0] }
 0x35f   :  { %8487 = vmatpush.bf16.msrb.mxu3 %v12867_v44  ;;  %v14155_v44 = vor.u32 %v16942_v29, %v14152_v63  ;;  %v14891_v46 = vor.u32 %v17126_v32, %v14888_v34  ;;  %v15351_v29 = vor.u32 %v17241_v13, %v15348_v14  ;;  %v16310_v63 = vld [vmem:[#allocation2 + $0x5a8] sm:$0xf0]  ;;  %v13698_v13 = vld [vmem:[#allocation2 + $0x15d8] sm:$0xf]  ;;  %v16839_v14 = vld [vmem:[#allocation2 + $0x1630] sm:$0xf0] }
 0x360   :  { %8512 = vmatpush.bf16.msrb.mxu0 %v14431_v47  ;;  %v8209_v47 = vadd.f32 %v8208_v42, %v8195_v1  ;;  %v16494_v32 = vld [vmem:[#allocation2 + $0xb68] sm:$0xf0]  ;;  %v17057_v42 = vld [vmem:[#allocation2 + $0x1d04] sm:$0xf] }
 0x361   :  { %8500 = vmatpush.bf16.msra.mxu1 %v13603_v50  ;;  %v17103_v50 = vld [vmem:[#allocation2 + $0x1e74] sm:$0xf]  ;;  %v8210_v34 = vpop.f32.mrf.mxu3  ;;  %v14615_v3 = vor.u32 %v17057_v42, %v14612_v28 }
 0x362   :  { %8525 = vmatpush.bf16.msrb.mxu2 %v15167_v56  ;;  %v14060_v56 = vld [vmem:[#allocation2 + $0x190c] sm:$0xf0]  ;;  %v14799_v11 = vor.u32 %v17103_v50, %v14796_v62  ;;  %v11490_v50 = vld [vmem:[#allocation2 + $0x498] sm:$0xf]  ;;  %v13879_v62 = vor.u32 %v16873_v38, %v13876_v39  ;;  %v16241_v34 = vld [vmem:[#allocation2 + $0x380] sm:$0xf0] }
 0x363   :  { %8488 = vmatpush.bf16.msrb.mxu3 %v12775_v0  ;;  %v8222_v0 = vadd.f32 %v8221_v20, %v8209_v47  ;;  %v14704_v20 = vld [vmem:[#allocation2 + $0x1e14] sm:$0xf0]  ;;  %v16678_v47 = vld [vmem:[#allocation2 + $0x1128] sm:$0xf0]  ;;  %v16425_v38 = vld [vmem:[#allocation2 + $0x940] sm:$0xf0] }
 0x364   :  { %8513 = vmatpush.bf16.msrb.mxu0 %v14339_v5  ;;  %v14063_v5 = vor.u32 %v16919_v53, %v14060_v56  ;;  %v17766_v49 = vpop.f32.mrf.mxu0 }
 0x365   :  { %8501 = vmatpush.bf16.msra.mxu1 %v13511_v12  ;;  %v17764_v10 = vadd.f32 %v8234_v61, %v8222_v0  ;;  %v13968_v12 = vld [vmem:[#allocation2 + $0x1854] sm:$0xf0]  ;;  %v16862_v61 = vld [vmem:[#allocation2 + $0x16e8] sm:$0xf0] }
 0x366   :  { %8526 = vmatpush.bf16.msrb.mxu2 %v15075_v9  ;;  %v16896_v9 = vld [vmem:[#allocation2 + $0x17fc] sm:$0xf]  ;;  %v12226_v0 = vld [vmem:[#allocation2 + $0xa58] sm:$0xf] }
 0x367   :  { %8489 = vmatpush.bf16.msrb.mxu3 %v12683_v15  ;;  %v8197_v15 = vpop.f32.mrf.mxu1  ;;  %v13971_v1 = vor.u32 %v16896_v9, %v13968_v12  ;;  %v16655_v9 = vld [vmem:[#allocation2 + $0x1070] sm:$0xf0]  ;;  %v12227_v12 = vor.u32 %v16471_v2, %v12226_v0  ;;  %v16402_v0 = vld [vmem:[#allocation2 + $0x888] sm:$0xf0] }
 0x368   :  { %8514 = vmatpush.bf16.msrb.mxu0 %v14247_v27  ;;  %v12407_v27 = vor.u32 %v16505_v4, %v12404_v6  ;;  %v12962_v6 = vld [vmem:[#allocation2 + $0x1018] sm:$0xf]  ;;  %v11398_v15 = vld [vmem:[#allocation2 + $0x3e0] sm:$0xf] }
 0x369   :  { %8502 = vmatpush.bf16.msra.mxu1 %v13419_v54  ;;  %v12318_v54 = vld [vmem:[#allocation2 + $0xb10] sm:$0xf] }
 0x36a   :  { %8527 = vmatpush.bf16.msrb.mxu2 %v14983_v17  ;;  %v11582_v17 = vld [vmem:[#allocation2 + $0x550] sm:$0xf]  ;;  %v12319_v56 = vor.u32 %v16494_v32, %v12318_v54  ;;  %v16816_v54 = vld [vmem:[#allocation2 + $0x1578] sm:$0xf0]  ;;  %v11306_v32 = vld [vmem:[#allocation2 + $0x328] sm:$0xf] }
 0x36b   :  { %8490 = vmatpush.bf16.msrb.mxu3 %v12591_v33  ;;  %v14707_v33 = vor.u32 %v17080_v16, %v14704_v20  ;;  %v11583_v53 = vor.u32 %v16310_v63, %v11582_v17  ;;  %v12134_v16 = vld [vmem:[#allocation2 + $0x9a0] sm:$0xf]  ;;  %v16448_v20 = vld [vmem:[#allocation2 + $0x9f8] sm:$0xf0] }
 0x36c   :  { %8515 = vmatpush.bf16.msrb.mxu0 %v14155_v44  ;;  %v13143_v44 = vor.u32 %v16689_v25, %v13140_v21  ;;  %v13699_v25 = vor.u32 %v16839_v14, %v13698_v13  ;;  %v12870_v21 = vld [vmem:[#allocation2 + $0xf60] sm:$0xf]  ;;  %v16632_v17 = vld [vmem:[#allocation2 + $0xfb8] sm:$0xf0]  ;;  %v8275_v39 = vpop.f32.mrf.mxu0  ;;  %v16195_v14 = vld [vmem:[#allocation2 + $0x210] sm:$0xf0] }
 0x36d   :  { %8503 = vmatpush.bf16.msra.mxu1 %v13327_v18  ;;  %v13790_v18 = vld [vmem:[#allocation2 + $0x1690] sm:$0xf]  ;;  %v13606_v63 = vld [vmem:[#allocation2 + $0x1520] sm:$0xf]  ;;  %v12871_v42 = vor.u32 %v16632_v17, %v12870_v21  ;;  %v12594_v17 = vld [vmem:[#allocation2 + $0xd38] sm:$0xf] }
 0x36e   :  { %8528 = vmatpush.bf16.msrb.mxu2 %v14891_v46  ;;  %v8236_v46 = vpop.f32.mrf.mxu2  ;;  %v13791_v4 = vor.u32 %v16862_v61, %v13790_v18  ;;  %v13607_v28 = vor.u32 %v16816_v54, %v13606_v63  ;;  %v13514_v18 = vld [vmem:[#allocation2 + $0x1468] sm:$0xf]  ;;  %v16793_v61 = vld [vmem:[#allocation2 + $0x14c0] sm:$0xf0]  ;;  %v11766_v39 = vld [vmem:[#allocation2 + $0x6c0] sm:$0xf] }
 0x36f   :  { %8491 = vmatpush.bf16.msrb.mxu3 %v12499_v58  ;;  %v16287_v58 = vld [vmem:[#allocation2 + $0x4f0] sm:$0xf0] }
 0x370   :  { %8516 = vmatpush.bf16.msrb.mxu0 %v14063_v5  ;;  %v13055_v5 = vor.u32 %v16678_v47, %v13054_v40  ;;  %v12778_v40 = vld [vmem:[#allocation2 + $0xea8] sm:$0xf]  ;;  %v16609_v47 = vld [vmem:[#allocation2 + $0xf00] sm:$0xf0] }
 0x371   :  { %8504 = vmatpush.bf16.msra.mxu1 %v13235_v59  ;;  %v16264_v59 = vld [vmem:[#allocation2 + $0x438] sm:$0xf0]  ;;  %v12779_v2 = vor.u32 %v16609_v47, %v12778_v40 }
 0x372   :  { %8529 = vmatpush.bf16.msrb.mxu2 %v14799_v11  ;;  %v11491_v11 = vor.u32 %v16287_v58, %v11490_v50  ;;  %v11214_v50 = vld [vmem:[#allocation2 + $0x270] sm:$0xf] }
 0x373   :  { %8492 = vmatpush.bf16.msrb.mxu3 %v12407_v27  ;;  %v12963_v27 = vor.u32 %v16655_v9, %v12962_v6  ;;  %v11950_v58 = vld [vmem:[#allocation2 + $0x830] sm:$0xf] }
 0x374   :  { %8517 = vmatpush.bf16.msrb.mxu0 %v13971_v1  ;;  %v11399_v1 = vor.u32 %v16264_v59, %v11398_v15  ;;  %v13422_v9 = vld [vmem:[#allocation2 + $0x13b0] sm:$0xf]  ;;  %v11858_v15 = vld [vmem:[#allocation2 + $0x778] sm:$0xf]  ;;  %v16379_v59 = vld [vmem:[#allocation2 + $0x7d0] sm:$0xf0] }
 0x375   :  { %8505 = vmatpush.bf16.msra.mxu1 %v13143_v44  ;;  %v8247_v44 = vpop.f32.mrf.mxu1  ;;  %v11859_v54 = vor.u32 %v16379_v59, %v11858_v15 }
 0x376   :  { %8530 = vmatpush.bf16.msrb.mxu2 %v14707_v33  ;;  %8493 = vmatmul.bf16.vlgmr.msrb.gmra.mxu3 %v17512_v51  ;;  %v12042_v33 = vld [vmem:[#allocation2 + $0x8e8] sm:$0xf]  ;;  %v8248_v46 = vadd.f32 %v8247_v44, %v17764_v10  ;;  %v11951_v10 = vor.u32 %v16402_v0, %v11950_v58  ;;  %v16333_v0 = vld [vmem:[#allocation2 + $0x660] sm:$0xf0] }
 0x377   :  { %8544 = vmatpush.bf16.msra.mxu3 %v15351_v29  ;;  %v12135_v29 = vor.u32 %v16448_v20, %v12134_v16  ;;  %v11674_v58 = vld [vmem:[#allocation2 + $0x608] sm:$0xf] }
 0x378   :  { %8518 = vmatpush.bf16.msrb.mxu0 %v13879_v62  ;;  %8506 = vmatmul.bf16.vlgmr.msra.gmra.mxu1 %v17516_v57  ;;  %v16218_v62 = vld [vmem:[#allocation2 + $0x2c8] sm:$0xf0]  ;;  %v11675_v59 = vor.u32 %v16333_v0, %v11674_v58 }
 0x379   :  { %8550 = vmatpush.bf16.msrb.mxu1 %v11583_v53  ;;  %v11307_v53 = vor.u32 %v16241_v34, %v11306_v32  ;;  %v11215_v6 = vor.u32 %v16218_v62, %v11214_v50  ;;  %v8260_v13 = vpop.f32.mrf.mxu3  ;;  %v13330_v32 = vld [vmem:[#allocation2 + $0x12f8] sm:$0xf]  ;;  %v16747_v34 = vld [vmem:[#allocation2 + $0x1350] sm:$0xf0]  ;;  %v10938_v50 = vld [vmem:[#allocation2 + $0x48] sm:$0xf] }
 0x37a   :  { %8531 = vmatpush.bf16.msrb.mxu2 %v14615_v3  ;;  %v13515_v3 = vor.u32 %v16793_v61, %v13514_v18  ;;  %v8261_v16 = vadd.f32 %v8260_v13, %v8248_v46  ;;  %v13331_v47 = vor.u32 %v16747_v34, %v13330_v32  ;;  %v12502_v46 = vld [vmem:[#allocation2 + $0xc80] sm:$0xf]  ;;  %v16724_v61 = vld [vmem:[#allocation2 + $0x1298] sm:$0xf0]  ;;  %v16149_v62 = vld [vmem:[#allocation2 + $0xa0] sm:$0xf0] }
 0x37b   :  { %8563 = vmatpush.bf16.msrb.mxu3 %v12319_v56  ;;  %8519 = vmatmul.bf16.vlgmr.msrb.gmra.mxu0 %v17540_v30  ;;  %v12043_v56 = vor.u32 %v16425_v38, %v12042_v33  ;;  %v11030_v33 = vld [vmem:[#allocation2 + $0x100] sm:$0xf]  ;;  %v16172_v38 = vld [vmem:[#allocation2 + $0x158] sm:$0xf0]  ;;  %v16517_v13 = vld [vmem:[#allocation2 + $0xc20] sm:$0xf0]  ;;  %v10939_v15 = vor.u32 %v16149_v62, %v10938_v50 }
 0x37c   :  { %8576 = vmatpush.bf16.msra.mxu0 %v13055_v5  ;;  %v12686_v5 = vld [vmem:[#allocation2 + $0xdf0] sm:$0xf]  ;;  %v8286_v44 = vpop.f32.mrf.mxu2  ;;  %v17023_v34 = vld [vmem:[#allocation2 + $0x1bf0] sm:$0xf0]  ;;  %v15078_v50 = vld [vmem:[#allocation2 + $0x20a0] sm:$0xf] }
 0x37d   :  { %8551 = vmatpush.bf16.msrb.mxu1 %v11491_v11  ;;  %8532 = vmatmul.bf16.vlgmr.msrb.gmra.mxu2 %v17542_v35  ;;  %v16770_v11 = vld [vmem:[#allocation2 + $0x1408] sm:$0xf0]  ;;  %v8249_v21 = vpop.f32.mrf.mxu1  ;;  %v17184_v62 = vld [vmem:[#allocation2 + $0x20f8] sm:$0xf0] }
 0x37e   :  { %8589 = vmatpush.bf16.msra.mxu2 %v13791_v4  ;;  %v16586_v4 = vld [vmem:[#allocation2 + $0xe48] sm:$0xf0] }
 0x37f   :  { %8564 = vmatpush.bf16.msrb.mxu3 %v12227_v12  ;;  %v11122_v12 = vld [vmem:[#allocation2 + $0x1b8] sm:$0xf]  ;;  %v12687_v20 = vor.u32 %v16586_v4, %v12686_v5  ;;  %v17046_v4 = vld [vmem:[#allocation2 + $0x1ca8] sm:$0xf0] }
 0x380   :  { %8577 = vmatpush.bf16.msra.mxu0 %v12963_v27  ;;  %v8299_v27 = vpop.f32.mrf.mxu0  ;;  %v11123_v63 = vor.u32 %v16195_v14, %v11122_v12  ;;  %v12410_v12 = vld [vmem:[#allocation2 + $0xbc8] sm:$0xf] }
 0x381   :  { %8552 = vmatpush.bf16.msrb.mxu1 %v11399_v1  ;;  %v16563_v1 = vld [vmem:[#allocation2 + $0xd90] sm:$0xf0]  ;;  %v17778_v40 = vadd.f32 %v8299_v27, %v8286_v44  ;;  %v13146_v14 = vld [vmem:[#allocation2 + $0x1188] sm:$0xf]  ;;  %v17253_v27 = vld [vmem:[#allocation2 + $0x2320] sm:$0xf0]  ;;  %v12411_v32 = vor.u32 %v16517_v13, %v12410_v12 }
 0x382   :  { %8590 = vmatpush.bf16.msra.mxu2 %v13699_v25  ;;  %v13423_v25 = vor.u32 %v16770_v11, %v13422_v9  ;;  %v14986_v12 = vld [vmem:[#allocation2 + $0x1fe8] sm:$0xf]  ;;  %v17161_v13 = vld [vmem:[#allocation2 + $0x2040] sm:$0xf0] }
 0x383   :  { %8565 = vmatpush.bf16.msrb.mxu3 %v12135_v29  ;;  %v17776_v29 = vadd.f32 %v17766_v49, %v8261_v16  ;;  %v16540_v49 = vld [vmem:[#allocation2 + $0xcd8] sm:$0xf0]  ;;  %v16701_v16 = vld [vmem:[#allocation2 + $0x11e0] sm:$0xf0] }
 0x384   :  { %8578 = vmatpush.bf16.msra.mxu0 %v12871_v42  ;;  %v16356_v42 = vld [vmem:[#allocation2 + $0x718] sm:$0xf0]  ;;  %v12503_v5 = vor.u32 %v16540_v49, %v12502_v46 }
 0x385   :  { %8553 = vmatpush.bf16.msrb.mxu1 %v11307_v53  ;;  %v13238_v53 = vld [vmem:[#allocation2 + $0x1240] sm:$0xf]  ;;  %v11767_v18 = vor.u32 %v16356_v42, %v11766_v39  ;;  %v13147_v39 = vor.u32 %v16701_v16, %v13146_v14  ;;  %v16437_v16 = vld [vmem:[#allocation2 + $0x9a4] sm:$0xf] }
 0x386   :  { %8591 = vmatpush.bf16.msra.mxu2 %v13607_v28  ;;  %15389 = vmatmul.msk.bf16.vlgmr.msra.gmra.mxu3 %vm6908_vm0, %v17530_v45  ;;  %v12595_v28 = vor.u32 %v16563_v1, %v12594_v17  ;;  %v13239_v11 = vor.u32 %v16724_v61, %v13238_v53  ;;  %v16299_v17 = vld [vmem:[#allocation2 + $0x554] sm:$0xf]  ;;  %v11584_v1 = vld [vmem:[#allocation2 + $0x5ac] sm:$0xf0]  ;;  %v16276_v53 = vld [vmem:[#allocation2 + $0x49c] sm:$0xf] }
 0x387   :  { %8566 = vmatpush.bf16.msrb.mxu3 %v12043_v56  ;;  %v11031_v56 = vor.u32 %v16172_v38, %v11030_v33  ;;  %v15170_v33 = vld [vmem:[#allocation2 + $0x2158] sm:$0xf]  ;;  %v17207_v38 = vld [vmem:[#allocation2 + $0x21b0] sm:$0xf0]  ;;  %v11587_v44 = vor.u32 %v16299_v17, %v11584_v1  ;;  %v17000_v61 = vld [vmem:[#allocation2 + $0x1b38] sm:$0xf0] }
 0x388   :  { %8579 = vmatpush.bf16.msra.mxu0 %v12779_v2  ;;  %v14526_v2 = vld [vmem:[#allocation2 + $0x1c50] sm:$0xf]  ;;  %v8301_v9 = vpop.f32.mrf.mxu0  ;;  %v15171_v49 = vor.u32 %v17207_v38, %v15170_v33  ;;  %v16230_v17 = vld [vmem:[#allocation2 + $0x32c] sm:$0xf]  ;;  %v11308_v1 = vld [vmem:[#allocation2 + $0x384] sm:$0xf0] }
 0x389   :  { %8554 = vmatpush.bf16.msrb.mxu1 %v11215_v6  ;;  %v15262_v6 = vld [vmem:[#allocation2 + $0x2210] sm:$0xf]  ;;  %v14250_v9 = vld [vmem:[#allocation2 + $0x1a28] sm:$0xf]  ;;  %v11311_v38 = vor.u32 %v16230_v17, %v11308_v1 }
 0x38a   :  { %8592 = vmatpush.bf16.msra.mxu2 %v13515_v3  ;;  %v8262_v3 = vpop.f32.mrf.mxu3 }
 0x38b   :  { %8567 = vmatpush.bf16.msrb.mxu3 %v11951_v10  ;;  %v17230_v10 = vld [vmem:[#allocation2 + $0x2268] sm:$0xf0]  ;;  %v12228_v3 = vld [vmem:[#allocation2 + $0xab4] sm:$0xf0] }
 0x38c   :  { %8580 = vmatpush.bf16.msra.mxu0 %v12687_v20  ;;  %v15354_v20 = vld [vmem:[#allocation2 + $0x22c8] sm:$0xf]  ;;  %v15263_v21 = vor.u32 %v17230_v10, %v15262_v6  ;;  %v16253_v6 = vld [vmem:[#allocation2 + $0x3e4] sm:$0xf]  ;;  %v11400_v10 = vld [vmem:[#allocation2 + $0x43c] sm:$0xf0] }
 0x38d   :  { %8555 = vmatpush.bf16.msrb.mxu1 %v11123_v63  ;;  %v14434_v63 = vld [vmem:[#allocation2 + $0x1b98] sm:$0xf]  ;;  %v15355_v42 = vor.u32 %v17253_v27, %v15354_v20  ;;  %v12136_v20 = vld [vmem:[#allocation2 + $0x9fc] sm:$0xf0] }
 0x38e   :  { %8593 = vmatpush.bf16.msra.mxu2 %v13423_v25  ;;  %v14527_v25 = vor.u32 %v17046_v4, %v14526_v2  ;;  %v14435_v46 = vor.u32 %v17023_v34, %v14434_v63  ;;  %v16460_v2 = vld [vmem:[#allocation2 + $0xa5c] sm:$0xf]  ;;  %v15079_v4 = vor.u32 %v17184_v62, %v15078_v50  ;;  %v14158_v63 = vld [vmem:[#allocation2 + $0x1970] sm:$0xf]  ;;  %v17138_v34 = vld [vmem:[#allocation2 + $0x1f88] sm:$0xf0]  ;;  %v12139_v33 = vor.u32 %v16437_v16, %v12136_v20 }
 0x38f   :  { %8568 = vmatpush.bf16.msrb.mxu3 %v11859_v54  ;;  %v8288_v54 = vpop.f32.mrf.mxu2  ;;  %v12231_v14 = vor.u32 %v16460_v2, %v12228_v3  ;;  %v16391_v2 = vld [vmem:[#allocation2 + $0x834] sm:$0xf]  ;;  %v11952_v3 = vld [vmem:[#allocation2 + $0x88c] sm:$0xf0]  ;;  %v16368_v20 = vld [vmem:[#allocation2 + $0x77c] sm:$0xf] }
 0x390   :  { %8581 = vmatpush.bf16.msra.mxu0 %v12595_v28  ;;  %v16483_v28 = vld [vmem:[#allocation2 + $0xb14] sm:$0xf]  ;;  %v16954_v54 = vld [vmem:[#allocation2 + $0x19c8] sm:$0xf0] }
 0x391   :  { %8556 = vmatpush.bf16.msrb.mxu1 %v11031_v56  ;;  %v11492_v56 = vld [vmem:[#allocation2 + $0x4f4] sm:$0xf0] }
 0x392   :  { %8594 = vmatpush.bf16.msra.mxu2 %v13331_v47  ;;  %v12320_v47 = vld [vmem:[#allocation2 + $0xb6c] sm:$0xf0]  ;;  %v11495_v0 = vor.u32 %v16276_v53, %v11492_v56  ;;  %v14802_v53 = vld [vmem:[#allocation2 + $0x1e78] sm:$0xf]  ;;  %v17115_v56 = vld [vmem:[#allocation2 + $0x1ed0] sm:$0xf0] }
 0x393   :  { %8569 = vmatpush.bf16.msrb.mxu3 %v11767_v18  ;;  %v14342_v18 = vld [vmem:[#allocation2 + $0x1ae0] sm:$0xf]  ;;  %v12323_v58 = vor.u32 %v16483_v28, %v12320_v47  ;;  %v16207_v28 = vld [vmem:[#allocation2 + $0x274] sm:$0xf]  ;;  %v11216_v47 = vld [vmem:[#allocation2 + $0x2cc] sm:$0xf0] }
 0x394   :  { %8582 = vmatpush.bf16.msra.mxu0 %v12503_v5  ;;  %v14343_v5 = vor.u32 %v17000_v61, %v14342_v18 }
 0x395   :  { %8557 = vmatpush.bf16.msrb.mxu1 %v10939_v15  ;;  %v8312_v15 = vpop.f32.mrf.mxu1 }
 0x396   :  { %8595 = vmatpush.bf16.msra.mxu2 %v13239_v11  ;;  %v16977_v11 = vld [vmem:[#allocation2 + $0x1a80] sm:$0xf0]  ;;  %v8313_v27 = vadd.f32 %v8312_v15, %v17778_v40 }
 0x397   :  { %8570 = vmatpush.bf16.msrb.mxu3 %v11675_v59  ;;  %v11403_v59 = vor.u32 %v16253_v6, %v11400_v10  ;;  %v16184_v6 = vld [vmem:[#allocation2 + $0x1bc] sm:$0xf]  ;;  %v11124_v10 = vld [vmem:[#allocation2 + $0x214] sm:$0xf0] }
 0x398   :  { %8583 = vmatpush.bf16.msra.mxu0 %v12411_v32  ;;  %8558 = vmatmul.bf16.vlgmr.msrb.gmra.mxu1 %v17514_v55  ;;  %v14894_v32 = vld [vmem:[#allocation2 + $0x1f30] sm:$0xf]  ;;  %v8351_v50 = vpop.f32.mrf.mxu0  ;;  %v11127_v16 = vor.u32 %v16184_v6, %v11124_v10  ;;  %v16644_v10 = vld [vmem:[#allocation2 + $0x101c] sm:$0xf] }
 0x399   :  { %8602 = vmatpush.bf16.msra.mxu1 %v14527_v25  ;;  %v14251_v25 = vor.u32 %v16977_v11, %v14250_v9  ;;  %v14895_v40 = vor.u32 %v17138_v34, %v14894_v32  ;;  %v8325_v18 = vpop.f32.mrf.mxu3  ;;  %v13974_v9 = vld [vmem:[#allocation2 + $0x1800] sm:$0xf]  ;;  %v16885_v32 = vld [vmem:[#allocation2 + $0x17a0] sm:$0xf0]  ;;  %v14618_v34 = vld [vmem:[#allocation2 + $0x1d08] sm:$0xf] }
 0x39a   :  { %8596 = vmatpush.bf16.msra.mxu2 %v13147_v39  ;;  %8571 = vmatmul.bf16.vlgmr.msrb.gmra.mxu3 %v17523_v7  ;;  %v16414_v39 = vld [vmem:[#allocation2 + $0x8ec] sm:$0xf]  ;;  %v8326_v62 = vadd.f32 %v8325_v18, %v8313_v27  ;;  %v11860_v27 = vld [vmem:[#allocation2 + $0x7d4] sm:$0xf0] }
 0x39b   :  { %8615 = vmatpush.bf16.msra.mxu3 %v15263_v21  ;;  %8584 = vmatmul.bf16.vlgmr.msra.gmra.mxu0 %v17512_v51  ;;  %v14987_v21 = vor.u32 %v17161_v13, %v14986_v12  ;;  %v16908_v12 = vld [vmem:[#allocation2 + $0x1858] sm:$0xf0]  ;;  %v14710_v13 = vld [vmem:[#allocation2 + $0x1dc0] sm:$0xf] }
 0x39c   :  { %8635 = vmatpush.bf16.msrb.mxu0 %v15355_v42  ;;  %v12044_v42 = vld [vmem:[#allocation2 + $0x944] sm:$0xf0]  ;;  %v8338_v11 = vpop.f32.mrf.mxu2  ;;  %v13975_v17 = vor.u32 %v16908_v12, %v13974_v9  ;;  %v12964_v9 = vld [vmem:[#allocation2 + $0x1074] sm:$0xf0] }
 0x39d   :  { %8603 = vmatpush.bf16.msra.mxu1 %v14435_v46  ;;  %8597 = vmatmul.bf16.vlgmr.msra.gmra.mxu2 %v17516_v57  ;;  %v14066_v46 = vld [vmem:[#allocation2 + $0x18b8] sm:$0xf]  ;;  %v12047_v61 = vor.u32 %v16414_v39, %v12044_v42  ;;  %v8339_v15 = vadd.f32 %v8338_v11, %v8326_v62  ;;  %v11863_v39 = vor.u32 %v16368_v20, %v11860_v27  ;;  %v13056_v42 = vld [vmem:[#allocation2 + $0x112c] sm:$0xf0]  ;;  %v16138_v62 = vld [vmem:[#allocation2 + $0x4c] sm:$0xf] }
 0x39e   :  { %8641 = vmatpush.bf16.msrb.mxu2 %v11587_v44  ;;  %v14159_v44 = vor.u32 %v16954_v54, %v14158_v63  ;;  %v11032_v63 = vld [vmem:[#allocation2 + $0x15c] sm:$0xf0]  ;;  %v13882_v54 = vld [vmem:[#allocation2 + $0x1748] sm:$0xf]  ;;  %v16828_v11 = vld [vmem:[#allocation2 + $0x15dc] sm:$0xf]  ;;  %v12967_v27 = vor.u32 %v16644_v10, %v12964_v9 }
 0x39f   :  { %8616 = vmatpush.bf16.msra.mxu3 %v15171_v49  ;;  %v16931_v49 = vld [vmem:[#allocation2 + $0x1910] sm:$0xf0]  ;;  %v13700_v12 = vld [vmem:[#allocation2 + $0x1634] sm:$0xf0]  ;;  %v12688_v10 = vld [vmem:[#allocation2 + $0xe4c] sm:$0xf0] }
 0x3a0   :  { %8654 = vmatpush.bf16.msra.mxu0 %v12323_v58  ;;  %v8314_v58 = vpop.f32.mrf.mxu1 }
 0x3a1   :  { %8604 = vmatpush.bf16.msra.mxu1 %v14343_v5  ;;  %v14067_v5 = vor.u32 %v16931_v49, %v14066_v46 }
 0x3a2   :  { %8642 = vmatpush.bf16.msrb.mxu2 %v11495_v0  ;;  %v11219_v0 = vor.u32 %v16207_v28, %v11216_v47  ;;  %v8327_v28 = vpop.f32.mrf.mxu3  ;;  %v8353_v47 = vpop.f32.mrf.mxu0 }
 0x3a3   :  { %8617 = vmatpush.bf16.msra.mxu3 %v15079_v4  ;;  %v14803_v4 = vor.u32 %v17115_v56, %v14802_v53  ;;  %v16345_v53 = vld [vmem:[#allocation2 + $0x6c4] sm:$0xf]  ;;  %v11768_v56 = vld [vmem:[#allocation2 + $0x71c] sm:$0xf0] }
 0x3a4   :  { %8655 = vmatpush.bf16.msra.mxu0 %v12231_v14  ;;  %v17092_v14 = vld [vmem:[#allocation2 + $0x1e18] sm:$0xf0]  ;;  %v11771_v6 = vor.u32 %v16345_v53, %v11768_v56  ;;  %v16989_v28 = vld [vmem:[#allocation2 + $0x1ae4] sm:$0xf]  ;;  %v12780_v53 = vld [vmem:[#allocation2 + $0xf04] sm:$0xf0] }
 0x3a5   :  { %8605 = vmatpush.bf16.msra.mxu1 %v14251_v25  ;;  %v16161_v25 = vld [vmem:[#allocation2 + $0x104] sm:$0xf]  ;;  %v14711_v1 = vor.u32 %v17092_v14, %v14710_v13  ;;  %v16322_v13 = vld [vmem:[#allocation2 + $0x60c] sm:$0xf]  ;;  %v11676_v14 = vld [vmem:[#allocation2 + $0x664] sm:$0xf0] }
 0x3a6   :  { %8643 = vmatpush.bf16.msrb.mxu2 %v11403_v59  ;;  %v11955_v59 = vor.u32 %v16391_v2, %v11952_v3  ;;  %v11035_v49 = vor.u32 %v16161_v25, %v11032_v63  ;;  %v10940_v2 = vld [vmem:[#allocation2 + $0xa4] sm:$0xf0]  ;;  %v17035_v3 = vld [vmem:[#allocation2 + $0x1c54] sm:$0xf]  ;;  %v17012_v25 = vld [vmem:[#allocation2 + $0x1b9c] sm:$0xf] }
 0x3a7   :  { %8618 = vmatpush.bf16.msra.mxu3 %v14987_v21  ;;  %v8352_v21 = vadd.f32 %v8351_v50, %v8339_v15  ;;  %v10943_v15 = vor.u32 %v16138_v62, %v10940_v2  ;;  %v16621_v63 = vld [vmem:[#allocation2 + $0xf64] sm:$0xf] }
 0x3a8   :  { %8656 = vmatpush.bf16.msra.mxu0 %v12139_v33  ;;  %v17069_v33 = vld [vmem:[#allocation2 + $0x1d60] sm:$0xf0]  ;;  %v8364_v46 = vpop.f32.mrf.mxu1 }
 0x3a9   :  { %8606 = vmatpush.bf16.msra.mxu1 %v14159_v44  ;;  %v16851_v44 = vld [vmem:[#allocation2 + $0x1694] sm:$0xf]  ;;  %v17787_v18 = vadd.f32 %v8364_v46, %v8352_v21  ;;  %v14619_v50 = vor.u32 %v17069_v33, %v14618_v34  ;;  %v13703_v21 = vor.u32 %v16828_v11, %v13700_v12  ;;  %v16805_v34 = vld [vmem:[#allocation2 + $0x1524] sm:$0xf]  ;;  %v13608_v33 = vld [vmem:[#allocation2 + $0x157c] sm:$0xf0] }
 0x3aa   :  { %8644 = vmatpush.bf16.msrb.mxu2 %v11311_v38  ;;  %v16667_v38 = vld [vmem:[#allocation2 + $0x10d4] sm:$0xf]  ;;  %v13611_v47 = vor.u32 %v16805_v34, %v13608_v33  ;;  %v14344_v46 = vld [vmem:[#allocation2 + $0x1b3c] sm:$0xf0]  ;;  %v17173_v62 = vld [vmem:[#allocation2 + $0x20a4] sm:$0xf] }
 0x3ab   :  { %8619 = vmatpush.bf16.msra.mxu3 %v14895_v40  ;;  %15390 = vmatmul.msk.bf16.vlgmr.msrb.gmra.mxu0 %vm6908_vm0, %v17530_v45  ;;  %v13792_v40 = vld [vmem:[#allocation2 + $0x16ec] sm:$0xf0]  ;;  %v13059_v58 = vor.u32 %v16667_v38, %v13056_v42  ;;  %v15172_v42 = vld [vmem:[#allocation2 + $0x21b4] sm:$0xf0]  ;;  %v16759_v11 = vld [vmem:[#allocation2 + $0x13b4] sm:$0xf] }
 0x3ac   :  { %8657 = vmatpush.bf16.msra.mxu0 %v12047_v61  ;;  %v13883_v61 = vor.u32 %v16885_v32, %v13882_v54  ;;  %v12872_v54 = vld [vmem:[#allocation2 + $0xfbc] sm:$0xf0]  ;;  %v13424_v12 = vld [vmem:[#allocation2 + $0x140c] sm:$0xf0]  ;;  %v17127_v34 = vld [vmem:[#allocation2 + $0x1f34] sm:$0xf] }
 0x3ad   :  { %8607 = vmatpush.bf16.msra.mxu1 %v14067_v5  ;;  %v14528_v5 = vld [vmem:[#allocation2 + $0x1cac] sm:$0xf0] }
 0x3ae   :  { %8645 = vmatpush.bf16.msrb.mxu2 %v11219_v0  ;;  %v13795_v0 = vor.u32 %v16851_v44, %v13792_v40  ;;  %v14531_v20 = vor.u32 %v17035_v3, %v14528_v5  ;;  %v12875_v40 = vor.u32 %v16621_v63, %v12872_v54  ;;  %v16966_v3 = vld [vmem:[#allocation2 + $0x1a2c] sm:$0xf]  ;;  %v16736_v54 = vld [vmem:[#allocation2 + $0x12fc] sm:$0xf]  ;;  %v14896_v33 = vld [vmem:[#allocation2 + $0x1f8c] sm:$0xf0] }
 0x3af   :  { %8620 = vmatpush.bf16.msra.mxu3 %v14803_v4  ;;  %v8340_v4 = vpop.f32.mrf.mxu2 }
 0x3b0   :  { %8658 = vmatpush.bf16.msra.mxu0 %v11955_v59  ;;  %v17219_v59 = vld [vmem:[#allocation2 + $0x2214] sm:$0xf]  ;;  %v8366_v38 = vpop.f32.mrf.mxu1  ;;  %v14252_v4 = vld [vmem:[#allocation2 + $0x1a84] sm:$0xf0] }
 0x3b1   :  { %8608 = vmatpush.bf16.msra.mxu1 %v13975_v17  ;;  %v11679_v17 = vor.u32 %v16322_v13, %v11676_v14  ;;  %v17150_v13 = vld [vmem:[#allocation2 + $0x1fec] sm:$0xf]  ;;  %v14988_v14 = vld [vmem:[#allocation2 + $0x2044] sm:$0xf0] }
 0x3b2   :  { %8646 = vmatpush.bf16.msrb.mxu2 %v11127_v16  ;;  %v15264_v16 = vld [vmem:[#allocation2 + $0x226c] sm:$0xf0] }
 0x3b3   :  { %8621 = vmatpush.bf16.msra.mxu3 %v14711_v1  ;;  %v14436_v1 = vld [vmem:[#allocation2 + $0x1bf4] sm:$0xf0]  ;;  %v15267_v32 = vor.u32 %v17219_v59, %v15264_v16  ;;  %v16943_v16 = vld [vmem:[#allocation2 + $0x1974] sm:$0xf] }
 0x3b4   :  { %8659 = vmatpush.bf16.msra.mxu0 %v11863_v39  ;;  %v17196_v39 = vld [vmem:[#allocation2 + $0x215c] sm:$0xf]  ;;  %v14439_v44 = vor.u32 %v17012_v25, %v14436_v1  ;;  %v14991_v1 = vor.u32 %v17150_v13, %v14988_v14 }
 0x3b5   :  { %8609 = vmatpush.bf16.msra.mxu1 %v13883_v61  ;;  %v15175_v56 = vor.u32 %v17196_v39, %v15172_v42  ;;  %v16782_v61 = vld [vmem:[#allocation2 + $0x146c] sm:$0xf]  ;;  %v16552_v25 = vld [vmem:[#allocation2 + $0xd3c] sm:$0xf] }
 0x3b6   :  { %8647 = vmatpush.bf16.msrb.mxu2 %v11035_v49  ;;  %v16598_v49 = vld [vmem:[#allocation2 + $0xeac] sm:$0xf]  ;;  %v16920_v42 = vld [vmem:[#allocation2 + $0x18bc] sm:$0xf] }
 0x3b7   :  { %8622 = vmatpush.bf16.msra.mxu3 %v14619_v50  ;;  %v13516_v50 = vld [vmem:[#allocation2 + $0x14c4] sm:$0xf0]  ;;  %v12783_v2 = vor.u32 %v16598_v49, %v12780_v53  ;;  %v14899_v53 = vor.u32 %v17127_v34, %v14896_v33 }
 0x3b8   :  { %8660 = vmatpush.bf16.msra.mxu0 %v11771_v6  ;;  %8610 = vmatmul.bf16.vlgmr.msra.gmra.mxu1 %v17540_v30  ;;  %v13519_v5 = vor.u32 %v16782_v61, %v13516_v50  ;;  %v16575_v6 = vld [vmem:[#allocation2 + $0xdf4] sm:$0xf]  ;;  %v8390_v63 = vpop.f32.mrf.mxu1  ;;  %v13240_v61 = vld [vmem:[#allocation2 + $0x129c] sm:$0xf0] }
 0x3b9   :  { %8667 = vmatpush.bf16.msrb.mxu1 %v13059_v58  ;;  %v15080_v58 = vld [vmem:[#allocation2 + $0x20fc] sm:$0xf0]  ;;  %v12691_v59 = vor.u32 %v16575_v6, %v12688_v10  ;;  %v8377_v49 = vpop.f32.mrf.mxu3 }
 0x3ba   :  { %8623 = vmatmul.bf16.vlgmr.msra.gmra.mxu3 %v17542_v35  ;;  %8648 = vmatpush.bf16.msrb.mxu2 %v10943_v15  ;;  %v15083_v9 = vor.u32 %v17173_v62, %v15080_v58  ;;  %v14255_v15 = vor.u32 %v16966_v3, %v14252_v4  ;;  %v8391_v50 = vadd.f32 %v8390_v63, %v8377_v49  ;;  %v17104_v62 = vld [vmem:[#allocation2 + $0x1e7c] sm:$0xf]  ;;  %v14804_v58 = vld [vmem:[#allocation2 + $0x1ed4] sm:$0xf0]  ;;  %v16897_v3 = vld [vmem:[#allocation2 + $0x1804] sm:$0xf] }
 0x3bb   :  { %8680 = vmatpush.bf16.msrb.mxu3 %v13795_v0  ;;  %v14347_v0 = vor.u32 %v16989_v28, %v14344_v46  ;;  %v14068_v28 = vld [vmem:[#allocation2 + $0x1914] sm:$0xf0]  ;;  %v12504_v46 = vld [vmem:[#allocation2 + $0xcdc] sm:$0xf0]  ;;  %v16506_v4 = vld [vmem:[#allocation2 + $0xbcc] sm:$0xf]  ;;  %v14807_v14 = vor.u32 %v17104_v62, %v14804_v58 }
 0x3bc   :  { %8661 = vmatpush.bf16.msra.mxu0 %v11679_v17  ;;  %v8416_v17 = vpop.f32.mrf.mxu0  ;;  %v13798_v62 = vld [vmem:[#allocation2 + $0x1698] sm:$0xf]  ;;  %v16863_v58 = vld [vmem:[#allocation2 + $0x16f0] sm:$0xf0] }
 0x3bd   :  { %8668 = vmatpush.bf16.msrb.mxu1 %v12967_v27  ;;  %8649 = vmatmul.bf16.vlgmr.msrb.gmra.mxu2 %v17514_v55  ;;  %v14160_v27 = vld [vmem:[#allocation2 + $0x19cc] sm:$0xf0] }
 0x3be   :  { %8693 = vmatpush.bf16.msra.mxu2 %v14531_v20  ;;  %v13427_v20 = vor.u32 %v16759_v11, %v13424_v12  ;;  %v14163_v38 = vor.u32 %v16943_v16, %v14160_v27  ;;  %v16690_v11 = vld [vmem:[#allocation2 + $0x118c] sm:$0xf]  ;;  %v13148_v12 = vld [vmem:[#allocation2 + $0x11e4] sm:$0xf0] }
 0x3bf   :  { %8681 = vmatpush.bf16.msrb.mxu3 %v13703_v21  ;;  %8662 = vmatmul.bf16.vlgmr.msra.gmra.mxu0 %v17523_v7  ;;  %v12596_v21 = vld [vmem:[#allocation2 + $0xd94] sm:$0xf0]  ;;  %v15356_v16 = vld [vmem:[#allocation2 + $0x2324] sm:$0xf0]  ;;  %v13151_v33 = vor.u32 %v16690_v11, %v13148_v12  ;;  %v13799_v11 = vor.u32 %v16863_v58, %v13798_v62 }
 0x3c0   :  { %8706 = vmatpush.bf16.msrb.mxu0 %v15267_v32  ;;  %v13332_v32 = vld [vmem:[#allocation2 + $0x1354] sm:$0xf0]  ;;  %v12599_v39 = vor.u32 %v16552_v25, %v12596_v21  ;;  %v16311_v25 = vld [vmem:[#allocation2 + $0x5b0] sm:$0xf0]  ;;  %v17081_v21 = vld [vmem:[#allocation2 + $0x1dc4] sm:$0xf] }
 0x3c1   :  { %8669 = vmatpush.bf16.msrb.mxu1 %v12875_v40  ;;  %v13335_v40 = vor.u32 %v16736_v54, %v13332_v32  ;;  %v16874_v32 = vld [vmem:[#allocation2 + $0x174c] sm:$0xf]  ;;  %v8379_v49 = vpop.f32.mrf.mxu3  ;;  %v11406_v12 = vld [vmem:[#allocation2 + $0x3e8] sm:$0xf] }
 0x3c2   :  { %8694 = vmatpush.bf16.msra.mxu2 %v14439_v44  ;;  %v8403_v44 = vpop.f32.mrf.mxu2 }
 0x3c3   :  { %8682 = vmatpush.bf16.msrb.mxu3 %v13611_v47  ;;  %v16529_v47 = vld [vmem:[#allocation2 + $0xc84] sm:$0xf]  ;;  %v8404_v6 = vadd.f32 %v8403_v44, %v8391_v50  ;;  %v16495_v44 = vld [vmem:[#allocation2 + $0xb70] sm:$0xf0] }
 0x3c4   :  { %8707 = vmatpush.bf16.msrb.mxu0 %v15175_v56  ;;  %v16713_v56 = vld [vmem:[#allocation2 + $0x1244] sm:$0xf]  ;;  %v8418_v13 = vpop.f32.mrf.mxu0 }
 0x3c5   :  { %8670 = vmatpush.bf16.msrb.mxu1 %v12783_v2  ;;  %v12507_v2 = vor.u32 %v16529_v47, %v12504_v46  ;;  %v13243_v10 = vor.u32 %v16713_v56, %v13240_v61  ;;  %v17793_v27 = vadd.f32 %v8416_v17, %v8404_v6  ;;  %v13062_v17 = vld [vmem:[#allocation2 + $0x10d8] sm:$0xf]  ;;  %v16679_v47 = vld [vmem:[#allocation2 + $0x1130] sm:$0xf0]  ;;  %v11498_v46 = vld [vmem:[#allocation2 + $0x4a0] sm:$0xf] }
 0x3c6   :  { %8695 = vmatpush.bf16.msra.mxu2 %v14347_v0  ;;  %v14071_v0 = vor.u32 %v16920_v42, %v14068_v28  ;;  %v12326_v42 = vld [vmem:[#allocation2 + $0xb18] sm:$0xf]  ;;  %v17058_v56 = vld [vmem:[#allocation2 + $0x1d0c] sm:$0xf]  ;;  %v14620_v61 = vld [vmem:[#allocation2 + $0x1d64] sm:$0xf0] }
 0x3c7   :  { %8683 = vmatpush.bf16.msrb.mxu3 %v13519_v5  ;;  %v13976_v5 = vld [vmem:[#allocation2 + $0x185c] sm:$0xf0]  ;;  %v16472_v6 = vld [vmem:[#allocation2 + $0xab8] sm:$0xf0]  ;;  %v16265_v13 = vld [vmem:[#allocation2 + $0x440] sm:$0xf0] }
 0x3c8   :  { %8708 = vmatpush.bf16.msrb.mxu0 %v15083_v9  ;;  %v12412_v9 = vld [vmem:[#allocation2 + $0xc24] sm:$0xf0]  ;;  %v13979_v63 = vor.u32 %v16897_v3, %v13976_v5  ;;  %v12234_v3 = vld [vmem:[#allocation2 + $0xa60] sm:$0xf] }
 0x3c9   :  { %8671 = vmatpush.bf16.msrb.mxu1 %v12691_v59  ;;  %v17242_v59 = vld [vmem:[#allocation2 + $0x22cc] sm:$0xf]  ;;  %v12415_v54 = vor.u32 %v16506_v4, %v12412_v9  ;;  %v14623_v4 = vor.u32 %v17058_v56, %v14620_v61  ;;  %v16656_v9 = vld [vmem:[#allocation2 + $0x1078] sm:$0xf0]  ;;  %v16219_v56 = vld [vmem:[#allocation2 + $0x2d0] sm:$0xf0] }
 0x3ca   :  { %8696 = vmatpush.bf16.msra.mxu2 %v14255_v15  ;;  %v11590_v15 = vld [vmem:[#allocation2 + $0x558] sm:$0xf]  ;;  %v8405_v34 = vpop.f32.mrf.mxu2  ;;  %v13522_v61 = vld [vmem:[#allocation2 + $0x1470] sm:$0xf] }
 0x3cb   :  { %8684 = vmatpush.bf16.msrb.mxu3 %v13427_v20  ;;  %v8392_v20 = vpop.f32.mrf.mxu1  ;;  %v11314_v34 = vld [vmem:[#allocation2 + $0x330] sm:$0xf] }
 0x3cc   :  { %8709 = vmatpush.bf16.msrb.mxu0 %v14991_v1  ;;  %v14712_v1 = vld [vmem:[#allocation2 + $0x1e1c] sm:$0xf0]  ;;  %v12142_v20 = vld [vmem:[#allocation2 + $0x9a8] sm:$0xf] }
 0x3cd   :  { %8672 = vmatpush.bf16.msrb.mxu1 %v12599_v39  ;;  %v15359_v39 = vor.u32 %v17242_v59, %v15356_v16  ;;  %v14715_v28 = vor.u32 %v17081_v21, %v14712_v1  ;;  %v12235_v59 = vor.u32 %v16472_v6, %v12234_v3  ;;  %v11407_v21 = vor.u32 %v16265_v13, %v11406_v12  ;;  %v16449_v1 = vld [vmem:[#allocation2 + $0xa00] sm:$0xf0]  ;;  %v12694_v6 = vld [vmem:[#allocation2 + $0xdf8] sm:$0xf]  ;;  %v11130_v13 = vld [vmem:[#allocation2 + $0x1c0] sm:$0xf] }
 0x3ce   :  { %8697 = vmatpush.bf16.msra.mxu2 %v14163_v38  ;;  %v13884_v38 = vld [vmem:[#allocation2 + $0x17a4] sm:$0xf0] }
 0x3cf   :  { %8685 = vmatpush.bf16.msrb.mxu3 %v13335_v40  ;;  %v11591_v40 = vor.u32 %v16311_v25, %v11590_v15  ;;  %v13887_v50 = vor.u32 %v16874_v32, %v13884_v38  ;;  %v16840_v15 = vld [vmem:[#allocation2 + $0x1638] sm:$0xf0]  ;;  %v13614_v38 = vld [vmem:[#allocation2 + $0x1528] sm:$0xf] }
 0x3d0   :  { %8710 = vmatpush.bf16.msrb.mxu0 %v14899_v53  ;;  %v16288_v53 = vld [vmem:[#allocation2 + $0x4f8] sm:$0xf0] }
 0x3d1   :  { %8673 = vmatpush.bf16.msrb.mxu1 %v12507_v2  ;;  %v13063_v2 = vor.u32 %v16679_v47, %v13062_v17  ;;  %v11499_v5 = vor.u32 %v16288_v53, %v11498_v46  ;;  %v16426_v17 = vld [vmem:[#allocation2 + $0x948] sm:$0xf0]  ;;  %v12786_v47 = vld [vmem:[#allocation2 + $0xeb0] sm:$0xf]  ;;  %v11222_v53 = vld [vmem:[#allocation2 + $0x278] sm:$0xf] }
 0x3d2   :  { %8698 = vmatpush.bf16.msra.mxu2 %v14071_v0  ;;  %v12327_v0 = vor.u32 %v16495_v44, %v12326_v42  ;;  %v17797_v25 = vpop.f32.mrf.mxu2  ;;  %v12143_v42 = vor.u32 %v16449_v1, %v12142_v20  ;;  %v16610_v46 = vld [vmem:[#allocation2 + $0xf08] sm:$0xf0]  ;;  %v11866_v1 = vld [vmem:[#allocation2 + $0x780] sm:$0xf] }
 0x3d3   :  { %8686 = vmatpush.bf16.msrb.mxu3 %v13243_v10  ;;  %v12970_v10 = vld [vmem:[#allocation2 + $0x1020] sm:$0xf]  ;;  %v12787_v58 = vor.u32 %v16610_v46, %v12786_v47  ;;  %v11774_v47 = vld [vmem:[#allocation2 + $0x6c8] sm:$0xf] }
 0x3d4   :  { %8711 = vmatpush.bf16.msrb.mxu0 %v14807_v14  ;;  %v13706_v14 = vld [vmem:[#allocation2 + $0x15e0] sm:$0xf]  ;;  %v12971_v16 = vor.u32 %v16656_v9, %v12970_v10  ;;  %v16587_v10 = vld [vmem:[#allocation2 + $0xe50] sm:$0xf0] }
 0x3d5   :  { %8674 = vmatpush.bf16.msrb.mxu1 %v12415_v54  ;;  %v16633_v54 = vld [vmem:[#allocation2 + $0xfc0] sm:$0xf0]  ;;  %v13707_v32 = vor.u32 %v16840_v15, %v13706_v14  ;;  %v16196_v14 = vld [vmem:[#allocation2 + $0x218] sm:$0xf0] }
 0x3d6   :  { %8699 = vmatpush.bf16.msra.mxu2 %v13979_v63  ;;  %v12878_v63 = vld [vmem:[#allocation2 + $0xf68] sm:$0xf] }
 0x3d7   :  { %8687 = vmatpush.bf16.msrb.mxu3 %v13151_v33  ;;  %v16242_v33 = vld [vmem:[#allocation2 + $0x388] sm:$0xf0]  ;;  %v12879_v44 = vor.u32 %v16633_v54, %v12878_v63  ;;  %v11131_v54 = vor.u32 %v16196_v14, %v11130_v13  ;;  %v11682_v13 = vld [vmem:[#allocation2 + $0x610] sm:$0xf] }
 0x3d8   :  { %8712 = vmatpush.bf16.msrb.mxu0 %v14715_v28  ;;  %8675 = vmatmul.bf16.vlgmr.msrb.gmra.mxu1 %v17512_v51  ;;  %v11315_v28 = vor.u32 %v16242_v33, %v11314_v34  ;;  %v8468_v9 = vpop.f32.mrf.mxu0  ;;  %v12602_v34 = vld [vmem:[#allocation2 + $0xd40] sm:$0xf]  ;;  %v16564_v33 = vld [vmem:[#allocation2 + $0xd98] sm:$0xf0]  ;;  %v16334_v14 = vld [vmem:[#allocation2 + $0x668] sm:$0xf0] }
 0x3d9   :  { %8726 = vmatpush.bf16.msra.mxu1 %v15359_v39  ;;  %v16817_v39 = vld [vmem:[#allocation2 + $0x1580] sm:$0xf0] }
 0x3da   :  { %8688 = vmatmul.bf16.vlgmr.msrb.gmra.mxu3 %v17516_v57  ;;  %8700 = vmatpush.bf16.msra.mxu2 %v13887_v50  ;;  %v13615_v49 = vor.u32 %v16817_v39, %v13614_v38  ;;  %v16794_v50 = vld [vmem:[#allocation2 + $0x14c8] sm:$0xf0]  ;;  %v8457_v3 = vpop.f32.mrf.mxu2  ;;  %v11038_v39 = vld [vmem:[#allocation2 + $0x108] sm:$0xf] }
 0x3db   :  { %8732 = vmatpush.bf16.msra.mxu3 %v11591_v40  ;;  %v12050_v40 = vld [vmem:[#allocation2 + $0x8f0] sm:$0xf]  ;;  %v13523_v12 = vor.u32 %v16794_v50, %v13522_v61  ;;  %v12510_v61 = vld [vmem:[#allocation2 + $0xc88] sm:$0xf]  ;;  %v16541_v50 = vld [vmem:[#allocation2 + $0xce0] sm:$0xf0] }
 0x3dc   :  { %8713 = vmatpush.bf16.msrb.mxu0 %v14623_v4  ;;  %v12051_v62 = vor.u32 %v16426_v17, %v12050_v40  ;;  %v16403_v4 = vld [vmem:[#allocation2 + $0x890] sm:$0xf0]  ;;  %v16748_v40 = vld [vmem:[#allocation2 + $0x1358] sm:$0xf0]  ;;  %v12603_v17 = vor.u32 %v16564_v33, %v12602_v34  ;;  %v14534_v3 = vld [vmem:[#allocation2 + $0x1c58] sm:$0xf] }
 0x3dd   :  { %8745 = vmatpush.bf16.msrb.mxu1 %v12327_v0  ;;  %8701 = vmatmul.bf16.vlgmr.msra.gmra.mxu2 %v17540_v30  ;;  %v8442_v0 = vpop.f32.mrf.mxu1  ;;  %v17024_v34 = vld [vmem:[#allocation2 + $0x1bf8] sm:$0xf0]  ;;  %v13154_v33 = vld [vmem:[#allocation2 + $0x1190] sm:$0xf] }
 0x3de   :  { %8758 = vmatpush.bf16.msrb.mxu2 %v13063_v2  ;;  %v11958_v2 = vld [vmem:[#allocation2 + $0x838] sm:$0xf] }
 0x3df   :  { %8733 = vmatpush.bf16.msra.mxu3 %v11499_v5  ;;  %8714 = vmatmul.bf16.vlgmr.msrb.gmra.mxu0 %v17542_v35  ;;  %v11223_v5 = vor.u32 %v16219_v56, %v11222_v53  ;;  %v11959_v20 = vor.u32 %v16403_v4, %v11958_v2  ;;  %v16357_v56 = vld [vmem:[#allocation2 + $0x720] sm:$0xf0]  ;;  %v16150_v2 = vld [vmem:[#allocation2 + $0xa8] sm:$0xf0]  ;;  %v17047_v4 = vld [vmem:[#allocation2 + $0x1cb0] sm:$0xf0] }
 0x3e0   :  { %8771 = vmatpush.bf16.msra.mxu0 %v13799_v11  ;;  %v8429_v11 = vpop.f32.mrf.mxu3 }
 0x3e1   :  { %8746 = vmatpush.bf16.msrb.mxu1 %v12235_v59  ;;  %v8430_v15 = vadd.f32 %v8429_v11, %v17793_v27  ;;  %v13430_v59 = vld [vmem:[#allocation2 + $0x13b8] sm:$0xf]  ;;  %v16173_v27 = vld [vmem:[#allocation2 + $0x160] sm:$0xf0]  ;;  %v11775_v11 = vor.u32 %v16357_v56, %v11774_v47 }
 0x3e2   :  { %8759 = vmatpush.bf16.msrb.mxu2 %v12971_v16  ;;  %v16771_v16 = vld [vmem:[#allocation2 + $0x1410] sm:$0xf0]  ;;  %v11039_v53 = vor.u32 %v16173_v27, %v11038_v39  ;;  %v11683_v39 = vor.u32 %v16334_v14, %v11682_v13  ;;  %v17185_v13 = vld [vmem:[#allocation2 + $0x2100] sm:$0xf0] }
 0x3e3   :  { %8734 = vmatpush.bf16.msra.mxu3 %v11407_v21  ;;  %v12695_v21 = vor.u32 %v16587_v10, %v12694_v6  ;;  %v8443_v63 = vadd.f32 %v8442_v0, %v8430_v15  ;;  %v13431_v38 = vor.u32 %v16771_v16, %v13430_v59  ;;  %v10946_v0 = vld [vmem:[#allocation2 + $0x50] sm:$0xf]  ;;  %v13246_v6 = vld [vmem:[#allocation2 + $0x1248] sm:$0xf]  ;;  %v16725_v10 = vld [vmem:[#allocation2 + $0x12a0] sm:$0xf0] }
 0x3e4   :  { %8772 = vmatpush.bf16.msra.mxu0 %v13707_v32  ;;  %v16380_v32 = vld [vmem:[#allocation2 + $0x7d8] sm:$0xf0]  ;;  %v12418_v15 = vld [vmem:[#allocation2 + $0xbd0] sm:$0xf]  ;;  %v16518_v59 = vld [vmem:[#allocation2 + $0xc28] sm:$0xf0] }
 0x3e5   :  { %8747 = vmatpush.bf16.msrb.mxu1 %v12143_v42  ;;  %v17805_v42 = vadd.f32 %v17797_v25, %v8443_v63  ;;  %v8444_v46 = vpop.f32.mrf.mxu1  ;;  %v15270_v16 = vld [vmem:[#allocation2 + $0x2218] sm:$0xf]  ;;  %v14442_v63 = vld [vmem:[#allocation2 + $0x1ba0] sm:$0xf]  ;;  %v12419_v27 = vor.u32 %v16518_v59, %v12418_v15  ;;  %v14258_v15 = vld [vmem:[#allocation2 + $0x1a30] sm:$0xf] }
 0x3e6   :  { %8760 = vmatpush.bf16.msrb.mxu2 %v12879_v44  ;;  %v13338_v44 = vld [vmem:[#allocation2 + $0x1300] sm:$0xf]  ;;  %v16484_v46 = vld [vmem:[#allocation2 + $0xb1c] sm:$0xf] }
 0x3e7   :  { %8735 = vmatpush.bf16.msra.mxu3 %v11315_v28  ;;  %v11867_v28 = vor.u32 %v16380_v32, %v11866_v1  ;;  %v13339_v25 = vor.u32 %v16748_v40, %v13338_v44  ;;  %v13247_v1 = vor.u32 %v16725_v10, %v13246_v6  ;;  %v17254_v32 = vld [vmem:[#allocation2 + $0x2328] sm:$0xf0]  ;;  %v16300_v44 = vld [vmem:[#allocation2 + $0x55c] sm:$0xf]  ;;  %v11592_v40 = vld [vmem:[#allocation2 + $0x5b4] sm:$0xf0] }
 0x3e8   :  { %8773 = vmatpush.bf16.msra.mxu0 %v13615_v49  ;;  %15391 = vmatmul.msk.bf16.vlgmr.msra.gmra.mxu1 %vm6908_vm0, %v17530_v45  ;;  %v8481_v49 = vpop.f32.mrf.mxu2  ;;  %v16461_v6 = vld [vmem:[#allocation2 + $0xa64] sm:$0xf]  ;;  %v12236_v10 = vld [vmem:[#allocation2 + $0xabc] sm:$0xf0] }
 0x3e9   :  { %8748 = vmatpush.bf16.msrb.mxu1 %v12051_v62  ;;  %v17807_v62 = vadd.f32 %v8481_v49, %v8468_v9  ;;  %v10947_v9 = vor.u32 %v16150_v2, %v10946_v0  ;;  %v12328_v49 = vld [vmem:[#allocation2 + $0xb74] sm:$0xf0]  ;;  %v17001_v0 = vld [vmem:[#allocation2 + $0x1b40] sm:$0xf0]  ;;  %v12239_v59 = vor.u32 %v16461_v6, %v12236_v10  ;;  %v16392_v10 = vld [vmem:[#allocation2 + $0x83c] sm:$0xf] }
 0x3ea   :  { %8761 = vmatpush.bf16.msrb.mxu2 %v12787_v58  ;;  %v8470_v58 = vpop.f32.mrf.mxu0  ;;  %v12331_v2 = vor.u32 %v16484_v46, %v12328_v49 }
 0x3eb   :  { %8736 = vmatpush.bf16.msra.mxu3 %v11223_v5  ;;  %v8431_v5 = vpop.f32.mrf.mxu3  ;;  %v11595_v58 = vor.u32 %v16300_v44, %v11592_v40  ;;  %v16231_v44 = vld [vmem:[#allocation2 + $0x334] sm:$0xf]  ;;  %v11316_v40 = vld [vmem:[#allocation2 + $0x38c] sm:$0xf0] }
 0x3ec   :  { %8774 = vmatpush.bf16.msra.mxu0 %v13523_v12  ;;  %v12511_v12 = vor.u32 %v16541_v50, %v12510_v61  ;;  %v15178_v61 = vld [vmem:[#allocation2 + $0x2160] sm:$0xf]  ;;  %v17208_v50 = vld [vmem:[#allocation2 + $0x21b8] sm:$0xf0] }
 0x3ed   :  { %8749 = vmatpush.bf16.msrb.mxu1 %v11959_v20  ;;  %v17231_v20 = vld [vmem:[#allocation2 + $0x2270] sm:$0xf0]  ;;  %v11500_v5 = vld [vmem:[#allocation2 + $0x4fc] sm:$0xf0] }
 0x3ee   :  { %8762 = vmatpush.bf16.msrb.mxu2 %v12695_v21  ;;  %v14535_v21 = vor.u32 %v17047_v4, %v14534_v3  ;;  %v16277_v3 = vld [vmem:[#allocation2 + $0x4a4] sm:$0xf]  ;;  %v15179_v4 = vor.u32 %v17208_v50, %v15178_v61  ;;  %v11319_v50 = vor.u32 %v16231_v44, %v11316_v40 }
 0x3ef   :  { %8737 = vmatpush.bf16.msra.mxu3 %v11131_v54  ;;  %v15362_v54 = vld [vmem:[#allocation2 + $0x22d0] sm:$0xf]  ;;  %v11503_v14 = vor.u32 %v16277_v3, %v11500_v5  ;;  %v16208_v5 = vld [vmem:[#allocation2 + $0x27c] sm:$0xf]  ;;  %v17093_v44 = vld [vmem:[#allocation2 + $0x1e20] sm:$0xf0] }
 0x3f0   :  { %8775 = vmatpush.bf16.msra.mxu0 %v13431_v38  ;;  %v16702_v38 = vld [vmem:[#allocation2 + $0x11e8] sm:$0xf0]  ;;  %v15363_v47 = vor.u32 %v17254_v32, %v15362_v54  ;;  %v14994_v32 = vld [vmem:[#allocation2 + $0x1ff0] sm:$0xf] }
 0x3f1   :  { %8750 = vmatpush.bf16.msrb.mxu1 %v11867_v28  ;;  %v8483_v28 = vpop.f32.mrf.mxu2  ;;  %v13155_v56 = vor.u32 %v16702_v38, %v13154_v33  ;;  %v14166_v38 = vld [vmem:[#allocation2 + $0x1978] sm:$0xf] }
 0x3f2   :  { %8763 = vmatpush.bf16.msrb.mxu2 %v12603_v17  ;;  %v15271_v17 = vor.u32 %v17231_v20, %v15270_v16  ;;  %v16254_v16 = vld [vmem:[#allocation2 + $0x3ec] sm:$0xf]  ;;  %v11408_v20 = vld [vmem:[#allocation2 + $0x444] sm:$0xf0] }
 0x3f3   :  { %8738 = vmatpush.bf16.msra.mxu3 %v11039_v53  ;;  %v14443_v53 = vor.u32 %v17024_v34, %v14442_v63  ;;  %v12144_v63 = vld [vmem:[#allocation2 + $0xa04] sm:$0xf0]  ;;  %v17162_v34 = vld [vmem:[#allocation2 + $0x2048] sm:$0xf0]  ;;  %v11411_v33 = vor.u32 %v16254_v16, %v11408_v20  ;;  %v16909_v16 = vld [vmem:[#allocation2 + $0x1860] sm:$0xf0] }
 0x3f4   :  { %8776 = vmatpush.bf16.msra.mxu0 %v13339_v25  ;;  %v14350_v25 = vld [vmem:[#allocation2 + $0x1ae8] sm:$0xf]  ;;  %v14995_v28 = vor.u32 %v17162_v34, %v14994_v32  ;;  %v16369_v32 = vld [vmem:[#allocation2 + $0x784] sm:$0xf]  ;;  %v11868_v34 = vld [vmem:[#allocation2 + $0x7dc] sm:$0xf0] }
 0x3f5   :  { %8751 = vmatpush.bf16.msrb.mxu1 %v11775_v11  ;;  %v14351_v11 = vor.u32 %v17001_v0, %v14350_v25  ;;  %v8507_v46 = vpop.f32.mrf.mxu1  ;;  %v16932_v25 = vld [vmem:[#allocation2 + $0x1918] sm:$0xf0] }
 0x3f6   :  { %8764 = vmatpush.bf16.msrb.mxu2 %v12511_v12  ;;  %v15086_v12 = vld [vmem:[#allocation2 + $0x20a8] sm:$0xf] }
 0x3f7   :  { %8739 = vmatpush.bf16.msra.mxu3 %v10947_v9  ;;  %v16978_v9 = vld [vmem:[#allocation2 + $0x1a88] sm:$0xf0] }
 0x3f8   :  { %8777 = vmatpush.bf16.msra.mxu0 %v13247_v1  ;;  %v16438_v1 = vld [vmem:[#allocation2 + $0x9ac] sm:$0xf]  ;;  %v14259_v54 = vor.u32 %v16978_v9, %v14258_v15  ;;  %v8520_v0 = vpop.f32.mrf.mxu0  ;;  %v17116_v15 = vld [vmem:[#allocation2 + $0x1ed8] sm:$0xf0] }
 0x3f9   :  { %8752 = vmatpush.bf16.msrb.mxu1 %v11683_v39  ;;  %v16955_v39 = vld [vmem:[#allocation2 + $0x19d0] sm:$0xf0]  ;;  %v8494_v61 = vpop.f32.mrf.mxu3 }
 0x3fa   :  { %8765 = vmatpush.bf16.msrb.mxu2 %v12419_v27  ;;  %8740 = vmatmul.bf16.vlgmr.msra.gmra.mxu3 %v17514_v55  ;;  %v12147_v27 = vor.u32 %v16438_v1, %v12144_v63  ;;  %v14167_v49 = vor.u32 %v16955_v39, %v14166_v38  ;;  %v11132_v1 = vld [vmem:[#allocation2 + $0x21c] sm:$0xf0] }
 0x3fb   :  { %8784 = vmatpush.bf16.msrb.mxu3 %v14535_v21  ;;  %v15087_v21 = vor.u32 %v17185_v13, %v15086_v12 }
 0x3fc   :  { %8778 = vmatpush.bf16.msra.mxu0 %v13155_v56  ;;  %8753 = vmatmul.bf16.vlgmr.msrb.gmra.mxu1 %v17523_v7  ;;  %v17139_v56 = vld [vmem:[#allocation2 + $0x1f90] sm:$0xf0] }
 0x3fd   :  { %8797 = vmatpush.bf16.msra.mxu1 %v15271_v17  ;;  %8766 = vmatmul.bf16.vlgmr.msrb.gmra.mxu2 %v17512_v51  ;;  %v16415_v17 = vld [vmem:[#allocation2 + $0x8f4] sm:$0xf] }
 0x3fe   :  { %8817 = vmatpush.bf16.msra.mxu2 %v15363_v47  ;;  %v12052_v47 = vld [vmem:[#allocation2 + $0x94c] sm:$0xf0] }
 0x3ff   :  { %8785 = vmatpush.bf16.msrb.mxu3 %v14443_v53  ;;  %8779 = vmatmul.bf16.vlgmr.msra.gmra.mxu0 %v17516_v57  ;;  %v14902_v53 = vld [vmem:[#allocation2 + $0x1f38] sm:$0xf]  ;;  %v12055_v3 = vor.u32 %v16415_v17, %v12052_v47  ;;  %v13890_v17 = vld [vmem:[#allocation2 + $0x1750] sm:$0xf]  ;;  %v16886_v47 = vld [vmem:[#allocation2 + $0x17a8] sm:$0xf0] }
 0x400   :  { %8823 = vmatpush.bf16.msrb.mxu0 %v11595_v58  ;;  %v14074_v58 = vld [vmem:[#allocation2 + $0x18c0] sm:$0xf]  ;;  %v14903_v6 = vor.u32 %v17139_v56, %v14902_v53  ;;  %v11871_v53 = vor.u32 %v16369_v32, %v11868_v34  ;;  %v13064_v56 = vld [vmem:[#allocation2 + $0x1134] sm:$0xf0] }
 0x401   :  { %8798 = vmatpush.bf16.msra.mxu1 %v15179_v4  ;;  %v11224_v4 = vld [vmem:[#allocation2 + $0x2d4] sm:$0xf0]  ;;  %v14075_v12 = vor.u32 %v16932_v25, %v14074_v58  ;;  %v8496_v40 = vpop.f32.mrf.mxu3  ;;  %v16346_v25 = vld [vmem:[#allocation2 + $0x6cc] sm:$0xf] }
 0x402   :  { %8836 = vmatpush.bf16.msrb.mxu2 %v12331_v2  ;;  %v8495_v2 = vadd.f32 %v8494_v61, %v17807_v62  ;;  %v11227_v9 = vor.u32 %v16208_v5, %v11224_v4  ;;  %v16162_v61 = vld [vmem:[#allocation2 + $0x10c] sm:$0xf]  ;;  %v16852_v4 = vld [vmem:[#allocation2 + $0x169c] sm:$0xf]  ;;  %v15272_v32 = vld [vmem:[#allocation2 + $0x2274] sm:$0xf0] }
 0x403   :  { %8786 = vmatpush.bf16.msrb.mxu3 %v14351_v11  ;;  %v11960_v11 = vld [vmem:[#allocation2 + $0x894] sm:$0xf0]  ;;  %v17070_v5 = vld [vmem:[#allocation2 + $0x1d68] sm:$0xf0] }
 0x404   :  { %8824 = vmatpush.bf16.msrb.mxu0 %v11503_v14  ;;  %v8508_v13 = vadd.f32 %v8507_v46, %v8495_v2  ;;  %v14810_v14 = vld [vmem:[#allocation2 + $0x1e80] sm:$0xf]  ;;  %v11963_v20 = vor.u32 %v16392_v10, %v11960_v11  ;;  %v16668_v46 = vld [vmem:[#allocation2 + $0x10dc] sm:$0xf]  ;;  %v13891_v2 = vor.u32 %v16886_v47, %v13890_v17  ;;  %v13800_v11 = vld [vmem:[#allocation2 + $0x16f4] sm:$0xf0] }
 0x405   :  { %8799 = vmatpush.bf16.msra.mxu1 %v15087_v21  ;;  %v16185_v21 = vld [vmem:[#allocation2 + $0x1c4] sm:$0xf]  ;;  %v14811_v63 = vor.u32 %v17116_v15, %v14810_v14  ;;  %v16139_v15 = vld [vmem:[#allocation2 + $0x54] sm:$0xf]  ;;  %v16622_v47 = vld [vmem:[#allocation2 + $0xf6c] sm:$0xf] }
 0x406   :  { %8837 = vmatpush.bf16.msrb.mxu2 %v12239_v59  ;;  %v13982_v59 = vld [vmem:[#allocation2 + $0x1808] sm:$0xf]  ;;  %v8521_v62 = vadd.f32 %v8520_v0, %v8508_v13  ;;  %v12972_v13 = vld [vmem:[#allocation2 + $0x107c] sm:$0xf0] }
 0x407   :  { %8787 = vmatpush.bf16.msrb.mxu3 %v14259_v54  ;;  %v8533_v54 = vpop.f32.mrf.mxu2  ;;  %v13983_v38 = vor.u32 %v16909_v16, %v13982_v59  ;;  %v11776_v0 = vld [vmem:[#allocation2 + $0x724] sm:$0xf0]  ;;  %v16323_v59 = vld [vmem:[#allocation2 + $0x614] sm:$0xf] }
 0x408   :  { %8825 = vmatpush.bf16.msrb.mxu0 %v11411_v33  ;;  %v8509_v33 = vpop.f32.mrf.mxu1  ;;  %v8534_v39 = vadd.f32 %v8533_v54, %v8521_v62  ;;  %v11779_v14 = vor.u32 %v16346_v25, %v11776_v0  ;;  %v17036_v62 = vld [vmem:[#allocation2 + $0x1c5c] sm:$0xf]  ;;  %v13616_v0 = vld [vmem:[#allocation2 + $0x1584] sm:$0xf0] }
 0x409   :  { %8800 = vmatpush.bf16.msra.mxu1 %v14995_v28  ;;  %v11135_v28 = vor.u32 %v16185_v21, %v11132_v1  ;;  %v14536_v21 = vld [vmem:[#allocation2 + $0x1cb4] sm:$0xf0]  ;;  %v17220_v54 = vld [vmem:[#allocation2 + $0x221c] sm:$0xf]  ;;  %v8546_v34 = vpop.f32.mrf.mxu3 }
 0x40a   :  { %8838 = vmatpush.bf16.msrb.mxu2 %v12147_v27  ;;  %v14718_v27 = vld [vmem:[#allocation2 + $0x1dc8] sm:$0xf]  ;;  %v17816_v40 = vadd.f32 %v8546_v34, %v8534_v39  ;;  %v14539_v17 = vor.u32 %v17036_v62, %v14536_v21  ;;  %v16806_v39 = vld [vmem:[#allocation2 + $0x152c] sm:$0xf]  ;;  %v12696_v62 = vld [vmem:[#allocation2 + $0xe54] sm:$0xf0] }
 0x40b   :  { %8788 = vmatpush.bf16.msrb.mxu3 %v14167_v49  ;;  %v8522_v49 = vpop.f32.mrf.mxu0  ;;  %v14719_v58 = vor.u32 %v17093_v44, %v14718_v27  ;;  %v16829_v27 = vld [vmem:[#allocation2 + $0x15e4] sm:$0xf]  ;;  %v13708_v44 = vld [vmem:[#allocation2 + $0x163c] sm:$0xf0]  ;;  %v14996_v34 = vld [vmem:[#allocation2 + $0x204c] sm:$0xf0] }
 0x40c   :  { %8826 = vmatpush.bf16.msrb.mxu0 %v11319_v50  ;;  %v11040_v50 = vld [vmem:[#allocation2 + $0x164] sm:$0xf0]  ;;  %v15275_v49 = vor.u32 %v17220_v54, %v15272_v32  ;;  %v17151_v32 = vld [vmem:[#allocation2 + $0x1ff4] sm:$0xf] }
 0x40d   :  { %8801 = vmatpush.bf16.msra.mxu1 %v14903_v6  ;;  %15392 = vmatmul.msk.bf16.vlgmr.msra.gmra.mxu2 %vm6908_vm0, %v17530_v45  ;;  %v13067_v6 = vor.u32 %v16668_v46, %v13064_v56  ;;  %v11043_v10 = vor.u32 %v16162_v61, %v11040_v50  ;;  %v12880_v46 = vld [vmem:[#allocation2 + $0xfc4] sm:$0xf0]  ;;  %v14444_v56 = vld [vmem:[#allocation2 + $0x1bfc] sm:$0xf0]  ;;  %v13711_v61 = vor.u32 %v16829_v27, %v13708_v44  ;;  %v17197_v50 = vld [vmem:[#allocation2 + $0x2164] sm:$0xf] }
 0x40e   :  { %8839 = vmatpush.bf16.msrb.mxu2 %v12055_v3  ;;  %v14626_v3 = vld [vmem:[#allocation2 + $0x1d10] sm:$0xf]  ;;  %v12883_v25 = vor.u32 %v16622_v47, %v12880_v46  ;;  %v13432_v27 = vld [vmem:[#allocation2 + $0x1414] sm:$0xf0]  ;;  %v12604_v47 = vld [vmem:[#allocation2 + $0xd9c] sm:$0xf0]  ;;  %v14999_v46 = vor.u32 %v17151_v32, %v14996_v34 }
 0x40f   :  { %8789 = vmatpush.bf16.msrb.mxu3 %v14075_v12  ;;  %v16645_v12 = vld [vmem:[#allocation2 + $0x1024] sm:$0xf]  ;;  %v14627_v16 = vor.u32 %v17070_v5, %v14626_v3  ;;  %v8535_v1 = vpop.f32.mrf.mxu2  ;;  %v16599_v3 = vld [vmem:[#allocation2 + $0xeb4] sm:$0xf]  ;;  %v12788_v5 = vld [vmem:[#allocation2 + $0xf0c] sm:$0xf0] }
 0x410   :  { %8827 = vmatpush.bf16.msrb.mxu0 %v11227_v9  ;;  %v10948_v9 = vld [vmem:[#allocation2 + $0xac] sm:$0xf0]  ;;  %v12975_v33 = vor.u32 %v16645_v12, %v12972_v13  ;;  %v17174_v12 = vld [vmem:[#allocation2 + $0x20ac] sm:$0xf]  ;;  %v15088_v13 = vld [vmem:[#allocation2 + $0x2104] sm:$0xf0] }
 0x411   :  { %8802 = vmatpush.bf16.msra.mxu1 %v14811_v63  ;;  %v13803_v63 = vor.u32 %v16852_v4, %v13800_v11  ;;  %v13619_v11 = vor.u32 %v16806_v39, %v13616_v0  ;;  %v15091_v21 = vor.u32 %v17174_v12, %v15088_v13  ;;  %v16967_v1 = vld [vmem:[#allocation2 + $0x1a34] sm:$0xf]  ;;  %v16737_v39 = vld [vmem:[#allocation2 + $0x1304] sm:$0xf]  ;;  %v13340_v0 = vld [vmem:[#allocation2 + $0x135c] sm:$0xf0] }
 0x412   :  { %8840 = vmatpush.bf16.msrb.mxu2 %v11963_v20  ;;  %v11684_v20 = vld [vmem:[#allocation2 + $0x66c] sm:$0xf0]  ;;  %v14076_v12 = vld [vmem:[#allocation2 + $0x191c] sm:$0xf0]  ;;  %v13343_v13 = vor.u32 %v16737_v39, %v13340_v0  ;;  %v16898_v32 = vld [vmem:[#allocation2 + $0x180c] sm:$0xf] }
 0x413   :  { %8790 = vmatpush.bf16.msrb.mxu3 %v13983_v38  ;;  %v10951_v38 = vor.u32 %v16139_v15, %v10948_v9  ;;  %v8548_v15 = vpop.f32.mrf.mxu3  ;;  %v16783_v9 = vld [vmem:[#allocation2 + $0x1474] sm:$0xf]  ;;  %v12334_v39 = vld [vmem:[#allocation2 + $0xb20] sm:$0xf]  ;;  %v16496_v0 = vld [vmem:[#allocation2 + $0xb78] sm:$0xf0] }
 0x414   :  { %8828 = vmatpush.bf16.msrb.mxu0 %v11135_v28  ;;  %v11687_v28 = vor.u32 %v16323_v59, %v11684_v20  ;;  %v13524_v59 = vld [vmem:[#allocation2 + $0x14cc] sm:$0xf0]  ;;  %v16576_v20 = vld [vmem:[#allocation2 + $0xdfc] sm:$0xf]  ;;  %v17105_v15 = vld [vmem:[#allocation2 + $0x1e84] sm:$0xf] }
 0x415   :  { %8803 = vmatpush.bf16.msra.mxu1 %v14719_v58  ;;  %v15180_v58 = vld [vmem:[#allocation2 + $0x21bc] sm:$0xf0]  ;;  %v13527_v54 = vor.u32 %v16783_v9, %v13524_v59 }
 0x416   :  { %8841 = vmatpush.bf16.msrb.mxu2 %v11871_v53  ;;  %v17013_v53 = vld [vmem:[#allocation2 + $0x1ba4] sm:$0xf]  ;;  %v15183_v4 = vor.u32 %v17197_v50, %v15180_v58  ;;  %v17128_v50 = vld [vmem:[#allocation2 + $0x1f3c] sm:$0xf]  ;;  %v14904_v58 = vld [vmem:[#allocation2 + $0x1f94] sm:$0xf0] }
 0x417   :  { %8791 = vmatpush.bf16.msrb.mxu3 %v13891_v2  ;;  %v14447_v2 = vor.u32 %v17013_v53, %v14444_v56  ;;  %v16944_v53 = vld [vmem:[#allocation2 + $0x197c] sm:$0xf]  ;;  %v14168_v56 = vld [vmem:[#allocation2 + $0x19d4] sm:$0xf0]  ;;  %v14812_v9 = vld [vmem:[#allocation2 + $0x1edc] sm:$0xf0] }
 0x418   :  { %8829 = vmatpush.bf16.msrb.mxu0 %v11043_v10  ;;  %v14352_v10 = vld [vmem:[#allocation2 + $0x1b44] sm:$0xf0]  ;;  %v8585_v44 = vpop.f32.mrf.mxu0 }
 0x419   :  { %8804 = vmatpush.bf16.msra.mxu1 %v14627_v16 }
 0x41a   :  { %8842 = vmatpush.bf16.msrb.mxu2 %v11779_v14  ;;  %8792 = vmatmul.bf16.vlgmr.msrb.gmra.mxu3 %v17540_v30  ;;  %v12791_v14 = vor.u32 %v16599_v3, %v12788_v5  ;;  %v14171_v3 = vor.u32 %v16944_v53, %v14168_v56  ;;  %v16530_v5 = vld [vmem:[#allocation2 + $0xc8c] sm:$0xf]  ;;  %v16691_v53 = vld [vmem:[#allocation2 + $0x1194] sm:$0xf]  ;;  %v13156_v56 = vld [vmem:[#allocation2 + $0x11ec] sm:$0xf0] }
 0x41b   :  { %8849 = vmatpush.bf16.msra.mxu3 %v13067_v6  ;;  %v16990_v6 = vld [vmem:[#allocation2 + $0x1aec] sm:$0xf] }
 0x41c   :  { %8830 = vmatpush.bf16.msrb.mxu0 %v10951_v38  ;;  %8805 = vmatmul.bf16.vlgmr.msra.gmra.mxu1 %v17542_v35  ;;  %v14355_v16 = vor.u32 %v16990_v6, %v14352_v10  ;;  %v16760_v38 = vld [vmem:[#allocation2 + $0x13bc] sm:$0xf]  ;;  %v14907_v10 = vor.u32 %v17128_v50, %v14904_v58 }
 0x41d   :  { %8862 = vmatpush.bf16.msrb.mxu1 %v13803_v63  ;;  %v14260_v63 = vld [vmem:[#allocation2 + $0x1a8c] sm:$0xf0] }
 0x41e   :  { %8843 = vmatpush.bf16.msrb.mxu2 %v11687_v28  ;;  %v14263_v28 = vor.u32 %v16967_v1, %v14260_v63  ;;  %v16507_v63 = vld [vmem:[#allocation2 + $0xbd4] sm:$0xf] }
 0x41f   :  { %8850 = vmatpush.bf16.msra.mxu3 %v12975_v33  ;;  %8831 = vmatmul.bf16.vlgmr.msrb.gmra.mxu0 %v17514_v55  ;;  %v12699_v33 = vor.u32 %v16576_v20, %v12696_v62  ;;  %v16714_v20 = vld [vmem:[#allocation2 + $0x124c] sm:$0xf]  ;;  %v13248_v62 = vld [vmem:[#allocation2 + $0x12a4] sm:$0xf0] }
 0x420   :  { %8875 = vmatpush.bf16.msra.mxu0 %v14539_v17  ;;  %v16553_v17 = vld [vmem:[#allocation2 + $0xd44] sm:$0xf] }
 0x421   :  { %8863 = vmatpush.bf16.msrb.mxu1 %v13711_v61  ;;  %8844 = vmatmul.bf16.vlgmr.msrb.gmra.mxu2 %v17523_v7  ;;  %v13435_v61 = vor.u32 %v16760_v38, %v13432_v27  ;;  %v13984_v38 = vld [vmem:[#allocation2 + $0x1864] sm:$0xf0]  ;;  %v17243_v27 = vld [vmem:[#allocation2 + $0x22d4] sm:$0xf] }
 0x422   :  { %8888 = vmatpush.bf16.msra.mxu2 %v15275_v49  ;;  %v8559_v49 = vpop.f32.mrf.mxu1  ;;  %v13987_v50 = vor.u32 %v16898_v32, %v13984_v38 }
 0x423   :  { %8851 = vmatpush.bf16.msra.mxu3 %v12883_v25  ;;  %v12607_v25 = vor.u32 %v16553_v17, %v12604_v47  ;;  %v13251_v47 = vor.u32 %v16714_v20, %v13248_v62  ;;  %v11506_v20 = vld [vmem:[#allocation2 + $0x4a8] sm:$0xf] }
 0x424   :  { %8876 = vmatpush.bf16.msra.mxu0 %v14447_v2  ;;  %v8572_v2 = vpop.f32.mrf.mxu3 }
 0x425   :  { %8864 = vmatpush.bf16.msrb.mxu1 %v13619_v11  ;;  %v8573_v6 = vadd.f32 %v8572_v2, %v8559_v49  ;;  %v16921_v11 = vld [vmem:[#allocation2 + $0x18c4] sm:$0xf] }
 0x426   :  { %8889 = vmatpush.bf16.msra.mxu2 %v15183_v4  ;;  %v12512_v4 = vld [vmem:[#allocation2 + $0xce4] sm:$0xf0]  ;;  %v14079_v1 = vor.u32 %v16921_v11, %v14076_v12  ;;  %v14628_v11 = vld [vmem:[#allocation2 + $0x1d6c] sm:$0xf0]  ;;  %v13070_v12 = vld [vmem:[#allocation2 + $0x10e0] sm:$0xf] }
 0x427   :  { %8852 = vmatpush.bf16.msra.mxu3 %v12791_v14  ;;  %v8598_v14 = vpop.f32.mrf.mxu2  ;;  %v12515_v59 = vor.u32 %v16530_v5, %v12512_v4  ;;  %v16875_v5 = vld [vmem:[#allocation2 + $0x1754] sm:$0xf]  ;;  %v13892_v4 = vld [vmem:[#allocation2 + $0x17ac] sm:$0xf0] }
 0x428   :  { %8877 = vmatpush.bf16.msra.mxu0 %v14355_v16  ;;  %v8586_v16 = vadd.f32 %v8585_v44, %v8573_v6  ;;  %v14720_v44 = vld [vmem:[#allocation2 + $0x1e24] sm:$0xf0]  ;;  %v17059_v6 = vld [vmem:[#allocation2 + $0x1d14] sm:$0xf]  ;;  %v13895_v62 = vor.u32 %v16875_v5, %v13892_v4  ;;  %v16818_v5 = vld [vmem:[#allocation2 + $0x1588] sm:$0xf0] }
 0x429   :  { %8865 = vmatpush.bf16.msrb.mxu1 %v13527_v54  ;;  %v12420_v54 = vld [vmem:[#allocation2 + $0xc2c] sm:$0xf0]  ;;  %v14631_v32 = vor.u32 %v17059_v6, %v14628_v11  ;;  %v11322_v4 = vld [vmem:[#allocation2 + $0x338] sm:$0xf]  ;;  %v16243_v6 = vld [vmem:[#allocation2 + $0x390] sm:$0xf0] }
 0x42a   :  { %8890 = vmatpush.bf16.msra.mxu2 %v15091_v21  ;;  %v8587_v21 = vpop.f32.mrf.mxu0  ;;  %v17822_v34 = vadd.f32 %v8598_v14, %v8586_v16  ;;  %v8561_v17 = vpop.f32.mrf.mxu1  ;;  %v12423_v49 = vor.u32 %v16507_v63, %v12420_v54  ;;  %v16864_v16 = vld [vmem:[#allocation2 + $0x16f8] sm:$0xf0]  ;;  %v16473_v63 = vld [vmem:[#allocation2 + $0xac0] sm:$0xf0]  ;;  %v16427_v11 = vld [vmem:[#allocation2 + $0x950] sm:$0xf0] }
 0x42b   :  { %8853 = vmatpush.bf16.msra.mxu3 %v12699_v33  ;;  %v14815_v33 = vor.u32 %v17105_v15, %v14812_v9  ;;  %v12335_v9 = vor.u32 %v16496_v0, %v12334_v39  ;;  %v16289_v21 = vld [vmem:[#allocation2 + $0x500] sm:$0xf0]  ;;  %v16634_v39 = vld [vmem:[#allocation2 + $0xfc8] sm:$0xf0] }
 0x42c   :  { %8878 = vmatpush.bf16.msra.mxu0 %v14263_v28  ;;  %v15364_v28 = vld [vmem:[#allocation2 + $0x232c] sm:$0xf0]  ;;  %v8574_v2 = vpop.f32.mrf.mxu3  ;;  %v11507_v17 = vor.u32 %v16289_v21, %v11506_v20  ;;  %v11323_v20 = vor.u32 %v16243_v6, %v11322_v4  ;;  %v13530_v21 = vld [vmem:[#allocation2 + $0x1478] sm:$0xf]  ;;  %v16565_v4 = vld [vmem:[#allocation2 + $0xda0] sm:$0xf0] }
 0x42d   :  { %8866 = vmatpush.bf16.msrb.mxu1 %v13435_v61  ;;  %v11598_v61 = vld [vmem:[#allocation2 + $0x560] sm:$0xf]  ;;  %v15367_v58 = vor.u32 %v17243_v27, %v15364_v28  ;;  %v12978_v27 = vld [vmem:[#allocation2 + $0x1028] sm:$0xf]  ;;  %v16657_v28 = vld [vmem:[#allocation2 + $0x1080] sm:$0xf0] }
 0x42e   :  { %8891 = vmatpush.bf16.msra.mxu2 %v14999_v46  ;;  %v17082_v46 = vld [vmem:[#allocation2 + $0x1dcc] sm:$0xf] }
 0x42f   :  { %8854 = vmatpush.bf16.msra.mxu3 %v12607_v25  ;;  %v16312_v25 = vld [vmem:[#allocation2 + $0x5b8] sm:$0xf0]  ;;  %v8600_v14 = vpop.f32.mrf.mxu2 }
 0x430   :  { %8879 = vmatpush.bf16.msra.mxu0 %v14171_v3  ;;  %v14723_v3 = vor.u32 %v17082_v46, %v14720_v44  ;;  %v11599_v15 = vor.u32 %v16312_v25, %v11598_v61  ;;  %v13714_v46 = vld [vmem:[#allocation2 + $0x15e8] sm:$0xf]  ;;  %v16841_v44 = vld [vmem:[#allocation2 + $0x1640] sm:$0xf0]  ;;  %v16450_v61 = vld [vmem:[#allocation2 + $0xa08] sm:$0xf0] }
 0x431   :  { %8867 = vmatpush.bf16.msrb.mxu1 %v13343_v13  ;;  %v16680_v13 = vld [vmem:[#allocation2 + $0x1138] sm:$0xf0]  ;;  %v12886_v25 = vld [vmem:[#allocation2 + $0xf70] sm:$0xf] }
 0x432   :  { %8892 = vmatpush.bf16.msra.mxu2 %v14907_v10  ;;  %v13159_v10 = vor.u32 %v16691_v53, %v13156_v56  ;;  %v17824_v54 = vpop.f32.mrf.mxu0  ;;  %v16266_v53 = vld [vmem:[#allocation2 + $0x448] sm:$0xf0]  ;;  %v12150_v56 = vld [vmem:[#allocation2 + $0x9b0] sm:$0xf] }
 0x433   :  { %8855 = vmatpush.bf16.msra.mxu3 %v12515_v59  ;;  %v13806_v59 = vld [vmem:[#allocation2 + $0x16a0] sm:$0xf]  ;;  %v12151_v2 = vor.u32 %v16450_v61, %v12150_v56  ;;  %v16197_v61 = vld [vmem:[#allocation2 + $0x220] sm:$0xf0] }
 0x434   :  { %8880 = vmatpush.bf16.msra.mxu0 %v14079_v1  ;;  %v12242_v1 = vld [vmem:[#allocation2 + $0xa68] sm:$0xf]  ;;  %v13807_v38 = vor.u32 %v16864_v16, %v13806_v59  ;;  %v16611_v59 = vld [vmem:[#allocation2 + $0xf10] sm:$0xf0] }
 0x435   :  { %8868 = vmatpush.bf16.msrb.mxu1 %v13251_v47  ;;  %v12243_v47 = vor.u32 %v16473_v63, %v12242_v1  ;;  %v8611_v14 = vpop.f32.mrf.mxu1  ;;  %v16795_v1 = vld [vmem:[#allocation2 + $0x14d0] sm:$0xf0]  ;;  %v11230_v63 = vld [vmem:[#allocation2 + $0x280] sm:$0xf] }
 0x436   :  { %8893 = vmatpush.bf16.msra.mxu2 %v14815_v33  ;;  %v13071_v33 = vor.u32 %v16680_v13, %v13070_v12  ;;  %v12887_v13 = vor.u32 %v16634_v39, %v12886_v25  ;;  %v8612_v16 = vadd.f32 %v8611_v14, %v17822_v34  ;;  %v11046_v14 = vld [vmem:[#allocation2 + $0x110] sm:$0xf] }
 0x437   :  { %8856 = vmatpush.bf16.msra.mxu3 %v12423_v49  ;;  %v11414_v49 = vld [vmem:[#allocation2 + $0x3f0] sm:$0xf] }
 0x438   :  { %8881 = vmatpush.bf16.msra.mxu0 %v13987_v50  ;;  %v12979_v50 = vor.u32 %v16657_v28, %v12978_v27  ;;  %v11415_v0 = vor.u32 %v16266_v53, %v11414_v49  ;;  %v13531_v28 = vor.u32 %v16795_v1, %v13530_v21  ;;  %v16772_v49 = vld [vmem:[#allocation2 + $0x1418] sm:$0xf0]  ;;  %v11138_v53 = vld [vmem:[#allocation2 + $0x1c8] sm:$0xf]  ;;  %v12518_v1 = vld [vmem:[#allocation2 + $0xc90] sm:$0xf] }
 0x439   :  { %8869 = vmatpush.bf16.msrb.mxu1 %v13159_v10  ;;  %v12058_v10 = vld [vmem:[#allocation2 + $0x8f8] sm:$0xf] }
 0x43a   :  { %8894 = vmatpush.bf16.msra.mxu2 %v14723_v3  ;;  %8857 = vmatmul.bf16.vlgmr.msra.gmra.mxu3 %v17512_v51  ;;  %v13622_v3 = vld [vmem:[#allocation2 + $0x1530] sm:$0xf]  ;;  %v8639_v12 = vpop.f32.mrf.mxu0 }
 0x43b   :  { %8908 = vmatpush.bf16.msrb.mxu3 %v15367_v58  ;;  %v13715_v58 = vor.u32 %v16841_v44, %v13714_v46  ;;  %v13438_v44 = vld [vmem:[#allocation2 + $0x13c0] sm:$0xf]  ;;  %v13346_v12 = vld [vmem:[#allocation2 + $0x1308] sm:$0xf] }
 0x43c   :  { %8882 = vmatpush.bf16.msra.mxu0 %v13895_v62  ;;  %8870 = vmatmul.bf16.vlgmr.msrb.gmra.mxu1 %v17516_v57  ;;  %v12059_v62 = vor.u32 %v16427_v11, %v12058_v10  ;;  %v11139_v10 = vor.u32 %v16197_v61, %v11138_v53  ;;  %v15278_v53 = vld [vmem:[#allocation2 + $0x2220] sm:$0xf] }
 0x43d   :  { %8914 = vmatpush.bf16.msra.mxu1 %v11599_v15  ;;  %v13623_v15 = vor.u32 %v16818_v5, %v13622_v3  ;;  %v8624_v56 = vpop.f32.mrf.mxu3  ;;  %v8613_v3 = vpop.f32.mrf.mxu1  ;;  %v12610_v5 = vld [vmem:[#allocation2 + $0xd48] sm:$0xf] }
 0x43e   :  { %8895 = vmatpush.bf16.msra.mxu2 %v14631_v32  ;;  %v16220_v32 = vld [vmem:[#allocation2 + $0x2d8] sm:$0xf0]  ;;  %v8625_v25 = vadd.f32 %v8624_v56, %v8612_v16  ;;  %v16703_v3 = vld [vmem:[#allocation2 + $0x11f0] sm:$0xf0] }
 0x43f   :  { %8927 = vmatpush.bf16.msra.mxu3 %v12335_v9  ;;  %8883 = vmatmul.bf16.vlgmr.msra.gmra.mxu0 %v17540_v30  ;;  %v12794_v9 = vld [vmem:[#allocation2 + $0xeb8] sm:$0xf]  ;;  %v11231_v46 = vor.u32 %v16220_v32, %v11230_v63  ;;  %v13254_v63 = vld [vmem:[#allocation2 + $0x1250] sm:$0xf]  ;;  %v17232_v56 = vld [vmem:[#allocation2 + $0x2278] sm:$0xf0] }
 0x440   :  { %8940 = vmatpush.bf16.msrb.mxu0 %v13071_v33  ;;  %v11966_v33 = vld [vmem:[#allocation2 + $0x840] sm:$0xf]  ;;  %v12795_v27 = vor.u32 %v16611_v59, %v12794_v9  ;;  %v17834_v6 = vadd.f32 %v17824_v54, %v8625_v25  ;;  %v11782_v9 = vld [vmem:[#allocation2 + $0x6d0] sm:$0xf]  ;;  %v16358_v59 = vld [vmem:[#allocation2 + $0x728] sm:$0xf0]  ;;  %v8650_v16 = vpop.f32.mrf.mxu2 }
 0x441   :  { %8915 = vmatpush.bf16.msra.mxu1 %v11507_v17  ;;  %8896 = vmatmul.bf16.vlgmr.msra.gmra.mxu2 %v17542_v35  ;;  %v12702_v17 = vld [vmem:[#allocation2 + $0xe00] sm:$0xf]  ;;  %v16542_v54 = vld [vmem:[#allocation2 + $0xce8] sm:$0xf0]  ;;  %v16519_v25 = vld [vmem:[#allocation2 + $0xc30] sm:$0xf0] }
 0x442   :  { %8953 = vmatpush.bf16.msrb.mxu2 %v13807_v38  ;;  %v16404_v38 = vld [vmem:[#allocation2 + $0x898] sm:$0xf0] }
 0x443   :  { %8928 = vmatpush.bf16.msra.mxu3 %v12243_v47  ;;  %v16588_v47 = vld [vmem:[#allocation2 + $0xe58] sm:$0xf0]  ;;  %v11967_v34 = vor.u32 %v16404_v38, %v11966_v33  ;;  %v11783_v33 = vor.u32 %v16358_v59, %v11782_v9  ;;  %v16726_v38 = vld [vmem:[#allocation2 + $0x12a8] sm:$0xf0]  ;;  %v15186_v9 = vld [vmem:[#allocation2 + $0x2168] sm:$0xf] }
 0x444   :  { %8941 = vmatpush.bf16.msrb.mxu0 %v12979_v50  ;;  %v11874_v50 = vld [vmem:[#allocation2 + $0x788] sm:$0xf]  ;;  %v12703_v39 = vor.u32 %v16588_v47, %v12702_v17  ;;  %v11690_v17 = vld [vmem:[#allocation2 + $0x618] sm:$0xf]  ;;  %v16335_v47 = vld [vmem:[#allocation2 + $0x670] sm:$0xf0] }
 0x445   :  { %8916 = vmatpush.bf16.msra.mxu1 %v11415_v0  ;;  %v8663_v0 = vpop.f32.mrf.mxu0  ;;  %v17209_v59 = vld [vmem:[#allocation2 + $0x21c0] sm:$0xf0] }
 0x446   :  { %8954 = vmatpush.bf16.msrb.mxu2 %v13715_v58  ;;  %v16381_v58 = vld [vmem:[#allocation2 + $0x7e0] sm:$0xf0] }
 0x447   :  { %8929 = vmatpush.bf16.msra.mxu3 %v12151_v2  ;;  %v13439_v2 = vor.u32 %v16772_v49, %v13438_v44  ;;  %v11875_v11 = vor.u32 %v16381_v58, %v11874_v50  ;;  %v12519_v44 = vor.u32 %v16542_v54, %v12518_v1  ;;  %v17048_v49 = vld [vmem:[#allocation2 + $0x1cb8] sm:$0xf0]  ;;  %v13255_v50 = vor.u32 %v16726_v38, %v13254_v63  ;;  %v12426_v58 = vld [vmem:[#allocation2 + $0xbd8] sm:$0xf]  ;;  %v14358_v63 = vld [vmem:[#allocation2 + $0x1af0] sm:$0xf] }
 0x448   :  { %8942 = vmatpush.bf16.msrb.mxu0 %v12887_v13  ;;  %v16749_v13 = vld [vmem:[#allocation2 + $0x1360] sm:$0xf0]  ;;  %v15187_v54 = vor.u32 %v17209_v59, %v15186_v9  ;;  %v17186_v38 = vld [vmem:[#allocation2 + $0x2108] sm:$0xf0]  ;;  %v17259_v9 = vld [vmem:[%s18462_s2 + $0x18] sm:$0xff] }
 0x449   :  { %8917 = vmatpush.bf16.msra.mxu1 %v11323_v20  ;;  %v12611_v20 = vor.u32 %v16565_v4, %v12610_v5  ;;  %v13347_v21 = vor.u32 %v16749_v13, %v13346_v12  ;;  %v15370_v5 = vld [vmem:[#allocation2 + $0x22d8] sm:$0xf]  ;;  %v17255_v4 = vld [vmem:[#allocation2 + $0x2330] sm:$0xf0]  ;;  %v14450_v12 = vld [vmem:[#allocation2 + $0x1ba8] sm:$0xf]  ;;  %v8652_v13 = vpop.f32.mrf.mxu2 }
 0x44a   :  { %8955 = vmatpush.bf16.msrb.mxu2 %v13623_v15  ;;  %15393 = vmatmul.msk.bf16.vlgmr.msrb.gmra.mxu3 %vm6908_vm0, %v17530_v45  ;;  %v16174_v15 = vld [vmem:[#allocation2 + $0x168] sm:$0xf0] }
 0x44b   :  { %8930 = vmatpush.bf16.msra.mxu3 %v12059_v62  ;;  %v17836_v62 = vadd.f32 %v8663_v0, %v8650_v16  ;;  %v11047_v32 = vor.u32 %v16174_v15, %v11046_v14  ;;  %v12427_v14 = vor.u32 %v16519_v25, %v12426_v58  ;;  %v17025_v15 = vld [vmem:[#allocation2 + $0x1c00] sm:$0xf0]  ;;  %v16956_v58 = vld [vmem:[#allocation2 + $0x19d8] sm:$0xf0]  ;;  %v14910_v25 = vld [vmem:[#allocation2 + $0x1f40] sm:$0xf] }
 0x44c   :  { %8943 = vmatpush.bf16.msrb.mxu0 %v12795_v27  ;;  %v10954_v27 = vld [vmem:[#allocation2 + $0x58] sm:$0xf]  ;;  %v14451_v1 = vor.u32 %v17025_v15, %v14450_v12  ;;  %v17268_v12 = vld [vmem:[%s18462_s2 + $0x60] sm:$0xff] }
 0x44d   :  { %8918 = vmatpush.bf16.msra.mxu1 %v11231_v46  ;;  %v14542_v46 = vld [vmem:[#allocation2 + $0x1c60] sm:$0xf]  ;;  %v8665_v61 = vpop.f32.mrf.mxu0 }
 0x44e   :  { %8956 = vmatpush.bf16.msrb.mxu2 %v13531_v28  ;;  %v16151_v28 = vld [vmem:[#allocation2 + $0xb0] sm:$0xf0] }
 0x44f   :  { %8931 = vmatpush.bf16.msra.mxu3 %v11967_v34  ;;  %v8626_v34 = vpop.f32.mrf.mxu3  ;;  %v10955_v0 = vor.u32 %v16151_v28, %v10954_v27  ;;  %v17271_v27 = vld [vmem:[%s18462_s2 + $0x78] sm:$0xff]  ;;  %v17262_v28 = vld [vmem:[%s18462_s2 + $0x30] sm:$0xff] }
 0x450   :  { %8944 = vmatpush.bf16.msrb.mxu0 %v12703_v39  ;;  %v13162_v39 = vld [vmem:[#allocation2 + $0x1198] sm:$0xf]  ;;  %v16979_v34 = vld [vmem:[#allocation2 + $0x1a90] sm:$0xf0] }
 0x451   :  { %8919 = vmatpush.bf16.msra.mxu1 %v11139_v10  ;;  %v14543_v10 = vor.u32 %v17048_v49, %v14542_v46  ;;  %v13163_v16 = vor.u32 %v16703_v3, %v13162_v39  ;;  %v14266_v46 = vld [vmem:[#allocation2 + $0x1a38] sm:$0xf]  ;;  %v17163_v49 = vld [vmem:[#allocation2 + $0x2050] sm:$0xf0]  ;;  %v17140_v39 = vld [vmem:[#allocation2 + $0x1f98] sm:$0xf0] }
 0x452   :  { %8957 = vmatpush.bf16.msrb.mxu2 %v13439_v2  ;;  %v11691_v2 = vor.u32 %v16335_v47, %v11690_v17  ;;  %v14082_v3 = vld [vmem:[#allocation2 + $0x18c8] sm:$0xf] }
 0x453   :  { %8932 = vmatpush.bf16.msra.mxu3 %v11875_v11  ;;  %v15279_v11 = vor.u32 %v17232_v56, %v15278_v53  ;;  %v17261_v56 = vld [vmem:[%s18462_s2 + $0x28] sm:$0xff] }
 0x454   :  { %8945 = vmatpush.bf16.msrb.mxu0 %v12611_v20  ;;  %v15371_v20 = vor.u32 %v17255_v4, %v15370_v5  ;;  %v16933_v5 = vld [vmem:[#allocation2 + $0x1920] sm:$0xf0]  ;;  %v14818_v4 = vld [vmem:[#allocation2 + $0x1e88] sm:$0xf] }
 0x455   :  { %8920 = vmatpush.bf16.msra.mxu1 %v11047_v32  ;;  %v17002_v32 = vld [vmem:[#allocation2 + $0x1b48] sm:$0xf0]  ;;  %v8676_v53 = vpop.f32.mrf.mxu1  ;;  %v14083_v59 = vor.u32 %v16933_v5, %v14082_v3  ;;  %v17286_v3 = vld [vmem:[%s18462_s2 + $0xf0] sm:$0xff]  ;;  %v17264_v5 = vld [vmem:[%s18462_s2 + $0x40] sm:$0xff] }
 0x456   :  { %8958 = vmatpush.bf16.msrb.mxu2 %v13347_v21  ;;  %v17263_v21 = vld [vmem:[%s18462_s2 + $0x38] sm:$0xff]  ;;  %v14359_v17 = vor.u32 %v17002_v32, %v14358_v63  ;;  %v17094_v63 = vld [vmem:[#allocation2 + $0x1e28] sm:$0xf0] }
 0x457   :  { %8933 = vmatpush.bf16.msra.mxu3 %v11783_v33  ;;  %v15094_v33 = vld [vmem:[#allocation2 + $0x20b0] sm:$0xf] }
 0x458   :  { %8946 = vmatpush.bf16.msrb.mxu0 %v12519_v44  ;;  %v15095_v47 = vor.u32 %v17186_v38, %v15094_v33  ;;  %v15002_v44 = vld [vmem:[#allocation2 + $0x1ff8] sm:$0xf]  ;;  %v17258_v38 = vld [vmem:[%s18462_s2 + $0x10] sm:$0xff] }
 0x459   :  { %8921 = vmatpush.bf16.msra.mxu1 %v10955_v0  ;;  %v15003_v61 = vor.u32 %v17163_v49, %v15002_v44  ;;  %v17260_v0 = vld [vmem:[%s18462_s2 + $0x20] sm:$0xff]  ;;  %v17267_v33 = vld [vmem:[%s18462_s2 + $0x58] sm:$0xff]  ;;  %v17071_v44 = vld [vmem:[#allocation2 + $0x1d70] sm:$0xf0] }
 0x45a   :  { %8959 = vmatpush.bf16.msrb.mxu2 %v13255_v50  ;;  %v14174_v50 = vld [vmem:[#allocation2 + $0x1980] sm:$0xf]  ;;  %v17266_v49 = vld [vmem:[%s18462_s2 + $0x50] sm:$0xff] }
 0x45b   :  { %8934 = vmatpush.bf16.msra.mxu3 %v11691_v2  ;;  %v14911_v2 = vor.u32 %v17140_v39, %v14910_v25  ;;  %v17265_v39 = vld [vmem:[%s18462_s2 + $0x48] sm:$0xff] }
 0x45c   :  { %8947 = vmatpush.bf16.msrb.mxu0 %v12427_v14  ;;  %8922 = vmatmul.bf16.vlgmr.msra.gmra.mxu1 %v17514_v55  ;;  %v17269_v55 = vld [vmem:[%s18462_s2 + $0x68] sm:$0xff]  ;;  %v8715_v13 = vpop.f32.mrf.mxu0 }
 0x45d   :  { %8966 = vmatpush.bf16.msrb.mxu1 %v14543_v10  ;;  %v17117_v10 = vld [vmem:[#allocation2 + $0x1ee0] sm:$0xf0]  ;;  %v8678_v15 = vpop.f32.mrf.mxu1 }
 0x45e   :  { %8960 = vmatpush.bf16.msrb.mxu2 %v13163_v16  ;;  %8935 = vmatmul.bf16.vlgmr.msra.gmra.mxu3 %v17523_v7  ;;  %v17270_v7 = vld [vmem:[%s18462_s2 + $0x70] sm:$0xff]  ;;  %v14819_v16 = vor.u32 %v17117_v10, %v14818_v4  ;;  %v17303_v4 = vld [vmem:[%s18462_s2 + $0x178] sm:$0xff]  ;;  %v17276_v15 = vld [vmem:[%s18462_s2 + $0xa0] sm:$0xff] }
 0x45f   :  { %8979 = vmatpush.bf16.msrb.mxu3 %v15279_v11  ;;  %8948 = vmatmul.bf16.vlgmr.msrb.gmra.mxu0 %v17512_v51  ;;  %v8677_v51 = vadd.f32 %v8676_v53, %v17836_v62  ;;  %v14175_v62 = vor.u32 %v16956_v58, %v14174_v50  ;;  %v8689_v11 = vpop.f32.mrf.mxu3  ;;  %v17279_v50 = vld [vmem:[%s18462_s2 + $0xb8] sm:$0xff] }
 0x460   :  { %8999 = vmatpush.bf16.msra.mxu0 %v15371_v20  ;;  %v13990_v20 = vld [vmem:[#allocation2 + $0x1810] sm:$0xf]  ;;  %v17287_v58 = vld [vmem:[%s18462_s2 + $0xf8] sm:$0xff] }
 0x461   :  { %8967 = vmatpush.bf16.msrb.mxu1 %v14451_v1  ;;  %8961 = vmatmul.bf16.vlgmr.msrb.gmra.mxu2 %v17516_v57  ;;  %v14267_v57 = vor.u32 %v16979_v34, %v14266_v46  ;;  %v8690_v14 = vadd.f32 %v8689_v11, %v8677_v51  ;;  %v16910_v1 = vld [vmem:[#allocation2 + $0x1868] sm:$0xf0]  ;;  %v16887_v46 = vld [vmem:[#allocation2 + $0x17b0] sm:$0xf0]  ;;  %v14634_v34 = vld [vmem:[#allocation2 + $0x1d18] sm:$0xf] }
 0x462   :  { %10495 = vmatpush.bf16.msra.mxu2 %v17263_v21  ;;  %v8702_v21 = vpop.f32.mrf.mxu2  ;;  %v17257_v51 = vld [vmem:[%s18462_s2 + $0x8] sm:$0xff] }
 0x463   :  { %8980 = vmatpush.bf16.msrb.mxu3 %v15187_v54  ;;  %v14726_v54 = vld [vmem:[#allocation2 + $0x1dd0] sm:$0xf]  ;;  %v8703_v32 = vadd.f32 %v8702_v21, %v8690_v14  ;;  %v17293_v14 = vld [vmem:[%s18462_s2 + $0x128] sm:$0xff]  ;;  %v17283_v21 = vld [vmem:[%s18462_s2 + $0xd8] sm:$0xff] }
 0x464   :  { %10508 = vmatpush.bf16.msrb.mxu0 %v17271_v27  ;;  %v8717_v53 = vpop.f32.mrf.mxu0 }
 0x465   :  { %8968 = vmatpush.bf16.msrb.mxu1 %v14359_v17  ;;  %v8716_v27 = vadd.f32 %v8715_v13, %v8703_v32  ;;  %v14727_v17 = vor.u32 %v17094_v63, %v14726_v54  ;;  %v17302_v13 = vld [vmem:[%s18462_s2 + $0x170] sm:$0xff]  ;;  %v17300_v54 = vld [vmem:[%s18462_s2 + $0x160] sm:$0xff]  ;;  %v17291_v32 = vld [vmem:[%s18462_s2 + $0x118] sm:$0xff] }
 0x466   :  { %10496 = vmatpush.bf16.msra.mxu2 %v17262_v28  ;;  %v13991_v28 = vor.u32 %v16910_v1, %v13990_v20  ;;  %v17275_v20 = vld [vmem:[%s18462_s2 + $0x98] sm:$0xff]  ;;  %v17298_v53 = vld [vmem:[%s18462_s2 + $0x150] sm:$0xff] }
 0x467   :  { %8981 = vmatpush.bf16.msrb.mxu3 %v15095_v47  ;;  %v13898_v47 = vld [vmem:[#allocation2 + $0x1758] sm:$0xf] }
 0x468   :  { %10509 = vmatpush.bf16.msrb.mxu0 %v17270_v7  ;;  %v8691_v7 = vpop.f32.mrf.mxu3 }
 0x469   :  { %8969 = vmatpush.bf16.msrb.mxu1 %v14267_v57 }
 0x46a   :  { %10497 = vmatpush.bf16.msra.mxu2 %v17261_v56  ;;  %v8728_v56 = vpop.f32.mrf.mxu1  ;;  %v8704_v25 = vpop.f32.mrf.mxu2 }
 0x46b   :  { %8982 = vmatpush.bf16.msrb.mxu3 %v15003_v61  ;;  %v17884_v57 = vadd.f32 %v8728_v56, %v8716_v27  ;;  %v14635_v61 = vor.u32 %v17071_v44, %v14634_v34  ;;  %v17282_v27 = vld [vmem:[%s18462_s2 + $0xd0] sm:$0xff]  ;;  %v17273_v44 = vld [vmem:[%s18462_s2 + $0x88] sm:$0xff]  ;;  %v9007_v25 = vmax.f32 %v17602_v48, 0.0  ;;  %v17288_v48 = vld [vmem:[%s18462_s2 + $0x100] sm:$0xff] }
 0x46c   :  { %10510 = vmatpush.bf16.msrb.mxu0 %v17269_v55  ;;  %v17256_v55 = vld [vmem:[%s18462_s2] sm:$0xff] }
 0x46d   :  { %8970 = vmatpush.bf16.msrb.mxu1 %v14175_v62  ;;  %v17295_v62 = vld [vmem:[%s18462_s2 + $0x138] sm:$0xff] }
 0x46e   :  { %10498 = vmatpush.bf16.msra.mxu2 %v17260_v0  ;;  %v9005_v0 = vmax.f32 %v17571_v31, 0.0  ;;  %v9006_v31 = vmax.f32 %v17584_v23, 0.0 }
 0x46f   :  { %8983 = vmatpush.bf16.msrb.mxu3 %v14911_v2  ;;  %15394 = vmatmul.msk.bf16.vlgmr.msra.gmra.mxu0 %vm6908_vm0, %v17530_v45  ;;  %v13899_v45 = vor.u32 %v16887_v46, %v13898_v47  ;;  %v17278_v2 = vld [vmem:[%s18462_s2 + $0xb0] sm:$0xff] }
 0x470   :  { %10511 = vmatpush.bf16.msrb.mxu0 %v17268_v12  ;;  %v9028_v11 = vpack.c.bf16 %v9005_v0, %v9005_v0  ;;  %v17294_v12 = vld [vmem:[%s18462_s2 + $0x130] sm:$0xff]  ;;  %v9029_v23 = vpack.c.bf16 %v9006_v31, %v9006_v31  ;;  %v17319_v0 = vld [vmem:[%s18462_s2 + $0x1f8] sm:$0xff] }
 0x471   :  { %8971 = vmatpush.bf16.msrb.mxu1 %v14083_v59  ;;  %v17301_v59 = vld [vmem:[%s18462_s2 + $0x168] sm:$0xff]  ;;  %v17290_v46 = vld [vmem:[%s18462_s2 + $0x110] sm:$0xff]  ;;  %v17327_v31 = vld [vmem:[%s18462_s2 + $0x238] sm:$0xff] }
 0x472   :  { %10499 = vmatpush.bf16.msra.mxu2 %v17259_v9  ;;  %v8730_v10 = vpop.f32.mrf.mxu1  ;;  %v17284_v9 = vld [vmem:[%s18462_s2 + $0xe0] sm:$0xff] }
 0x473   :  { %8984 = vmatpush.bf16.msrb.mxu3 %v14819_v16  ;;  %v17292_v16 = vld [vmem:[%s18462_s2 + $0x120] sm:$0xff]  ;;  %v17318_v10 = vld [vmem:[%s18462_s2 + $0x1f0] sm:$0xff] }
 0x474   :  { %10512 = vmatpush.bf16.msrb.mxu0 %v17267_v33 }
 0x475   :  { %8972 = vmatpush.bf16.msrb.mxu1 %v13991_v28 }
 0x476   :  { %10500 = vmatpush.bf16.msra.mxu2 %v17258_v38  ;;  %v17274_v38 = vld [vmem:[%s18462_s2 + $0x90] sm:$0xff] }
 0x477   :  { %8985 = vmatpush.bf16.msrb.mxu3 %v14727_v17  ;;  %v17299_v17 = vld [vmem:[%s18462_s2 + $0x158] sm:$0xff] }
 0x478   :  { %10513 = vmatpush.bf16.msrb.mxu0 %v17266_v49  ;;  %v17281_v49 = vld [vmem:[%s18462_s2 + $0xc8] sm:$0xff] }
 0x479   :  { %8973 = vmatpush.bf16.msrb.mxu1 %v13899_v45  ;;  %v17289_v45 = vld [vmem:[%s18462_s2 + $0x108] sm:$0xff] }
 0x47a   :  { %10501 = vmatpush.bf16.msra.mxu2 %v17257_v51  ;;  %v8754_v63 = vpop.f32.mrf.mxu1 }
 0x47b   :  { %8986 = vmatpush.bf16.msrb.mxu3 %v14635_v61 }
 0x47c   :  { %10514 = vmatpush.bf16.msrb.mxu0 %v17265_v39  ;;  %8974 = vmatmul.bf16.vlgmr.msrb.gmra.mxu1 %v17540_v30  ;;  %v17277_v30 = vld [vmem:[%s18462_s2 + $0xa8] sm:$0xff]  ;;  %v8780_v1 = vpop.f32.mrf.mxu0  ;;  %v9008_v39 = vmax.f32 %v17613_v22, 0.0  ;;  %v9030_v22 = vpack.c.bf16 %v9007_v25, %v9007_v25  ;;  %v17330_v25 = vld [vmem:[%s18462_s2 + $0x250] sm:$0xff] }
 0x47d   :  { %10521 = vmatpush.bf16.msra.mxu1 %v17279_v50  ;;  %v8741_v28 = vpop.f32.mrf.mxu3  ;;  %v17272_v50 = vld [vmem:[%s18462_s2 + $0x80] sm:$0xff] }
 0x47e   :  { %8987 = vmatmul.bf16.vlgmr.msrb.gmra.mxu3 %v17542_v35  ;;  %10502 = vmatpush.bf16.msra.mxu2 %v17256_v55  ;;  %v17285_v35 = vld [vmem:[%s18462_s2 + $0xe8] sm:$0xff]  ;;  %v8755_v47 = vadd.f32 %v8754_v63, %v8741_v28  ;;  %v17311_v55 = vld [vmem:[%s18462_s2 + $0x1b8] sm:$0xff]  ;;  %v17332_v28 = vld [vmem:[%s18462_s2 + $0x260] sm:$0xff] }
 0x47f   :  { %10534 = vmatpush.bf16.msra.mxu3 %v17287_v58  ;;  %v17280_v58 = vld [vmem:[%s18462_s2 + $0xc0] sm:$0xff] }
 0x480   :  { %10515 = vmatpush.bf16.msrb.mxu0 %v17264_v5  ;;  %v8767_v33 = vpop.f32.mrf.mxu2  ;;  %v9009_v5 = vmax.f32 %v17631_v37, 0.0  ;;  %v9010_v37 = vmax.f32 %v17642_v24, 0.0  ;;  %v17309_v24 = vld [vmem:[%s18462_s2 + $0x1a8] sm:$0xff] }
 0x481   :  { %10522 = vmatpush.bf16.msra.mxu1 %v17278_v2  ;;  %10503 = vmatmul.bf16.vlgmr.msra.gmra.mxu2 %v9028_v11  ;;  %v8768_v34 = vadd.f32 %v8767_v33, %v8755_v47  ;;  %v17297_v2 = vld [vmem:[%s18462_s2 + $0x148] sm:$0xff]  ;;  %v17296_v11 = vld [vmem:[%s18462_s2 + $0x140] sm:$0xff]  ;;  %v17307_v33 = vld [vmem:[%s18462_s2 + $0x198] sm:$0xff] }
 0x482   :  { %10547 = vmatpush.bf16.msrb.mxu2 %v17295_v62  ;;  %v8756_v56 = vpop.f32.mrf.mxu1  ;;  %v17323_v47 = vld [vmem:[%s18462_s2 + $0x218] sm:$0xff] }
 0x483   :  { %10535 = vmatpush.bf16.msra.mxu3 %v17286_v3  ;;  %10516 = vmatmul.bf16.vlgmr.msrb.gmra.mxu0 %v9029_v23  ;;  %v17977_v51 = vadd.f32 %v8780_v1, %v8768_v34  ;;  %v9031_v3 = vpack.c.bf16 %v9008_v39, %v9008_v39  ;;  %v17326_v23 = vld [vmem:[%s18462_s2 + $0x230] sm:$0xff]  ;;  %v17321_v39 = vld [vmem:[%s18462_s2 + $0x208] sm:$0xff] }
 0x484   :  { %10560 = vmatpush.bf16.msra.mxu0 %v17303_v4  ;;  %v8782_v7 = vpop.f32.mrf.mxu0  ;;  %v17310_v4 = vld [vmem:[%s18462_s2 + $0x1b0] sm:$0xff] }
 0x485   :  { %10523 = vmatpush.bf16.msra.mxu1 %v17277_v30  ;;  %v8743_v62 = vpop.f32.mrf.mxu3  ;;  %v17314_v34 = vld [vmem:[%s18462_s2 + $0x1d0] sm:$0xff] }
 0x486   :  { %10548 = vmatpush.bf16.msrb.mxu2 %v17294_v12  ;;  %v17335_v12 = vld [vmem:[%s18462_s2 + $0x278] sm:$0xff]  ;;  %v17322_v56 = vld [vmem:[%s18462_s2 + $0x210] sm:$0xff]  ;;  %v9011_v62 = vmax.f32 %v17660_v36, 0.0  ;;  %v17320_v36 = vld [vmem:[%s18462_s2 + $0x200] sm:$0xff] }
 0x487   :  { %10536 = vmatpush.bf16.msra.mxu3 %v17285_v35  ;;  %v9032_v35 = vpack.c.bf16 %v9009_v5, %v9009_v5 }
 0x488   :  { %10561 = vmatpush.bf16.msra.mxu0 %v17302_v13  ;;  %v8769_v61 = vpop.f32.mrf.mxu2  ;;  %v17317_v13 = vld [vmem:[%s18462_s2 + $0x1e8] sm:$0xff] }
 0x489   :  { %10524 = vmatpush.bf16.msra.mxu1 %v17276_v15  ;;  %v17334_v15 = vld [vmem:[%s18462_s2 + $0x270] sm:$0xff]  ;;  %v17305_v61 = vld [vmem:[%s18462_s2 + $0x188] sm:$0xff] }
 0x48a   :  { %10549 = vmatpush.bf16.msrb.mxu2 %v17293_v14  ;;  %v9033_v14 = vpack.c.bf16 %v9010_v37, %v9010_v37  ;;  %v17350_v37 = vld [vmem:[%s18462_s2 + $0x2f0] sm:$0xff] }
 0x48b   :  { %10537 = vmatpush.bf16.msra.mxu3 %v17284_v9  ;;  %v17325_v9 = vld [vmem:[%s18462_s2 + $0x228] sm:$0xff] }
 0x48c   :  { %10562 = vmatpush.bf16.msra.mxu0 %v17301_v59  ;;  %v17308_v59 = vld [vmem:[%s18462_s2 + $0x1a0] sm:$0xff] }
 0x48d   :  { %10525 = vmatpush.bf16.msra.mxu1 %v17275_v20  ;;  %v17333_v20 = vld [vmem:[%s18462_s2 + $0x268] sm:$0xff] }
 0x48e   :  { %10550 = vmatpush.bf16.msrb.mxu2 %v17292_v16  ;;  %v17316_v16 = vld [vmem:[%s18462_s2 + $0x1e0] sm:$0xff] }
 0x48f   :  { %10538 = vmatpush.bf16.msra.mxu3 %v17283_v21 }
 0x490   :  { %10563 = vmatpush.bf16.msra.mxu0 %v17300_v54  ;;  %v8819_v30 = vpop.f32.mrf.mxu2  ;;  %v17324_v54 = vld [vmem:[%s18462_s2 + $0x220] sm:$0xff] }
 0x491   :  { %10526 = vmatpush.bf16.msra.mxu1 %v17274_v38  ;;  %v17315_v38 = vld [vmem:[%s18462_s2 + $0x1d8] sm:$0xff] }
 0x492   :  { %10551 = vmatpush.bf16.msrb.mxu2 %v17291_v32 }
 0x493   :  { %10539 = vmatpush.bf16.msra.mxu3 %v17282_v27 }
 0x494   :  { %10564 = vmatpush.bf16.msra.mxu0 %v17299_v17 }
 0x495   :  { %10527 = vmatpush.bf16.msra.mxu1 %v17273_v44 }
 0x496   :  { %10552 = vmatpush.bf16.msrb.mxu2 %v17290_v46  ;;  %v17306_v46 = vld [vmem:[%s18462_s2 + $0x190] sm:$0xff] }
 0x497   :  { %10540 = vmatpush.bf16.msra.mxu3 %v17281_v49  ;;  %v17331_v49 = vld [vmem:[%s18462_s2 + $0x258] sm:$0xff] }
 0x498   :  { %10565 = vmatpush.bf16.msra.mxu0 %v17298_v53  ;;  %v8821_v1 = vpop.f32.mrf.mxu2 }
 0x499   :  { %10528 = vmatpush.bf16.msra.mxu1 %v17272_v50  ;;  %v8806_v21 = vpop.f32.mrf.mxu1  ;;  %v17313_v50 = vld [vmem:[%s18462_s2 + $0x1c8] sm:$0xff]  ;;  %v17356_v1 = vld [vmem:[%s18462_s2 + $0x320] sm:$0xff] }
 0x49a   :  { %10553 = vmatpush.bf16.msrb.mxu2 %v17289_v45 }
 0x49b   :  { %10541 = vmatpush.bf16.msra.mxu3 %v17280_v58 }
 0x49c   :  { %10566 = vmatpush.bf16.msra.mxu0 %v17297_v2  ;;  %10529 = vmatmul.bf16.vlgmr.msra.gmra.mxu1 %v9030_v22  ;;  %v8832_v63 = vpop.f32.mrf.mxu0  ;;  %v9012_v2 = vmax.f32 %v17671_v19, 0.0  ;;  %v17351_v22 = vld [vmem:[%s18462_s2 + $0x2f8] sm:$0xff]  ;;  %v9034_v19 = vpack.c.bf16 %v9011_v62, %v9011_v62  ;;  %v9016_v62 = vmax.f32 %v17729_v60, 0.0 }
 0x49d   :  { %10573 = vmatpush.bf16.msrb.mxu1 %v17311_v55  ;;  %v8793_v32 = vpop.f32.mrf.mxu3  ;;  %v17304_v55 = vld [vmem:[%s18462_s2 + $0x180] sm:$0xff] }
 0x49e   :  { %10542 = vmatmul.bf16.vlgmr.msra.gmra.mxu3 %v9031_v3  ;;  %10554 = vmatpush.bf16.msrb.mxu2 %v17288_v48  ;;  %v8794_v27 = vadd.f32 %v8793_v32, %v17977_v51  ;;  %v17343_v48 = vld [vmem:[%s18462_s2 + $0x2b8] sm:$0xff]  ;;  %v17329_v3 = vld [vmem:[%s18462_s2 + $0x248] sm:$0xff] }
 0x49f   :  { %10586 = vmatpush.bf16.msrb.mxu3 %v17319_v0  ;;  %v17312_v0 = vld [vmem:[%s18462_s2 + $0x1c0] sm:$0xff]  ;;  %v17339_v32 = vld [vmem:[%s18462_s2 + $0x298] sm:$0xff] }
 0x4a0   :  { %10567 = vmatpush.bf16.msra.mxu0 %v17296_v11  ;;  %v8807_v17 = vadd.f32 %v8806_v21, %v8794_v27  ;;  %v17342_v11 = vld [vmem:[%s18462_s2 + $0x2b0] sm:$0xff] }
 0x4a1   :  { %10574 = vmatpush.bf16.msrb.mxu1 %v17310_v4  ;;  %10555 = vmatmul.bf16.vlgmr.msrb.gmra.mxu2 %v9032_v35  ;;  %v8808_v7 = vpop.f32.mrf.mxu1  ;;  %v9013_v4 = vmax.f32 %v17689_v8, 0.0  ;;  %v9014_v8 = vmax.f32 %v17700_v41, 0.0  ;;  %v17341_v41 = vld [vmem:[%s18462_s2 + $0x2a8] sm:$0xff] }
 0x4a2   :  { %10599 = vmatpush.bf16.msra.mxu2 %v17327_v31  ;;  %v18065_v44 = vadd.f32 %v8819_v30, %v8807_v17  ;;  %v9035_v31 = vpack.c.bf16 %v9012_v2, %v9012_v2  ;;  %v17367_v30 = vld [vmem:[%s18462_s2 + $0x378] sm:$0xff]  ;;  %v17338_v17 = vld [vmem:[%s18462_s2 + $0x290] sm:$0xff] }
 0x4a3   :  { %10587 = vmatpush.bf16.msrb.mxu3 %v17318_v10  ;;  %10568 = vmatmul.bf16.vlgmr.msra.gmra.mxu0 %v9033_v14  ;;  %v17359_v10 = vld [vmem:[%s18462_s2 + $0x338] sm:$0xff]  ;;  %v9036_v35 = vpack.c.bf16 %v9013_v4, %v9013_v4  ;;  %v17366_v14 = vld [vmem:[%s18462_s2 + $0x370] sm:$0xff] }
 0x4a4   :  { %10612 = vmatpush.bf16.msrb.mxu0 %v17335_v12  ;;  %v8845_v53 = vpop.f32.mrf.mxu2  ;;  %v8834_v45 = vpop.f32.mrf.mxu0  ;;  %v17328_v12 = vld [vmem:[%s18462_s2 + $0x240] sm:$0xff]  ;;  %v17375_v2 = vld [vmem:[%s18462_s2 + $0x3b8] sm:$0xff]  ;;  %v17374_v4 = vld [vmem:[%s18462_s2 + $0x3b0] sm:$0xff] }
 0x4a5   :  { %10575 = vmatpush.bf16.msrb.mxu1 %v17309_v24  ;;  %v18073_v51 = vadd.f32 %v8845_v53, %v8832_v63  ;;  %v8795_v58 = vpop.f32.mrf.mxu3  ;;  %v17349_v24 = vld [vmem:[%s18462_s2 + $0x2e8] sm:$0xff] }
 0x4a6   :  { %10600 = vmatpush.bf16.msra.mxu2 %v17326_v23  ;;  %v17358_v23 = vld [vmem:[%s18462_s2 + $0x330] sm:$0xff] }
 0x4a7   :  { %10588 = vmatpush.bf16.msrb.mxu3 %v17317_v13  ;;  %v9037_v13 = vpack.c.bf16 %v9014_v8, %v9014_v8  ;;  %v17362_v58 = vld [vmem:[%s18462_s2 + $0x350] sm:$0xff] }
 0x4a8   :  { %10613 = vmatpush.bf16.msrb.mxu0 %v17334_v15  ;;  %v17357_v15 = vld [vmem:[%s18462_s2 + $0x328] sm:$0xff]  ;;  %v17390_v8 = vld [vmem:[%s18462_s2 + $0x430] sm:$0xff] }
 0x4a9   :  { %10576 = vmatpush.bf16.msrb.mxu1 %v17308_v59  ;;  %v17348_v59 = vld [vmem:[%s18462_s2 + $0x2e0] sm:$0xff] }
 0x4aa   :  { %10601 = vmatpush.bf16.msra.mxu2 %v17325_v9  ;;  %v17340_v9 = vld [vmem:[%s18462_s2 + $0x2a0] sm:$0xff] }
 0x4ab   :  { %10589 = vmatpush.bf16.msrb.mxu3 %v17316_v16  ;;  %v17365_v16 = vld [vmem:[%s18462_s2 + $0x368] sm:$0xff] }
 0x4ac   :  { %10614 = vmatpush.bf16.msrb.mxu0 %v17333_v20  ;;  %v8847_v5 = vpop.f32.mrf.mxu2 }
 0x4ad   :  { %10577 = vmatpush.bf16.msrb.mxu1 %v17307_v33  ;;  %v17347_v33 = vld [vmem:[%s18462_s2 + $0x2d8] sm:$0xff] }
 0x4ae   :  { %10602 = vmatpush.bf16.msra.mxu2 %v17324_v54 }
 0x4af   :  { %10590 = vmatpush.bf16.msrb.mxu3 %v17315_v38  ;;  %v17364_v38 = vld [vmem:[%s18462_s2 + $0x360] sm:$0xff] }
 0x4b0   :  { %10615 = vmatpush.bf16.msrb.mxu0 %v17332_v28  ;;  %v17355_v28 = vld [vmem:[%s18462_s2 + $0x318] sm:$0xff] }
 0x4b1   :  { %10578 = vmatpush.bf16.msrb.mxu1 %v17306_v46 }
 0x4b2   :  { %10603 = vmatpush.bf16.msra.mxu2 %v17323_v47  ;;  %v17346_v47 = vld [vmem:[%s18462_s2 + $0x2d0] sm:$0xff] }
 0x4b3   :  { %10591 = vmatpush.bf16.msrb.mxu3 %v17314_v34  ;;  %v17363_v34 = vld [vmem:[%s18462_s2 + $0x358] sm:$0xff] }
 0x4b4   :  { %10616 = vmatpush.bf16.msrb.mxu0 %v17331_v49 }
 0x4b5   :  { %10579 = vmatpush.bf16.msrb.mxu1 %v17305_v61  ;;  %v17337_v61 = vld [vmem:[%s18462_s2 + $0x288] sm:$0xff] }
 0x4b6   :  { %10604 = vmatpush.bf16.msra.mxu2 %v17322_v56 }
 0x4b7   :  { %10592 = vmatpush.bf16.msrb.mxu3 %v17313_v50  ;;  %v17345_v50 = vld [vmem:[%s18462_s2 + $0x2c8] sm:$0xff] }
 0x4b8   :  { %10617 = vmatpush.bf16.msrb.mxu0 %v17330_v25  ;;  %v17353_v25 = vld [vmem:[%s18462_s2 + $0x308] sm:$0xff] }
 0x4b9   :  { %10580 = vmatpush.bf16.msrb.mxu1 %v17304_v55  ;;  %v8871_v20 = vpop.f32.mrf.mxu1  ;;  %v17344_v55 = vld [vmem:[%s18462_s2 + $0x2c0] sm:$0xff] }
 0x4ba   :  { %10605 = vmatpush.bf16.msra.mxu2 %v17321_v39  ;;  %v17336_v39 = vld [vmem:[%s18462_s2 + $0x280] sm:$0xff] }
 0x4bb   :  { %10593 = vmatpush.bf16.msrb.mxu3 %v17312_v0  ;;  %v9015_v0 = vmax.f32 %v17718_v43, 0.0  ;;  %v17352_v43 = vld [vmem:[%s18462_s2 + $0x300] sm:$0xff] }
 0x4bc   :  { %10618 = vmatpush.bf16.msrb.mxu0 %v17329_v3  ;;  %10581 = vmatmul.bf16.vlgmr.msrb.gmra.mxu1 %v9034_v19  ;;  %v8884_v54 = vpop.f32.mrf.mxu0  ;;  %v17361_v3 = vld [vmem:[%s18462_s2 + $0x348] sm:$0xff]  ;;  %v9017_v19 = vmax.f32 %v17747_v52, 0.0  ;;  %v9018_v52 = vmax.f32 %v17758_v26, 0.0 }
 0x4bd   :  { %10625 = vmatpush.bf16.msra.mxu1 %v17343_v48  ;;  %v8858_v21 = vpop.f32.mrf.mxu3  ;;  %v17383_v48 = vld [vmem:[%s18462_s2 + $0x3f8] sm:$0xff]  ;;  %v9038_v60 = vpack.c.bf16 %v9015_v0, %v9015_v0  ;;  %v17373_v26 = vld [vmem:[%s18462_s2 + $0x3a8] sm:$0xff] }
 0x4be   :  { %10594 = vmatmul.bf16.vlgmr.msrb.gmra.mxu3 %v9035_v31  ;;  %10606 = vmatpush.bf16.msra.mxu2 %v17320_v36  ;;  %v8859_v63 = vadd.f32 %v8858_v21, %v18073_v51  ;;  %v17354_v51 = vld [vmem:[%s18462_s2 + $0x310] sm:$0xff]  ;;  %v9039_v36 = vpack.c.bf16 %v9016_v62, %v9016_v62  ;;  %v17391_v31 = vld [vmem:[%s18462_s2 + $0x438] sm:$0xff]  ;;  %v17393_v0 = vld [vmem:[%s18462_s2 + $0x448] sm:$0xff] }
 0x4bf   :  { %10638 = vmatpush.bf16.msra.mxu3 %v17351_v22  ;;  %v17379_v21 = vld [vmem:[%s18462_s2 + $0x3d8] sm:$0xff] }
 0x4c0   :  { %10619 = vmatpush.bf16.msrb.mxu0 %v17328_v12  ;;  %v8872_v27 = vadd.f32 %v8871_v20, %v8859_v63  ;;  %v9040_v12 = vpack.c.bf16 %v9017_v19, %v9017_v19  ;;  %v17371_v20 = vld [vmem:[%s18462_s2 + $0x398] sm:$0xff]  ;;  %v17422_v19 = vld [vmem:[%s18462_s2 + $0x530] sm:$0xff] }
 0x4c1   :  { %10626 = vmatpush.bf16.msra.mxu1 %v17342_v11  ;;  %10607 = vmatmul.bf16.vlgmr.msra.gmra.mxu2 %v9036_v35  ;;  %v8873_v7 = vpop.f32.mrf.mxu1  ;;  %v17360_v11 = vld [vmem:[%s18462_s2 + $0x340] sm:$0xff]  ;;  %v9041_v35 = vpack.c.bf16 %v9018_v52, %v9018_v52  ;;  %v17387_v63 = vld [vmem:[%s18462_s2 + $0x418] sm:$0xff] }
 0x4c2   :  { %10651 = vmatpush.bf16.msrb.mxu2 %v17359_v10  ;;  %v8885_v46 = vadd.f32 %v8884_v54, %v8872_v27  ;;  %v17382_v10 = vld [vmem:[%s18462_s2 + $0x3f0] sm:$0xff]  ;;  %v17395_v27 = vld [vmem:[%s18462_s2 + $0x458] sm:$0xff] }
 0x4c3   :  { %10639 = vmatpush.bf16.msra.mxu3 %v17350_v37  ;;  %10620 = vmatmul.bf16.vlgmr.msrb.gmra.mxu0 %v9037_v13  ;;  %v17399_v37 = vld [vmem:[%s18462_s2 + $0x478] sm:$0xff]  ;;  %v17372_v13 = vld [vmem:[%s18462_s2 + $0x3a0] sm:$0xff] }
 0x4c4   :  { %10664 = vmatpush.bf16.msra.mxu0 %v17367_v30  ;;  %v8897_v49 = vpop.f32.mrf.mxu2  ;;  %v8886_v45 = vpop.f32.mrf.mxu0  ;;  %v17381_v30 = vld [vmem:[%s18462_s2 + $0x3e8] sm:$0xff] }
 0x4c5   :  { %10627 = vmatpush.bf16.msra.mxu1 %v17341_v41  ;;  %v18173_v53 = vadd.f32 %v8897_v49, %v8885_v46  ;;  %v8860_v56 = vpop.f32.mrf.mxu3  ;;  %v17369_v46 = vld [vmem:[%s18462_s2 + $0x388] sm:$0xff]  ;;  %v17394_v49 = vld [vmem:[%s18462_s2 + $0x450] sm:$0xff]  ;;  %v17376_v45 = vld [vmem:[%s18462_s2 + $0x3c0] sm:$0xff] }
 0x4c6   :  { %10652 = vmatpush.bf16.msrb.mxu2 %v17358_v23  ;;  %v17398_v23 = vld [vmem:[%s18462_s2 + $0x470] sm:$0xff]  ;;  %v17385_v56 = vld [vmem:[%s18462_s2 + $0x408] sm:$0xff] }
 0x4c7   :  { %10640 = vmatpush.bf16.msra.mxu3 %v17349_v24  ;;  %v17389_v24 = vld [vmem:[%s18462_s2 + $0x428] sm:$0xff] }
 0x4c8   :  { %10665 = vmatpush.bf16.msra.mxu0 %v17366_v14  ;;  %v17380_v14 = vld [vmem:[%s18462_s2 + $0x3e0] sm:$0xff] }
 0x4c9   :  { %10628 = vmatpush.bf16.msra.mxu1 %v17340_v9 }
 0x4ca   :  { %10653 = vmatpush.bf16.msrb.mxu2 %v17357_v15  ;;  %v17397_v15 = vld [vmem:[%s18462_s2 + $0x468] sm:$0xff] }
 0x4cb   :  { %10641 = vmatpush.bf16.msra.mxu3 %v17348_v59  ;;  %v17388_v59 = vld [vmem:[%s18462_s2 + $0x420] sm:$0xff] }
 0x4cc   :  { %10666 = vmatpush.bf16.msra.mxu0 %v17365_v16  ;;  %v8899_v22 = vpop.f32.mrf.mxu2 }
 0x4cd   :  { %10629 = vmatpush.bf16.msra.mxu1 %v17339_v32  ;;  %v18207_v5 = vpop.f32.mrf.mxu3  ;;  %v17370_v32 = vld [vmem:[%s18462_s2 + $0x390] sm:$0xff] }
 0x4ce   :  { %10654 = vmatpush.bf16.msrb.mxu2 %v17356_v1  ;;  %v17396_v1 = vld [vmem:[%s18462_s2 + $0x460] sm:$0xff]  ;;  %v17406_v22 = vld [vmem:[%s18462_s2 + $0x4b0] sm:$0xff] }
 0x4cf   :  { %10642 = vmatpush.bf16.msra.mxu3 %v17347_v33  ;;  %v17378_v33 = vld [vmem:[%s18462_s2 + $0x3d0] sm:$0xff] }
 0x4d0   :  { %10667 = vmatpush.bf16.msra.mxu0 %v17364_v38 }
 0x4d1   :  { %10630 = vmatpush.bf16.msra.mxu1 %v17338_v17  ;;  %v17386_v17 = vld [vmem:[%s18462_s2 + $0x410] sm:$0xff] }
 0x4d2   :  { %10655 = vmatpush.bf16.msrb.mxu2 %v17355_v28 }
 0x4d3   :  { %10643 = vmatpush.bf16.msra.mxu3 %v17346_v47 }
 0x4d4   :  { %10668 = vmatpush.bf16.msra.mxu0 %v17363_v34  ;;  %v17377_v34 = vld [vmem:[%s18462_s2 + $0x3c8] sm:$0xff] }
 0x4d5   :  { %10631 = vmatpush.bf16.msra.mxu1 %v17337_v61  ;;  %v8912_v41 = vpop.f32.mrf.mxu3 }
 0x4d6   :  { %10656 = vmatpush.bf16.msrb.mxu2 %v17354_v51  ;;  %v17368_v51 = vld [vmem:[%s18462_s2 + $0x380] sm:$0xff] }
 0x4d7   :  { %10644 = vmatpush.bf16.msra.mxu3 %v17345_v50  ;;  %v9019_v50 = vmax.f32 %v17776_v29, 0.0  ;;  %v17384_v29 = vld [vmem:[%s18462_s2 + $0x400] sm:$0xff] }
 0x4d8   :  { %10669 = vmatpush.bf16.msra.mxu0 %v17362_v58  ;;  %v9020_v58 = vmax.f32 %v17787_v18, 0.0 }
 0x4d9   :  { %10632 = vmatpush.bf16.msra.mxu1 %v17336_v39  ;;  %v18258_v16 = vpop.f32.mrf.mxu1  ;;  %v17415_v39 = vld [vmem:[%s18462_s2 + $0x4f8] sm:$0xff]  ;;  %v9042_v18 = vpack.c.bf16 %v9019_v50, %v9019_v50  ;;  %v8911_v50 = vadd.f32 %v18207_v5, %v18173_v53  ;;  %v17434_v53 = vld [vmem:[%s18462_s2 + $0x590] sm:$0xff] }
 0x4da   :  { %10657 = vmatpush.bf16.msrb.mxu2 %v17353_v25  ;;  %v17407_v25 = vld [vmem:[%s18462_s2 + $0x4b8] sm:$0xff]  ;;  %v9043_v62 = vpack.c.bf16 %v9020_v58, %v9020_v58  ;;  %v9025_v58 = vmax.f32 %v18065_v44, 0.0 }
 0x4db   :  { %10645 = vmatpush.bf16.msra.mxu3 %v17344_v55  ;;  %v9026_v5 = vmax.f32 %v8911_v50, 0.0 }
 0x4dc   :  { %10670 = vmatpush.bf16.msra.mxu0 %v17361_v3  ;;  %10633 = vmatmul.bf16.vlgmr.msra.gmra.mxu1 %v9038_v60  ;;  %v18253_v9 = vpop.f32.mrf.mxu0  ;;  %v17414_v3 = vld [vmem:[%s18462_s2 + $0x4f0] sm:$0xff]  ;;  %v17431_v60 = vld [vmem:[%s18462_s2 + $0x578] sm:$0xff] }
 0x4dd   :  { %10677 = vmatpush.bf16.msrb.mxu1 %v17375_v2  ;;  %v9021_v2 = vmax.f32 %v17805_v42, 0.0  ;;  %v9022_v42 = vmax.f32 %v17816_v40, 0.0  ;;  %v17405_v40 = vld [vmem:[%s18462_s2 + $0x4a8] sm:$0xff] }
 0x4de   :  { %10646 = vmatmul.bf16.vlgmr.msra.gmra.mxu3 %v9039_v36  ;;  %10658 = vmatpush.bf16.msrb.mxu2 %v17352_v43  ;;  %v17392_v43 = vld [vmem:[%s18462_s2 + $0x440] sm:$0xff] }
 0x4df   :  { %10690 = vmatpush.bf16.msrb.mxu3 %v17383_v48  ;;  %v17423_v48 = vld [vmem:[%s18462_s2 + $0x538] sm:$0xff]  ;;  %v9044_v36 = vpack.c.bf16 %v9021_v2, %v9021_v2 }
 0x4e0   :  { %10671 = vmatpush.bf16.msra.mxu0 %v17360_v11  ;;  %v17430_v11 = vld [vmem:[%s18462_s2 + $0x570] sm:$0xff] }
 0x4e1   :  { %10678 = vmatpush.bf16.msrb.mxu1 %v17374_v4  ;;  %10659 = vmatmul.bf16.vlgmr.msrb.gmra.mxu2 %v9040_v12  ;;  %v18269_v54 = vpop.f32.mrf.mxu3  ;;  %v8925_v47 = vpop.f32.mrf.mxu1  ;;  %v17404_v12 = vld [vmem:[%s18462_s2 + $0x4a0] sm:$0xff] }
 0x4e2   :  { %10703 = vmatpush.bf16.msra.mxu2 %v17391_v31  ;;  %v17413_v31 = vld [vmem:[%s18462_s2 + $0x4e8] sm:$0xff]  ;;  %v8937_v47 = vadd.f32 %v18269_v54, %v18258_v16  ;;  %v17408_v16 = vld [vmem:[%s18462_s2 + $0x4c0] sm:$0xff]  ;;  %v9023_v54 = vmax.f32 %v17834_v6, 0.0 }
 0x4e3   :  { %10691 = vmatpush.bf16.msrb.mxu3 %v17382_v10  ;;  %10672 = vmatmul.bf16.vlgmr.msra.gmra.mxu0 %v9041_v35  ;;  %v9045_v10 = vpack.c.bf16 %v9022_v42, %v9022_v42  ;;  %v17403_v35 = vld [vmem:[%s18462_s2 + $0x498] sm:$0xff]  ;;  %v17416_v6 = vld [vmem:[%s18462_s2 + $0x500] sm:$0xff] }
 0x4e4   :  { %10716 = vmatpush.bf16.msrb.mxu0 %v17399_v37  ;;  %v18280_v38 = vpop.f32.mrf.mxu2  ;;  %v8951_v28 = vpop.f32.mrf.mxu0  ;;  %v17421_v37 = vld [vmem:[%s18462_s2 + $0x528] sm:$0xff] }
 0x4e5   :  { %10679 = vmatpush.bf16.msrb.mxu1 %v17373_v26  ;;  %v17429_v26 = vld [vmem:[%s18462_s2 + $0x568] sm:$0xff] }
 0x4e6   :  { %10704 = vmatpush.bf16.msra.mxu2 %v17390_v8  ;;  %v17412_v8 = vld [vmem:[%s18462_s2 + $0x4e0] sm:$0xff] }
 0x4e7   :  { %10692 = vmatpush.bf16.msrb.mxu3 %v17381_v30  ;;  %v17420_v30 = vld [vmem:[%s18462_s2 + $0x520] sm:$0xff] }
 0x4e8   :  { %10717 = vmatpush.bf16.msrb.mxu0 %v17398_v23  ;;  %v17411_v23 = vld [vmem:[%s18462_s2 + $0x4d8] sm:$0xff] }
 0x4e9   :  { %10680 = vmatpush.bf16.msrb.mxu1 %v17372_v13  ;;  %v8938_v7 = vpop.f32.mrf.mxu3  ;;  %v17428_v13 = vld [vmem:[%s18462_s2 + $0x560] sm:$0xff] }
 0x4ea   :  { %10705 = vmatpush.bf16.msra.mxu2 %v17389_v24  ;;  %v17400_v7 = vld [vmem:[%s18462_s2 + $0x480] sm:$0xff] }
 0x4eb   :  { %10693 = vmatpush.bf16.msrb.mxu3 %v17380_v14 }
 0x4ec   :  { %10718 = vmatpush.bf16.msrb.mxu0 %v17397_v15  ;;  %v8964_v61 = vpop.f32.mrf.mxu2  ;;  %v18314_v55 = vpop.f32.mrf.mxu0  ;;  %v17419_v15 = vld [vmem:[%s18462_s2 + $0x518] sm:$0xff] }
 0x4ed   :  { %10681 = vmatpush.bf16.msrb.mxu1 %v17371_v20  ;;  %v17402_v20 = vld [vmem:[%s18462_s2 + $0x490] sm:$0xff]  ;;  %v17435_v61 = vld [vmem:[%s18462_s2 + $0x598] sm:$0xff] }
 0x4ee   :  { %10706 = vmatpush.bf16.msra.mxu2 %v17388_v59 }
 0x4ef   :  { %10694 = vmatpush.bf16.msrb.mxu3 %v17379_v21  ;;  %v17410_v21 = vld [vmem:[%s18462_s2 + $0x4d0] sm:$0xff] }
 0x4f0   :  { %10719 = vmatpush.bf16.msrb.mxu0 %v17396_v1 }
 0x4f1   :  { %10682 = vmatpush.bf16.msrb.mxu1 %v17370_v32  ;;  %v17418_v32 = vld [vmem:[%s18462_s2 + $0x510] sm:$0xff] }
 0x4f2   :  { %10707 = vmatpush.bf16.msra.mxu2 %v17387_v63  ;;  %v17427_v63 = vld [vmem:[%s18462_s2 + $0x558] sm:$0xff] }
 0x4f3   :  { %10695 = vmatpush.bf16.msrb.mxu3 %v17378_v33  ;;  %v17401_v33 = vld [vmem:[%s18462_s2 + $0x488] sm:$0xff] }
 0x4f4   :  { %10720 = vmatpush.bf16.msrb.mxu0 %v17395_v27  ;;  %v9003_v4 = vpop.f32.mrf.mxu0  ;;  %v17409_v27 = vld [vmem:[%s18462_s2 + $0x4c8] sm:$0xff] }
 0x4f5   :  { %10683 = vmatpush.bf16.msrb.mxu1 %v17369_v46  ;;  %v17426_v46 = vld [vmem:[%s18462_s2 + $0x550] sm:$0xff] }
 0x4f6   :  { %10708 = vmatpush.bf16.msra.mxu2 %v17386_v17 }
 0x4f7   :  { %10696 = vmatpush.bf16.msrb.mxu3 %v17377_v34  ;;  %v17417_v34 = vld [vmem:[%s18462_s2 + $0x508] sm:$0xff] }
 0x4f8   :  { %10721 = vmatpush.bf16.msrb.mxu0 %v17394_v49 }
 0x4f9   :  { %10684 = vmatpush.bf16.msrb.mxu1 %v17368_v51  ;;  %v18351_v52 = vpop.f32.mrf.mxu1  ;;  %v8950_v51 = vadd.f32 %v18253_v9, %v8937_v47 }
 0x4fa   :  { %10709 = vmatpush.bf16.msra.mxu2 %v17385_v56  ;;  %v9024_v56 = vmax.f32 %v17884_v57, 0.0  ;;  %v9046_v57 = vpack.c.bf16 %v9023_v54, %v9023_v54 }
 0x4fb   :  { %10697 = vmatpush.bf16.msrb.mxu3 %v17376_v45  ;;  %v17425_v45 = vld [vmem:[%s18462_s2 + $0x548] sm:$0xff] }
 0x4fc   :  { %10722 = vmatpush.bf16.msrb.mxu0 %v17393_v0  ;;  %10685 = vmatmul.bf16.vlgmr.msrb.gmra.mxu1 %v9042_v18  ;;  %v9047_v9 = vpack.c.bf16 %v9024_v56, %v9024_v56  ;;  %v9049_v18 = vpack.c.bf16 %v9026_v5, %v9026_v5 }
 0x4fd   :  { %10729 = vmatpush.bf16.msra.mxu1 %v17407_v25  ;;  %v8963_v25 = vadd.f32 %v18280_v38, %v8950_v51  ;;  %v17433_v38 = vld [vmem:[%s18462_s2 + $0x588] sm:$0xff] }
 0x4fe   :  { %10698 = vmatmul.bf16.vlgmr.msrb.gmra.mxu3 %v9043_v62  ;;  %10710 = vmatpush.bf16.msra.mxu2 %v17384_v29  ;;  %v9048_v29 = vpack.c.bf16 %v9025_v58, %v9025_v58  ;;  %v17437_v51 = vld [vmem:[%s18463_s3 + $0x8] sm:$0xff] }
 0x4ff   :  { %10742 = vmatpush.bf16.msra.mxu3 %v17415_v39  ;;  %v17424_v39 = vld [vmem:[%s18462_s2 + $0x540] sm:$0xff]  ;;  %v8976_v0 = vadd.f32 %v18351_v52, %v8963_v25 }
 0x500   :  { %10723 = vmatpush.bf16.msrb.mxu0 %v17392_v43  ;;  %v10517_v24 = vpop.f32.mrf.mxu0 }
 0x501   :  { %10730 = vmatpush.bf16.msra.mxu1 %v17406_v22  ;;  %10711 = vmatmul.bf16.vlgmr.msra.gmra.mxu2 %v9044_v36  ;;  %v8988_v41 = vpop.f32.mrf.mxu3  ;;  %v8977_v14 = vpop.f32.mrf.mxu1  ;;  %v17432_v22 = vld [vmem:[%s18462_s2 + $0x580] sm:$0xff] }
 0x502   :  { %10755 = vmatpush.bf16.msrb.mxu2 %v17423_v48  ;;  %v8989_v44 = vadd.f32 %v8988_v41, %v8976_v0 }
 0x503   :  { %10743 = vmatpush.bf16.msra.mxu3 %v17414_v3  ;;  %10724 = vmatmul.bf16.vlgmr.msrb.gmra.mxu0 %v9045_v10 }
 0x504   :  { %10768 = vmatpush.bf16.msra.mxu0 %v17431_v60  ;;  %v10504_v59 = vpop.f32.mrf.mxu2  ;;  %v9002_v2 = vadd.f32 %v18314_v55, %v8989_v44 }
 0x505   :  { %10731 = vmatpush.bf16.msra.mxu1 %v17405_v40  ;;  %v10518_v1 = vadd.f32 %v10517_v24, %v10504_v59 }
 0x506   :  { %10756 = vmatpush.bf16.msrb.mxu2 %v17422_v19  ;;  %v9027_v3 = vmax.f32 %v9002_v2, 0.0 }
 0x507   :  { %10744 = vmatpush.bf16.msra.mxu3 %v17413_v31 }
 0x508   :  { %10769 = vmatpush.bf16.msra.mxu0 %v17430_v11  ;;  %v10519_v28 = vpop.f32.mrf.mxu0  ;;  %v9050_v19 = vpack.c.bf16 %v9027_v3, %v9027_v3 }
 0x509   :  { %10732 = vmatpush.bf16.msra.mxu1 %v17404_v12  ;;  %v8990_v17 = vpop.f32.mrf.mxu3  ;;  %v10802_v28 = vld [vmem:[%s18463_s3 + $0x18] sm:$0x1] }
 0x50a   :  { %10757 = vmatpush.bf16.msrb.mxu2 %v17421_v37  ;;  %v10816_v17 = vunpack.c.l.b16 %v10802_v28 }
 0x50b   :  { %10745 = vmatpush.bf16.msra.mxu3 %v17412_v8 }
 0x50c   :  { %10770 = vmatpush.bf16.msra.mxu0 %v17429_v26  ;;  %v10506_v49 = vpop.f32.mrf.mxu2  ;;  %v10820_v47 = vpack.c.b16 %v10816_v17, %v10816_v17 }
 0x50d   :  { %10733 = vmatpush.bf16.msra.mxu1 %v17403_v35 }
 0x50e   :  { %10758 = vmatpush.bf16.msrb.mxu2 %v17420_v30  ;;  %v10830_v49 = vsel %vm10828_vm2, %v10820_v47, 0 }
 0x50f   :  { %10746 = vmatpush.bf16.msra.mxu3 %v17411_v23 }
 0x510   :  { %10771 = vmatpush.bf16.msra.mxu0 %v17428_v13 }
 0x511   :  { %10734 = vmatpush.bf16.msra.mxu1 %v17402_v20 }
 0x512   :  { %10759 = vmatpush.bf16.msrb.mxu2 %v17419_v15 }
 0x513   :  { %10747 = vmatpush.bf16.msra.mxu3 %v17410_v21 }
 0x514   :  { %10772 = vmatpush.bf16.msra.mxu0 %v17427_v63 }
 0x515   :  { %10735 = vmatpush.bf16.msra.mxu1 %v17401_v33 }
 0x516   :  { %10760 = vmatpush.bf16.msrb.mxu2 %v17418_v32 }
 0x517   :  { %10748 = vmatpush.bf16.msra.mxu3 %v17409_v27 }
 0x518   :  { %10773 = vmatpush.bf16.msra.mxu0 %v17426_v46 }
 0x519   :  { %10736 = vmatpush.bf16.msra.mxu1 %v17400_v7  ;;  %v10530_v62 = vpop.f32.mrf.mxu1 }
 0x51a   :  { %10761 = vmatpush.bf16.msrb.mxu2 %v17417_v34  ;;  %v10531_v48 = vadd.f32 %v10530_v62, %v10518_v1 }
 0x51b   :  { %10749 = vmatpush.bf16.msra.mxu3 %v17408_v16  ;;  %v17438_v16 = vld [vmem:[%s18463_s3 + $0x10] sm:$0xff] }
 0x51c   :  { %10774 = vmatpush.bf16.msra.mxu0 %v17425_v45  ;;  %10737 = vmatmul.bf16.vlgmr.msra.gmra.mxu1 %v9046_v57  ;;  %v17436_v57 = vld [vmem:[%s18463_s3] sm:$0xff] }
 0x51d   :  { %10785 = vmatpush.bf16.msrb.mxu1 %v17435_v61 }
 0x51e   :  { %10750 = vmatmul.bf16.vlgmr.msra.gmra.mxu3 %v9047_v9  ;;  %10762 = vmatpush.bf16.msrb.mxu2 %v17416_v6 }
 0x51f   :  { %10836 = vmatpush.bf16.msrb.mxu3 %v10830_v49 }
 0x520   :  { %10775 = vmatpush.bf16.msra.mxu0 %v17424_v39  ;;  %v10569_v42 = vpop.f32.mrf.mxu0 }
 0x521   :  { %10786 = vmatpush.bf16.msrb.mxu1 %v17434_v53  ;;  %10763 = vmatmul.bf16.vlgmr.msrb.gmra.mxu2 %v9048_v29  ;;  %v10543_v43 = vpop.f32.mrf.mxu3  ;;  %v10532_v36 = vpop.f32.mrf.mxu1 }
 0x522   :  { %v10544_v60 = vadd.f32 %v10543_v43, %v10531_v48 }
 0x523   :  { %10776 = vmatmul.bf16.vlgmr.msra.gmra.mxu0 %v9049_v18  ;;  %10837 = vmatpush.bf16.msrb.mxu3 %v17438_v16 }
 0x524   :  { %v10556_v40 = vpop.f32.mrf.mxu2 }
 0x525   :  { %10787 = vmatpush.bf16.msrb.mxu1 %v17433_v38  ;;  %v10557_v31 = vadd.f32 %v10556_v40, %v10544_v60 }
 0x527   :  { %v10570_v4 = vadd.f32 %v10569_v42, %v10557_v31  ;;  %10838 = vmatpush.bf16.msrb.mxu3 %v17437_v51 }
 0x528   :  { %v10571_v55 = vpop.f32.mrf.mxu0 }
 0x529   :  { %10788 = vmatpush.bf16.msrb.mxu1 %v17432_v22  ;;  %v10545_v10 = vpop.f32.mrf.mxu3 }
 0x52b   :  { %10839 = vmatpush.bf16.msrb.mxu3 %v17436_v57 }
 0x52c   :  { %16115 = vmatmul.msk.bf16.vlgmr.msrb.gmra.mxu1 %vm10491_vm1, %v9050_v19  ;;  %v10558_v11 = vpop.f32.mrf.mxu2 }
 0x539   :  { %v10582_v52 = vpop.f32.mrf.mxu1 }
 0x53a   :  { %v10583_v37 = vadd.f32 %v10582_v52, %v10570_v4 }
 0x540   :  { %v10621_v8 = vpop.f32.mrf.mxu0 }
 0x541   :  { %v10595_v12 = vpop.f32.mrf.mxu3  ;;  %v10584_v30 = vpop.f32.mrf.mxu1 }
 0x542   :  { %v10596_v26 = vadd.f32 %v10595_v12, %v10583_v37 }
 0x544   :  { %v10608_v35 = vpop.f32.mrf.mxu2 }
 0x545   :  { %v10609_v23 = vadd.f32 %v10608_v35, %v10596_v26 }
 0x547   :  { %v10622_v41 = vadd.f32 %v10621_v8, %v10609_v23 }
 0x548   :  { %v10623_v13 = vpop.f32.mrf.mxu0 }
 0x549   :  { %v10597_v24 = vpop.f32.mrf.mxu3 }
 0x54c   :  { %v10610_v14 = vpop.f32.mrf.mxu2 }
 0x559   :  { %v10634_v15 = vpop.f32.mrf.mxu1 }
 0x55a   :  { %v10635_v56 = vadd.f32 %v10634_v15, %v10622_v41 }
 0x560   :  { %v10673_v20 = vpop.f32.mrf.mxu0 }
 0x561   :  { %v10647_v59 = vpop.f32.mrf.mxu3  ;;  %v10636_v21 = vpop.f32.mrf.mxu1 }
 0x562   :  { %v10648_v45 = vadd.f32 %v10647_v59, %v10635_v56 }
 0x564   :  { %v10660_v1 = vpop.f32.mrf.mxu2 }
 0x565   :  { %v10661_v6 = vadd.f32 %v10660_v1, %v10648_v45 }
 0x567   :  { %v10674_v58 = vadd.f32 %v10673_v20, %v10661_v6 }
 0x568   :  { %v10675_v32 = vpop.f32.mrf.mxu0 }
 0x569   :  { %v10649_v63 = vpop.f32.mrf.mxu3 }
 0x56c   :  { %v10662_v33 = vpop.f32.mrf.mxu2 }
 0x579   :  { %v10686_v27 = vpop.f32.mrf.mxu1 }
 0x57a   :  { %v10687_v25 = vadd.f32 %v10686_v27, %v10674_v58 }
 0x580   :  { %v10725_v34 = vpop.f32.mrf.mxu0 }
 0x581   :  { %v10699_v46 = vpop.f32.mrf.mxu3  ;;  %v10688_v7 = vpop.f32.mrf.mxu1 }
 0x582   :  { %v10700_v39 = vadd.f32 %v10699_v46, %v10687_v25 }
 0x584   :  { %v10712_v54 = vpop.f32.mrf.mxu2 }
 0x585   :  { %v10713_v53 = vadd.f32 %v10712_v54, %v10700_v39 }
 0x587   :  { %v10726_v0 = vadd.f32 %v10725_v34, %v10713_v53 }
 0x588   :  { %v10727_v50 = vpop.f32.mrf.mxu0 }
 0x589   :  { %v10701_v61 = vpop.f32.mrf.mxu3 }
 0x58c   :  { %v10714_v9 = vpop.f32.mrf.mxu2 }
 0x599   :  { %v10738_v5 = vpop.f32.mrf.mxu1 }
 0x59a   :  { %v10739_v29 = vadd.f32 %v10738_v5, %v10726_v0 }
 0x5a0   :  { %v10777_v44 = vpop.f32.mrf.mxu0 }
 0x5a1   :  { %v10751_v38 = vpop.f32.mrf.mxu3  ;;  %v10740_v62 = vpop.f32.mrf.mxu1 }
 0x5a2   :  { %v10752_v18 = vadd.f32 %v10751_v38, %v10739_v29 }
 0x5a4   :  { %v10764_v2 = vpop.f32.mrf.mxu2 }
 0x5a5   :  { %v10765_v48 = vadd.f32 %v10764_v2, %v10752_v18 }
 0x5a7   :  { %v10778_v43 = vadd.f32 %v10777_v44, %v10765_v48 }
 0x5a8   :  { %v10779_v22 = vpop.f32.mrf.mxu0 }
 0x5a9   :  { %v10753_v3 = vpop.f32.mrf.mxu3  ;;  %v10790_v42 = vpop.f32.mrf.mxu1 }
 0x5aa   :  { %v10791_v60 = vadd.f32 %v10790_v42, %v10778_v43 }
 0x5ac   :  { %v10766_v36 = vpop.f32.mrf.mxu2  ;;  %v10794_v19 = vmax.f32 %v10791_v60, 0.0 }
 0x5ae   :  { %v10795_v40 = vpack.c.bf16 %v10794_v19, %v10794_v19 }
 0x5b0   :  { %16128 = vmatmul.msk.bf16.vlgmr.msrb.gmra.mxu3 %vm10824_vm3, %v10795_v40 }
 0x5b1   :  { %v10792_v31 = vpop.f32.mrf.mxu1 }
 0x633   :  { %v10841_v4 = vpop.f32.mrf.mxu3 }
 0x634   :  { %v10846_v10 = vsel %vm10845_vm4, %v10841_v4, -inf }
 0x635   :  { %10847 = vmax.xlane.f32.xlu0 %v10846_v10 }
 0x63b   :  { %v10843_v55 = vpop.f32.mrf.mxu3 }
 0x6a8   :  { %v10848_v11 = vpop.xlane.xlu0 %10847 }
 0x6a9   :  { %v10849_v52 = vsub.f32 %v10841_v4, %v10848_v11 }
 0x6ab   :  { %v10850_v37 = vmul.f32 1.442695, %v10849_v52 }
 0x6ad   :  { %17442 = vpow2.f32 %v10850_v37 }
 0x6b3   :  { %v17443_v12 = vpop.eup %17442 }
 0x6b4   :  { %v10852_v8 = vsel %vm10845_vm4, %v17443_v12, 0.0 }
 0x6b5   :  { %10853 = vadd.xlane.f32.xlu0 %v10852_v8 }
 0x728   :  { %v10854_v26 = vpop.xlane.xlu0 %10853 }
 0x729   :  { %17444 = vlog2.f32 %v10854_v26 }
 0x72f   :  { %v17445_v30 = vpop.eup %17444 }
 0x730   :  { %v10856_v35 = vmul.f32 0.6931472, %v17445_v30 }
 0x732   :  { %v10857_v23 = vsub.f32 %v10849_v52, %v10856_v35 }
 0x734   :  { %10858 = vst.msk [vmem:[%s18464_s4] sm:$0xff] %vm10845_vm4, %v10857_v23 }
 0x735   :  { %10863 = vsyncpa [#allocation3], 1 }

</bundles_post_ra>
